<compile_context>
chip_gen: v6e
topology: v6e:2x2x1
jax: 0.10.0
libtpu: 0.0.40
codegen_flags: <defaults>
</compile_context>

<pallas_src>
import functools
import math

import jax
import jax.numpy as jnp
from jax.experimental import pallas as pl
from jax.experimental.pallas import tpu as pltpu

BN_EPS = 1e-5


def _round_up(x, m):
    return ((x + m - 1) // m) * m


@functools.lru_cache(maxsize=None)
def _vmem_limit_bytes():
    # Generation-aware budget: v5e/v6e have 128 MiB VMEM, v7x only 64 MiB/TC.
    try:
        cap = int(pltpu.get_tpu_info().vmem_capacity_bytes)
    except Exception:
        cap = 64 * 1024 * 1024
    return int(min(cap * 3 // 4, 96 * 1024 * 1024))


def _compiler_params(semantics):
    return pltpu.CompilerParams(
        dimension_semantics=semantics, vmem_limit_bytes=_vmem_limit_bytes()
    )


# ----------------------------------------------------------------------------
# Pass-1 kernels: conv matmul + partial BatchNorm statistics
# ----------------------------------------------------------------------------
def _band_conv_kernel(x_ref, w_ref, mask_ref, y_ref, sum_ref, sq_ref, *, offsets):
    """Direct 3x3 stride-1 conv on one image: 9 shifted matmuls, f32 accumulate.

    x_ref:    (1, Mext, Cin)  bf16  flattened, padded + edge-extended image
    w_ref:    (9, Cin, Coutp) bf16
    mask_ref: (Mb, 1)         f32   1.0 at valid output columns, 0.0 at pad cols
    y_ref:    (1, Mb, Coutp)  bf16  pre-BN conv output (band layout)
    sum/sq:   (1, 1, Coutp)   f32   per-image masked partial BN statistics
    """
    mb = y_ref.shape[1]
    cout = y_ref.shape[2]
    acc = jnp.zeros((mb, cout), jnp.float32)
    for idx, off in enumerate(offsets):  # static unroll over the 9 taps
        xw = x_ref[0, off:off + mb, :]
        acc = acc + jnp.dot(xw, w_ref[idx], preferred_element_type=jnp.float32)
    m = mask_ref[...]
    am = acc * m
    y_ref[0] = acc.astype(y_ref.dtype)
    sum_ref[...] = jnp.sum(am, axis=0, keepdims=True).reshape(1, 1, cout)
    sq_ref[...] = jnp.sum(acc * am, axis=0, keepdims=True).reshape(1, 1, cout)


def _im2col_conv_kernel(p_ref, w_ref, y_ref, sum_ref, sq_ref):
    """Tiled im2col matmul (bf16 in, f32 acc) + per-tile BN partial statistics.

    Zero-padded rows / K columns contribute exactly 0 to both sums.
    """
    acc = jnp.dot(p_ref[...], w_ref[...], preferred_element_type=jnp.float32)
    cout = acc.shape[1]
    y_ref[...] = acc.astype(y_ref.dtype)
    sum_ref[...] = jnp.sum(acc, axis=0, keepdims=True).reshape(1, 1, cout)
    sq_ref[...] = jnp.sum(acc * acc, axis=0, keepdims=True).reshape(1, 1, cout)


def _band_max_kernel(x_ref, o_ref, *, offsets):
    """3x3 window max via shifted slices (used for MaxPool, stride applied later)."""
    mb = o_ref.shape[1]
    r = x_ref[0, offsets[0]:offsets[0] + mb, :]
    for off in offsets[1:]:
        r = jnp.maximum(r, x_ref[0, off:off + mb, :])
    o_ref[0] = r


# ----------------------------------------------------------------------------
# Pass-2 kernels: BatchNorm normalize (+ residual) (+ ReLU)
# ----------------------------------------------------------------------------
def _bn_stats(sum_ref, sq_ref, count, eps):
    # NOTE: E[x^2]-E[x]^2 in f32; fine for fresh-init activations (review-noted).
    inv_n = 1.0 / count
    mean = jnp.sum(sum_ref[...], axis=0) * inv_n       # (1, Coutp)
    ex2 = jnp.sum(sq_ref[...], axis=0) * inv_n
    var = ex2 - mean * mean
    return mean, jax.lax.rsqrt(var + eps)


def _bn_act_kernel(y_ref, sum_ref, sq_ref, o_ref, *, count, eps, relu):
    mean, inv = _bn_stats(sum_ref, sq_ref, count, eps)
    y = (y_ref[0].astype(jnp.float32) - mean) * inv
    if relu:
        y = jnp.maximum(y, 0.0)
    o_ref[0] = y.astype(o_ref.dtype)


def _bn_add_relu_kernel(y_ref, sum_ref, sq_ref, r_ref, o_ref, *, count, eps):
    mean, inv = _bn_stats(sum_ref, sq_ref, count, eps)
    y = (y_ref[0].astype(jnp.float32) - mean) * inv
    y = y + r_ref[0].astype(jnp.float32)
    o_ref[0] = jnp.maximum(y, 0.0).astype(o_ref.dtype)


# ----------------------------------------------------------------------------
# Small whole-array kernels (head)
# ----------------------------------------------------------------------------
def _avgpool_kernel(x_ref, o_ref):
    o_ref[...] = jnp.mean(x_ref[...].astype(jnp.float32), axis=1)


def _linear_kernel(x_ref, w_ref, b_ref, o_ref):
    o_ref[...] = (
        jnp.dot(x_ref[...], w_ref[...], preferred_element_type=jnp.float32)
        + b_ref[...]
    )


def _pcall(kernel, out_shape, out_dtype, *arrs):
    in_specs = [
        pl.BlockSpec(a.shape, (lambda i, nd=a.ndim: (0,) * nd)) for a in arrs
    ]
    out_spec = pl.BlockSpec(out_shape, (lambda i, nd=len(out_shape): (0,) * nd))
    return pl.pallas_call(
        kernel,
        out_shape=jax.ShapeDtypeStruct(out_shape, out_dtype),
        grid=(1,),
        in_specs=in_specs,
        out_specs=out_spec,
        compiler_params=_compiler_params(("arbitrary",)),
    )(*arrs)


# ----------------------------------------------------------------------------
# Pass-2 wrapper (shared by band and im2col paths)
# ----------------------------------------------------------------------------
def _conv_pass2(y3d, s, sq, count, relu, residual3d=None):
    """BN (batch stats) [+ residual add] [+ ReLU] over (G, M, C) tiles, bf16 out."""
    g, mtile, c = y3d.shape
    tile_spec = pl.BlockSpec((1, mtile, c), lambda i: (i, 0, 0))
    stat_spec = pl.BlockSpec(s.shape, lambda i: (0, 0, 0))
    in_specs = [tile_spec, stat_spec, stat_spec]
    args = [y3d, s, sq]
    if residual3d is None:
        kern = functools.partial(_bn_act_kernel, count=count, eps=BN_EPS, relu=relu)
    else:
        kern = functools.partial(_bn_add_relu_kernel, count=count, eps=BN_EPS)
        in_specs.append(tile_spec)
        args.append(residual3d)
    return pl.pallas_call(
        kern,
        out_shape=jax.ShapeDtypeStruct((g, mtile, c), jnp.bfloat16),
        grid=(g,),
        in_specs=in_specs,
        out_specs=tile_spec,
        compiler_params=_compiler_params(("parallel",)),
    )(*args)


# ----------------------------------------------------------------------------
# Stride-1 3x3 conv + BN (band / shifted-matmul path, no im2col)
# ----------------------------------------------------------------------------
def conv3x3_bn_band(x, w_oihw, relu, residual=None):
    n, h, w, cin = x.shape
    cout = w_oihw.shape[0]
    coutp = _round_up(cout, 128)
    wp = w + 2
    mb = h * wp

    x = x.astype(jnp.bfloat16)
    # (N, Hp, Wp, Cin) -> flatten -> extend by pw rows so every shifted read is
    # in range.  Built once per conv (~1x input traffic), no 9x patch blow-up.
    xp = jnp.pad(x, ((0, 0), (1, 1), (1, 1), (0, 0)))
    x_ext = jnp.pad(xp.reshape(n, (h + 2) * wp, cin), ((0, 0), (1, 1), (0, 0)))
    mext = x_ext.shape[1]

    # Weights (kh*kw, Cin, Coutp), Cout zero-padded for lane-dense stores.
    wmat = jnp.transpose(w_oihw, (2, 3, 1, 0)).reshape(9, cin, cout)
    wmat = jnp.pad(wmat, ((0, 0), (0, 0), (0, coutp - cout))).astype(jnp.bfloat16)

    # Valid-column mask: horizontal pad columns must not pollute BN statistics.
    col = jnp.arange(mb, dtype=jnp.int32) % wp
    mask = ((col >= 1) & (col < 1 + w)).astype(jnp.float32).reshape(mb, 1)

    offsets = tuple(dy * wp + dx for dy in range(3) for dx in range(3))

    y, s, sq = pl.pallas_call(
        functools.partial(_band_conv_kernel, offsets=offsets),
        out_shape=(
            jax.ShapeDtypeStruct((n, mb, coutp), jnp.bfloat16),
            jax.ShapeDtypeStruct((n, 1, coutp), jnp.float32),
            jax.ShapeDtypeStruct((n, 1, coutp), jnp.float32),
        ),
        grid=(n,),
        in_specs=[
            pl.BlockSpec((1, mext, cin), lambda i: (i, 0, 0)),
            pl.BlockSpec((9, cin, coutp), lambda i: (0, 0, 0)),
            pl.BlockSpec((mb, 1), lambda i: (0, 0)),
        ],
        out_specs=(
            pl.BlockSpec((1, mb, coutp), lambda i: (i, 0, 0)),
            pl.BlockSpec((1, 1, coutp), lambda i: (i, 0, 0)),
            pl.BlockSpec((1, 1, coutp), lambda i: (i, 0, 0)),
        ),
        compiler_params=_compiler_params(("parallel",)),
        cost_estimate=pl.CostEstimate(
            flops=2 * n * mb * 9 * cin * coutp,
            transcendentals=0,
            bytes_accessed=int(x_ext.size * 2 + wmat.size * 2 + n * mb * coutp * 2),
        ),
    )(x_ext, wmat, mask)

    res_band = None
    if residual is not None:
        # Residual in band layout, bf16, zero pad columns / channels (no f32 cast).
        res_band = jnp.pad(
            residual.astype(jnp.bfloat16),
            ((0, 0), (0, 0), (1, 1), (0, coutp - cout)),
        ).reshape(n, mb, coutp)

    out = _conv_pass2(y, s, sq, float(n * h * w), relu, residual3d=res_band)
    # band -> valid: (N, H, Wp, Coutp) -> (N, H, W, Cout)
    return out.reshape(n, h, wp, coutp)[:, :, 1:1 + w, :cout]


# ----------------------------------------------------------------------------
# Strided convs + BN (tiled im2col matmul path)
# ----------------------------------------------------------------------------
def _extract_patches(x, kh, kw, stride, padding):
    n, h, w, c = x.shape
    ho = (h + 2 * padding - kh) // stride + 1
    wo = (w + 2 * padding - kw) // stride + 1
    xp = jnp.pad(x, ((0, 0), (padding, padding), (padding, padding), (0, 0)))
    slices = []
    for dy in range(kh):
        for dx in range(kw):
            slices.append(
                xp[:, dy:dy + stride * ho:stride, dx:dx + stride * wo:stride, :]
            )
    return jnp.stack(slices, axis=3), ho, wo  # (N, Ho, Wo, kh*kw, C)


def conv_bn_im2col(x, w_oihw, stride, padding, relu):
    n, h, w, cin = x.shape
    cout, _, kh, kw = w_oihw.shape
    coutp = _round_up(cout, 128)
    x = x.astype(jnp.bfloat16)
    patches, ho, wo = _extract_patches(x, kh, kw, stride, padding)
    m = n * ho * wo
    k = kh * kw * cin
    kp = _round_up(k, 128)  # lane/sublane-aligned contraction (stem K=147 -> 256)

    p2d = patches.reshape(m, k)
    if kp != k:
        p2d = jnp.pad(p2d, ((0, 0), (0, kp - k)))
    tm = min(512, _round_up(m, 128))
    m_pad = _round_up(m, tm)
    if m_pad != m:
        p2d = jnp.pad(p2d, ((0, m_pad - m), (0, 0)))
    grid_m = m_pad // tm

    wmat = jnp.transpose(w_oihw, (2, 3, 1, 0)).reshape(k, cout).astype(jnp.bfloat16)
    wmat = jnp.pad(wmat, ((0, kp - k), (0, coutp - cout)))

    y, s, sq = pl.pallas_call(
        _im2col_conv_kernel,
        out_shape=(
            jax.ShapeDtypeStruct((m_pad, coutp), jnp.bfloat16),
            jax.ShapeDtypeStruct((grid_m, 1, coutp), jnp.float32),
            jax.ShapeDtypeStruct((grid_m, 1, coutp), jnp.float32),
        ),
        grid=(grid_m,),
        in_specs=[
            pl.BlockSpec((tm, kp), lambda i: (i, 0)),
            pl.BlockSpec((kp, coutp), lambda i: (0, 0)),
        ],
        out_specs=(
            pl.BlockSpec((tm, coutp), lambda i: (i, 0)),
            pl.BlockSpec((1, 1, coutp), lambda i: (i, 0, 0)),
            pl.BlockSpec((1, 1, coutp), lambda i: (i, 0, 0)),
        ),
        compiler_params=_compiler_params(("parallel",)),
        cost_estimate=pl.CostEstimate(
            flops=2 * m_pad * kp * coutp,
            transcendentals=0,
            bytes_accessed=int(p2d.size * 2 + wmat.size * 2 + m_pad * coutp * 2),
        ),
    )(p2d, wmat)

    out = _conv_pass2(y.reshape(grid_m, tm, coutp), s, sq, float(m), relu)
    return out.reshape(m_pad, coutp)[:m, :cout].reshape(n, ho, wo, cout)


# ----------------------------------------------------------------------------
# MaxPool 3x3 / stride 2 / pad 1 (shifted window max, no patch blow-up)
# ----------------------------------------------------------------------------
def maxpool_3x3_s2_p1(x):
    n, h, w, c = x.shape
    wp = w + 2
    mb = h * wp
    xp = jnp.pad(x, ((0, 0), (1, 1), (1, 1), (0, 0)), constant_values=-jnp.inf)
    x_ext = jnp.pad(
        xp.reshape(n, (h + 2) * wp, c), ((0, 0), (1, 1), (0, 0)),
        constant_values=-jnp.inf,
    )
    mext = x_ext.shape[1]
    offsets = tuple(dy * wp + dx for dy in range(3) for dx in range(3))
    out = pl.pallas_call(
        functools.partial(_band_max_kernel, offsets=offsets),
        out_shape=jax.ShapeDtypeStruct((n, mb, c), x.dtype),
        grid=(n,),
        in_specs=[pl.BlockSpec((1, mext, c), lambda i: (i, 0, 0))],
        out_specs=pl.BlockSpec((1, mb, c), lambda i: (i, 0, 0)),
        compiler_params=_compiler_params(("parallel",)),
    )(x_ext)
    out = out.reshape(n, h, wp, c)[:, :, 1:1 + w, :]  # drop pad columns
    return out[:, ::2, ::2, :]                        # stride-2 decimation


# ----------------------------------------------------------------------------
# Network
# ----------------------------------------------------------------------------
def residual_block(x, blk):
    stride = blk["stride"]
    if stride == 1:
        left = conv3x3_bn_band(x, blk["w1"], relu=True)
        right = x  # nn.Identity
    else:
        left = conv_bn_im2col(x, blk["w1"], stride, 1, relu=True)
        right = conv_bn_im2col(x, blk["w_skip"], stride, 0, relu=False)
    # Second conv: BN + residual add + ReLU fused in the pass-2 epilogue.
    return conv3x3_bn_band(left, blk["w2"], relu=True, residual=right)


def resnet_forward(params, x_nchw):
    x = jnp.transpose(x_nchw, (0, 2, 3, 1)).astype(jnp.bfloat16)  # NCHW -> NHWC
    # in_layers: Conv7x7/2 + BN + ReLU + MaxPool3x3/2
    x = conv_bn_im2col(x, params["stem_w"], stride=2, padding=3, relu=True)
    x = maxpool_3x3_s2_p1(x)
    # residual groups
    for blocks in params["groups"]:
        for blk in blocks:
            x = residual_block(x, blk)
    # out_layers: AveragePool (mean over H,W) + Flatten + Linear
    n, h, w, c = x.shape
    pooled = _pcall(_avgpool_kernel, (n, c), jnp.float32, x.reshape(n, h * w, c))
    n_classes = params["fc_w"].shape[0]
    logits = _pcall(
        _linear_kernel,
        (n, n_classes),
        jnp.float32,
        pooled,
        params["fc_w"].T,
        params["fc_b"].reshape(1, n_classes),
    )
    return logits


# ----------------------------------------------------------------------------
# Deterministic parameter initialization (matches shapes of the nn.Module)
# ----------------------------------------------------------------------------
def _kaiming_normal_fan_out(key, shape):
    cout, _, kh, kw = shape
    std = math.sqrt(2.0 / (cout * kh * kw))
    return std * jax.random.normal(key, shape, dtype=jnp.float32)


def init_resnet_params(
    key, n_blocks_per_group, out_features_per_group, first_strides_per_group, n_classes
):
    assert (
        len(n_blocks_per_group)
        == len(out_features_per_group)
        == len(first_strides_per_group)
    )
    params = {}
    key, k_stem = jax.random.split(key)
    params["stem_w"] = _kaiming_normal_fan_out(k_stem, (64, 3, 7, 7))

    groups = []
    in_feats = 64
    for n_blocks, out_feats, first_stride in zip(
        n_blocks_per_group, out_features_per_group, first_strides_per_group
    ):
        blocks = []
        for b in range(n_blocks):
            stride = first_stride if b == 0 else 1
            cin = in_feats if b == 0 else out_feats
            key, k1, k2, k3 = jax.random.split(key, 4)
            blk = {
                "stride": stride,
                "w1": _kaiming_normal_fan_out(k1, (out_feats, cin, 3, 3)),
                "w2": _kaiming_normal_fan_out(k2, (out_feats, out_feats, 3, 3)),
            }
            if stride != 1:
                blk["w_skip"] = _kaiming_normal_fan_out(k3, (out_feats, cin, 1, 1))
            blocks.append(blk)
        groups.append(blocks)
        in_feats = out_feats
    params["groups"] = groups

    key, kw, kb = jax.random.split(key, 3)
    params["fc_w"] = 0.02 * jax.random.normal(kw, (n_classes, in_feats), jnp.float32)
    params["fc_b"] = 0.02 * jax.random.normal(kb, (n_classes,), jnp.float32)
    return params


# ----------------------------------------------------------------------------
# Demo
# ----------------------------------------------------------------------------
if __name__ == "__main__":
    key = jax.random.PRNGKey(0)
    k_params, k_x = jax.random.split(key)

    # Small ResNet: 2 groups, 1 block each, second group downsamples.
    n_blocks_per_group = [1, 1]
    out_features_per_group = [64, 64]
    first_strides_per_group = [1, 2]
    n_classes = 10

    params = init_resnet_params(
        k_params,
        n_blocks_per_group,
        out_features_per_group,
        first_strides_per_group,
        n_classes,
    )

    # Input matches PyTorch NCHW convention: (batch=2, channels=3, 32, 32).
    x = jax.random.normal(k_x, (2, 3, 32, 32), dtype=jnp.float32)

    fwd = jax.jit(functools.partial(resnet_forward, params))
    logits = fwd(x)
    jax.block_until_ready(logits)
    assert logits.shape == (2, n_classes), logits.shape
    print("KERNEL_OK")
</pallas_src>

<mosaic_0001>
module attributes {stable_mosaic.version = 11 : i64} {
  func.func @_bn_act_kernel(%arg0: i32, %arg1: memref<1x512x128xbf16, #tpu.memory_space<vmem>>, %arg2: memref<1x1x128xf32, #tpu.memory_space<vmem>>, %arg3: memref<1x1x128xf32, #tpu.memory_space<vmem>>, %arg4: memref<1x512x128xbf16, #tpu.memory_space<vmem>>) attributes {dimension_semantics = [#tpu.dimension_semantics<parallel>], iteration_bounds = array<i64: 1>, scalar_prefetch = 0 : i64, scratch_operands = 0 : i64, tpu.core_type = #tpu.core_type<tc>, window_params = [{transform_indices = @transform_0, window_bounds = array<i64: 1, 512, 128>}, {pipeline_mode = #tpu.pipeline_mode<synchronous>, transform_indices = @transform_1, window_bounds = array<i64: 1, 1, 128>}, {pipeline_mode = #tpu.pipeline_mode<synchronous>, transform_indices = @transform_2, window_bounds = array<i64: 1, 1, 128>}, {transform_indices = @transform_3, window_bounds = array<i64: 1, 512, 128>}]} {
    %c0 = arith.constant 0 : index
    %c0_0 = arith.constant 0 : index
    %c0_1 = arith.constant 0 : index
    %0 = vector.load %arg2[%c0, %c0_0, %c0_1] : memref<1x1x128xf32, #tpu.memory_space<vmem>>, vector<1x1x128xf32>
    %cst = arith.constant dense<0.000000e+00> : vector<1x128xf32>
    %1 = vector.multi_reduction <add>, %0, %cst [0] : vector<1x1x128xf32> to vector<1x128xf32>
    %cst_2 = arith.constant 0.001953125 : f32
    %2 = vector.broadcast %cst_2 : f32 to vector<1x128xf32>
    %3 = arith.mulf %1, %2 : vector<1x128xf32>
    %c0_3 = arith.constant 0 : index
    %c0_4 = arith.constant 0 : index
    %c0_5 = arith.constant 0 : index
    %4 = vector.load %arg3[%c0_3, %c0_4, %c0_5] : memref<1x1x128xf32, #tpu.memory_space<vmem>>, vector<1x1x128xf32>
    %cst_6 = arith.constant dense<0.000000e+00> : vector<1x128xf32>
    %5 = vector.multi_reduction <add>, %4, %cst_6 [0] : vector<1x1x128xf32> to vector<1x128xf32>
    %cst_7 = arith.constant 0.001953125 : f32
    %6 = vector.broadcast %cst_7 : f32 to vector<1x128xf32>
    %7 = arith.mulf %5, %6 : vector<1x128xf32>
    %8 = arith.mulf %3, %3 : vector<1x128xf32>
    %9 = arith.subf %7, %8 : vector<1x128xf32>
    %cst_8 = arith.constant 9.99999974E-6 : f32
    %10 = vector.broadcast %cst_8 : f32 to vector<1x128xf32>
    %11 = arith.addf %9, %10 : vector<1x128xf32>
    %12 = math.rsqrt %11 : vector<1x128xf32>
    %c0_9 = arith.constant 0 : index
    %c0_10 = arith.constant 0 : index
    %c0_11 = arith.constant 0 : index
    %13 = vector.load %arg1[%c0_9, %c0_10, %c0_11] : memref<1x512x128xbf16, #tpu.memory_space<vmem>>, vector<1x512x128xbf16>
    %14 = vector.shape_cast %13 : vector<1x512x128xbf16> to vector<512x128xbf16>
    %15 = arith.extf %14 : vector<512x128xbf16> to vector<512x128xf32>
    %16 = vector.broadcast %3 : vector<1x128xf32> to vector<512x128xf32>
    %17 = arith.subf %15, %16 : vector<512x128xf32>
    %18 = vector.broadcast %12 : vector<1x128xf32> to vector<512x128xf32>
    %19 = arith.mulf %17, %18 : vector<512x128xf32>
    %cst_12 = arith.constant 0.000000e+00 : f32
    %20 = vector.broadcast %cst_12 : f32 to vector<512x128xf32>
    %21 = arith.maximumf %19, %20 : vector<512x128xf32>
    %22 = arith.truncf %21 : vector<512x128xf32> to vector<512x128xbf16>
    %c0_13 = arith.constant 0 : index
    %c0_14 = arith.constant 0 : index
    %c0_15 = arith.constant 0 : index
    %23 = vector.load %arg4[%c0_13, %c0_14, %c0_15] : memref<1x512x128xbf16, #tpu.memory_space<vmem>>, vector<1x512x128xbf16>
    %24 = vector.shape_cast %23 : vector<1x512x128xbf16> to vector<512x128xbf16>
    %25 = vector.shape_cast %22 : vector<512x128xbf16> to vector<1x512x128xbf16>
    tpu.vector_store %arg4[%c0_13, %c0_14, %c0_15], %25 {strides = array<i32>} : memref<1x512x128xbf16, #tpu.memory_space<vmem>>, vector<1x512x128xbf16>,
    return
  }
  func.func @transform_0(%arg0: i32) -> (i32, i32, i32) {
    %c0_i32 = arith.constant 0 : i32
    %c0_i32_0 = arith.constant 0 : i32
    %c0_i32_1 = arith.constant 0 : i32
    return %arg0, %c0_i32, %c0_i32_0 : i32, i32, i32
  }
  func.func @transform_1(%arg0: i32) -> (i32, i32, i32) {
    %c0_i32 = arith.constant 0 : i32
    %c0_i32_0 = arith.constant 0 : i32
    %c0_i32_1 = arith.constant 0 : i32
    %c0_i32_2 = arith.constant 0 : i32
    return %c0_i32, %c0_i32_0, %c0_i32_1 : i32, i32, i32
  }
  func.func @transform_2(%arg0: i32) -> (i32, i32, i32) {
    %c0_i32 = arith.constant 0 : i32
    %c0_i32_0 = arith.constant 0 : i32
    %c0_i32_1 = arith.constant 0 : i32
    %c0_i32_2 = arith.constant 0 : i32
    return %c0_i32, %c0_i32_0, %c0_i32_1 : i32, i32, i32
  }
  func.func @transform_3(%arg0: i32) -> (i32, i32, i32) {
    %c0_i32 = arith.constant 0 : i32
    %c0_i32_0 = arith.constant 0 : i32
    %c0_i32_1 = arith.constant 0 : i32
    return %arg0, %c0_i32, %c0_i32_0 : i32, i32, i32
  }
}

module attributes {stable_mosaic.version = 11 : i64} {
  func.func @_im2col_conv_kernel(%arg0: i32, %arg1: memref<512x256xbf16, #tpu.memory_space<vmem>>, %arg2: memref<256x128xbf16, #tpu.memory_space<vmem>>, %arg3: memref<512x128xbf16, #tpu.memory_space<vmem>>, %arg4: memref<1x1x128xf32, #tpu.memory_space<vmem>>, %arg5: memref<1x1x128xf32, #tpu.memory_space<vmem>>) attributes {dimension_semantics = [#tpu.dimension_semantics<parallel>], iteration_bounds = array<i64: 1>, scalar_prefetch = 0 : i64, scratch_operands = 0 : i64, tpu.core_type = #tpu.core_type<tc>, window_params = [{transform_indices = @transform_0, window_bounds = array<i64: 512, 256>}, {pipeline_mode = #tpu.pipeline_mode<synchronous>, transform_indices = @transform_1, window_bounds = array<i64: 256, 128>}, {transform_indices = @transform_2, window_bounds = array<i64: 512, 128>}, {transform_indices = @transform_3, window_bounds = array<i64: 1, 1, 128>}, {transform_indices = @transform_4, window_bounds = array<i64: 1, 1, 128>}]} {
    %c0 = arith.constant 0 : index
    %c0_0 = arith.constant 0 : index
    %0 = vector.load %arg1[%c0, %c0_0] : memref<512x256xbf16, #tpu.memory_space<vmem>>, vector<512x256xbf16>
    %c0_1 = arith.constant 0 : index
    %c0_2 = arith.constant 0 : index
    %1 = vector.load %arg2[%c0_1, %c0_2] : memref<256x128xbf16, #tpu.memory_space<vmem>>, vector<256x128xbf16>
    %cst = arith.constant dense<0.000000e+00> : vector<512x128xf32>
    %2 = tpu.matmul %0, %1, %cst {dimension_numbers = #tpu.dot_dimension_numbers<[1], [0], [0], [1], [0, 0, 1, 1], [], []>} : vector<512x256xbf16>, vector<256x128xbf16>, vector<512x128xf32> -> vector<512x128xf32>
    %3 = arith.truncf %2 : vector<512x128xf32> to vector<512x128xbf16>
    %c0_3 = arith.constant 0 : index
    %c0_4 = arith.constant 0 : index
    %4 = vector.load %arg3[%c0_3, %c0_4] : memref<512x128xbf16, #tpu.memory_space<vmem>>, vector<512x128xbf16>
    tpu.vector_store %arg3[%c0_3, %c0_4], %3 {strides = array<i32>} : memref<512x128xbf16, #tpu.memory_space<vmem>>, vector<512x128xbf16>,
    %cst_5 = arith.constant dense<0.000000e+00> : vector<128xf32>
    %5 = vector.multi_reduction <add>, %2, %cst_5 [0] : vector<512x128xf32> to vector<128xf32>
    %6 = vector.shape_cast %5 : vector<128xf32> to vector<1x128xf32>
    %7 = vector.shape_cast %6 : vector<1x128xf32> to vector<1x1x128xf32>
    %c0_6 = arith.constant 0 : index
    %c0_7 = arith.constant 0 : index
    %c0_8 = arith.constant 0 : index
    %8 = vector.load %arg4[%c0_6, %c0_7, %c0_8] : memref<1x1x128xf32, #tpu.memory_space<vmem>>, vector<1x1x128xf32>
    tpu.vector_store %arg4[%c0_6, %c0_7, %c0_8], %7 {strides = array<i32>} : memref<1x1x128xf32, #tpu.memory_space<vmem>>, vector<1x1x128xf32>,
    %9 = arith.mulf %2, %2 : vector<512x128xf32>
    %cst_9 = arith.constant dense<0.000000e+00> : vector<128xf32>
    %10 = vector.multi_reduction <add>, %9, %cst_9 [0] : vector<512x128xf32> to vector<128xf32>
    %11 = vector.shape_cast %10 : vector<128xf32> to vector<1x128xf32>
    %12 = vector.shape_cast %11 : vector<1x128xf32> to vector<1x1x128xf32>
    %c0_10 = arith.constant 0 : index
    %c0_11 = arith.constant 0 : index
    %c0_12 = arith.constant 0 : index
    %13 = vector.load %arg5[%c0_10, %c0_11, %c0_12] : memref<1x1x128xf32, #tpu.memory_space<vmem>>, vector<1x1x128xf32>
    tpu.vector_store %arg5[%c0_10, %c0_11, %c0_12], %12 {strides = array<i32>} : memref<1x1x128xf32, #tpu.memory_space<vmem>>, vector<1x1x128xf32>,
    return
  }
  func.func @transform_0(%arg0: i32) -> (i32, i32) {
    %c0_i32 = arith.constant 0 : i32
    %c0_i32_0 = arith.constant 0 : i32
    return %arg0, %c0_i32 : i32, i32
  }
  func.func @transform_1(%arg0: i32) -> (i32, i32) {
    %c0_i32 = arith.constant 0 : i32
    %c0_i32_0 = arith.constant 0 : i32
    %c0_i32_1 = arith.constant 0 : i32
    return %c0_i32, %c0_i32_0 : i32, i32
  }
  func.func @transform_2(%arg0: i32) -> (i32, i32) {
    %c0_i32 = arith.constant 0 : i32
    %c0_i32_0 = arith.constant 0 : i32
    return %arg0, %c0_i32 : i32, i32
  }
  func.func @transform_3(%arg0: i32) -> (i32, i32, i32) {
    %c0_i32 = arith.constant 0 : i32
    %c0_i32_0 = arith.constant 0 : i32
    %c0_i32_1 = arith.constant 0 : i32
    return %arg0, %c0_i32, %c0_i32_0 : i32, i32, i32
  }
  func.func @transform_4(%arg0: i32) -> (i32, i32, i32) {
    %c0_i32 = arith.constant 0 : i32
    %c0_i32_0 = arith.constant 0 : i32
    %c0_i32_1 = arith.constant 0 : i32
    return %arg0, %c0_i32, %c0_i32_0 : i32, i32, i32
  }
}

module attributes {stable_mosaic.version = 11 : i64} {
  func.func @_band_max_kernel(%arg0: i32, %arg1: memref<1x326x64xbf16, #tpu.memory_space<vmem>>, %arg2: memref<1x288x64xbf16, #tpu.memory_space<vmem>>) attributes {dimension_semantics = [#tpu.dimension_semantics<parallel>], iteration_bounds = array<i64: 2>, scalar_prefetch = 0 : i64, scratch_operands = 0 : i64, tpu.core_type = #tpu.core_type<tc>, window_params = [{transform_indices = @transform_0, window_bounds = array<i64: 1, 326, 64>}, {transform_indices = @transform_1, window_bounds = array<i64: 1, 288, 64>}]} {
    %c0 = arith.constant 0 : index
    %c0_0 = arith.constant 0 : index
    %c0_1 = arith.constant 0 : index
    %0 = vector.load %arg1[%c0, %c0_0, %c0_1] : memref<1x326x64xbf16, #tpu.memory_space<vmem>>, vector<1x288x64xbf16>
    %1 = vector.shape_cast %0 : vector<1x288x64xbf16> to vector<288x64xbf16>
    %c0_2 = arith.constant 0 : index
    %c1 = arith.constant 1 : index
    %c0_3 = arith.constant 0 : index
    %2 = vector.load %arg1[%c0_2, %c1, %c0_3] : memref<1x326x64xbf16, #tpu.memory_space<vmem>>, vector<1x288x64xbf16>
    %3 = vector.shape_cast %2 : vector<1x288x64xbf16> to vector<288x64xbf16>
    %4 = arith.maximumf %1, %3 : vector<288x64xbf16>
    %c0_4 = arith.constant 0 : index
    %c2 = arith.constant 2 : index
    %c0_5 = arith.constant 0 : index
    %5 = vector.load %arg1[%c0_4, %c2, %c0_5] : memref<1x326x64xbf16, #tpu.memory_space<vmem>>, vector<1x288x64xbf16>
    %6 = vector.shape_cast %5 : vector<1x288x64xbf16> to vector<288x64xbf16>
    %7 = arith.maximumf %4, %6 : vector<288x64xbf16>
    %c0_6 = arith.constant 0 : index
    %c18 = arith.constant 18 : index
    %c0_7 = arith.constant 0 : index
    %8 = vector.load %arg1[%c0_6, %c18, %c0_7] : memref<1x326x64xbf16, #tpu.memory_space<vmem>>, vector<1x288x64xbf16>
    %9 = vector.shape_cast %8 : vector<1x288x64xbf16> to vector<288x64xbf16>
    %10 = arith.maximumf %7, %9 : vector<288x64xbf16>
    %c0_8 = arith.constant 0 : index
    %c19 = arith.constant 19 : index
    %c0_9 = arith.constant 0 : index
    %11 = vector.load %arg1[%c0_8, %c19, %c0_9] : memref<1x326x64xbf16, #tpu.memory_space<vmem>>, vector<1x288x64xbf16>
    %12 = vector.shape_cast %11 : vector<1x288x64xbf16> to vector<288x64xbf16>
    %13 = arith.maximumf %10, %12 : vector<288x64xbf16>
    %c0_10 = arith.constant 0 : index
    %c20 = arith.constant 20 : index
    %c0_11 = arith.constant 0 : index
    %14 = vector.load %arg1[%c0_10, %c20, %c0_11] : memref<1x326x64xbf16, #tpu.memory_space<vmem>>, vector<1x288x64xbf16>
    %15 = vector.shape_cast %14 : vector<1x288x64xbf16> to vector<288x64xbf16>
    %16 = arith.maximumf %13, %15 : vector<288x64xbf16>
    %c0_12 = arith.constant 0 : index
    %c36 = arith.constant 36 : index
    %c0_13 = arith.constant 0 : index
    %17 = vector.load %arg1[%c0_12, %c36, %c0_13] : memref<1x326x64xbf16, #tpu.memory_space<vmem>>, vector<1x288x64xbf16>
    %18 = vector.shape_cast %17 : vector<1x288x64xbf16> to vector<288x64xbf16>
    %19 = arith.maximumf %16, %18 : vector<288x64xbf16>
    %c0_14 = arith.constant 0 : index
    %c37 = arith.constant 37 : index
    %c0_15 = arith.constant 0 : index
    %20 = vector.load %arg1[%c0_14, %c37, %c0_15] : memref<1x326x64xbf16, #tpu.memory_space<vmem>>, vector<1x288x64xbf16>
    %21 = vector.shape_cast %20 : vector<1x288x64xbf16> to vector<288x64xbf16>
    %22 = arith.maximumf %19, %21 : vector<288x64xbf16>
    %c0_16 = arith.constant 0 : index
    %c38 = arith.constant 38 : index
    %c0_17 = arith.constant 0 : index
    %23 = vector.load %arg1[%c0_16, %c38, %c0_17] : memref<1x326x64xbf16, #tpu.memory_space<vmem>>, vector<1x288x64xbf16>
    %24 = vector.shape_cast %23 : vector<1x288x64xbf16> to vector<288x64xbf16>
    %25 = arith.maximumf %22, %24 : vector<288x64xbf16>
    %c0_18 = arith.constant 0 : index
    %c0_19 = arith.constant 0 : index
    %c0_20 = arith.constant 0 : index
    %26 = vector.load %arg2[%c0_18, %c0_19, %c0_20] : memref<1x288x64xbf16, #tpu.memory_space<vmem>>, vector<1x288x64xbf16>
    %27 = vector.shape_cast %26 : vector<1x288x64xbf16> to vector<288x64xbf16>
    %28 = vector.shape_cast %25 : vector<288x64xbf16> to vector<1x288x64xbf16>
    tpu.vector_store %arg2[%c0_18, %c0_19, %c0_20], %28 {strides = array<i32>} : memref<1x288x64xbf16, #tpu.memory_space<vmem>>, vector<1x288x64xbf16>,
    return
  }
  func.func @transform_0(%arg0: i32) -> (i32, i32, i32) {
    %c0_i32 = arith.constant 0 : i32
    %c0_i32_0 = arith.constant 0 : i32
    %c0_i32_1 = arith.constant 0 : i32
    return %arg0, %c0_i32, %c0_i32_0 : i32, i32, i32
  }
  func.func @transform_1(%arg0: i32) -> (i32, i32, i32) {
    %c0_i32 = arith.constant 0 : i32
    %c0_i32_0 = arith.constant 0 : i32
    %c0_i32_1 = arith.constant 0 : i32
    return %arg0, %c0_i32, %c0_i32_0 : i32, i32, i32
  }
}

module attributes {stable_mosaic.version = 11 : i64} {
  func.func @_band_conv_kernel(%arg0: i32, %arg1: memref<1x102x64xbf16, #tpu.memory_space<vmem>>, %arg2: memref<9x64x128xbf16, #tpu.memory_space<vmem>>, %arg3: memref<80x1xf32, #tpu.memory_space<vmem>>, %arg4: memref<1x80x128xbf16, #tpu.memory_space<vmem>>, %arg5: memref<1x1x128xf32, #tpu.memory_space<vmem>>, %arg6: memref<1x1x128xf32, #tpu.memory_space<vmem>>) attributes {dimension_semantics = [#tpu.dimension_semantics<parallel>], iteration_bounds = array<i64: 2>, scalar_prefetch = 0 : i64, scratch_operands = 0 : i64, tpu.core_type = #tpu.core_type<tc>, window_params = [{transform_indices = @transform_0, window_bounds = array<i64: 1, 102, 64>}, {pipeline_mode = #tpu.pipeline_mode<synchronous>, transform_indices = @transform_1, window_bounds = array<i64: 9, 64, 128>}, {pipeline_mode = #tpu.pipeline_mode<synchronous>, transform_indices = @transform_2, window_bounds = array<i64: 80, 1>}, {transform_indices = @transform_3, window_bounds = array<i64: 1, 80, 128>}, {transform_indices = @transform_4, window_bounds = array<i64: 1, 1, 128>}, {transform_indices = @transform_5, window_bounds = array<i64: 1, 1, 128>}]} {
    %cst = arith.constant 0.000000e+00 : f32
    %0 = vector.broadcast %cst : f32 to vector<80x128xf32>
    %c0 = arith.constant 0 : index
    %c0_0 = arith.constant 0 : index
    %c0_1 = arith.constant 0 : index
    %1 = vector.load %arg1[%c0, %c0_0, %c0_1] : memref<1x102x64xbf16, #tpu.memory_space<vmem>>, vector<1x80x64xbf16>
    %2 = vector.shape_cast %1 : vector<1x80x64xbf16> to vector<80x64xbf16>
    %c0_2 = arith.constant 0 : index
    %c0_3 = arith.constant 0 : index
    %c0_4 = arith.constant 0 : index
    %3 = vector.load %arg2[%c0_2, %c0_3, %c0_4] : memref<9x64x128xbf16, #tpu.memory_space<vmem>>, vector<1x64x128xbf16>
    %4 = vector.shape_cast %3 : vector<1x64x128xbf16> to vector<64x128xbf16>
    %cst_5 = arith.constant dense<0.000000e+00> : vector<80x128xf32>
    %5 = tpu.matmul %2, %4, %cst_5 {dimension_numbers = #tpu.dot_dimension_numbers<[1], [0], [0], [1], [0, 0, 1, 1], [], []>} : vector<80x64xbf16>, vector<64x128xbf16>, vector<80x128xf32> -> vector<80x128xf32>
    %6 = arith.addf %0, %5 : vector<80x128xf32>
    %c0_6 = arith.constant 0 : index
    %c1 = arith.constant 1 : index
    %c0_7 = arith.constant 0 : index
    %7 = vector.load %arg1[%c0_6, %c1, %c0_7] : memref<1x102x64xbf16, #tpu.memory_space<vmem>>, vector<1x80x64xbf16>
    %8 = vector.shape_cast %7 : vector<1x80x64xbf16> to vector<80x64xbf16>
    %c1_8 = arith.constant 1 : index
    %c0_9 = arith.constant 0 : index
    %c0_10 = arith.constant 0 : index
    %9 = vector.load %arg2[%c1_8, %c0_9, %c0_10] : memref<9x64x128xbf16, #tpu.memory_space<vmem>>, vector<1x64x128xbf16>
    %10 = vector.shape_cast %9 : vector<1x64x128xbf16> to vector<64x128xbf16>
    %cst_11 = arith.constant dense<0.000000e+00> : vector<80x128xf32>
    %11 = tpu.matmul %8, %10, %cst_11 {dimension_numbers = #tpu.dot_dimension_numbers<[1], [0], [0], [1], [0, 0, 1, 1], [], []>} : vector<80x64xbf16>, vector<64x128xbf16>, vector<80x128xf32> -> vector<80x128xf32>
    %12 = arith.addf %6, %11 : vector<80x128xf32>
    %c0_12 = arith.constant 0 : index
    %c2 = arith.constant 2 : index
    %c0_13 = arith.constant 0 : index
    %13 = vector.load %arg1[%c0_12, %c2, %c0_13] : memref<1x102x64xbf16, #tpu.memory_space<vmem>>, vector<1x80x64xbf16>
    %14 = vector.shape_cast %13 : vector<1x80x64xbf16> to vector<80x64xbf16>
    %c2_14 = arith.constant 2 : index
    %c0_15 = arith.constant 0 : index
    %c0_16 = arith.constant 0 : index
    %15 = vector.load %arg2[%c2_14, %c0_15, %c0_16] : memref<9x64x128xbf16, #tpu.memory_space<vmem>>, vector<1x64x128xbf16>
    %16 = vector.shape_cast %15 : vector<1x64x128xbf16> to vector<64x128xbf16>
    %cst_17 = arith.constant dense<0.000000e+00> : vector<80x128xf32>
    %17 = tpu.matmul %14, %16, %cst_17 {dimension_numbers = #tpu.dot_dimension_numbers<[1], [0], [0], [1], [0, 0, 1, 1], [], []>} : vector<80x64xbf16>, vector<64x128xbf16>, vector<80x128xf32> -> vector<80x128xf32>
    %18 = arith.addf %12, %17 : vector<80x128xf32>
    %c0_18 = arith.constant 0 : index
    %c10 = arith.constant 10 : index
    %c0_19 = arith.constant 0 : index
    %19 = vector.load %arg1[%c0_18, %c10, %c0_19] : memref<1x102x64xbf16, #tpu.memory_space<vmem>>, vector<1x80x64xbf16>
    %20 = vector.shape_cast %19 : vector<1x80x64xbf16> to vector<80x64xbf16>
    %c3 = arith.constant 3 : index
    %c0_20 = arith.constant 0 : index
    %c0_21 = arith.constant 0 : index
    %21 = vector.load %arg2[%c3, %c0_20, %c0_21] : memref<9x64x128xbf16, #tpu.memory_space<vmem>>, vector<1x64x128xbf16>
    %22 = vector.shape_cast %21 : vector<1x64x128xbf16> to vector<64x128xbf16>
    %cst_22 = arith.constant dense<0.000000e+00> : vector<80x128xf32>
    %23 = tpu.matmul %20, %22, %cst_22 {dimension_numbers = #tpu.dot_dimension_numbers<[1], [0], [0], [1], [0, 0, 1, 1], [], []>} : vector<80x64xbf16>, vector<64x128xbf16>, vector<80x128xf32> -> vector<80x128xf32>
    %24 = arith.addf %18, %23 : vector<80x128xf32>
    %c0_23 = arith.constant 0 : index
    %c11 = arith.constant 11 : index
    %c0_24 = arith.constant 0 : index
    %25 = vector.load %arg1[%c0_23, %c11, %c0_24] : memref<1x102x64xbf16, #tpu.memory_space<vmem>>, vector<1x80x64xbf16>
    %26 = vector.shape_cast %25 : vector<1x80x64xbf16> to vector<80x64xbf16>
    %c4 = arith.constant 4 : index
    %c0_25 = arith.constant 0 : index
    %c0_26 = arith.constant 0 : index
    %27 = vector.load %arg2[%c4, %c0_25, %c0_26] : memref<9x64x128xbf16, #tpu.memory_space<vmem>>, vector<1x64x128xbf16>
    %28 = vector.shape_cast %27 : vector<1x64x128xbf16> to vector<64x128xbf16>
    %cst_27 = arith.constant dense<0.000000e+00> : vector<80x128xf32>
    %29 = tpu.matmul %26, %28, %cst_27 {dimension_numbers = #tpu.dot_dimension_numbers<[1], [0], [0], [1], [0, 0, 1, 1], [], []>} : vector<80x64xbf16>, vector<64x128xbf16>, vector<80x128xf32> -> vector<80x128xf32>
    %30 = arith.addf %24, %29 : vector<80x128xf32>
    %c0_28 = arith.constant 0 : index
    %c12 = arith.constant 12 : index
    %c0_29 = arith.constant 0 : index
    %31 = vector.load %arg1[%c0_28, %c12, %c0_29] : memref<1x102x64xbf16, #tpu.memory_space<vmem>>, vector<1x80x64xbf16>
    %32 = vector.shape_cast %31 : vector<1x80x64xbf16> to vector<80x64xbf16>
    %c5 = arith.constant 5 : index
    %c0_30 = arith.constant 0 : index
    %c0_31 = arith.constant 0 : index
    %33 = vector.load %arg2[%c5, %c0_30, %c0_31] : memref<9x64x128xbf16, #tpu.memory_space<vmem>>, vector<1x64x128xbf16>
    %34 = vector.shape_cast %33 : vector<1x64x128xbf16> to vector<64x128xbf16>
    %cst_32 = arith.constant dense<0.000000e+00> : vector<80x128xf32>
    %35 = tpu.matmul %32, %34, %cst_32 {dimension_numbers = #tpu.dot_dimension_numbers<[1], [0], [0], [1], [0, 0, 1, 1], [], []>} : vector<80x64xbf16>, vector<64x128xbf16>, vector<80x128xf32> -> vector<80x128xf32>
    %36 = arith.addf %30, %35 : vector<80x128xf32>
    %c0_33 = arith.constant 0 : index
    %c20 = arith.constant 20 : index
    %c0_34 = arith.constant 0 : index
    %37 = vector.load %arg1[%c0_33, %c20, %c0_34] : memref<1x102x64xbf16, #tpu.memory_space<vmem>>, vector<1x80x64xbf16>
    %38 = vector.shape_cast %37 : vector<1x80x64xbf16> to vector<80x64xbf16>
    %c6 = arith.constant 6 : index
    %c0_35 = arith.constant 0 : index
    %c0_36 = arith.constant 0 : index
    %39 = vector.load %arg2[%c6, %c0_35, %c0_36] : memref<9x64x128xbf16, #tpu.memory_space<vmem>>, vector<1x64x128xbf16>
    %40 = vector.shape_cast %39 : vector<1x64x128xbf16> to vector<64x128xbf16>
    %cst_37 = arith.constant dense<0.000000e+00> : vector<80x128xf32>
    %41 = tpu.matmul %38, %40, %cst_37 {dimension_numbers = #tpu.dot_dimension_numbers<[1], [0], [0], [1], [0, 0, 1, 1], [], []>} : vector<80x64xbf16>, vector<64x128xbf16>, vector<80x128xf32> -> vector<80x128xf32>
    %42 = arith.addf %36, %41 : vector<80x128xf32>
    %c0_38 = arith.constant 0 : index
    %c21 = arith.constant 21 : index
    %c0_39 = arith.constant 0 : index
    %43 = vector.load %arg1[%c0_38, %c21, %c0_39] : memref<1x102x64xbf16, #tpu.memory_space<vmem>>, vector<1x80x64xbf16>
    %44 = vector.shape_cast %43 : vector<1x80x64xbf16> to vector<80x64xbf16>
    %c7 = arith.constant 7 : index
    %c0_40 = arith.constant 0 : index
    %c0_41 = arith.constant 0 : index
    %45 = vector.load %arg2[%c7, %c0_40, %c0_41] : memref<9x64x128xbf16, #tpu.memory_space<vmem>>, vector<1x64x128xbf16>
    %46 = vector.shape_cast %45 : vector<1x64x128xbf16> to vector<64x128xbf16>
    %cst_42 = arith.constant dense<0.000000e+00> : vector<80x128xf32>
    %47 = tpu.matmul %44, %46, %cst_42 {dimension_numbers = #tpu.dot_dimension_numbers<[1], [0], [0], [1], [0, 0, 1, 1], [], []>} : vector<80x64xbf16>, vector<64x128xbf16>, vector<80x128xf32> -> vector<80x128xf32>
    %48 = arith.addf %42, %47 : vector<80x128xf32>
    %c0_43 = arith.constant 0 : index
    %c22 = arith.constant 22 : index
    %c0_44 = arith.constant 0 : index
    %49 = vector.load %arg1[%c0_43, %c22, %c0_44] : memref<1x102x64xbf16, #tpu.memory_space<vmem>>, vector<1x80x64xbf16>
    %50 = vector.shape_cast %49 : vector<1x80x64xbf16> to vector<80x64xbf16>
    %c8 = arith.constant 8 : index
    %c0_45 = arith.constant 0 : index
    %c0_46 = arith.constant 0 : index
    %51 = vector.load %arg2[%c8, %c0_45, %c0_46] : memref<9x64x128xbf16, #tpu.memory_space<vmem>>, vector<1x64x128xbf16>
    %52 = vector.shape_cast %51 : vector<1x64x128xbf16> to vector<64x128xbf16>
    %cst_47 = arith.constant dense<0.000000e+00> : vector<80x128xf32>
    %53 = tpu.matmul %50, %52, %cst_47 {dimension_numbers = #tpu.dot_dimension_numbers<[1], [0], [0], [1], [0, 0, 1, 1], [], []>} : vector<80x64xbf16>, vector<64x128xbf16>, vector<80x128xf32> -> vector<80x128xf32>
    %54 = arith.addf %48, %53 : vector<80x128xf32>
    %c0_48 = arith.constant 0 : index
    %c0_49 = arith.constant 0 : index
    %55 = vector.load %arg3[%c0_48, %c0_49] : memref<80x1xf32, #tpu.memory_space<vmem>>, vector<80x1xf32>
    %56 = vector.broadcast %55 : vector<80x1xf32> to vector<80x128xf32>
    %57 = arith.mulf %54, %56 : vector<80x128xf32>
    %58 = arith.truncf %54 : vector<80x128xf32> to vector<80x128xbf16>
    %c0_50 = arith.constant 0 : index
    %c0_51 = arith.constant 0 : index
    %c0_52 = arith.constant 0 : index
    %59 = vector.load %arg4[%c0_50, %c0_51, %c0_52] : memref<1x80x128xbf16, #tpu.memory_space<vmem>>, vector<1x80x128xbf16>
    %60 = vector.shape_cast %59 : vector<1x80x128xbf16> to vector<80x128xbf16>
    %61 = vector.shape_cast %58 : vector<80x128xbf16> to vector<1x80x128xbf16>
    tpu.vector_store %arg4[%c0_50, %c0_51, %c0_52], %61 {strides = array<i32>} : memref<1x80x128xbf16, #tpu.memory_space<vmem>>, vector<1x80x128xbf16>,
    %cst_53 = arith.constant dense<0.000000e+00> : vector<128xf32>
    %62 = vector.multi_reduction <add>, %57, %cst_53 [0] : vector<80x128xf32> to vector<128xf32>
    %63 = vector.shape_cast %62 : vector<128xf32> to vector<1x128xf32>
    %64 = vector.shape_cast %63 : vector<1x128xf32> to vector<1x1x128xf32>
    %c0_54 = arith.constant 0 : index
    %c0_55 = arith.constant 0 : index
    %c0_56 = arith.constant 0 : index
    %65 = vector.load %arg5[%c0_54, %c0_55, %c0_56] : memref<1x1x128xf32, #tpu.memory_space<vmem>>, vector<1x1x128xf32>
    tpu.vector_store %arg5[%c0_54, %c0_55, %c0_56], %64 {strides = array<i32>} : memref<1x1x128xf32, #tpu.memory_space<vmem>>, vector<1x1x128xf32>,
    %66 = arith.mulf %54, %57 : vector<80x128xf32>
    %cst_57 = arith.constant dense<0.000000e+00> : vector<128xf32>
    %67 = vector.multi_reduction <add>, %66, %cst_57 [0] : vector<80x128xf32> to vector<128xf32>
    %68 = vector.shape_cast %67 : vector<128xf32> to vector<1x128xf32>
    %69 = vector.shape_cast %68 : vector<1x128xf32> to vector<1x1x128xf32>
    %c0_58 = arith.constant 0 : index
    %c0_59 = arith.constant 0 : index
    %c0_60 = arith.constant 0 : index
    %70 = vector.load %arg6[%c0_58, %c0_59, %c0_60] : memref<1x1x128xf32, #tpu.memory_space<vmem>>, vector<1x1x128xf32>
    tpu.vector_store %arg6[%c0_58, %c0_59, %c0_60], %69 {strides = array<i32>} : memref<1x1x128xf32, #tpu.memory_space<vmem>>, vector<1x1x128xf32>,
    return
  }
  func.func @transform_0(%arg0: i32) -> (i32, i32, i32) {
    %c0_i32 = arith.constant 0 : i32
    %c0_i32_0 = arith.constant 0 : i32
    %c0_i32_1 = arith.constant 0 : i32
    return %arg0, %c0_i32, %c0_i32_0 : i32, i32, i32
  }
  func.func @transform_1(%arg0: i32) -> (i32, i32, i32) {
    %c0_i32 = arith.constant 0 : i32
    %c0_i32_0 = arith.constant 0 : i32
    %c0_i32_1 = arith.constant 0 : i32
    %c0_i32_2 = arith.constant 0 : i32
    return %c0_i32, %c0_i32_0, %c0_i32_1 : i32, i32, i32
  }
  func.func @transform_2(%arg0: i32) -> (i32, i32) {
    %c0_i32 = arith.constant 0 : i32
    %c0_i32_0 = arith.constant 0 : i32
    %c0_i32_1 = arith.constant 0 : i32
    return %c0_i32, %c0_i32_0 : i32, i32
  }
  func.func @transform_3(%arg0: i32) -> (i32, i32, i32) {
    %c0_i32 = arith.constant 0 : i32
    %c0_i32_0 = arith.constant 0 : i32
    %c0_i32_1 = arith.constant 0 : i32
    return %arg0, %c0_i32, %c0_i32_0 : i32, i32, i32
  }
  func.func @transform_4(%arg0: i32) -> (i32, i32, i32) {
    %c0_i32 = arith.constant 0 : i32
    %c0_i32_0 = arith.constant 0 : i32
    %c0_i32_1 = arith.constant 0 : i32
    return %arg0, %c0_i32, %c0_i32_0 : i32, i32, i32
  }
  func.func @transform_5(%arg0: i32) -> (i32, i32, i32) {
    %c0_i32 = arith.constant 0 : i32
    %c0_i32_0 = arith.constant 0 : i32
    %c0_i32_1 = arith.constant 0 : i32
    return %arg0, %c0_i32, %c0_i32_0 : i32, i32, i32
  }
}

module attributes {stable_mosaic.version = 11 : i64} {
  func.func @_bn_act_kernel(%arg0: i32, %arg1: memref<1x80x128xbf16, #tpu.memory_space<vmem>>, %arg2: memref<2x1x128xf32, #tpu.memory_space<vmem>>, %arg3: memref<2x1x128xf32, #tpu.memory_space<vmem>>, %arg4: memref<1x80x128xbf16, #tpu.memory_space<vmem>>) attributes {dimension_semantics = [#tpu.dimension_semantics<parallel>], iteration_bounds = array<i64: 2>, scalar_prefetch = 0 : i64, scratch_operands = 0 : i64, tpu.core_type = #tpu.core_type<tc>, window_params = [{transform_indices = @transform_0, window_bounds = array<i64: 1, 80, 128>}, {pipeline_mode = #tpu.pipeline_mode<synchronous>, transform_indices = @transform_1, window_bounds = array<i64: 2, 1, 128>}, {pipeline_mode = #tpu.pipeline_mode<synchronous>, transform_indices = @transform_2, window_bounds = array<i64: 2, 1, 128>}, {transform_indices = @transform_3, window_bounds = array<i64: 1, 80, 128>}]} {
    %c0 = arith.constant 0 : index
    %c0_0 = arith.constant 0 : index
    %c0_1 = arith.constant 0 : index
    %0 = vector.load %arg2[%c0, %c0_0, %c0_1] : memref<2x1x128xf32, #tpu.memory_space<vmem>>, vector<2x1x128xf32>
    %cst = arith.constant dense<0.000000e+00> : vector<1x128xf32>
    %1 = vector.multi_reduction <add>, %0, %cst [0] : vector<2x1x128xf32> to vector<1x128xf32>
    %cst_2 = arith.constant 7.812500e-03 : f32
    %2 = vector.broadcast %cst_2 : f32 to vector<1x128xf32>
    %3 = arith.mulf %1, %2 : vector<1x128xf32>
    %c0_3 = arith.constant 0 : index
    %c0_4 = arith.constant 0 : index
    %c0_5 = arith.constant 0 : index
    %4 = vector.load %arg3[%c0_3, %c0_4, %c0_5] : memref<2x1x128xf32, #tpu.memory_space<vmem>>, vector<2x1x128xf32>
    %cst_6 = arith.constant dense<0.000000e+00> : vector<1x128xf32>
    %5 = vector.multi_reduction <add>, %4, %cst_6 [0] : vector<2x1x128xf32> to vector<1x128xf32>
    %cst_7 = arith.constant 7.812500e-03 : f32
    %6 = vector.broadcast %cst_7 : f32 to vector<1x128xf32>
    %7 = arith.mulf %5, %6 : vector<1x128xf32>
    %8 = arith.mulf %3, %3 : vector<1x128xf32>
    %9 = arith.subf %7, %8 : vector<1x128xf32>
    %cst_8 = arith.constant 9.99999974E-6 : f32
    %10 = vector.broadcast %cst_8 : f32 to vector<1x128xf32>
    %11 = arith.addf %9, %10 : vector<1x128xf32>
    %12 = math.rsqrt %11 : vector<1x128xf32>
    %c0_9 = arith.constant 0 : index
    %c0_10 = arith.constant 0 : index
    %c0_11 = arith.constant 0 : index
    %13 = vector.load %arg1[%c0_9, %c0_10, %c0_11] : memref<1x80x128xbf16, #tpu.memory_space<vmem>>, vector<1x80x128xbf16>
    %14 = vector.shape_cast %13 : vector<1x80x128xbf16> to vector<80x128xbf16>
    %15 = arith.extf %14 : vector<80x128xbf16> to vector<80x128xf32>
    %16 = vector.broadcast %3 : vector<1x128xf32> to vector<80x128xf32>
    %17 = arith.subf %15, %16 : vector<80x128xf32>
    %18 = vector.broadcast %12 : vector<1x128xf32> to vector<80x128xf32>
    %19 = arith.mulf %17, %18 : vector<80x128xf32>
    %cst_12 = arith.constant 0.000000e+00 : f32
    %20 = vector.broadcast %cst_12 : f32 to vector<80x128xf32>
    %21 = arith.maximumf %19, %20 : vector<80x128xf32>
    %22 = arith.truncf %21 : vector<80x128xf32> to vector<80x128xbf16>
    %c0_13 = arith.constant 0 : index
    %c0_14 = arith.constant 0 : index
    %c0_15 = arith.constant 0 : index
    %23 = vector.load %arg4[%c0_13, %c0_14, %c0_15] : memref<1x80x128xbf16, #tpu.memory_space<vmem>>, vector<1x80x128xbf16>
    %24 = vector.shape_cast %23 : vector<1x80x128xbf16> to vector<80x128xbf16>
    %25 = vector.shape_cast %22 : vector<80x128xbf16> to vector<1x80x128xbf16>
    tpu.vector_store %arg4[%c0_13, %c0_14, %c0_15], %25 {strides = array<i32>} : memref<1x80x128xbf16, #tpu.memory_space<vmem>>, vector<1x80x128xbf16>,
    return
  }
  func.func @transform_0(%arg0: i32) -> (i32, i32, i32) {
    %c0_i32 = arith.constant 0 : i32
    %c0_i32_0 = arith.constant 0 : i32
    %c0_i32_1 = arith.constant 0 : i32
    return %arg0, %c0_i32, %c0_i32_0 : i32, i32, i32
  }
  func.func @transform_1(%arg0: i32) -> (i32, i32, i32) {
    %c0_i32 = arith.constant 0 : i32
    %c0_i32_0 = arith.constant 0 : i32
    %c0_i32_1 = arith.constant 0 : i32
    %c0_i32_2 = arith.constant 0 : i32
    return %c0_i32, %c0_i32_0, %c0_i32_1 : i32, i32, i32
  }
  func.func @transform_2(%arg0: i32) -> (i32, i32, i32) {
    %c0_i32 = arith.constant 0 : i32
    %c0_i32_0 = arith.constant 0 : i32
    %c0_i32_1 = arith.constant 0 : i32
    %c0_i32_2 = arith.constant 0 : i32
    return %c0_i32, %c0_i32_0, %c0_i32_1 : i32, i32, i32
  }
  func.func @transform_3(%arg0: i32) -> (i32, i32, i32) {
    %c0_i32 = arith.constant 0 : i32
    %c0_i32_0 = arith.constant 0 : i32
    %c0_i32_1 = arith.constant 0 : i32
    return %arg0, %c0_i32, %c0_i32_0 : i32, i32, i32
  }
}

module attributes {stable_mosaic.version = 11 : i64} {
  func.func @_bn_add_relu_kernel(%arg0: i32, %arg1: memref<1x80x128xbf16, #tpu.memory_space<vmem>>, %arg2: memref<2x1x128xf32, #tpu.memory_space<vmem>>, %arg3: memref<2x1x128xf32, #tpu.memory_space<vmem>>, %arg4: memref<1x80x128xbf16, #tpu.memory_space<vmem>>, %arg5: memref<1x80x128xbf16, #tpu.memory_space<vmem>>) attributes {dimension_semantics = [#tpu.dimension_semantics<parallel>], iteration_bounds = array<i64: 2>, scalar_prefetch = 0 : i64, scratch_operands = 0 : i64, tpu.core_type = #tpu.core_type<tc>, window_params = [{transform_indices = @transform_0, window_bounds = array<i64: 1, 80, 128>}, {pipeline_mode = #tpu.pipeline_mode<synchronous>, transform_indices = @transform_1, window_bounds = array<i64: 2, 1, 128>}, {pipeline_mode = #tpu.pipeline_mode<synchronous>, transform_indices = @transform_2, window_bounds = array<i64: 2, 1, 128>}, {transform_indices = @transform_3, window_bounds = array<i64: 1, 80, 128>}, {transform_indices = @transform_4, window_bounds = array<i64: 1, 80, 128>}]} {
    %c0 = arith.constant 0 : index
    %c0_0 = arith.constant 0 : index
    %c0_1 = arith.constant 0 : index
    %0 = vector.load %arg2[%c0, %c0_0, %c0_1] : memref<2x1x128xf32, #tpu.memory_space<vmem>>, vector<2x1x128xf32>
    %cst = arith.constant dense<0.000000e+00> : vector<1x128xf32>
    %1 = vector.multi_reduction <add>, %0, %cst [0] : vector<2x1x128xf32> to vector<1x128xf32>
    %cst_2 = arith.constant 7.812500e-03 : f32
    %2 = vector.broadcast %cst_2 : f32 to vector<1x128xf32>
    %3 = arith.mulf %1, %2 : vector<1x128xf32>
    %c0_3 = arith.constant 0 : index
    %c0_4 = arith.constant 0 : index
    %c0_5 = arith.constant 0 : index
    %4 = vector.load %arg3[%c0_3, %c0_4, %c0_5] : memref<2x1x128xf32, #tpu.memory_space<vmem>>, vector<2x1x128xf32>
    %cst_6 = arith.constant dense<0.000000e+00> : vector<1x128xf32>
    %5 = vector.multi_reduction <add>, %4, %cst_6 [0] : vector<2x1x128xf32> to vector<1x128xf32>
    %cst_7 = arith.constant 7.812500e-03 : f32
    %6 = vector.broadcast %cst_7 : f32 to vector<1x128xf32>
    %7 = arith.mulf %5, %6 : vector<1x128xf32>
    %8 = arith.mulf %3, %3 : vector<1x128xf32>
    %9 = arith.subf %7, %8 : vector<1x128xf32>
    %cst_8 = arith.constant 9.99999974E-6 : f32
    %10 = vector.broadcast %cst_8 : f32 to vector<1x128xf32>
    %11 = arith.addf %9, %10 : vector<1x128xf32>
    %12 = math.rsqrt %11 : vector<1x128xf32>
    %c0_9 = arith.constant 0 : index
    %c0_10 = arith.constant 0 : index
    %c0_11 = arith.constant 0 : index
    %13 = vector.load %arg1[%c0_9, %c0_10, %c0_11] : memref<1x80x128xbf16, #tpu.memory_space<vmem>>, vector<1x80x128xbf16>
    %14 = vector.shape_cast %13 : vector<1x80x128xbf16> to vector<80x128xbf16>
    %15 = arith.extf %14 : vector<80x128xbf16> to vector<80x128xf32>
    %16 = vector.broadcast %3 : vector<1x128xf32> to vector<80x128xf32>
    %17 = arith.subf %15, %16 : vector<80x128xf32>
    %18 = vector.broadcast %12 : vector<1x128xf32> to vector<80x128xf32>
    %19 = arith.mulf %17, %18 : vector<80x128xf32>
    %c0_12 = arith.constant 0 : index
    %c0_13 = arith.constant 0 : index
    %c0_14 = arith.constant 0 : index
    %20 = vector.load %arg4[%c0_12, %c0_13, %c0_14] : memref<1x80x128xbf16, #tpu.memory_space<vmem>>, vector<1x80x128xbf16>
    %21 = vector.shape_cast %20 : vector<1x80x128xbf16> to vector<80x128xbf16>
    %22 = arith.extf %21 : vector<80x128xbf16> to vector<80x128xf32>
    %23 = arith.addf %19, %22 : vector<80x128xf32>
    %cst_15 = arith.constant 0.000000e+00 : f32
    %24 = vector.broadcast %cst_15 : f32 to vector<80x128xf32>
    %25 = arith.maximumf %23, %24 : vector<80x128xf32>
    %26 = arith.truncf %25 : vector<80x128xf32> to vector<80x128xbf16>
    %c0_16 = arith.constant 0 : index
    %c0_17 = arith.constant 0 : index
    %c0_18 = arith.constant 0 : index
    %27 = vector.load %arg5[%c0_16, %c0_17, %c0_18] : memref<1x80x128xbf16, #tpu.memory_space<vmem>>, vector<1x80x128xbf16>
    %28 = vector.shape_cast %27 : vector<1x80x128xbf16> to vector<80x128xbf16>
    %29 = vector.shape_cast %26 : vector<80x128xbf16> to vector<1x80x128xbf16>
    tpu.vector_store %arg5[%c0_16, %c0_17, %c0_18], %29 {strides = array<i32>} : memref<1x80x128xbf16, #tpu.memory_space<vmem>>, vector<1x80x128xbf16>,
    return
  }
  func.func @transform_0(%arg0: i32) -> (i32, i32, i32) {
    %c0_i32 = arith.constant 0 : i32
    %c0_i32_0 = arith.constant 0 : i32
    %c0_i32_1 = arith.constant 0 : i32
    return %arg0, %c0_i32, %c0_i32_0 : i32, i32, i32
  }
  func.func @transform_1(%arg0: i32) -> (i32, i32, i32) {
    %c0_i32 = arith.constant 0 : i32
    %c0_i32_0 = arith.constant 0 : i32
    %c0_i32_1 = arith.constant 0 : i32
    %c0_i32_2 = arith.constant 0 : i32
    return %c0_i32, %c0_i32_0, %c0_i32_1 : i32, i32, i32
  }
  func.func @transform_2(%arg0: i32) -> (i32, i32, i32) {
    %c0_i32 = arith.constant 0 : i32
    %c0_i32_0 = arith.constant 0 : i32
    %c0_i32_1 = arith.constant 0 : i32
    %c0_i32_2 = arith.constant 0 : i32
    return %c0_i32, %c0_i32_0, %c0_i32_1 : i32, i32, i32
  }
  func.func @transform_3(%arg0: i32) -> (i32, i32, i32) {
    %c0_i32 = arith.constant 0 : i32
    %c0_i32_0 = arith.constant 0 : i32
    %c0_i32_1 = arith.constant 0 : i32
    return %arg0, %c0_i32, %c0_i32_0 : i32, i32, i32
  }
  func.func @transform_4(%arg0: i32) -> (i32, i32, i32) {
    %c0_i32 = arith.constant 0 : i32
    %c0_i32_0 = arith.constant 0 : i32
    %c0_i32_1 = arith.constant 0 : i32
    return %arg0, %c0_i32, %c0_i32_0 : i32, i32, i32
  }
}

module attributes {stable_mosaic.version = 11 : i64} {
  func.func @_im2col_conv_kernel(%arg0: i32, %arg1: memref<128x128xbf16, #tpu.memory_space<vmem>>, %arg2: memref<128x128xbf16, #tpu.memory_space<vmem>>, %arg3: memref<128x128xbf16, #tpu.memory_space<vmem>>, %arg4: memref<1x1x128xf32, #tpu.memory_space<vmem>>, %arg5: memref<1x1x128xf32, #tpu.memory_space<vmem>>) attributes {dimension_semantics = [#tpu.dimension_semantics<parallel>], iteration_bounds = array<i64: 1>, scalar_prefetch = 0 : i64, scratch_operands = 0 : i64, tpu.core_type = #tpu.core_type<tc>, window_params = [{transform_indices = @transform_0, window_bounds = array<i64: 128, 128>}, {pipeline_mode = #tpu.pipeline_mode<synchronous>, transform_indices = @transform_1, window_bounds = array<i64: 128, 128>}, {transform_indices = @transform_2, window_bounds = array<i64: 128, 128>}, {transform_indices = @transform_3, window_bounds = array<i64: 1, 1, 128>}, {transform_indices = @transform_4, window_bounds = array<i64: 1, 1, 128>}]} {
    %c0 = arith.constant 0 : index
    %c0_0 = arith.constant 0 : index
    %0 = vector.load %arg1[%c0, %c0_0] : memref<128x128xbf16, #tpu.memory_space<vmem>>, vector<128x128xbf16>
    %c0_1 = arith.constant 0 : index
    %c0_2 = arith.constant 0 : index
    %1 = vector.load %arg2[%c0_1, %c0_2] : memref<128x128xbf16, #tpu.memory_space<vmem>>, vector<128x128xbf16>
    %cst = arith.constant dense<0.000000e+00> : vector<128x128xf32>
    %2 = tpu.matmul %0, %1, %cst {dimension_numbers = #tpu.dot_dimension_numbers<[1], [0], [0], [1], [0, 0, 1, 1], [], []>} : vector<128x128xbf16>, vector<128x128xbf16>, vector<128x128xf32> -> vector<128x128xf32>
    %3 = arith.truncf %2 : vector<128x128xf32> to vector<128x128xbf16>
    %c0_3 = arith.constant 0 : index
    %c0_4 = arith.constant 0 : index
    %4 = vector.load %arg3[%c0_3, %c0_4] : memref<128x128xbf16, #tpu.memory_space<vmem>>, vector<128x128xbf16>
    tpu.vector_store %arg3[%c0_3, %c0_4], %3 {strides = array<i32>} : memref<128x128xbf16, #tpu.memory_space<vmem>>, vector<128x128xbf16>,
    %cst_5 = arith.constant dense<0.000000e+00> : vector<128xf32>
    %5 = vector.multi_reduction <add>, %2, %cst_5 [0] : vector<128x128xf32> to vector<128xf32>
    %6 = vector.shape_cast %5 : vector<128xf32> to vector<1x128xf32>
    %7 = vector.shape_cast %6 : vector<1x128xf32> to vector<1x1x128xf32>
    %c0_6 = arith.constant 0 : index
    %c0_7 = arith.constant 0 : index
    %c0_8 = arith.constant 0 : index
    %8 = vector.load %arg4[%c0_6, %c0_7, %c0_8] : memref<1x1x128xf32, #tpu.memory_space<vmem>>, vector<1x1x128xf32>
    tpu.vector_store %arg4[%c0_6, %c0_7, %c0_8], %7 {strides = array<i32>} : memref<1x1x128xf32, #tpu.memory_space<vmem>>, vector<1x1x128xf32>,
    %9 = arith.mulf %2, %2 : vector<128x128xf32>
    %cst_9 = arith.constant dense<0.000000e+00> : vector<128xf32>
    %10 = vector.multi_reduction <add>, %9, %cst_9 [0] : vector<128x128xf32> to vector<128xf32>
    %11 = vector.shape_cast %10 : vector<128xf32> to vector<1x128xf32>
    %12 = vector.shape_cast %11 : vector<1x128xf32> to vector<1x1x128xf32>
    %c0_10 = arith.constant 0 : index
    %c0_11 = arith.constant 0 : index
    %c0_12 = arith.constant 0 : index
    %13 = vector.load %arg5[%c0_10, %c0_11, %c0_12] : memref<1x1x128xf32, #tpu.memory_space<vmem>>, vector<1x1x128xf32>
    tpu.vector_store %arg5[%c0_10, %c0_11, %c0_12], %12 {strides = array<i32>} : memref<1x1x128xf32, #tpu.memory_space<vmem>>, vector<1x1x128xf32>,
    return
  }
  func.func @transform_0(%arg0: i32) -> (i32, i32) {
    %c0_i32 = arith.constant 0 : i32
    %c0_i32_0 = arith.constant 0 : i32
    return %arg0, %c0_i32 : i32, i32
  }
  func.func @transform_1(%arg0: i32) -> (i32, i32) {
    %c0_i32 = arith.constant 0 : i32
    %c0_i32_0 = arith.constant 0 : i32
    %c0_i32_1 = arith.constant 0 : i32
    return %c0_i32, %c0_i32_0 : i32, i32
  }
  func.func @transform_2(%arg0: i32) -> (i32, i32) {
    %c0_i32 = arith.constant 0 : i32
    %c0_i32_0 = arith.constant 0 : i32
    return %arg0, %c0_i32 : i32, i32
  }
  func.func @transform_3(%arg0: i32) -> (i32, i32, i32) {
    %c0_i32 = arith.constant 0 : i32
    %c0_i32_0 = arith.constant 0 : i32
    %c0_i32_1 = arith.constant 0 : i32
    return %arg0, %c0_i32, %c0_i32_0 : i32, i32, i32
  }
  func.func @transform_4(%arg0: i32) -> (i32, i32, i32) {
    %c0_i32 = arith.constant 0 : i32
    %c0_i32_0 = arith.constant 0 : i32
    %c0_i32_1 = arith.constant 0 : i32
    return %arg0, %c0_i32, %c0_i32_0 : i32, i32, i32
  }
}

module attributes {stable_mosaic.version = 11 : i64} {
  func.func @_bn_act_kernel(%arg0: i32, %arg1: memref<1x128x128xbf16, #tpu.memory_space<vmem>>, %arg2: memref<1x1x128xf32, #tpu.memory_space<vmem>>, %arg3: memref<1x1x128xf32, #tpu.memory_space<vmem>>, %arg4: memref<1x128x128xbf16, #tpu.memory_space<vmem>>) attributes {dimension_semantics = [#tpu.dimension_semantics<parallel>], iteration_bounds = array<i64: 1>, scalar_prefetch = 0 : i64, scratch_operands = 0 : i64, tpu.core_type = #tpu.core_type<tc>, window_params = [{transform_indices = @transform_0, window_bounds = array<i64: 1, 128, 128>}, {pipeline_mode = #tpu.pipeline_mode<synchronous>, transform_indices = @transform_1, window_bounds = array<i64: 1, 1, 128>}, {pipeline_mode = #tpu.pipeline_mode<synchronous>, transform_indices = @transform_2, window_bounds = array<i64: 1, 1, 128>}, {transform_indices = @transform_3, window_bounds = array<i64: 1, 128, 128>}]} {
    %c0 = arith.constant 0 : index
    %c0_0 = arith.constant 0 : index
    %c0_1 = arith.constant 0 : index
    %0 = vector.load %arg2[%c0, %c0_0, %c0_1] : memref<1x1x128xf32, #tpu.memory_space<vmem>>, vector<1x1x128xf32>
    %cst = arith.constant dense<0.000000e+00> : vector<1x128xf32>
    %1 = vector.multi_reduction <add>, %0, %cst [0] : vector<1x1x128xf32> to vector<1x128xf32>
    %cst_2 = arith.constant 3.125000e-02 : f32
    %2 = vector.broadcast %cst_2 : f32 to vector<1x128xf32>
    %3 = arith.mulf %1, %2 : vector<1x128xf32>
    %c0_3 = arith.constant 0 : index
    %c0_4 = arith.constant 0 : index
    %c0_5 = arith.constant 0 : index
    %4 = vector.load %arg3[%c0_3, %c0_4, %c0_5] : memref<1x1x128xf32, #tpu.memory_space<vmem>>, vector<1x1x128xf32>
    %cst_6 = arith.constant dense<0.000000e+00> : vector<1x128xf32>
    %5 = vector.multi_reduction <add>, %4, %cst_6 [0] : vector<1x1x128xf32> to vector<1x128xf32>
    %cst_7 = arith.constant 3.125000e-02 : f32
    %6 = vector.broadcast %cst_7 : f32 to vector<1x128xf32>
    %7 = arith.mulf %5, %6 : vector<1x128xf32>
    %8 = arith.mulf %3, %3 : vector<1x128xf32>
    %9 = arith.subf %7, %8 : vector<1x128xf32>
    %cst_8 = arith.constant 9.99999974E-6 : f32
    %10 = vector.broadcast %cst_8 : f32 to vector<1x128xf32>
    %11 = arith.addf %9, %10 : vector<1x128xf32>
    %12 = math.rsqrt %11 : vector<1x128xf32>
    %c0_9 = arith.constant 0 : index
    %c0_10 = arith.constant 0 : index
    %c0_11 = arith.constant 0 : index
    %13 = vector.load %arg1[%c0_9, %c0_10, %c0_11] : memref<1x128x128xbf16, #tpu.memory_space<vmem>>, vector<1x128x128xbf16>
    %14 = vector.shape_cast %13 : vector<1x128x128xbf16> to vector<128x128xbf16>
    %15 = arith.extf %14 : vector<128x128xbf16> to vector<128x128xf32>
    %16 = vector.broadcast %3 : vector<1x128xf32> to vector<128x128xf32>
    %17 = arith.subf %15, %16 : vector<128x128xf32>
    %18 = vector.broadcast %12 : vector<1x128xf32> to vector<128x128xf32>
    %19 = arith.mulf %17, %18 : vector<128x128xf32>
    %20 = arith.truncf %19 : vector<128x128xf32> to vector<128x128xbf16>
    %c0_12 = arith.constant 0 : index
    %c0_13 = arith.constant 0 : index
    %c0_14 = arith.constant 0 : index
    %21 = vector.load %arg4[%c0_12, %c0_13, %c0_14] : memref<1x128x128xbf16, #tpu.memory_space<vmem>>, vector<1x128x128xbf16>
    %22 = vector.shape_cast %21 : vector<1x128x128xbf16> to vector<128x128xbf16>
    %23 = vector.shape_cast %20 : vector<128x128xbf16> to vector<1x128x128xbf16>
    tpu.vector_store %arg4[%c0_12, %c0_13, %c0_14], %23 {strides = array<i32>} : memref<1x128x128xbf16, #tpu.memory_space<vmem>>, vector<1x128x128xbf16>,
    return
  }
  func.func @transform_0(%arg0: i32) -> (i32, i32, i32) {
    %c0_i32 = arith.constant 0 : i32
    %c0_i32_0 = arith.constant 0 : i32
    %c0_i32_1 = arith.constant 0 : i32
    return %arg0, %c0_i32, %c0_i32_0 : i32, i32, i32
  }
  func.func @transform_1(%arg0: i32) -> (i32, i32, i32) {
    %c0_i32 = arith.constant 0 : i32
    %c0_i32_0 = arith.constant 0 : i32
    %c0_i32_1 = arith.constant 0 : i32
    %c0_i32_2 = arith.constant 0 : i32
    return %c0_i32, %c0_i32_0, %c0_i32_1 : i32, i32, i32
  }
  func.func @transform_2(%arg0: i32) -> (i32, i32, i32) {
    %c0_i32 = arith.constant 0 : i32
    %c0_i32_0 = arith.constant 0 : i32
    %c0_i32_1 = arith.constant 0 : i32
    %c0_i32_2 = arith.constant 0 : i32
    return %c0_i32, %c0_i32_0, %c0_i32_1 : i32, i32, i32
  }
  func.func @transform_3(%arg0: i32) -> (i32, i32, i32) {
    %c0_i32 = arith.constant 0 : i32
    %c0_i32_0 = arith.constant 0 : i32
    %c0_i32_1 = arith.constant 0 : i32
    return %arg0, %c0_i32, %c0_i32_0 : i32, i32, i32
  }
}

module attributes {stable_mosaic.version = 11 : i64} {
  func.func @_im2col_conv_kernel(%arg0: i32, %arg1: memref<128x640xbf16, #tpu.memory_space<vmem>>, %arg2: memref<640x128xbf16, #tpu.memory_space<vmem>>, %arg3: memref<128x128xbf16, #tpu.memory_space<vmem>>, %arg4: memref<1x1x128xf32, #tpu.memory_space<vmem>>, %arg5: memref<1x1x128xf32, #tpu.memory_space<vmem>>) attributes {dimension_semantics = [#tpu.dimension_semantics<parallel>], iteration_bounds = array<i64: 1>, scalar_prefetch = 0 : i64, scratch_operands = 0 : i64, tpu.core_type = #tpu.core_type<tc>, window_params = [{transform_indices = @transform_0, window_bounds = array<i64: 128, 640>}, {pipeline_mode = #tpu.pipeline_mode<synchronous>, transform_indices = @transform_1, window_bounds = array<i64: 640, 128>}, {transform_indices = @transform_2, window_bounds = array<i64: 128, 128>}, {transform_indices = @transform_3, window_bounds = array<i64: 1, 1, 128>}, {transform_indices = @transform_4, window_bounds = array<i64: 1, 1, 128>}]} {
    %c0 = arith.constant 0 : index
    %c0_0 = arith.constant 0 : index
    %0 = vector.load %arg1[%c0, %c0_0] : memref<128x640xbf16, #tpu.memory_space<vmem>>, vector<128x640xbf16>
    %c0_1 = arith.constant 0 : index
    %c0_2 = arith.constant 0 : index
    %1 = vector.load %arg2[%c0_1, %c0_2] : memref<640x128xbf16, #tpu.memory_space<vmem>>, vector<640x128xbf16>
    %cst = arith.constant dense<0.000000e+00> : vector<128x128xf32>
    %2 = tpu.matmul %0, %1, %cst {dimension_numbers = #tpu.dot_dimension_numbers<[1], [0], [0], [1], [0, 0, 1, 1], [], []>} : vector<128x640xbf16>, vector<640x128xbf16>, vector<128x128xf32> -> vector<128x128xf32>
    %3 = arith.truncf %2 : vector<128x128xf32> to vector<128x128xbf16>
    %c0_3 = arith.constant 0 : index
    %c0_4 = arith.constant 0 : index
    %4 = vector.load %arg3[%c0_3, %c0_4] : memref<128x128xbf16, #tpu.memory_space<vmem>>, vector<128x128xbf16>
    tpu.vector_store %arg3[%c0_3, %c0_4], %3 {strides = array<i32>} : memref<128x128xbf16, #tpu.memory_space<vmem>>, vector<128x128xbf16>,
    %cst_5 = arith.constant dense<0.000000e+00> : vector<128xf32>
    %5 = vector.multi_reduction <add>, %2, %cst_5 [0] : vector<128x128xf32> to vector<128xf32>
    %6 = vector.shape_cast %5 : vector<128xf32> to vector<1x128xf32>
    %7 = vector.shape_cast %6 : vector<1x128xf32> to vector<1x1x128xf32>
    %c0_6 = arith.constant 0 : index
    %c0_7 = arith.constant 0 : index
    %c0_8 = arith.constant 0 : index
    %8 = vector.load %arg4[%c0_6, %c0_7, %c0_8] : memref<1x1x128xf32, #tpu.memory_space<vmem>>, vector<1x1x128xf32>
    tpu.vector_store %arg4[%c0_6, %c0_7, %c0_8], %7 {strides = array<i32>} : memref<1x1x128xf32, #tpu.memory_space<vmem>>, vector<1x1x128xf32>,
    %9 = arith.mulf %2, %2 : vector<128x128xf32>
    %cst_9 = arith.constant dense<0.000000e+00> : vector<128xf32>
    %10 = vector.multi_reduction <add>, %9, %cst_9 [0] : vector<128x128xf32> to vector<128xf32>
    %11 = vector.shape_cast %10 : vector<128xf32> to vector<1x128xf32>
    %12 = vector.shape_cast %11 : vector<1x128xf32> to vector<1x1x128xf32>
    %c0_10 = arith.constant 0 : index
    %c0_11 = arith.constant 0 : index
    %c0_12 = arith.constant 0 : index
    %13 = vector.load %arg5[%c0_10, %c0_11, %c0_12] : memref<1x1x128xf32, #tpu.memory_space<vmem>>, vector<1x1x128xf32>
    tpu.vector_store %arg5[%c0_10, %c0_11, %c0_12], %12 {strides = array<i32>} : memref<1x1x128xf32, #tpu.memory_space<vmem>>, vector<1x1x128xf32>,
    return
  }
  func.func @transform_0(%arg0: i32) -> (i32, i32) {
    %c0_i32 = arith.constant 0 : i32
    %c0_i32_0 = arith.constant 0 : i32
    return %arg0, %c0_i32 : i32, i32
  }
  func.func @transform_1(%arg0: i32) -> (i32, i32) {
    %c0_i32 = arith.constant 0 : i32
    %c0_i32_0 = arith.constant 0 : i32
    %c0_i32_1 = arith.constant 0 : i32
    return %c0_i32, %c0_i32_0 : i32, i32
  }
  func.func @transform_2(%arg0: i32) -> (i32, i32) {
    %c0_i32 = arith.constant 0 : i32
    %c0_i32_0 = arith.constant 0 : i32
    return %arg0, %c0_i32 : i32, i32
  }
  func.func @transform_3(%arg0: i32) -> (i32, i32, i32) {
    %c0_i32 = arith.constant 0 : i32
    %c0_i32_0 = arith.constant 0 : i32
    %c0_i32_1 = arith.constant 0 : i32
    return %arg0, %c0_i32, %c0_i32_0 : i32, i32, i32
  }
  func.func @transform_4(%arg0: i32) -> (i32, i32, i32) {
    %c0_i32 = arith.constant 0 : i32
    %c0_i32_0 = arith.constant 0 : i32
    %c0_i32_1 = arith.constant 0 : i32
    return %arg0, %c0_i32, %c0_i32_0 : i32, i32, i32
  }
}

module attributes {stable_mosaic.version = 11 : i64} {
  func.func @_bn_act_kernel(%arg0: i32, %arg1: memref<1x128x128xbf16, #tpu.memory_space<vmem>>, %arg2: memref<1x1x128xf32, #tpu.memory_space<vmem>>, %arg3: memref<1x1x128xf32, #tpu.memory_space<vmem>>, %arg4: memref<1x128x128xbf16, #tpu.memory_space<vmem>>) attributes {dimension_semantics = [#tpu.dimension_semantics<parallel>], iteration_bounds = array<i64: 1>, scalar_prefetch = 0 : i64, scratch_operands = 0 : i64, tpu.core_type = #tpu.core_type<tc>, window_params = [{transform_indices = @transform_0, window_bounds = array<i64: 1, 128, 128>}, {pipeline_mode = #tpu.pipeline_mode<synchronous>, transform_indices = @transform_1, window_bounds = array<i64: 1, 1, 128>}, {pipeline_mode = #tpu.pipeline_mode<synchronous>, transform_indices = @transform_2, window_bounds = array<i64: 1, 1, 128>}, {transform_indices = @transform_3, window_bounds = array<i64: 1, 128, 128>}]} {
    %c0 = arith.constant 0 : index
    %c0_0 = arith.constant 0 : index
    %c0_1 = arith.constant 0 : index
    %0 = vector.load %arg2[%c0, %c0_0, %c0_1] : memref<1x1x128xf32, #tpu.memory_space<vmem>>, vector<1x1x128xf32>
    %cst = arith.constant dense<0.000000e+00> : vector<1x128xf32>
    %1 = vector.multi_reduction <add>, %0, %cst [0] : vector<1x1x128xf32> to vector<1x128xf32>
    %cst_2 = arith.constant 3.125000e-02 : f32
    %2 = vector.broadcast %cst_2 : f32 to vector<1x128xf32>
    %3 = arith.mulf %1, %2 : vector<1x128xf32>
    %c0_3 = arith.constant 0 : index
    %c0_4 = arith.constant 0 : index
    %c0_5 = arith.constant 0 : index
    %4 = vector.load %arg3[%c0_3, %c0_4, %c0_5] : memref<1x1x128xf32, #tpu.memory_space<vmem>>, vector<1x1x128xf32>
    %cst_6 = arith.constant dense<0.000000e+00> : vector<1x128xf32>
    %5 = vector.multi_reduction <add>, %4, %cst_6 [0] : vector<1x1x128xf32> to vector<1x128xf32>
    %cst_7 = arith.constant 3.125000e-02 : f32
    %6 = vector.broadcast %cst_7 : f32 to vector<1x128xf32>
    %7 = arith.mulf %5, %6 : vector<1x128xf32>
    %8 = arith.mulf %3, %3 : vector<1x128xf32>
    %9 = arith.subf %7, %8 : vector<1x128xf32>
    %cst_8 = arith.constant 9.99999974E-6 : f32
    %10 = vector.broadcast %cst_8 : f32 to vector<1x128xf32>
    %11 = arith.addf %9, %10 : vector<1x128xf32>
    %12 = math.rsqrt %11 : vector<1x128xf32>
    %c0_9 = arith.constant 0 : index
    %c0_10 = arith.constant 0 : index
    %c0_11 = arith.constant 0 : index
    %13 = vector.load %arg1[%c0_9, %c0_10, %c0_11] : memref<1x128x128xbf16, #tpu.memory_space<vmem>>, vector<1x128x128xbf16>
    %14 = vector.shape_cast %13 : vector<1x128x128xbf16> to vector<128x128xbf16>
    %15 = arith.extf %14 : vector<128x128xbf16> to vector<128x128xf32>
    %16 = vector.broadcast %3 : vector<1x128xf32> to vector<128x128xf32>
    %17 = arith.subf %15, %16 : vector<128x128xf32>
    %18 = vector.broadcast %12 : vector<1x128xf32> to vector<128x128xf32>
    %19 = arith.mulf %17, %18 : vector<128x128xf32>
    %cst_12 = arith.constant 0.000000e+00 : f32
    %20 = vector.broadcast %cst_12 : f32 to vector<128x128xf32>
    %21 = arith.maximumf %19, %20 : vector<128x128xf32>
    %22 = arith.truncf %21 : vector<128x128xf32> to vector<128x128xbf16>
    %c0_13 = arith.constant 0 : index
    %c0_14 = arith.constant 0 : index
    %c0_15 = arith.constant 0 : index
    %23 = vector.load %arg4[%c0_13, %c0_14, %c0_15] : memref<1x128x128xbf16, #tpu.memory_space<vmem>>, vector<1x128x128xbf16>
    %24 = vector.shape_cast %23 : vector<1x128x128xbf16> to vector<128x128xbf16>
    %25 = vector.shape_cast %22 : vector<128x128xbf16> to vector<1x128x128xbf16>
    tpu.vector_store %arg4[%c0_13, %c0_14, %c0_15], %25 {strides = array<i32>} : memref<1x128x128xbf16, #tpu.memory_space<vmem>>, vector<1x128x128xbf16>,
    return
  }
  func.func @transform_0(%arg0: i32) -> (i32, i32, i32) {
    %c0_i32 = arith.constant 0 : i32
    %c0_i32_0 = arith.constant 0 : i32
    %c0_i32_1 = arith.constant 0 : i32
    return %arg0, %c0_i32, %c0_i32_0 : i32, i32, i32
  }
  func.func @transform_1(%arg0: i32) -> (i32, i32, i32) {
    %c0_i32 = arith.constant 0 : i32
    %c0_i32_0 = arith.constant 0 : i32
    %c0_i32_1 = arith.constant 0 : i32
    %c0_i32_2 = arith.constant 0 : i32
    return %c0_i32, %c0_i32_0, %c0_i32_1 : i32, i32, i32
  }
  func.func @transform_2(%arg0: i32) -> (i32, i32, i32) {
    %c0_i32 = arith.constant 0 : i32
    %c0_i32_0 = arith.constant 0 : i32
    %c0_i32_1 = arith.constant 0 : i32
    %c0_i32_2 = arith.constant 0 : i32
    return %c0_i32, %c0_i32_0, %c0_i32_1 : i32, i32, i32
  }
  func.func @transform_3(%arg0: i32) -> (i32, i32, i32) {
    %c0_i32 = arith.constant 0 : i32
    %c0_i32_0 = arith.constant 0 : i32
    %c0_i32_1 = arith.constant 0 : i32
    return %arg0, %c0_i32, %c0_i32_0 : i32, i32, i32
  }
}

module attributes {stable_mosaic.version = 11 : i64} {
  func.func @_band_conv_kernel(%arg0: i32, %arg1: memref<1x38x64xbf16, #tpu.memory_space<vmem>>, %arg2: memref<9x64x128xbf16, #tpu.memory_space<vmem>>, %arg3: memref<24x1xf32, #tpu.memory_space<vmem>>, %arg4: memref<1x24x128xbf16, #tpu.memory_space<vmem>>, %arg5: memref<1x1x128xf32, #tpu.memory_space<vmem>>, %arg6: memref<1x1x128xf32, #tpu.memory_space<vmem>>) attributes {dimension_semantics = [#tpu.dimension_semantics<parallel>], iteration_bounds = array<i64: 2>, scalar_prefetch = 0 : i64, scratch_operands = 0 : i64, tpu.core_type = #tpu.core_type<tc>, window_params = [{transform_indices = @transform_0, window_bounds = array<i64: 1, 38, 64>}, {pipeline_mode = #tpu.pipeline_mode<synchronous>, transform_indices = @transform_1, window_bounds = array<i64: 9, 64, 128>}, {pipeline_mode = #tpu.pipeline_mode<synchronous>, transform_indices = @transform_2, window_bounds = array<i64: 24, 1>}, {transform_indices = @transform_3, window_bounds = array<i64: 1, 24, 128>}, {transform_indices = @transform_4, window_bounds = array<i64: 1, 1, 128>}, {transform_indices = @transform_5, window_bounds = array<i64: 1, 1, 128>}]} {
    %cst = arith.constant 0.000000e+00 : f32
    %0 = vector.broadcast %cst : f32 to vector<24x128xf32>
    %c0 = arith.constant 0 : index
    %c0_0 = arith.constant 0 : index
    %c0_1 = arith.constant 0 : index
    %1 = vector.load %arg1[%c0, %c0_0, %c0_1] : memref<1x38x64xbf16, #tpu.memory_space<vmem>>, vector<1x24x64xbf16>
    %2 = vector.shape_cast %1 : vector<1x24x64xbf16> to vector<24x64xbf16>
    %c0_2 = arith.constant 0 : index
    %c0_3 = arith.constant 0 : index
    %c0_4 = arith.constant 0 : index
    %3 = vector.load %arg2[%c0_2, %c0_3, %c0_4] : memref<9x64x128xbf16, #tpu.memory_space<vmem>>, vector<1x64x128xbf16>
    %4 = vector.shape_cast %3 : vector<1x64x128xbf16> to vector<64x128xbf16>
    %cst_5 = arith.constant dense<0.000000e+00> : vector<24x128xf32>
    %5 = tpu.matmul %2, %4, %cst_5 {dimension_numbers = #tpu.dot_dimension_numbers<[1], [0], [0], [1], [0, 0, 1, 1], [], []>} : vector<24x64xbf16>, vector<64x128xbf16>, vector<24x128xf32> -> vector<24x128xf32>
    %6 = arith.addf %0, %5 : vector<24x128xf32>
    %c0_6 = arith.constant 0 : index
    %c1 = arith.constant 1 : index
    %c0_7 = arith.constant 0 : index
    %7 = vector.load %arg1[%c0_6, %c1, %c0_7] : memref<1x38x64xbf16, #tpu.memory_space<vmem>>, vector<1x24x64xbf16>
    %8 = vector.shape_cast %7 : vector<1x24x64xbf16> to vector<24x64xbf16>
    %c1_8 = arith.constant 1 : index
    %c0_9 = arith.constant 0 : index
    %c0_10 = arith.constant 0 : index
    %9 = vector.load %arg2[%c1_8, %c0_9, %c0_10] : memref<9x64x128xbf16, #tpu.memory_space<vmem>>, vector<1x64x128xbf16>
    %10 = vector.shape_cast %9 : vector<1x64x128xbf16> to vector<64x128xbf16>
    %cst_11 = arith.constant dense<0.000000e+00> : vector<24x128xf32>
    %11 = tpu.matmul %8, %10, %cst_11 {dimension_numbers = #tpu.dot_dimension_numbers<[1], [0], [0], [1], [0, 0, 1, 1], [], []>} : vector<24x64xbf16>, vector<64x128xbf16>, vector<24x128xf32> -> vector<24x128xf32>
    %12 = arith.addf %6, %11 : vector<24x128xf32>
    %c0_12 = arith.constant 0 : index
    %c2 = arith.constant 2 : index
    %c0_13 = arith.constant 0 : index
    %13 = vector.load %arg1[%c0_12, %c2, %c0_13] : memref<1x38x64xbf16, #tpu.memory_space<vmem>>, vector<1x24x64xbf16>
    %14 = vector.shape_cast %13 : vector<1x24x64xbf16> to vector<24x64xbf16>
    %c2_14 = arith.constant 2 : index
    %c0_15 = arith.constant 0 : index
    %c0_16 = arith.constant 0 : index
    %15 = vector.load %arg2[%c2_14, %c0_15, %c0_16] : memref<9x64x128xbf16, #tpu.memory_space<vmem>>, vector<1x64x128xbf16>
    %16 = vector.shape_cast %15 : vector<1x64x128xbf16> to vector<64x128xbf16>
    %cst_17 = arith.constant dense<0.000000e+00> : vector<24x128xf32>
    %17 = tpu.matmul %14, %16, %cst_17 {dimension_numbers = #tpu.dot_dimension_numbers<[1], [0], [0], [1], [0, 0, 1, 1], [], []>} : vector<24x64xbf16>, vector<64x128xbf16>, vector<24x128xf32> -> vector<24x128xf32>
    %18 = arith.addf %12, %17 : vector<24x128xf32>
    %c0_18 = arith.constant 0 : index
    %c6 = arith.constant 6 : index
    %c0_19 = arith.constant 0 : index
    %19 = vector.load %arg1[%c0_18, %c6, %c0_19] : memref<1x38x64xbf16, #tpu.memory_space<vmem>>, vector<1x24x64xbf16>
    %20 = vector.shape_cast %19 : vector<1x24x64xbf16> to vector<24x64xbf16>
    %c3 = arith.constant 3 : index
    %c0_20 = arith.constant 0 : index
    %c0_21 = arith.constant 0 : index
    %21 = vector.load %arg2[%c3, %c0_20, %c0_21] : memref<9x64x128xbf16, #tpu.memory_space<vmem>>, vector<1x64x128xbf16>
    %22 = vector.shape_cast %21 : vector<1x64x128xbf16> to vector<64x128xbf16>
    %cst_22 = arith.constant dense<0.000000e+00> : vector<24x128xf32>
    %23 = tpu.matmul %20, %22, %cst_22 {dimension_numbers = #tpu.dot_dimension_numbers<[1], [0], [0], [1], [0, 0, 1, 1], [], []>} : vector<24x64xbf16>, vector<64x128xbf16>, vector<24x128xf32> -> vector<24x128xf32>
    %24 = arith.addf %18, %23 : vector<24x128xf32>
    %c0_23 = arith.constant 0 : index
    %c7 = arith.constant 7 : index
    %c0_24 = arith.constant 0 : index
    %25 = vector.load %arg1[%c0_23, %c7, %c0_24] : memref<1x38x64xbf16, #tpu.memory_space<vmem>>, vector<1x24x64xbf16>
    %26 = vector.shape_cast %25 : vector<1x24x64xbf16> to vector<24x64xbf16>
    %c4 = arith.constant 4 : index
    %c0_25 = arith.constant 0 : index
    %c0_26 = arith.constant 0 : index
    %27 = vector.load %arg2[%c4, %c0_25, %c0_26] : memref<9x64x128xbf16, #tpu.memory_space<vmem>>, vector<1x64x128xbf16>
    %28 = vector.shape_cast %27 : vector<1x64x128xbf16> to vector<64x128xbf16>
    %cst_27 = arith.constant dense<0.000000e+00> : vector<24x128xf32>
    %29 = tpu.matmul %26, %28, %cst_27 {dimension_numbers = #tpu.dot_dimension_numbers<[1], [0], [0], [1], [0, 0, 1, 1], [], []>} : vector<24x64xbf16>, vector<64x128xbf16>, vector<24x128xf32> -> vector<24x128xf32>
    %30 = arith.addf %24, %29 : vector<24x128xf32>
    %c0_28 = arith.constant 0 : index
    %c8 = arith.constant 8 : index
    %c0_29 = arith.constant 0 : index
    %31 = vector.load %arg1[%c0_28, %c8, %c0_29] : memref<1x38x64xbf16, #tpu.memory_space<vmem>>, vector<1x24x64xbf16>
    %32 = vector.shape_cast %31 : vector<1x24x64xbf16> to vector<24x64xbf16>
    %c5 = arith.constant 5 : index
    %c0_30 = arith.constant 0 : index
    %c0_31 = arith.constant 0 : index
    %33 = vector.load %arg2[%c5, %c0_30, %c0_31] : memref<9x64x128xbf16, #tpu.memory_space<vmem>>, vector<1x64x128xbf16>
    %34 = vector.shape_cast %33 : vector<1x64x128xbf16> to vector<64x128xbf16>
    %cst_32 = arith.constant dense<0.000000e+00> : vector<24x128xf32>
    %35 = tpu.matmul %32, %34, %cst_32 {dimension_numbers = #tpu.dot_dimension_numbers<[1], [0], [0], [1], [0, 0, 1, 1], [], []>} : vector<24x64xbf16>, vector<64x128xbf16>, vector<24x128xf32> -> vector<24x128xf32>
    %36 = arith.addf %30, %35 : vector<24x128xf32>
    %c0_33 = arith.constant 0 : index
    %c12 = arith.constant 12 : index
    %c0_34 = arith.constant 0 : index
    %37 = vector.load %arg1[%c0_33, %c12, %c0_34] : memref<1x38x64xbf16, #tpu.memory_space<vmem>>, vector<1x24x64xbf16>
    %38 = vector.shape_cast %37 : vector<1x24x64xbf16> to vector<24x64xbf16>
    %c6_35 = arith.constant 6 : index
    %c0_36 = arith.constant 0 : index
    %c0_37 = arith.constant 0 : index
    %39 = vector.load %arg2[%c6_35, %c0_36, %c0_37] : memref<9x64x128xbf16, #tpu.memory_space<vmem>>, vector<1x64x128xbf16>
    %40 = vector.shape_cast %39 : vector<1x64x128xbf16> to vector<64x128xbf16>
    %cst_38 = arith.constant dense<0.000000e+00> : vector<24x128xf32>
    %41 = tpu.matmul %38, %40, %cst_38 {dimension_numbers = #tpu.dot_dimension_numbers<[1], [0], [0], [1], [0, 0, 1, 1], [], []>} : vector<24x64xbf16>, vector<64x128xbf16>, vector<24x128xf32> -> vector<24x128xf32>
    %42 = arith.addf %36, %41 : vector<24x128xf32>
    %c0_39 = arith.constant 0 : index
    %c13 = arith.constant 13 : index
    %c0_40 = arith.constant 0 : index
    %43 = vector.load %arg1[%c0_39, %c13, %c0_40] : memref<1x38x64xbf16, #tpu.memory_space<vmem>>, vector<1x24x64xbf16>
    %44 = vector.shape_cast %43 : vector<1x24x64xbf16> to vector<24x64xbf16>
    %c7_41 = arith.constant 7 : index
    %c0_42 = arith.constant 0 : index
    %c0_43 = arith.constant 0 : index
    %45 = vector.load %arg2[%c7_41, %c0_42, %c0_43] : memref<9x64x128xbf16, #tpu.memory_space<vmem>>, vector<1x64x128xbf16>
    %46 = vector.shape_cast %45 : vector<1x64x128xbf16> to vector<64x128xbf16>
    %cst_44 = arith.constant dense<0.000000e+00> : vector<24x128xf32>
    %47 = tpu.matmul %44, %46, %cst_44 {dimension_numbers = #tpu.dot_dimension_numbers<[1], [0], [0], [1], [0, 0, 1, 1], [], []>} : vector<24x64xbf16>, vector<64x128xbf16>, vector<24x128xf32> -> vector<24x128xf32>
    %48 = arith.addf %42, %47 : vector<24x128xf32>
    %c0_45 = arith.constant 0 : index
    %c14 = arith.constant 14 : index
    %c0_46 = arith.constant 0 : index
    %49 = vector.load %arg1[%c0_45, %c14, %c0_46] : memref<1x38x64xbf16, #tpu.memory_space<vmem>>, vector<1x24x64xbf16>
    %50 = vector.shape_cast %49 : vector<1x24x64xbf16> to vector<24x64xbf16>
    %c8_47 = arith.constant 8 : index
    %c0_48 = arith.constant 0 : index
    %c0_49 = arith.constant 0 : index
    %51 = vector.load %arg2[%c8_47, %c0_48, %c0_49] : memref<9x64x128xbf16, #tpu.memory_space<vmem>>, vector<1x64x128xbf16>
    %52 = vector.shape_cast %51 : vector<1x64x128xbf16> to vector<64x128xbf16>
    %cst_50 = arith.constant dense<0.000000e+00> : vector<24x128xf32>
    %53 = tpu.matmul %50, %52, %cst_50 {dimension_numbers = #tpu.dot_dimension_numbers<[1], [0], [0], [1], [0, 0, 1, 1], [], []>} : vector<24x64xbf16>, vector<64x128xbf16>, vector<24x128xf32> -> vector<24x128xf32>
    %54 = arith.addf %48, %53 : vector<24x128xf32>
    %c0_51 = arith.constant 0 : index
    %c0_52 = arith.constant 0 : index
    %55 = vector.load %arg3[%c0_51, %c0_52] : memref<24x1xf32, #tpu.memory_space<vmem>>, vector<24x1xf32>
    %56 = vector.broadcast %55 : vector<24x1xf32> to vector<24x128xf32>
    %57 = arith.mulf %54, %56 : vector<24x128xf32>
    %58 = arith.truncf %54 : vector<24x128xf32> to vector<24x128xbf16>
    %c0_53 = arith.constant 0 : index
    %c0_54 = arith.constant 0 : index
    %c0_55 = arith.constant 0 : index
    %59 = vector.load %arg4[%c0_53, %c0_54, %c0_55] : memref<1x24x128xbf16, #tpu.memory_space<vmem>>, vector<1x24x128xbf16>
    %60 = vector.shape_cast %59 : vector<1x24x128xbf16> to vector<24x128xbf16>
    %61 = vector.shape_cast %58 : vector<24x128xbf16> to vector<1x24x128xbf16>
    tpu.vector_store %arg4[%c0_53, %c0_54, %c0_55], %61 {strides = array<i32>} : memref<1x24x128xbf16, #tpu.memory_space<vmem>>, vector<1x24x128xbf16>,
    %cst_56 = arith.constant dense<0.000000e+00> : vector<128xf32>
    %62 = vector.multi_reduction <add>, %57, %cst_56 [0] : vector<24x128xf32> to vector<128xf32>
    %63 = vector.shape_cast %62 : vector<128xf32> to vector<1x128xf32>
    %64 = vector.shape_cast %63 : vector<1x128xf32> to vector<1x1x128xf32>
    %c0_57 = arith.constant 0 : index
    %c0_58 = arith.constant 0 : index
    %c0_59 = arith.constant 0 : index
    %65 = vector.load %arg5[%c0_57, %c0_58, %c0_59] : memref<1x1x128xf32, #tpu.memory_space<vmem>>, vector<1x1x128xf32>
    tpu.vector_store %arg5[%c0_57, %c0_58, %c0_59], %64 {strides = array<i32>} : memref<1x1x128xf32, #tpu.memory_space<vmem>>, vector<1x1x128xf32>,
    %66 = arith.mulf %54, %57 : vector<24x128xf32>
    %cst_60 = arith.constant dense<0.000000e+00> : vector<128xf32>
    %67 = vector.multi_reduction <add>, %66, %cst_60 [0] : vector<24x128xf32> to vector<128xf32>
    %68 = vector.shape_cast %67 : vector<128xf32> to vector<1x128xf32>
    %69 = vector.shape_cast %68 : vector<1x128xf32> to vector<1x1x128xf32>
    %c0_61 = arith.constant 0 : index
    %c0_62 = arith.constant 0 : index
    %c0_63 = arith.constant 0 : index
    %70 = vector.load %arg6[%c0_61, %c0_62, %c0_63] : memref<1x1x128xf32, #tpu.memory_space<vmem>>, vector<1x1x128xf32>
    tpu.vector_store %arg6[%c0_61, %c0_62, %c0_63], %69 {strides = array<i32>} : memref<1x1x128xf32, #tpu.memory_space<vmem>>, vector<1x1x128xf32>,
    return
  }
  func.func @transform_0(%arg0: i32) -> (i32, i32, i32) {
    %c0_i32 = arith.constant 0 : i32
    %c0_i32_0 = arith.constant 0 : i32
    %c0_i32_1 = arith.constant 0 : i32
    return %arg0, %c0_i32, %c0_i32_0 : i32, i32, i32
  }
  func.func @transform_1(%arg0: i32) -> (i32, i32, i32) {
    %c0_i32 = arith.constant 0 : i32
    %c0_i32_0 = arith.constant 0 : i32
    %c0_i32_1 = arith.constant 0 : i32
    %c0_i32_2 = arith.constant 0 : i32
    return %c0_i32, %c0_i32_0, %c0_i32_1 : i32, i32, i32
  }
  func.func @transform_2(%arg0: i32) -> (i32, i32) {
    %c0_i32 = arith.constant 0 : i32
    %c0_i32_0 = arith.constant 0 : i32
    %c0_i32_1 = arith.constant 0 : i32
    return %c0_i32, %c0_i32_0 : i32, i32
  }
  func.func @transform_3(%arg0: i32) -> (i32, i32, i32) {
    %c0_i32 = arith.constant 0 : i32
    %c0_i32_0 = arith.constant 0 : i32
    %c0_i32_1 = arith.constant 0 : i32
    return %arg0, %c0_i32, %c0_i32_0 : i32, i32, i32
  }
  func.func @transform_4(%arg0: i32) -> (i32, i32, i32) {
    %c0_i32 = arith.constant 0 : i32
    %c0_i32_0 = arith.constant 0 : i32
    %c0_i32_1 = arith.constant 0 : i32
    return %arg0, %c0_i32, %c0_i32_0 : i32, i32, i32
  }
  func.func @transform_5(%arg0: i32) -> (i32, i32, i32) {
    %c0_i32 = arith.constant 0 : i32
    %c0_i32_0 = arith.constant 0 : i32
    %c0_i32_1 = arith.constant 0 : i32
    return %arg0, %c0_i32, %c0_i32_0 : i32, i32, i32
  }
}

module attributes {stable_mosaic.version = 11 : i64} {
  func.func @_bn_add_relu_kernel(%arg0: i32, %arg1: memref<1x24x128xbf16, #tpu.memory_space<vmem>>, %arg2: memref<2x1x128xf32, #tpu.memory_space<vmem>>, %arg3: memref<2x1x128xf32, #tpu.memory_space<vmem>>, %arg4: memref<1x24x128xbf16, #tpu.memory_space<vmem>>, %arg5: memref<1x24x128xbf16, #tpu.memory_space<vmem>>) attributes {dimension_semantics = [#tpu.dimension_semantics<parallel>], iteration_bounds = array<i64: 2>, scalar_prefetch = 0 : i64, scratch_operands = 0 : i64, tpu.core_type = #tpu.core_type<tc>, window_params = [{transform_indices = @transform_0, window_bounds = array<i64: 1, 24, 128>}, {pipeline_mode = #tpu.pipeline_mode<synchronous>, transform_indices = @transform_1, window_bounds = array<i64: 2, 1, 128>}, {pipeline_mode = #tpu.pipeline_mode<synchronous>, transform_indices = @transform_2, window_bounds = array<i64: 2, 1, 128>}, {transform_indices = @transform_3, window_bounds = array<i64: 1, 24, 128>}, {transform_indices = @transform_4, window_bounds = array<i64: 1, 24, 128>}]} {
    %c0 = arith.constant 0 : index
    %c0_0 = arith.constant 0 : index
    %c0_1 = arith.constant 0 : index
    %0 = vector.load %arg2[%c0, %c0_0, %c0_1] : memref<2x1x128xf32, #tpu.memory_space<vmem>>, vector<2x1x128xf32>
    %cst = arith.constant dense<0.000000e+00> : vector<1x128xf32>
    %1 = vector.multi_reduction <add>, %0, %cst [0] : vector<2x1x128xf32> to vector<1x128xf32>
    %cst_2 = arith.constant 3.125000e-02 : f32
    %2 = vector.broadcast %cst_2 : f32 to vector<1x128xf32>
    %3 = arith.mulf %1, %2 : vector<1x128xf32>
    %c0_3 = arith.constant 0 : index
    %c0_4 = arith.constant 0 : index
    %c0_5 = arith.constant 0 : index
    %4 = vector.load %arg3[%c0_3, %c0_4, %c0_5] : memref<2x1x128xf32, #tpu.memory_space<vmem>>, vector<2x1x128xf32>
    %cst_6 = arith.constant dense<0.000000e+00> : vector<1x128xf32>
    %5 = vector.multi_reduction <add>, %4, %cst_6 [0] : vector<2x1x128xf32> to vector<1x128xf32>
    %cst_7 = arith.constant 3.125000e-02 : f32
    %6 = vector.broadcast %cst_7 : f32 to vector<1x128xf32>
    %7 = arith.mulf %5, %6 : vector<1x128xf32>
    %8 = arith.mulf %3, %3 : vector<1x128xf32>
    %9 = arith.subf %7, %8 : vector<1x128xf32>
    %cst_8 = arith.constant 9.99999974E-6 : f32
    %10 = vector.broadcast %cst_8 : f32 to vector<1x128xf32>
    %11 = arith.addf %9, %10 : vector<1x128xf32>
    %12 = math.rsqrt %11 : vector<1x128xf32>
    %c0_9 = arith.constant 0 : index
    %c0_10 = arith.constant 0 : index
    %c0_11 = arith.constant 0 : index
    %13 = vector.load %arg1[%c0_9, %c0_10, %c0_11] : memref<1x24x128xbf16, #tpu.memory_space<vmem>>, vector<1x24x128xbf16>
    %14 = vector.shape_cast %13 : vector<1x24x128xbf16> to vector<24x128xbf16>
    %15 = arith.extf %14 : vector<24x128xbf16> to vector<24x128xf32>
    %16 = vector.broadcast %3 : vector<1x128xf32> to vector<24x128xf32>
    %17 = arith.subf %15, %16 : vector<24x128xf32>
    %18 = vector.broadcast %12 : vector<1x128xf32> to vector<24x128xf32>
    %19 = arith.mulf %17, %18 : vector<24x128xf32>
    %c0_12 = arith.constant 0 : index
    %c0_13 = arith.constant 0 : index
    %c0_14 = arith.constant 0 : index
    %20 = vector.load %arg4[%c0_12, %c0_13, %c0_14] : memref<1x24x128xbf16, #tpu.memory_space<vmem>>, vector<1x24x128xbf16>
    %21 = vector.shape_cast %20 : vector<1x24x128xbf16> to vector<24x128xbf16>
    %22 = arith.extf %21 : vector<24x128xbf16> to vector<24x128xf32>
    %23 = arith.addf %19, %22 : vector<24x128xf32>
    %cst_15 = arith.constant 0.000000e+00 : f32
    %24 = vector.broadcast %cst_15 : f32 to vector<24x128xf32>
    %25 = arith.maximumf %23, %24 : vector<24x128xf32>
    %26 = arith.truncf %25 : vector<24x128xf32> to vector<24x128xbf16>
    %c0_16 = arith.constant 0 : index
    %c0_17 = arith.constant 0 : index
    %c0_18 = arith.constant 0 : index
    %27 = vector.load %arg5[%c0_16, %c0_17, %c0_18] : memref<1x24x128xbf16, #tpu.memory_space<vmem>>, vector<1x24x128xbf16>
    %28 = vector.shape_cast %27 : vector<1x24x128xbf16> to vector<24x128xbf16>
    %29 = vector.shape_cast %26 : vector<24x128xbf16> to vector<1x24x128xbf16>
    tpu.vector_store %arg5[%c0_16, %c0_17, %c0_18], %29 {strides = array<i32>} : memref<1x24x128xbf16, #tpu.memory_space<vmem>>, vector<1x24x128xbf16>,
    return
  }
  func.func @transform_0(%arg0: i32) -> (i32, i32, i32) {
    %c0_i32 = arith.constant 0 : i32
    %c0_i32_0 = arith.constant 0 : i32
    %c0_i32_1 = arith.constant 0 : i32
    return %arg0, %c0_i32, %c0_i32_0 : i32, i32, i32
  }
  func.func @transform_1(%arg0: i32) -> (i32, i32, i32) {
    %c0_i32 = arith.constant 0 : i32
    %c0_i32_0 = arith.constant 0 : i32
    %c0_i32_1 = arith.constant 0 : i32
    %c0_i32_2 = arith.constant 0 : i32
    return %c0_i32, %c0_i32_0, %c0_i32_1 : i32, i32, i32
  }
  func.func @transform_2(%arg0: i32) -> (i32, i32, i32) {
    %c0_i32 = arith.constant 0 : i32
    %c0_i32_0 = arith.constant 0 : i32
    %c0_i32_1 = arith.constant 0 : i32
    %c0_i32_2 = arith.constant 0 : i32
    return %c0_i32, %c0_i32_0, %c0_i32_1 : i32, i32, i32
  }
  func.func @transform_3(%arg0: i32) -> (i32, i32, i32) {
    %c0_i32 = arith.constant 0 : i32
    %c0_i32_0 = arith.constant 0 : i32
    %c0_i32_1 = arith.constant 0 : i32
    return %arg0, %c0_i32, %c0_i32_0 : i32, i32, i32
  }
  func.func @transform_4(%arg0: i32) -> (i32, i32, i32) {
    %c0_i32 = arith.constant 0 : i32
    %c0_i32_0 = arith.constant 0 : i32
    %c0_i32_1 = arith.constant 0 : i32
    return %arg0, %c0_i32, %c0_i32_0 : i32, i32, i32
  }
}

module attributes {stable_mosaic.version = 11 : i64} {
  func.func @_avgpool_kernel(%arg0: i32, %arg1: memref<2x16x64xbf16, #tpu.memory_space<vmem>>, %arg2: memref<2x64xf32, #tpu.memory_space<vmem>>) attributes {dimension_semantics = [#tpu.dimension_semantics<arbitrary>], iteration_bounds = array<i64: 1>, scalar_prefetch = 0 : i64, scratch_operands = 0 : i64, tpu.core_type = #tpu.core_type<tc>, window_params = [{pipeline_mode = #tpu.pipeline_mode<synchronous>, transform_indices = @transform_0, window_bounds = array<i64: 2, 16, 64>}, {pipeline_mode = #tpu.pipeline_mode<synchronous>, transform_indices = @transform_1, window_bounds = array<i64: 2, 64>}]} {
    %c0 = arith.constant 0 : index
    %c0_0 = arith.constant 0 : index
    %c0_1 = arith.constant 0 : index
    %0 = vector.load %arg1[%c0, %c0_0, %c0_1] : memref<2x16x64xbf16, #tpu.memory_space<vmem>>, vector<2x16x64xbf16>
    %1 = arith.extf %0 : vector<2x16x64xbf16> to vector<2x16x64xf32>
    %cst = arith.constant dense<0.000000e+00> : vector<2x64xf32>
    %2 = vector.multi_reduction <add>, %1, %cst [1] : vector<2x16x64xf32> to vector<2x64xf32>
    %cst_2 = arith.constant 1.600000e+01 : f32
    %3 = vector.broadcast %cst_2 : f32 to vector<2x64xf32>
    %4 = arith.divf %2, %3 : vector<2x64xf32>
    %c0_3 = arith.constant 0 : index
    %c0_4 = arith.constant 0 : index
    %5 = vector.load %arg2[%c0_3, %c0_4] : memref<2x64xf32, #tpu.memory_space<vmem>>, vector<2x64xf32>
    tpu.vector_store %arg2[%c0_3, %c0_4], %4 {strides = array<i32>} : memref<2x64xf32, #tpu.memory_space<vmem>>, vector<2x64xf32>,
    return
  }
  func.func @transform_0(%arg0: i32) -> (i32, i32, i32) {
    %c0_i32 = arith.constant 0 : i32
    %c0_i32_0 = arith.constant 0 : i32
    %c0_i32_1 = arith.constant 0 : i32
    %c0_i32_2 = arith.constant 0 : i32
    return %c0_i32, %c0_i32_0, %c0_i32_1 : i32, i32, i32
  }
  func.func @transform_1(%arg0: i32) -> (i32, i32) {
    %c0_i32 = arith.constant 0 : i32
    %c0_i32_0 = arith.constant 0 : i32
    %c0_i32_1 = arith.constant 0 : i32
    return %c0_i32, %c0_i32_0 : i32, i32
  }
}

module attributes {stable_mosaic.version = 11 : i64} {
  func.func @_linear_kernel(%arg0: i32, %arg1: memref<2x64xf32, #tpu.memory_space<vmem>>, %arg2: memref<64x10xf32, #tpu.memory_space<vmem>>, %arg3: memref<1x10xf32, #tpu.memory_space<vmem>>, %arg4: memref<2x10xf32, #tpu.memory_space<vmem>>) attributes {dimension_semantics = [#tpu.dimension_semantics<arbitrary>], iteration_bounds = array<i64: 1>, scalar_prefetch = 0 : i64, scratch_operands = 0 : i64, tpu.core_type = #tpu.core_type<tc>, window_params = [{pipeline_mode = #tpu.pipeline_mode<synchronous>, transform_indices = @transform_0, window_bounds = array<i64: 2, 64>}, {pipeline_mode = #tpu.pipeline_mode<synchronous>, transform_indices = @transform_1, window_bounds = array<i64: 64, 10>}, {pipeline_mode = #tpu.pipeline_mode<synchronous>, transform_indices = @transform_2, window_bounds = array<i64: 1, 10>}, {pipeline_mode = #tpu.pipeline_mode<synchronous>, transform_indices = @transform_3, window_bounds = array<i64: 2, 10>}]} {
    %c0 = arith.constant 0 : index
    %c0_0 = arith.constant 0 : index
    %0 = vector.load %arg1[%c0, %c0_0] : memref<2x64xf32, #tpu.memory_space<vmem>>, vector<2x64xf32>
    %c0_1 = arith.constant 0 : index
    %c0_2 = arith.constant 0 : index
    %1 = vector.load %arg2[%c0_1, %c0_2] : memref<64x10xf32, #tpu.memory_space<vmem>>, vector<64x10xf32>
    %cst = arith.constant dense<0.000000e+00> : vector<2x10xf32>
    %2 = tpu.matmul %0, %1, %cst {dimension_numbers = #tpu.dot_dimension_numbers<[1], [0], [0], [1], [0, 0, 1, 1], [], []>} : vector<2x64xf32>, vector<64x10xf32>, vector<2x10xf32> -> vector<2x10xf32>
    %c0_3 = arith.constant 0 : index
    %c0_4 = arith.constant 0 : index
    %3 = vector.load %arg3[%c0_3, %c0_4] : memref<1x10xf32, #tpu.memory_space<vmem>>, vector<1x10xf32>
    %4 = vector.broadcast %3 : vector<1x10xf32> to vector<2x10xf32>
    %5 = arith.addf %2, %4 : vector<2x10xf32>
    %c0_5 = arith.constant 0 : index
    %c0_6 = arith.constant 0 : index
    %6 = vector.load %arg4[%c0_5, %c0_6] : memref<2x10xf32, #tpu.memory_space<vmem>>, vector<2x10xf32>
    tpu.vector_store %arg4[%c0_5, %c0_6], %5 {strides = array<i32>} : memref<2x10xf32, #tpu.memory_space<vmem>>, vector<2x10xf32>,
    return
  }
  func.func @transform_0(%arg0: i32) -> (i32, i32) {
    %c0_i32 = arith.constant 0 : i32
    %c0_i32_0 = arith.constant 0 : i32
    %c0_i32_1 = arith.constant 0 : i32
    return %c0_i32, %c0_i32_0 : i32, i32
  }
  func.func @transform_1(%arg0: i32) -> (i32, i32) {
    %c0_i32 = arith.constant 0 : i32
    %c0_i32_0 = arith.constant 0 : i32
    %c0_i32_1 = arith.constant 0 : i32
    return %c0_i32, %c0_i32_0 : i32, i32
  }
  func.func @transform_2(%arg0: i32) -> (i32, i32) {
    %c0_i32 = arith.constant 0 : i32
    %c0_i32_0 = arith.constant 0 : i32
    %c0_i32_1 = arith.constant 0 : i32
    return %c0_i32, %c0_i32_0 : i32, i32
  }
  func.func @transform_3(%arg0: i32) -> (i32, i32) {
    %c0_i32 = arith.constant 0 : i32
    %c0_i32_0 = arith.constant 0 : i32
    %c0_i32_1 = arith.constant 0 : i32
    return %c0_i32, %c0_i32_0 : i32, i32
  }
}

</mosaic_0001>

<bundles_post_ra>
// kernel: resnet_forward.16
= control target key start
LH: loop header
LB: loop body
LE: loop exit
PB: predicated region body
PF: predicated region fallthrough
CT: control target
= control target key end

     0   :  { %v153_v0 = vlaneseq  ;;  %s1651_s0 = inlined_call_operand.vmem [shape: bf16[1,512,128], index: 0, kind: input, shape index: {}]   ;;  %s1652_s1 = inlined_call_operand.vmem [shape: f32[1,1,128], index: 1, kind: input, shape index: {}]   ;;  %s1653_s2 = inlined_call_operand.vmem [shape: f32[1,1,128], index: 2, kind: input, shape index: {}]   ;;  %s1654_s3 = inlined_call_operand.vmem [shape: bf16[1,512,128], index: 3, kind: output, shape index: {}]  }
   0x1   :  { %v14_v1 = vld [vmem:[%s1652_s1] sm:$0x1]  ;;  %v1096_v8 = vld [vmem:[%s1651_s0 + $0x8] sm:$0xff]   ;;  %v1097_v9 = vld [vmem:[%s1651_s0 + $0x10] sm:$0xff]  }
   0x2   :  { %v17_v2 = vld [vmem:[%s1653_s2] sm:$0x1]  ;;  %v16_v4 = vmul.f32 0.001953125, %v14_v1  ;;  %v1098_v10 = vld [vmem:[%s1651_s0 + $0x18] sm:$0xff]   ;;  %v1198_v11 = vshrl.u32 %v153_v0, 7  ;;  %v814_v12 = vunpack.c.l.bf16 %v1096_v8  ;;  %v815_v13 = vunpack.c.h.bf16 %v1096_v8  ;;  %v1100_v16 = vld [vmem:[%s1651_s0 + $0x28] sm:$0xff]  }
   0x3   :  { %v809_v3 = vld [vmem:[%s1651_s0] sm:$0xff]   ;;  %v19_v5 = vmul.f32 0.001953125, %v17_v2  ;;  %v818_v14 = vunpack.c.l.bf16 %v1097_v9  ;;  %v1101_v17 = vld [vmem:[%s1651_s0 + $0x30] sm:$0xff]   ;;  %v819_v19 = vunpack.c.h.bf16 %v1097_v9  ;;  %v822_v20 = vunpack.c.l.bf16 %v1098_v10  ;;  %v1102_v22 = vld [vmem:[%s1651_s0 + $0x38] sm:$0xff]  }
   0x4   :  { %v810_v6 = vunpack.c.l.bf16 %v809_v3  ;;  %v811_v7 = vunpack.c.h.bf16 %v809_v3  ;;  %v1099_v15 = vld [vmem:[%s1651_s0 + $0x20] sm:$0xff]   ;;  %v20_v18 = vmul.f32 %v16_v4, %v16_v4  ;;  %v823_v21 = vunpack.c.h.bf16 %v1098_v10  ;;  %v1104_v28 = vld [vmem:[%s1651_s0 + $0x48] sm:$0xff]   ;;  %v1105_v52 = vld [vmem:[%s1651_s0 + $0x50] sm:$0xff]  }
   0x5   :  { %v1103_v23 = vld [vmem:[%s1651_s0 + $0x40] sm:$0xff]   ;;  %v155_v24 = vsub.s32 0, %v1198_v11  ;;  %v826_v25 = vunpack.c.l.bf16 %v1099_v15  ;;  %v827_v26 = vunpack.c.h.bf16 %v1099_v15  ;;  %v830_v27 = vunpack.c.l.bf16 %v1100_v16  ;;  %v1106_v53 = vld [vmem:[%s1651_s0 + $0x58] sm:$0xff]   ;;  %v1108_v59 = vld [vmem:[%s1651_s0 + $0x68] sm:$0xff]  }
   0x6   :  { %v21_v29 = vsub.f32 %v19_v5, %v20_v18  ;;  %v831_v30 = vunpack.c.h.bf16 %v1100_v16  ;;  %v834_v31 = vunpack.c.l.bf16 %v1101_v17  ;;  %v835_v32 = vunpack.c.h.bf16 %v1101_v17  ;;  %v1107_v58 = vld [vmem:[%s1651_s0 + $0x60] sm:$0xff]   ;;  %v1109_v8 = vld [vmem:[%s1651_s0 + $0x70] sm:$0xff]   ;;  %v1110_v9 = vld [vmem:[%s1651_s0 + $0x78] sm:$0xff]  }
   0x7   :  { %v1221_v33 = vrot.slane %v16_v4, %v155_v24  ;;  %v838_v34 = vunpack.c.l.bf16 %v1102_v22  ;;  %v839_v35 = vunpack.c.h.bf16 %v1102_v22  ;;  %v842_v36 = vunpack.c.l.bf16 %v1103_v23  ;;  %v1111_v15 = vld [vmem:[%s1651_s0 + $0x80] sm:$0xff]   ;;  %v1112_v16 = vld [vmem:[%s1651_s0 + $0x88] sm:$0xff]  }
   0x8   :  { %v22_v37 = vadd.f32 1e-05, %v21_v29  ;;  %v843_v38 = vunpack.c.h.bf16 %v1103_v23  ;;  %v846_v39 = vunpack.c.l.bf16 %v1104_v28  ;;  %v847_v40 = vunpack.c.h.bf16 %v1104_v28 }
   0x9   :  { %v1224_v41 = vsub.f32 %v810_v6, %v1221_v33  ;;  %v1227_v42 = vsub.f32 %v811_v7, %v1221_v33  ;;  %v1230_v43 = vsub.f32 %v814_v12, %v1221_v33  ;;  %v1233_v44 = vsub.f32 %v815_v13, %v1221_v33 }
   0xa   :  { %1158 = vrsqrt.f32 %v22_v37  ;;  %v1236_v45 = vsub.f32 %v818_v14, %v1221_v33  ;;  %v1239_v46 = vsub.f32 %v819_v19, %v1221_v33  ;;  %v1242_v47 = vsub.f32 %v822_v20, %v1221_v33  ;;  %v1115_v37 = vld [vmem:[%s1651_s0 + $0xa0] sm:$0xff]  }
   0xb   :  { %v1245_v48 = vsub.f32 %v823_v21, %v1221_v33  ;;  %v1248_v49 = vsub.f32 %v826_v25, %v1221_v33  ;;  %v1251_v50 = vsub.f32 %v827_v26, %v1221_v33  ;;  %v1254_v51 = vsub.f32 %v830_v27, %v1221_v33 }
   0xc   :  { %v1263_v54 = vsub.f32 %v831_v30, %v1221_v33  ;;  %v1266_v55 = vsub.f32 %v834_v31, %v1221_v33  ;;  %v1269_v56 = vsub.f32 %v835_v32, %v1221_v33  ;;  %v1272_v57 = vsub.f32 %v838_v34, %v1221_v33  ;;  %v1113_v30 = vld [vmem:[%s1651_s0 + $0x90] sm:$0xff]   ;;  %v1114_v31 = vld [vmem:[%s1651_s0 + $0x98] sm:$0xff]  }
   0xd   :  { %v1281_v60 = vsub.f32 %v839_v35, %v1221_v33  ;;  %v1284_v61 = vsub.f32 %v842_v36, %v1221_v33  ;;  %v1287_v62 = vsub.f32 %v843_v38, %v1221_v33  ;;  %v1290_v63 = vsub.f32 %v846_v39, %v1221_v33  ;;  %v1352_v38 = vld [vmem:[%s1651_s0 + $0xa8] sm:$0xff]  }
   0xe   :  { %v1293_v0 = vsub.f32 %v847_v40, %v1221_v33  ;;  %v850_v1 = vunpack.c.l.bf16 %v1105_v52  ;;  %v851_v2 = vunpack.c.h.bf16 %v1105_v52  ;;  %v854_v3 = vunpack.c.l.bf16 %v1106_v53 }
   0xf   :  { %v855_v4 = vunpack.c.h.bf16 %v1106_v53  ;;  %v858_v5 = vunpack.c.l.bf16 %v1107_v58  ;;  %v859_v6 = vunpack.c.h.bf16 %v1107_v58  ;;  %v862_v7 = vunpack.c.l.bf16 %v1108_v59 }
  0x10   :  { %v1302_v10 = vsub.f32 %v850_v1, %v1221_v33  ;;  %v1305_v12 = vsub.f32 %v851_v2, %v1221_v33  ;;  %v1308_v13 = vsub.f32 %v854_v3, %v1221_v33  ;;  %v863_v14 = vunpack.c.h.bf16 %v1108_v59 }
  0x11   :  { %v1317_v17 = vsub.f32 %v855_v4, %v1221_v33  ;;  %v1320_v18 = vsub.f32 %v858_v5, %v1221_v33  ;;  %v1323_v19 = vsub.f32 %v859_v6, %v1221_v33  ;;  %v1326_v20 = vsub.f32 %v862_v7, %v1221_v33 }
  0x12   :  { %v1329_v21 = vsub.f32 %v863_v14, %v1221_v33  ;;  %v866_v22 = vunpack.c.l.bf16 %v1109_v8  ;;  %v867_v23 = vunpack.c.h.bf16 %v1109_v8  ;;  %v870_v25 = vunpack.c.l.bf16 %v1110_v9 }
  0x13   :  { %v871_v26 = vunpack.c.h.bf16 %v1110_v9  ;;  %v874_v27 = vunpack.c.l.bf16 %v1111_v15  ;;  %v875_v28 = vunpack.c.h.bf16 %v1111_v15  ;;  %v878_v29 = vunpack.c.l.bf16 %v1112_v16 }
  0x14   :  { %v1338_v32 = vsub.f32 %v866_v22, %v1221_v33  ;;  %v1341_v34 = vsub.f32 %v867_v23, %v1221_v33  ;;  %v1344_v35 = vsub.f32 %v870_v25, %v1221_v33  ;;  %v879_v36 = vunpack.c.h.bf16 %v1112_v16 }
  0x15   :  { %v1355_v39 = vsub.f32 %v871_v26, %v1221_v33  ;;  %v1358_v40 = vsub.f32 %v874_v27, %v1221_v33  ;;  %v1361_v52 = vsub.f32 %v875_v28, %v1221_v33  ;;  %v1364_v53 = vsub.f32 %v878_v29, %v1221_v33 }
  0x16   :  { %v1367_v58 = vsub.f32 %v879_v36, %v1221_v33  ;;  %v882_v59 = vunpack.c.l.bf16 %v1113_v30  ;;  %v883_v1 = vunpack.c.h.bf16 %v1113_v30  ;;  %v886_v2 = vunpack.c.l.bf16 %v1114_v31 }
  0x17   :  { %v1159_v3 = vpop.eup %1158  ;;  %v887_v4 = vunpack.c.h.bf16 %v1114_v31  ;;  %v890_v5 = vunpack.c.l.bf16 %v1115_v37  ;;  %v891_v6 = vunpack.c.h.bf16 %v1115_v37  ;;  %v894_v7 = vunpack.c.l.bf16 %v1352_v38 }
  0x18   :  { %v1372_v8 = vrot.slane %v1159_v3, %v155_v24  ;;  %v1375_v9 = vsub.f32 %v882_v59, %v1221_v33  ;;  %v1378_v14 = vsub.f32 %v883_v1, %v1221_v33  ;;  %v1381_v15 = vsub.f32 %v886_v2, %v1221_v33 }
  0x19   :  { %v1384_v16 = vsub.f32 %v887_v4, %v1221_v33  ;;  %v1387_v22 = vsub.f32 %v890_v5, %v1221_v33  ;;  %v1390_v23 = vsub.f32 %v891_v6, %v1221_v33  ;;  %v895_v11 = vunpack.c.h.bf16 %v1352_v38 }
  0x1a   :  { %v228_v24 = vmul.f32 %v1372_v8, %v1224_v41  ;;  %v229_v25 = vmul.f32 %v1372_v8, %v1227_v42  ;;  %v230_v26 = vmul.f32 %v1372_v8, %v1230_v43  ;;  %v231_v27 = vmul.f32 %v1372_v8, %v1233_v44 }
  0x1b   :  { %v232_v28 = vmul.f32 %v1372_v8, %v1236_v45  ;;  %v233_v29 = vmul.f32 %v1372_v8, %v1239_v46  ;;  %v234_v30 = vmul.f32 %v1372_v8, %v1242_v47  ;;  %v235_v41 = vmul.f32 %v1372_v8, %v1245_v48 }
  0x1c   :  { %v292_v31 = vmax.f32 %v228_v24, 0.0  ;;  %v293_v42 = vmax.f32 %v229_v25, 0.0  ;;  %v294_v36 = vmax.f32 %v230_v26, 0.0  ;;  %v295_v37 = vmax.f32 %v231_v27, 0.0 }
  0x1d   :  { %v296_v43 = vmax.f32 %v232_v28, 0.0  ;;  %v297_v59 = vmax.f32 %v233_v29, 0.0  ;;  %v298_v1 = vmax.f32 %v234_v30, 0.0  ;;  %v299_v44 = vmax.f32 %v235_v41, 0.0 }
  0x1e   :  { %v939_v2 = vpack.c.bf16 %v293_v42, %v292_v31  ;;  %v944_v3 = vpack.c.bf16 %v295_v37, %v294_v36  ;;  %v236_v45 = vmul.f32 %v1372_v8, %v1248_v49  ;;  %v237_v46 = vmul.f32 %v1372_v8, %v1251_v50 }
  0x1f   :  { %v949_v47 = vpack.c.bf16 %v297_v59, %v296_v43  ;;  %v954_v4 = vpack.c.bf16 %v299_v44, %v298_v1  ;;  %v238_v48 = vmul.f32 %v1372_v8, %v1254_v51  ;;  %v239_v5 = vmul.f32 %v1372_v8, %v1263_v54 }
  0x20   :  { %940 = vst [vmem:[%s1654_s3] sm:$0xff] %v939_v2   ;;  %1127 = vst [vmem:[%s1654_s3 + $0x8] sm:$0xff] %v944_v3   ;;  %v300_v49 = vmax.f32 %v236_v45, 0.0  ;;  %v301_v6 = vmax.f32 %v237_v46, 0.0  ;;  %v240_v50 = vmul.f32 %v1372_v8, %v1266_v55  ;;  %v241_v24 = vmul.f32 %v1372_v8, %v1269_v56 }
  0x21   :  { %1128 = vst [vmem:[%s1654_s3 + $0x10] sm:$0xff] %v949_v47   ;;  %1129 = vst [vmem:[%s1654_s3 + $0x18] sm:$0xff] %v954_v4   ;;  %v302_v51 = vmax.f32 %v238_v48, 0.0  ;;  %v303_v54 = vmax.f32 %v239_v5, 0.0  ;;  %v242_v25 = vmul.f32 %v1372_v8, %v1272_v57  ;;  %v243_v26 = vmul.f32 %v1372_v8, %v1281_v60 }
  0x22   :  { %v959_v55 = vpack.c.bf16 %v301_v6, %v300_v49  ;;  %v304_v27 = vmax.f32 %v240_v50, 0.0  ;;  %v305_v28 = vmax.f32 %v241_v24, 0.0  ;;  %v244_v56 = vmul.f32 %v1372_v8, %v1284_v61 }
  0x23   :  { %v964_v29 = vpack.c.bf16 %v303_v54, %v302_v51  ;;  %v306_v30 = vmax.f32 %v242_v25, 0.0  ;;  %v307_v41 = vmax.f32 %v243_v26, 0.0  ;;  %v245_v31 = vmul.f32 %v1372_v8, %v1287_v62 }
  0x24   :  { %1130 = vst [vmem:[%s1654_s3 + $0x20] sm:$0xff] %v959_v55   ;;  %v969_v57 = vpack.c.bf16 %v305_v28, %v304_v27  ;;  %v308_v42 = vmax.f32 %v244_v56, 0.0  ;;  %v246_v60 = vmul.f32 %v1372_v8, %v1290_v63  ;;  %v247_v36 = vmul.f32 %v1372_v8, %v1293_v0 }
  0x25   :  { %1131 = vst [vmem:[%s1654_s3 + $0x28] sm:$0xff] %v964_v29   ;;  %v974_v61 = vpack.c.bf16 %v307_v41, %v306_v30  ;;  %v309_v37 = vmax.f32 %v245_v31, 0.0  ;;  %v248_v62 = vmul.f32 %v1372_v8, %v1302_v10  ;;  %v249_v43 = vmul.f32 %v1372_v8, %v1305_v12 }
  0x26   :  { %1132 = vst [vmem:[%s1654_s3 + $0x30] sm:$0xff] %v969_v57   ;;  %v310_v63 = vmax.f32 %v246_v60, 0.0  ;;  %v311_v59 = vmax.f32 %v247_v36, 0.0  ;;  %v250_v0 = vmul.f32 %v1372_v8, %v1308_v13  ;;  %v251_v1 = vmul.f32 %v1372_v8, %v1317_v17 }
  0x27   :  { %1133 = vst [vmem:[%s1654_s3 + $0x38] sm:$0xff] %v974_v61   ;;  %v979_v10 = vpack.c.bf16 %v309_v37, %v308_v42  ;;  %v312_v44 = vmax.f32 %v248_v62, 0.0  ;;  %v313_v2 = vmax.f32 %v249_v43, 0.0  ;;  %v252_v12 = vmul.f32 %v1372_v8, %v1320_v18  ;;  %v1117_v42 = vld [vmem:[%s1651_s0 + $0xb0] sm:$0xff]   ;;  %v1118_v61 = vld [vmem:[%s1651_s0 + $0xb8] sm:$0xff]  }
  0x28   :  { %v984_v3 = vpack.c.bf16 %v311_v59, %v310_v63  ;;  %v314_v45 = vmax.f32 %v250_v0, 0.0  ;;  %v315_v46 = vmax.f32 %v251_v1, 0.0  ;;  %v253_v47 = vmul.f32 %v1372_v8, %v1323_v19 }
  0x29   :  { %1134 = vst [vmem:[%s1654_s3 + $0x40] sm:$0xff] %v979_v10   ;;  %v989_v13 = vpack.c.bf16 %v313_v2, %v312_v44  ;;  %v316_v17 = vmax.f32 %v252_v12, 0.0  ;;  %v254_v4 = vmul.f32 %v1372_v8, %v1326_v20  ;;  %v255_v48 = vmul.f32 %v1372_v8, %v1329_v21 }
  0x2a   :  { %1135 = vst [vmem:[%s1654_s3 + $0x48] sm:$0xff] %v984_v3   ;;  %v994_v18 = vpack.c.bf16 %v315_v46, %v314_v45  ;;  %v317_v5 = vmax.f32 %v253_v47, 0.0  ;;  %v256_v19 = vmul.f32 %v1372_v8, %v1338_v32  ;;  %v257_v49 = vmul.f32 %v1372_v8, %v1341_v34  ;;  %v1120_v45 = vld [vmem:[%s1651_s0 + $0xc8] sm:$0xff]  }
  0x2b   :  { %1136 = vst [vmem:[%s1654_s3 + $0x50] sm:$0xff] %v989_v13   ;;  %v318_v20 = vmax.f32 %v254_v4, 0.0  ;;  %v319_v6 = vmax.f32 %v255_v48, 0.0  ;;  %v258_v21 = vmul.f32 %v1372_v8, %v1344_v35  ;;  %v259_v50 = vmul.f32 %v1372_v8, %v1355_v39 }
  0x2c   :  { %1137 = vst [vmem:[%s1654_s3 + $0x58] sm:$0xff] %v994_v18   ;;  %v999_v32 = vpack.c.bf16 %v317_v5, %v316_v17  ;;  %v320_v24 = vmax.f32 %v256_v19, 0.0  ;;  %v321_v51 = vmax.f32 %v257_v49, 0.0  ;;  %v260_v34 = vmul.f32 %v1372_v8, %v1358_v40 }
  0x2d   :  { %v1004_v54 = vpack.c.bf16 %v319_v6, %v318_v20  ;;  %v322_v25 = vmax.f32 %v258_v21, 0.0  ;;  %v323_v26 = vmax.f32 %v259_v50, 0.0  ;;  %v261_v55 = vmul.f32 %v1372_v8, %v1361_v52  ;;  %v1121_v21 = vld [vmem:[%s1651_s0 + $0xd0] sm:$0xff]  }
  0x2e   :  { %1138 = vst [vmem:[%s1654_s3 + $0x60] sm:$0xff] %v999_v32   ;;  %v1009_v35 = vpack.c.bf16 %v321_v51, %v320_v24  ;;  %v324_v39 = vmax.f32 %v260_v34, 0.0  ;;  %v262_v27 = vmul.f32 %v1372_v8, %v1364_v53  ;;  %v263_v28 = vmul.f32 %v1372_v8, %v1367_v58 }
  0x2f   :  { %1139 = vst [vmem:[%s1654_s3 + $0x68] sm:$0xff] %v1004_v54   ;;  %v1014_v40 = vpack.c.bf16 %v323_v26, %v322_v25  ;;  %v325_v56 = vmax.f32 %v261_v55, 0.0  ;;  %v264_v52 = vmul.f32 %v1372_v8, %v1375_v9  ;;  %v265_v29 = vmul.f32 %v1372_v8, %v1378_v14  ;;  %v1122_v55 = vld [vmem:[%s1651_s0 + $0xd8] sm:$0xff]  }
  0x30   :  { %1140 = vst [vmem:[%s1654_s3 + $0x70] sm:$0xff] %v1009_v35   ;;  %v326_v53 = vmax.f32 %v262_v27, 0.0  ;;  %v327_v30 = vmax.f32 %v263_v28, 0.0  ;;  %v266_v58 = vmul.f32 %v1372_v8, %v1381_v15  ;;  %v267_v41 = vmul.f32 %v1372_v8, %v1384_v16 }
  0x31   :  { %1141 = vst [vmem:[%s1654_s3 + $0x78] sm:$0xff] %v1014_v40   ;;  %v1019_v9 = vpack.c.bf16 %v325_v56, %v324_v39  ;;  %v328_v31 = vmax.f32 %v264_v52, 0.0  ;;  %v329_v57 = vmax.f32 %v265_v29, 0.0  ;;  %v268_v14 = vmul.f32 %v1372_v8, %v1387_v22  ;;  %v1123_v40 = vld [vmem:[%s1651_s0 + $0xe0] sm:$0xff]  }
  0x32   :  { %v1024_v60 = vpack.c.bf16 %v327_v30, %v326_v53  ;;  %v330_v36 = vmax.f32 %v266_v58, 0.0  ;;  %v331_v15 = vmax.f32 %v267_v41, 0.0  ;;  %v269_v16 = vmul.f32 %v1372_v8, %v1390_v23  ;;  %v1119_v23 = vld [vmem:[%s1651_s0 + $0xc0] sm:$0xff]  }
  0x33   :  { %1142 = vst [vmem:[%s1654_s3 + $0x80] sm:$0xff] %v1019_v9   ;;  %v1029_v37 = vpack.c.bf16 %v329_v57, %v328_v31  ;;  %v332_v22 = vmax.f32 %v268_v14, 0.0  ;;  %v200_v62 = vsub.f32 %v894_v7, %v1221_v33  ;;  %v201_v43 = vsub.f32 %v895_v11, %v1221_v33 }
  0x34   :  { %1143 = vst [vmem:[%s1654_s3 + $0x88] sm:$0xff] %v1024_v60   ;;  %v1034_v63 = vpack.c.bf16 %v331_v15, %v330_v36  ;;  %v333_v59 = vmax.f32 %v269_v16, 0.0  ;;  %v898_v0 = vunpack.c.l.bf16 %v1117_v42  ;;  %v899_v1 = vunpack.c.h.bf16 %v1117_v42  ;;  %v1124_v60 = vld [vmem:[%s1651_s0 + $0xe8] sm:$0xff]  }
  0x35   :  { %1144 = vst [vmem:[%s1654_s3 + $0x90] sm:$0xff] %v1029_v37   ;;  %v270_v7 = vmul.f32 %v1372_v8, %v200_v62  ;;  %v271_v38 = vmul.f32 %v1372_v8, %v201_v43  ;;  %v902_v11 = vunpack.c.l.bf16 %v1118_v61  ;;  %v903_v10 = vunpack.c.h.bf16 %v1118_v61 }
  0x36   :  { %1145 = vst [vmem:[%s1654_s3 + $0x98] sm:$0xff] %v1034_v63   ;;  %v1039_v44 = vpack.c.bf16 %v333_v59, %v332_v22  ;;  %v202_v2 = vsub.f32 %v898_v0, %v1221_v33  ;;  %v203_v12 = vsub.f32 %v899_v1, %v1221_v33  ;;  %v906_v3 = vunpack.c.l.bf16 %v1119_v23  ;;  %v1125_v1 = vld [vmem:[%s1651_s0 + $0xf0] sm:$0xff]  }
  0x37   :  { %v334_v46 = vmax.f32 %v270_v7, 0.0  ;;  %v335_v47 = vmax.f32 %v271_v38, 0.0  ;;  %v204_v13 = vsub.f32 %v902_v11, %v1221_v33  ;;  %v205_v17 = vsub.f32 %v903_v10, %v1221_v33 }
  0x38   :  { %1146 = vst [vmem:[%s1654_s3 + $0xa0] sm:$0xff] %v1039_v44   ;;  %v272_v4 = vmul.f32 %v1372_v8, %v202_v2  ;;  %v273_v48 = vmul.f32 %v1372_v8, %v203_v12  ;;  %v907_v18 = vunpack.c.h.bf16 %v1119_v23  ;;  %v206_v5 = vsub.f32 %v906_v3, %v1221_v33 }
  0x39   :  { %v1044_v19 = vpack.c.bf16 %v335_v47, %v334_v46  ;;  %v274_v49 = vmul.f32 %v1372_v8, %v204_v13  ;;  %v275_v20 = vmul.f32 %v1372_v8, %v205_v17  ;;  %v910_v6 = vunpack.c.l.bf16 %v1120_v45 }
  0x3a   :  { %v336_v50 = vmax.f32 %v272_v4, 0.0  ;;  %v337_v32 = vmax.f32 %v273_v48, 0.0  ;;  %v207_v24 = vsub.f32 %v907_v18, %v1221_v33  ;;  %v276_v51 = vmul.f32 %v1372_v8, %v206_v5 }
  0x3b   :  { %1147 = vst [vmem:[%s1654_s3 + $0xa8] sm:$0xff] %v1044_v19   ;;  %v338_v34 = vmax.f32 %v274_v49, 0.0  ;;  %v339_v54 = vmax.f32 %v275_v20, 0.0  ;;  %v911_v25 = vunpack.c.h.bf16 %v1120_v45  ;;  %v208_v26 = vsub.f32 %v910_v6, %v1221_v33  ;;  %v1126_v45 = vld [vmem:[%s1651_s0 + $0xf8] sm:$0xff]  }
  0x3c   :  { %v1049_v35 = vpack.c.bf16 %v337_v32, %v336_v50  ;;  %v277_v39 = vmul.f32 %v1372_v8, %v207_v24  ;;  %v340_v27 = vmax.f32 %v276_v51, 0.0  ;;  %v914_v28 = vunpack.c.l.bf16 %v1121_v21 }
  0x3d   :  { %v1054_v56 = vpack.c.bf16 %v339_v54, %v338_v34  ;;  %v209_v52 = vsub.f32 %v911_v25, %v1221_v33  ;;  %v278_v29 = vmul.f32 %v1372_v8, %v208_v26  ;;  %v915_v53 = vunpack.c.h.bf16 %v1121_v21 }
  0x3e   :  { %1148 = vst [vmem:[%s1654_s3 + $0xb0] sm:$0xff] %v1049_v35   ;;  %v341_v30 = vmax.f32 %v277_v39, 0.0  ;;  %v210_v58 = vsub.f32 %v914_v28, %v1221_v33  ;;  %v918_v41 = vunpack.c.l.bf16 %v1122_v55  ;;  %v919_v9 = vunpack.c.h.bf16 %v1122_v55 }
  0x3f   :  { %1149 = vst [vmem:[%s1654_s3 + $0xb8] sm:$0xff] %v1054_v56   ;;  %v279_v31 = vmul.f32 %v1372_v8, %v209_v52  ;;  %v342_v57 = vmax.f32 %v278_v29, 0.0  ;;  %v211_v14 = vsub.f32 %v915_v53, %v1221_v33  ;;  %v922_v42 = vunpack.c.l.bf16 %v1123_v40 }
  0x40   :  { %v1059_v36 = vpack.c.bf16 %v341_v30, %v340_v27  ;;  %v280_v15 = vmul.f32 %v1372_v8, %v210_v58  ;;  %v212_v16 = vsub.f32 %v918_v41, %v1221_v33  ;;  %v213_v61 = vsub.f32 %v919_v9, %v1221_v33 }
  0x41   :  { %v343_v37 = vmax.f32 %v279_v31, 0.0  ;;  %v281_v22 = vmul.f32 %v1372_v8, %v211_v14  ;;  %v923_v62 = vunpack.c.h.bf16 %v1123_v40  ;;  %v214_v43 = vsub.f32 %v922_v42, %v1221_v33 }
  0x42   :  { %1150 = vst [vmem:[%s1654_s3 + $0xc0] sm:$0xff] %v1059_v36   ;;  %v344_v23 = vmax.f32 %v280_v15, 0.0  ;;  %v282_v63 = vmul.f32 %v1372_v8, %v212_v16  ;;  %v283_v59 = vmul.f32 %v1372_v8, %v213_v61  ;;  %v926_v0 = vunpack.c.l.bf16 %v1124_v60 }
  0x43   :  { %v1064_v7 = vpack.c.bf16 %v343_v37, %v342_v57  ;;  %v345_v38 = vmax.f32 %v281_v22, 0.0  ;;  %v215_v11 = vsub.f32 %v923_v62, %v1221_v33  ;;  %v284_v10 = vmul.f32 %v1372_v8, %v214_v43 }
  0x44   :  { %v346_v44 = vmax.f32 %v282_v63, 0.0  ;;  %v347_v2 = vmax.f32 %v283_v59, 0.0  ;;  %v927_v12 = vunpack.c.h.bf16 %v1124_v60  ;;  %v216_v3 = vsub.f32 %v926_v0, %v1221_v33 }
  0x45   :  { %1151 = vst [vmem:[%s1654_s3 + $0xc8] sm:$0xff] %v1064_v7   ;;  %v1069_v46 = vpack.c.bf16 %v345_v38, %v344_v23  ;;  %v285_v47 = vmul.f32 %v1372_v8, %v215_v11  ;;  %v348_v13 = vmax.f32 %v284_v10, 0.0  ;;  %v930_v17 = vunpack.c.l.bf16 %v1125_v1 }
  0x46   :  { %v1074_v4 = vpack.c.bf16 %v347_v2, %v346_v44  ;;  %v217_v48 = vsub.f32 %v927_v12, %v1221_v33  ;;  %v286_v18 = vmul.f32 %v1372_v8, %v216_v3  ;;  %v931_v5 = vunpack.c.h.bf16 %v1125_v1 }
  0x47   :  { %1152 = vst [vmem:[%s1654_s3 + $0xd0] sm:$0xff] %v1069_v46   ;;  %v349_v19 = vmax.f32 %v285_v47, 0.0  ;;  %v218_v49 = vsub.f32 %v930_v17, %v1221_v33  ;;  %v934_v20 = vunpack.c.l.bf16 %v1126_v45  ;;  %v935_v6 = vunpack.c.h.bf16 %v1126_v45 }
  0x48   :  { %1153 = vst [vmem:[%s1654_s3 + $0xd8] sm:$0xff] %v1074_v4   ;;  %v287_v21 = vmul.f32 %v1372_v8, %v217_v48  ;;  %v350_v50 = vmax.f32 %v286_v18, 0.0  ;;  %v219_v32 = vsub.f32 %v931_v5, %v1221_v33 }
  0x49   :  { %v1079_v24 = vpack.c.bf16 %v349_v19, %v348_v13  ;;  %v288_v51 = vmul.f32 %v1372_v8, %v218_v49  ;;  %v220_v34 = vsub.f32 %v934_v20, %v1221_v33  ;;  %v221_v54 = vsub.f32 %v935_v6, %v1221_v33 }
  0x4a   :  { %v351_v25 = vmax.f32 %v287_v21, 0.0  ;;  %v289_v26 = vmul.f32 %v1372_v8, %v219_v32 }
  0x4b   :  { %1154 = vst [vmem:[%s1654_s3 + $0xe0] sm:$0xff] %v1079_v24   ;;  %v352_v55 = vmax.f32 %v288_v51, 0.0  ;;  %v290_v35 = vmul.f32 %v1372_v8, %v220_v34  ;;  %v291_v39 = vmul.f32 %v1372_v8, %v221_v54 }
  0x4c   :  { %v1084_v27 = vpack.c.bf16 %v351_v25, %v350_v50  ;;  %v353_v28 = vmax.f32 %v289_v26, 0.0 }
  0x4d   :  { %v354_v40 = vmax.f32 %v290_v35, 0.0  ;;  %v355_v56 = vmax.f32 %v291_v39, 0.0 }
  0x4e   :  { %1155 = vst [vmem:[%s1654_s3 + $0xe8] sm:$0xff] %v1084_v27   ;;  %v1089_v33 = vpack.c.bf16 %v353_v28, %v352_v55 }
  0x4f   :  { %v1094_v52 = vpack.c.bf16 %v355_v56, %v354_v40 }
  0x50   :  { %1156 = vst [vmem:[%s1654_s3 + $0xf0] sm:$0xff] %v1089_v33  }
  0x51   :  { %1157 = vst [vmem:[%s1654_s3 + $0xf8] sm:$0xff] %v1094_v52  }

// kernel: resnet_forward.15
= control target key start
LH: loop header
LB: loop body
LE: loop exit
PB: predicated region body
PF: predicated region fallthrough
CT: control target
= control target key end

     0   :  { %v1896_v0 = vmov 0   ;;  %s2620_s1 = inlined_call_operand.vmem [shape: bf16[256,128], index: 1, kind: input, shape index: {}]   ;;  %s2621_s0 = inlined_call_operand.vmem [shape: bf16[512,256], index: 0, kind: input, shape index: {}]   ;;  %s2622_s2 = inlined_call_operand.vmem [shape: bf16[512,128], index: 2, kind: output, shape index: {0}]   ;;  %s2623_s3 = inlined_call_operand.vmem [shape: f32[1,1,128], index: 3, kind: output, shape index: {1}]   ;;  %s2624_s4 = inlined_call_operand.vmem [shape: f32[1,1,128], index: 4, kind: output, shape index: {2}]  }
   0x1   :  { %527 = vmatprep.subr.bf16.mxu0 %v1896_v0  ;;  %v1784_v1 = vld [vmem:[%s2620_s1 + $0x38] sm:$0xff]   ;;  %1751 = vmatprep.subr.bf16.mxu1 %v1896_v0  ;;  %v1785_v2 = vld [vmem:[%s2620_s1 + $0x30] sm:$0xff]   ;;  %v1786_v3 = vld [vmem:[%s2620_s1 + $0x28] sm:$0xff]  }
   0x2   :  { %528 = vmatpush1.bf16.msra.mxu0 %v1784_v1  ;;  %1767 = vmatpush1.bf16.msra.mxu1 %v1784_v1  ;;  %v1787_v4 = vld [vmem:[%s2620_s1 + $0x20] sm:$0xff]   ;;  %v1788_v5 = vld [vmem:[%s2620_s1 + $0x18] sm:$0xff]   ;;  %v1789_v7 = vld [vmem:[%s2620_s1 + $0x10] sm:$0xff]  }
   0x3   :  { %529 = vmatprep.subr.bf16.mxu0 %v1896_v0  ;;  %1752 = vmatprep.subr.bf16.mxu1 %v1896_v0  ;;  %v1802_v6 = vld [vmem:[%s2621_s0 + $0x4] ss:$8 sps:$4 sm:$0xff]   ;;  %v1792_v11 = vld [vmem:[%s2620_s1 + $0x78] sm:$0xff]   ;;  %v1793_v12 = vld [vmem:[%s2620_s1 + $0x70] sm:$0xff]  }
   0x4   :  { %559 = vmatprep.mubr.bf16.mxu0 %v1802_v6  ;;  %v1790_v8 = vld [vmem:[%s2620_s1 + $0x8] sm:$0xff]   ;;  %v1791_v9 = vld [vmem:[%s2620_s1] sm:$0xff]   ;;  %v1796_v15 = vld [vmem:[%s2620_s1 + $0x58] sm:$0xff]  }
   0x5   :  { %v1826_v10 = vld [vmem:[%s2621_s0 + $0x104] ss:$8 sps:$4 sm:$0xff]   ;;  %v1797_v16 = vld [vmem:[%s2620_s1 + $0x50] sm:$0xff]   ;;  %v1800_v19 = vld [vmem:[%s2621_s0] ss:$8 sps:$4 sm:$0xff]  }
   0x6   :  { %530 = vmatpush1.bf16.msra.mxu0 %v1785_v2  ;;  %1768 = vmatpush1.bf16.msra.mxu1 %v1785_v2  ;;  %v1794_v13 = vld [vmem:[%s2620_s1 + $0x68] sm:$0xff]   ;;  %v1795_v14 = vld [vmem:[%s2620_s1 + $0x60] sm:$0xff]   ;;  %v1803_v21 = vld [vmem:[%s2621_s0 + $0x14] ss:$8 sps:$4 sm:$0xff]  }
   0x7   :  { %531 = vmatprep.subr.bf16.mxu0 %v1896_v0  ;;  %1753 = vmatprep.subr.bf16.mxu1 %v1896_v0  ;;  %v1798_v17 = vld [vmem:[%s2620_s1 + $0x48] sm:$0xff]   ;;  %v1799_v18 = vld [vmem:[%s2620_s1 + $0x40] sm:$0xff]   ;;  %v1830_v22 = vld [vmem:[%s2621_s0 + $0x114] ss:$8 sps:$4 sm:$0xff]  }
   0x8   :  { %687 = vmatprep.mubr.bf16.mxu1 %v1826_v10  ;;  %v1824_v20 = vld [vmem:[%s2621_s0 + $0x100] ss:$8 sps:$4 sm:$0xff]   ;;  %v1805_v23 = vld [vmem:[%s2621_s0 + $0x10] ss:$8 sps:$4 sm:$0xff]   ;;  %v1806_v25 = vld [vmem:[%s2621_s0 + $0x24] ss:$8 sps:$4 sm:$0xff]  }
   0x9   :  { %v1832_v24 = vld [vmem:[%s2621_s0 + $0x110] ss:$8 sps:$4 sm:$0xff]   ;;  %v1836_v26 = vld [vmem:[%s2621_s0 + $0x124] ss:$8 sps:$4 sm:$0xff]   ;;  %v1808_v27 = vld [vmem:[%s2621_s0 + $0x20] ss:$8 sps:$4 sm:$0xff]  }
   0xa   :  { %532 = vmatpush1.bf16.msra.mxu0 %v1786_v3  ;;  %1769 = vmatpush1.bf16.msra.mxu1 %v1786_v3  ;;  %v1838_v28 = vld [vmem:[%s2621_s0 + $0x120] ss:$8 sps:$4 sm:$0xff]   ;;  %v1809_v29 = vld [vmem:[%s2621_s0 + $0x34] ss:$8 sps:$4 sm:$0xff]   ;;  %v1811_v31 = vld [vmem:[%s2621_s0 + $0x30] ss:$8 sps:$4 sm:$0xff]  }
   0xb   :  { %533 = vmatprep.subr.bf16.mxu0 %v1896_v0  ;;  %1754 = vmatprep.subr.bf16.mxu1 %v1896_v0  ;;  %v1842_v30 = vld [vmem:[%s2621_s0 + $0x134] ss:$8 sps:$4 sm:$0xff]   ;;  %v1844_v32 = vld [vmem:[%s2621_s0 + $0x130] ss:$8 sps:$4 sm:$0xff]   ;;  %v1812_v33 = vld [vmem:[%s2621_s0 + $0x44] ss:$8 sps:$4 sm:$0xff]  }
   0xc   :  { %v1848_v34 = vld [vmem:[%s2621_s0 + $0x144] ss:$8 sps:$4 sm:$0xff]   ;;  %v1814_v35 = vld [vmem:[%s2621_s0 + $0x40] ss:$8 sps:$4 sm:$0xff]   ;;  %v1815_v37 = vld [vmem:[%s2621_s0 + $0x54] ss:$8 sps:$4 sm:$0xff]  }
   0xd   :  { %v1850_v36 = vld [vmem:[%s2621_s0 + $0x140] ss:$8 sps:$4 sm:$0xff]   ;;  %v1854_v38 = vld [vmem:[%s2621_s0 + $0x154] ss:$8 sps:$4 sm:$0xff]   ;;  %v1817_v39 = vld [vmem:[%s2621_s0 + $0x50] ss:$8 sps:$4 sm:$0xff]  }
   0xe   :  { %534 = vmatpush1.bf16.msra.mxu0 %v1787_v4  ;;  %1770 = vmatpush1.bf16.msra.mxu1 %v1787_v4  ;;  %v1856_v40 = vld [vmem:[%s2621_s0 + $0x150] ss:$8 sps:$4 sm:$0xff]   ;;  %v1818_v41 = vld [vmem:[%s2621_s0 + $0x64] ss:$8 sps:$4 sm:$0xff]   ;;  %v1820_v43 = vld [vmem:[%s2621_s0 + $0x60] ss:$8 sps:$4 sm:$0xff]  }
   0xf   :  { %535 = vmatprep.subr.bf16.mxu0 %v1896_v0  ;;  %1755 = vmatprep.subr.bf16.mxu1 %v1896_v0  ;;  %v1860_v42 = vld [vmem:[%s2621_s0 + $0x164] ss:$8 sps:$4 sm:$0xff]   ;;  %v1862_v44 = vld [vmem:[%s2621_s0 + $0x160] ss:$8 sps:$4 sm:$0xff]   ;;  %v1821_v45 = vld [vmem:[%s2621_s0 + $0x74] ss:$8 sps:$4 sm:$0xff]  }
  0x10   :  { %v1866_v46 = vld [vmem:[%s2621_s0 + $0x174] ss:$8 sps:$4 sm:$0xff]   ;;  %v1823_v47 = vld [vmem:[%s2621_s0 + $0x70] ss:$8 sps:$4 sm:$0xff]   ;;  %v1827_v49 = vld [vmem:[%s2621_s0 + $0x84] ss:$8 sps:$4 sm:$0xff]  }
  0x11   :  { %v1868_v48 = vld [vmem:[%s2621_s0 + $0x170] ss:$8 sps:$4 sm:$0xff]   ;;  %v1872_v50 = vld [vmem:[%s2621_s0 + $0x184] ss:$8 sps:$4 sm:$0xff]   ;;  %v1829_v51 = vld [vmem:[%s2621_s0 + $0x80] ss:$8 sps:$4 sm:$0xff]  }
  0x12   :  { %536 = vmatpush1.bf16.msra.mxu0 %v1788_v5  ;;  %1771 = vmatpush1.bf16.msra.mxu1 %v1788_v5  ;;  %v1874_v52 = vld [vmem:[%s2621_s0 + $0x180] ss:$8 sps:$4 sm:$0xff]   ;;  %v1833_v53 = vld [vmem:[%s2621_s0 + $0x94] ss:$8 sps:$4 sm:$0xff]   ;;  %v1835_v55 = vld [vmem:[%s2621_s0 + $0x90] ss:$8 sps:$4 sm:$0xff]  }
  0x13   :  { %537 = vmatprep.subr.bf16.mxu0 %v1896_v0  ;;  %1756 = vmatprep.subr.bf16.mxu1 %v1896_v0  ;;  %v1875_v54 = vld [vmem:[%s2621_s0 + $0x194] ss:$8 sps:$4 sm:$0xff]   ;;  %v1877_v56 = vld [vmem:[%s2621_s0 + $0x190] ss:$8 sps:$4 sm:$0xff]   ;;  %v1839_v57 = vld [vmem:[%s2621_s0 + $0xa4] ss:$8 sps:$4 sm:$0xff]  }
  0x14   :  { %v1878_v58 = vld [vmem:[%s2621_s0 + $0x1a4] ss:$8 sps:$4 sm:$0xff]   ;;  %v1841_v59 = vld [vmem:[%s2621_s0 + $0xa0] ss:$8 sps:$4 sm:$0xff]   ;;  %v1845_v61 = vld [vmem:[%s2621_s0 + $0xb4] ss:$8 sps:$4 sm:$0xff]  }
  0x15   :  { %v1880_v60 = vld [vmem:[%s2621_s0 + $0x1a0] ss:$8 sps:$4 sm:$0xff]   ;;  %v1881_v62 = vld [vmem:[%s2621_s0 + $0x1b4] ss:$8 sps:$4 sm:$0xff]   ;;  %v1847_v63 = vld [vmem:[%s2621_s0 + $0xb0] ss:$8 sps:$4 sm:$0xff]  }
  0x16   :  { %538 = vmatpush1.bf16.msra.mxu0 %v1789_v7  ;;  %1772 = vmatpush1.bf16.msra.mxu1 %v1789_v7  ;;  %v1851_v1 = vld [vmem:[%s2621_s0 + $0xc4] ss:$8 sps:$4 sm:$0xff]   ;;  %v1853_v3 = vld [vmem:[%s2621_s0 + $0xc0] ss:$8 sps:$4 sm:$0xff]   ;;  %v1857_v5 = vld [vmem:[%s2621_s0 + $0xd4] ss:$8 sps:$4 sm:$0xff]  }
  0x17   :  { %539 = vmatprep.subr.bf16.mxu0 %v1896_v0  ;;  %1757 = vmatprep.subr.bf16.mxu1 %v1896_v0  ;;  %v1884_v2 = vld [vmem:[%s2621_s0 + $0x1c4] ss:$8 sps:$4 sm:$0xff]   ;;  %v1886_v4 = vld [vmem:[%s2621_s0 + $0x1c0] ss:$8 sps:$4 sm:$0xff]   ;;  %v1887_v6 = vld [vmem:[%s2621_s0 + $0x1d4] ss:$8 sps:$4 sm:$0xff]  }
  0x18   :  { %v1859_v7 = vld [vmem:[%s2621_s0 + $0xd0] ss:$8 sps:$4 sm:$0xff]   ;;  %v1890_v10 = vld [vmem:[%s2621_s0 + $0x1e4] ss:$8 sps:$4 sm:$0xff]  }
  0x1a   :  { %540 = vmatpush1.bf16.msra.mxu0 %v1790_v8  ;;  %1773 = vmatpush1.bf16.msra.mxu1 %v1790_v8  ;;  %v1889_v8 = vld [vmem:[%s2621_s0 + $0x1d0] ss:$8 sps:$4 sm:$0xff]  }
  0x1b   :  { %541 = vmatprep.subr.bf16.mxu0 %v1896_v0  ;;  %1758 = vmatprep.subr.bf16.mxu1 %v1896_v0 }
  0x1e   :  { %542 = vmatpush1.bf16.msra.mxu0 %v1791_v9  ;;  %1774 = vmatpush1.bf16.msra.mxu1 %v1791_v9  ;;  %v1863_v9 = vld [vmem:[%s2621_s0 + $0xe4] ss:$8 sps:$4 sm:$0xff]  }
  0x1f   :  { %543 = vmatprep.subr.bf16.mxu0 %v1896_v0  ;;  %1759 = vmatprep.subr.bf16.mxu1 %v1896_v0 }
  0x22   :  { %544 = vmatpush2.bf16.msra.mxu0 %v1792_v11  ;;  %1775 = vmatpush2.bf16.msra.mxu1 %v1792_v11  ;;  %v1865_v11 = vld [vmem:[%s2621_s0 + $0xe0] ss:$8 sps:$4 sm:$0xff]  }
  0x23   :  { %545 = vmatprep.subr.bf16.mxu0 %v1896_v0  ;;  %1760 = vmatprep.subr.bf16.mxu1 %v1896_v0 }
  0x26   :  { %546 = vmatpush2.bf16.msra.mxu0 %v1793_v12  ;;  %1776 = vmatpush2.bf16.msra.mxu1 %v1793_v12  ;;  %v1892_v12 = vld [vmem:[%s2621_s0 + $0x1e0] ss:$8 sps:$4 sm:$0xff]  }
  0x27   :  { %547 = vmatprep.subr.bf16.mxu0 %v1896_v0  ;;  %1761 = vmatprep.subr.bf16.mxu1 %v1896_v0 }
  0x2a   :  { %548 = vmatpush2.bf16.msra.mxu0 %v1794_v13  ;;  %1777 = vmatpush2.bf16.msra.mxu1 %v1794_v13  ;;  %v1869_v13 = vld [vmem:[%s2621_s0 + $0xf4] ss:$8 sps:$4 sm:$0xff]  }
  0x2b   :  { %549 = vmatprep.subr.bf16.mxu0 %v1896_v0  ;;  %1762 = vmatprep.subr.bf16.mxu1 %v1896_v0 }
  0x2e   :  { %550 = vmatpush2.bf16.msra.mxu0 %v1795_v14  ;;  %1778 = vmatpush2.bf16.msra.mxu1 %v1795_v14  ;;  %v1893_v14 = vld [vmem:[%s2621_s0 + $0x1f4] ss:$8 sps:$4 sm:$0xff]  }
  0x2f   :  { %551 = vmatprep.subr.bf16.mxu0 %v1896_v0  ;;  %1763 = vmatprep.subr.bf16.mxu1 %v1896_v0 }
  0x32   :  { %552 = vmatpush2.bf16.msra.mxu0 %v1796_v15  ;;  %1779 = vmatpush2.bf16.msra.mxu1 %v1796_v15  ;;  %v1871_v15 = vld [vmem:[%s2621_s0 + $0xf0] ss:$8 sps:$4 sm:$0xff]  }
  0x33   :  { %553 = vmatprep.subr.bf16.mxu0 %v1896_v0  ;;  %1764 = vmatprep.subr.bf16.mxu1 %v1896_v0 }
  0x36   :  { %554 = vmatpush2.bf16.msra.mxu0 %v1797_v16  ;;  %1780 = vmatpush2.bf16.msra.mxu1 %v1797_v16  ;;  %v1895_v16 = vld [vmem:[%s2621_s0 + $0x1f0] ss:$8 sps:$4 sm:$0xff]  }
  0x37   :  { %555 = vmatprep.subr.bf16.mxu0 %v1896_v0  ;;  %1765 = vmatprep.subr.bf16.mxu1 %v1896_v0 }
  0x3a   :  { %556 = vmatpush2.bf16.msra.mxu0 %v1798_v17  ;;  %1781 = vmatpush2.bf16.msra.mxu1 %v1798_v17 }
  0x3b   :  { %557 = vmatprep.subr.bf16.mxu0 %v1896_v0  ;;  %1766 = vmatprep.subr.bf16.mxu1 %v1896_v0  ;;  %v1883_v0 = vld [vmem:[%s2621_s0 + $0x1b0] ss:$8 sps:$4 sm:$0xff]  }
  0x3e   :  { %558 = vmatpush2.bf16.msra.mxu0 %v1799_v18  ;;  %1782 = vmatpush2.bf16.msra.mxu1 %v1799_v18 }
  0x41   :  { %560 = vmatmul.mubr.bf16.vlgmr.msra.gmra.mxu0 %v1800_v19  ;;  %688 = vmatmul.mubr.bf16.vlgmr.msra.gmra.mxu1 %v1824_v20 }
  0x42   :  { %567 = vmatprep.mubr.bf16.mxu0 %v1803_v21  ;;  %695 = vmatprep.mubr.bf16.mxu1 %v1830_v22 }
  0x49   :  { %568 = vmatmul.mubr.bf16.gmra.mxu0 %v1805_v23  ;;  %696 = vmatmul.mubr.bf16.gmra.mxu1 %v1832_v24 }
  0x4a   :  { %575 = vmatprep.mubr.bf16.mxu0 %v1806_v25  ;;  %703 = vmatprep.mubr.bf16.mxu1 %v1836_v26 }
  0x51   :  { %576 = vmatmul.mubr.bf16.gmra.mxu0 %v1808_v27  ;;  %704 = vmatmul.mubr.bf16.gmra.mxu1 %v1838_v28 }
  0x52   :  { %583 = vmatprep.mubr.bf16.mxu0 %v1809_v29  ;;  %711 = vmatprep.mubr.bf16.mxu1 %v1842_v30 }
  0x59   :  { %584 = vmatmul.mubr.bf16.gmra.mxu0 %v1811_v31  ;;  %712 = vmatmul.mubr.bf16.gmra.mxu1 %v1844_v32 }
  0x5a   :  { %591 = vmatprep.mubr.bf16.mxu0 %v1812_v33  ;;  %719 = vmatprep.mubr.bf16.mxu1 %v1848_v34 }
  0x61   :  { %592 = vmatmul.mubr.bf16.gmra.mxu0 %v1814_v35  ;;  %720 = vmatmul.mubr.bf16.gmra.mxu1 %v1850_v36 }
  0x62   :  { %599 = vmatprep.mubr.bf16.mxu0 %v1815_v37  ;;  %727 = vmatprep.mubr.bf16.mxu1 %v1854_v38 }
  0x69   :  { %600 = vmatmul.mubr.bf16.gmra.mxu0 %v1817_v39  ;;  %728 = vmatmul.mubr.bf16.gmra.mxu1 %v1856_v40 }
  0x6a   :  { %607 = vmatprep.mubr.bf16.mxu0 %v1818_v41  ;;  %735 = vmatprep.mubr.bf16.mxu1 %v1860_v42 }
  0x71   :  { %608 = vmatmul.mubr.bf16.gmra.mxu0 %v1820_v43  ;;  %736 = vmatmul.mubr.bf16.gmra.mxu1 %v1862_v44 }
  0x72   :  { %615 = vmatprep.mubr.bf16.mxu0 %v1821_v45  ;;  %743 = vmatprep.mubr.bf16.mxu1 %v1866_v46 }
  0x79   :  { %616 = vmatmul.mubr.bf16.gmra.mxu0 %v1823_v47  ;;  %744 = vmatmul.mubr.bf16.gmra.mxu1 %v1868_v48 }
  0x7a   :  { %623 = vmatprep.mubr.bf16.mxu0 %v1827_v49  ;;  %751 = vmatprep.mubr.bf16.mxu1 %v1872_v50 }
  0x81   :  { %624 = vmatmul.mubr.bf16.gmra.mxu0 %v1829_v51  ;;  %752 = vmatmul.mubr.bf16.gmra.mxu1 %v1874_v52 }
  0x82   :  { %631 = vmatprep.mubr.bf16.mxu0 %v1833_v53  ;;  %759 = vmatprep.mubr.bf16.mxu1 %v1875_v54 }
  0x89   :  { %632 = vmatmul.mubr.bf16.gmra.mxu0 %v1835_v55  ;;  %760 = vmatmul.mubr.bf16.gmra.mxu1 %v1877_v56 }
  0x8a   :  { %639 = vmatprep.mubr.bf16.mxu0 %v1839_v57  ;;  %767 = vmatprep.mubr.bf16.mxu1 %v1878_v58 }
  0x91   :  { %640 = vmatmul.mubr.bf16.gmra.mxu0 %v1841_v59  ;;  %768 = vmatmul.mubr.bf16.gmra.mxu1 %v1880_v60 }
  0x92   :  { %647 = vmatprep.mubr.bf16.mxu0 %v1845_v61  ;;  %775 = vmatprep.mubr.bf16.mxu1 %v1881_v62 }
  0x99   :  { %648 = vmatmul.mubr.bf16.gmra.mxu0 %v1847_v63  ;;  %776 = vmatmul.mubr.bf16.gmra.mxu1 %v1883_v0 }
  0x9a   :  { %655 = vmatprep.mubr.bf16.mxu0 %v1851_v1  ;;  %783 = vmatprep.mubr.bf16.mxu1 %v1884_v2 }
  0xa1   :  { %656 = vmatmul.mubr.bf16.gmra.mxu0 %v1853_v3  ;;  %784 = vmatmul.mubr.bf16.gmra.mxu1 %v1886_v4 }
  0xa2   :  { %663 = vmatprep.mubr.bf16.mxu0 %v1857_v5  ;;  %791 = vmatprep.mubr.bf16.mxu1 %v1887_v6 }
  0xa9   :  { %664 = vmatmul.mubr.bf16.gmra.mxu0 %v1859_v7  ;;  %792 = vmatmul.mubr.bf16.gmra.mxu1 %v1889_v8 }
  0xaa   :  { %671 = vmatprep.mubr.bf16.mxu0 %v1863_v9  ;;  %799 = vmatprep.mubr.bf16.mxu1 %v1890_v10 }
  0xb1   :  { %672 = vmatmul.mubr.bf16.gmra.mxu0 %v1865_v11  ;;  %800 = vmatmul.mubr.bf16.gmra.mxu1 %v1892_v12 }
  0xb2   :  { %679 = vmatprep.mubr.bf16.mxu0 %v1869_v13  ;;  %807 = vmatprep.mubr.bf16.mxu1 %v1893_v14 }
  0xb9   :  { %680 = vmatmul.mubr.bf16.gmra.mxu0 %v1871_v15  ;;  %808 = vmatmul.mubr.bf16.gmra.mxu1 %v1895_v16 }
 0x101   :  { %v2194_v17 = vpop.f32.mrf.mxu0  ;;  %v2196_v18 = vpop.f32.mrf.mxu1 }
 0x103   :  { %v563_v19 = vpop.f32.mrf.mxu0  ;;  %v691_v20 = vpop.f32.mrf.mxu1 }
 0x105   :  { %v2198_v21 = vpop.f32.mrf.mxu0  ;;  %v2200_v22 = vpop.f32.mrf.mxu1 }
 0x106   :  { %v1563_v23 = vpack.c.bf16 %v2198_v21, %v2194_v17  ;;  %v1643_v24 = vpack.c.bf16 %v2200_v22, %v2196_v18 }
 0x107   :  { %v566_v25 = vpop.f32.mrf.mxu0  ;;  %v694_v26 = vpop.f32.mrf.mxu1 }
 0x108   :  { %1564 = vst [vmem:[%s2622_s2] sm:$0xff] %v1563_v23   ;;  %1735 = vst [vmem:[%s2622_s2 + $0x80] sm:$0xff] %v1643_v24  }
 0x109   :  { %v2212_v27 = vpop.f32.mrf.mxu0  ;;  %v2214_v28 = vpop.f32.mrf.mxu1 }
 0x10b   :  { %v571_v29 = vpop.f32.mrf.mxu0  ;;  %v699_v30 = vpop.f32.mrf.mxu1 }
 0x10d   :  { %v2216_v31 = vpop.f32.mrf.mxu0  ;;  %v2218_v32 = vpop.f32.mrf.mxu1 }
 0x10e   :  { %v1568_v33 = vpack.c.bf16 %v2216_v31, %v2212_v27  ;;  %v1648_v34 = vpack.c.bf16 %v2218_v32, %v2214_v28 }
 0x10f   :  { %v574_v35 = vpop.f32.mrf.mxu0  ;;  %v702_v36 = vpop.f32.mrf.mxu1 }
 0x110   :  { %1720 = vst [vmem:[%s2622_s2 + $0x8] sm:$0xff] %v1568_v33   ;;  %1736 = vst [vmem:[%s2622_s2 + $0x88] sm:$0xff] %v1648_v34  }
 0x111   :  { %v2230_v37 = vpop.f32.mrf.mxu0  ;;  %v2232_v38 = vpop.f32.mrf.mxu1 }
 0x113   :  { %v579_v39 = vpop.f32.mrf.mxu0  ;;  %v707_v40 = vpop.f32.mrf.mxu1 }
 0x115   :  { %v2234_v41 = vpop.f32.mrf.mxu0  ;;  %v2236_v42 = vpop.f32.mrf.mxu1 }
 0x116   :  { %v1573_v43 = vpack.c.bf16 %v2234_v41, %v2230_v37  ;;  %v1653_v44 = vpack.c.bf16 %v2236_v42, %v2232_v38 }
 0x117   :  { %v582_v45 = vpop.f32.mrf.mxu0  ;;  %v710_v46 = vpop.f32.mrf.mxu1 }
 0x118   :  { %1721 = vst [vmem:[%s2622_s2 + $0x10] sm:$0xff] %v1573_v43   ;;  %1737 = vst [vmem:[%s2622_s2 + $0x90] sm:$0xff] %v1653_v44   ;;  %v1207_v43 = vmul.f32 %v2198_v21, %v2198_v21  ;;  %v1206_v46 = vmul.f32 %v2194_v17, %v2194_v17 }
 0x119   :  { %v2248_v47 = vpop.f32.mrf.mxu0  ;;  %v2250_v48 = vpop.f32.mrf.mxu1 }
 0x11b   :  { %v587_v49 = vpop.f32.mrf.mxu0  ;;  %v715_v50 = vpop.f32.mrf.mxu1 }
 0x11c   :  { %v1208_v49 = vmul.f32 %v2212_v27, %v2212_v27 }
 0x11d   :  { %v2252_v51 = vpop.f32.mrf.mxu0  ;;  %v2254_v52 = vpop.f32.mrf.mxu1 }
 0x11e   :  { %v1578_v53 = vpack.c.bf16 %v2252_v51, %v2248_v47  ;;  %v1658_v54 = vpack.c.bf16 %v2254_v52, %v2250_v48 }
 0x11f   :  { %v590_v55 = vpop.f32.mrf.mxu0  ;;  %v718_v56 = vpop.f32.mrf.mxu1 }
 0x120   :  { %1722 = vst [vmem:[%s2622_s2 + $0x18] sm:$0xff] %v1578_v53   ;;  %1738 = vst [vmem:[%s2622_s2 + $0x98] sm:$0xff] %v1658_v54   ;;  %v1136_v54 = vadd.f32 %v2198_v21, %v2194_v17  ;;  %v1270_v55 = vadd.f32 %v1207_v43, %v1206_v46  ;;  %v1209_v56 = vmul.f32 %v2216_v31, %v2216_v31 }
 0x121   :  { %v2266_v57 = vpop.f32.mrf.mxu0  ;;  %v2268_v58 = vpop.f32.mrf.mxu1 }
 0x123   :  { %v595_v59 = vpop.f32.mrf.mxu0  ;;  %v723_v60 = vpop.f32.mrf.mxu1 }
 0x125   :  { %v2270_v61 = vpop.f32.mrf.mxu0  ;;  %v2272_v62 = vpop.f32.mrf.mxu1 }
 0x126   :  { %v1583_v63 = vpack.c.bf16 %v2270_v61, %v2266_v57  ;;  %v1663_v0 = vpack.c.bf16 %v2272_v62, %v2268_v58 }
 0x127   :  { %v598_v1 = vpop.f32.mrf.mxu0  ;;  %v726_v2 = vpop.f32.mrf.mxu1 }
 0x128   :  { %1723 = vst [vmem:[%s2622_s2 + $0x20] sm:$0xff] %v1583_v63   ;;  %1739 = vst [vmem:[%s2622_s2 + $0xa0] sm:$0xff] %v1663_v0   ;;  %v1137_v63 = vadd.f32 %v1136_v54, %v2212_v27  ;;  %v1271_v0 = vadd.f32 %v1270_v55, %v1208_v49  ;;  %v1210_v1 = vmul.f32 %v2230_v37, %v2230_v37 }
 0x129   :  { %v2284_v3 = vpop.f32.mrf.mxu0  ;;  %v2286_v4 = vpop.f32.mrf.mxu1  ;;  %v1211_v27 = vmul.f32 %v2234_v41, %v2234_v41 }
 0x12b   :  { %v603_v5 = vpop.f32.mrf.mxu0  ;;  %v731_v6 = vpop.f32.mrf.mxu1 }
 0x12c   :  { %v1138_v6 = vadd.f32 %v1137_v63, %v2216_v31 }
 0x12d   :  { %v2288_v7 = vpop.f32.mrf.mxu0  ;;  %v2290_v8 = vpop.f32.mrf.mxu1 }
 0x12e   :  { %v1588_v9 = vpack.c.bf16 %v2288_v7, %v2284_v3  ;;  %v1668_v10 = vpack.c.bf16 %v2290_v8, %v2286_v4 }
 0x12f   :  { %v606_v11 = vpop.f32.mrf.mxu0  ;;  %v734_v12 = vpop.f32.mrf.mxu1 }
 0x130   :  { %1724 = vst [vmem:[%s2622_s2 + $0x28] sm:$0xff] %v1588_v9   ;;  %1740 = vst [vmem:[%s2622_s2 + $0xa8] sm:$0xff] %v1668_v10   ;;  %v1272_v9 = vadd.f32 %v1271_v0, %v1209_v56  ;;  %v1139_v12 = vadd.f32 %v1138_v6, %v2230_v37  ;;  %v1213_v37 = vmul.f32 %v2252_v51, %v2252_v51 }
 0x131   :  { %v2302_v13 = vpop.f32.mrf.mxu0  ;;  %v2304_v14 = vpop.f32.mrf.mxu1 }
 0x132   :  { %v1273_v31 = vadd.f32 %v1272_v9, %v1210_v1 }
 0x133   :  { %v611_v15 = vpop.f32.mrf.mxu0  ;;  %v739_v16 = vpop.f32.mrf.mxu1 }
 0x134   :  { %v1212_v15 = vmul.f32 %v2248_v47, %v2248_v47 }
 0x135   :  { %v2306_v19 = vpop.f32.mrf.mxu0  ;;  %v2308_v20 = vpop.f32.mrf.mxu1 }
 0x136   :  { %v1593_v23 = vpack.c.bf16 %v2306_v19, %v2302_v13  ;;  %v1673_v24 = vpack.c.bf16 %v2308_v20, %v2304_v14 }
 0x137   :  { %v614_v25 = vpop.f32.mrf.mxu0  ;;  %v742_v26 = vpop.f32.mrf.mxu1 }
 0x138   :  { %1725 = vst [vmem:[%s2622_s2 + $0x30] sm:$0xff] %v1593_v23   ;;  %1741 = vst [vmem:[%s2622_s2 + $0xb0] sm:$0xff] %v1673_v24   ;;  %v1140_v24 = vadd.f32 %v1139_v12, %v2234_v41  ;;  %v1274_v25 = vadd.f32 %v1273_v31, %v1211_v27  ;;  %v1218_v27 = vmul.f32 %v2302_v13, %v2302_v13 }
 0x139   :  { %v2320_v29 = vpop.f32.mrf.mxu0  ;;  %v2322_v30 = vpop.f32.mrf.mxu1 }
 0x13b   :  { %v619_v33 = vpop.f32.mrf.mxu0  ;;  %v747_v34 = vpop.f32.mrf.mxu1 }
 0x13c   :  { %v1141_v34 = vadd.f32 %v1140_v24, %v2248_v47  ;;  %v1215_v47 = vmul.f32 %v2270_v61, %v2270_v61 }
 0x13d   :  { %v2324_v35 = vpop.f32.mrf.mxu0  ;;  %v2326_v36 = vpop.f32.mrf.mxu1 }
 0x13e   :  { %v1598_v39 = vpack.c.bf16 %v2324_v35, %v2320_v29  ;;  %v1678_v40 = vpack.c.bf16 %v2326_v36, %v2322_v30 }
 0x13f   :  { %v622_v44 = vpop.f32.mrf.mxu0  ;;  %v750_v45 = vpop.f32.mrf.mxu1 }
 0x140   :  { %1726 = vst [vmem:[%s2622_s2 + $0x38] sm:$0xff] %v1598_v39   ;;  %1742 = vst [vmem:[%s2622_s2 + $0xb8] sm:$0xff] %v1678_v40   ;;  %v1275_v39 = vadd.f32 %v1274_v25, %v1212_v15  ;;  %v1214_v40 = vmul.f32 %v2266_v57, %v2266_v57  ;;  %v1142_v45 = vadd.f32 %v1141_v34, %v2252_v51 }
 0x141   :  { %v2344_v50 = vpop.f32.mrf.mxu0  ;;  %v2346_v53 = vpop.f32.mrf.mxu1 }
 0x142   :  { %v1276_v49 = vadd.f32 %v1275_v39, %v1213_v37  ;;  %v1143_v56 = vadd.f32 %v1142_v45, %v2266_v57  ;;  %v1217_v57 = vmul.f32 %v2288_v7, %v2288_v7 }
 0x143   :  { %v627_v59 = vpop.f32.mrf.mxu0  ;;  %v755_v60 = vpop.f32.mrf.mxu1 }
 0x144   :  { %v1277_v51 = vadd.f32 %v1276_v49, %v1214_v40  ;;  %v1216_v59 = vmul.f32 %v2284_v3, %v2284_v3  ;;  %v1144_v0 = vadd.f32 %v1143_v56, %v2270_v61 }
 0x145   :  { %v2355_v2 = vpop.f32.mrf.mxu0  ;;  %v2357_v5 = vpop.f32.mrf.mxu1 }
 0x146   :  { %v1603_v17 = vpack.c.bf16 %v2355_v2, %v2344_v50  ;;  %v1683_v21 = vpack.c.bf16 %v2357_v5, %v2346_v53  ;;  %v1278_v1 = vadd.f32 %v1277_v51, %v1215_v47  ;;  %v1222_v47 = vmul.f32 %v2344_v50, %v2344_v50 }
 0x147   :  { %v630_v10 = vpop.f32.mrf.mxu0  ;;  %v758_v11 = vpop.f32.mrf.mxu1 }
 0x148   :  { %1727 = vst [vmem:[%s2622_s2 + $0x40] sm:$0xff] %v1603_v17   ;;  %1743 = vst [vmem:[%s2622_s2 + $0xc0] sm:$0xff] %v1683_v21   ;;  %v1145_v21 = vadd.f32 %v1144_v0, %v2284_v3  ;;  %v1279_v9 = vadd.f32 %v1278_v1, %v1216_v59  ;;  %v1219_v3 = vmul.f32 %v2306_v19, %v2306_v19 }
 0x149   :  { %v2375_v16 = vpop.f32.mrf.mxu0  ;;  %v2377_v23 = vpop.f32.mrf.mxu1  ;;  %v1223_v0 = vmul.f32 %v2355_v2, %v2355_v2 }
 0x14a   :  { %v1146_v12 = vadd.f32 %v1145_v21, %v2288_v7  ;;  %v1280_v15 = vadd.f32 %v1279_v9, %v1217_v57 }
 0x14b   :  { %v635_v26 = vpop.f32.mrf.mxu0  ;;  %v763_v33 = vpop.f32.mrf.mxu1 }
 0x14c   :  { %v1147_v37 = vadd.f32 %v1146_v12, %v2302_v13  ;;  %v1281_v7 = vadd.f32 %v1280_v15, %v1218_v27  ;;  %v1220_v26 = vmul.f32 %v2320_v29, %v2320_v29  ;;  %v1221_v13 = vmul.f32 %v2324_v35, %v2324_v35 }
 0x14d   :  { %v2385_v43 = vpop.f32.mrf.mxu0  ;;  %v2387_v44 = vpop.f32.mrf.mxu1 }
 0x14e   :  { %v1608_v41 = vpack.c.bf16 %v2385_v43, %v2375_v16  ;;  %v1688_v46 = vpack.c.bf16 %v2387_v44, %v2377_v23  ;;  %v1148_v39 = vadd.f32 %v1147_v37, %v2306_v19  ;;  %v1282_v40 = vadd.f32 %v1281_v7, %v1219_v3 }
 0x14f   :  { %v638_v54 = vpop.f32.mrf.mxu0  ;;  %v766_v55 = vpop.f32.mrf.mxu1 }
 0x150   :  { %1728 = vst [vmem:[%s2622_s2 + $0x48] sm:$0xff] %v1608_v41   ;;  %1744 = vst [vmem:[%s2622_s2 + $0xc8] sm:$0xff] %v1688_v46   ;;  %v1149_v46 = vadd.f32 %v1148_v39, %v2320_v29  ;;  %v1283_v49 = vadd.f32 %v1282_v40, %v1220_v26 }
 0x151   :  { %v2405_v60 = vpop.f32.mrf.mxu0  ;;  %v2407_v63 = vpop.f32.mrf.mxu1 }
 0x152   :  { %v1150_v56 = vadd.f32 %v1149_v46, %v2324_v35  ;;  %v1284_v59 = vadd.f32 %v1283_v49, %v1221_v13  ;;  %v1226_v3 = vmul.f32 %v2405_v60, %v2405_v60 }
 0x153   :  { %v643_v6 = vpop.f32.mrf.mxu0  ;;  %v771_v17 = vpop.f32.mrf.mxu1 }
 0x154   :  { %v1151_v29 = vadd.f32 %v1150_v56, %v2344_v50  ;;  %v1285_v35 = vadd.f32 %v1284_v59, %v1222_v47  ;;  %v1224_v6 = vmul.f32 %v2375_v16, %v2375_v16  ;;  %v1225_v50 = vmul.f32 %v2385_v43, %v2385_v43 }
 0x155   :  { %v2415_v10 = vpop.f32.mrf.mxu0  ;;  %v2417_v11 = vpop.f32.mrf.mxu1 }
 0x156   :  { %v1613_v61 = vpack.c.bf16 %v2415_v10, %v2405_v60  ;;  %v1693_v31 = vpack.c.bf16 %v2417_v11, %v2407_v63  ;;  %v1152_v9 = vadd.f32 %v1151_v29, %v2355_v2  ;;  %v1286_v27 = vadd.f32 %v1285_v35, %v1223_v0 }
 0x157   :  { %v646_v24 = vpop.f32.mrf.mxu0  ;;  %v774_v25 = vpop.f32.mrf.mxu1  ;;  %v1227_v39 = vmul.f32 %v2415_v10, %v2415_v10 }
 0x158   :  { %1729 = vst [vmem:[%s2622_s2 + $0x50] sm:$0xff] %v1613_v61   ;;  %1745 = vst [vmem:[%s2622_s2 + $0xd0] sm:$0xff] %v1693_v31   ;;  %v1153_v31 = vadd.f32 %v1152_v9, %v2375_v16  ;;  %v1287_v15 = vadd.f32 %v1286_v27, %v1224_v6 }
 0x159   :  { %v649_v33 = vpop.f32.mrf.mxu0  ;;  %v2435_v34 = vpop.f32.mrf.mxu1 }
 0x15a   :  { %v1154_v37 = vadd.f32 %v1153_v31, %v2385_v43  ;;  %v1288_v26 = vadd.f32 %v1287_v15, %v1225_v50 }
 0x15b   :  { %v651_v45 = vpop.f32.mrf.mxu0  ;;  %v779_v41 = vpop.f32.mrf.mxu1 }
 0x15c   :  { %v1155_v16 = vadd.f32 %v1154_v37, %v2405_v60  ;;  %v1289_v43 = vadd.f32 %v1288_v26, %v1226_v3  ;;  %v1228_v45 = vmul.f32 %v649_v33, %v649_v33 }
 0x15d   :  { %v652_v54 = vpop.f32.mrf.mxu0  ;;  %v2443_v55 = vpop.f32.mrf.mxu1 }
 0x15e   :  { %v1618_v51 = vpack.c.bf16 %v652_v54, %v649_v33  ;;  %v1698_v19 = vpack.c.bf16 %v2443_v55, %v2435_v34  ;;  %v1156_v49 = vadd.f32 %v1155_v16, %v2415_v10  ;;  %v1290_v47 = vadd.f32 %v1289_v43, %v1227_v39 }
 0x15f   :  { %v654_v1 = vpop.f32.mrf.mxu0  ;;  %v782_v57 = vpop.f32.mrf.mxu1  ;;  %v1229_v56 = vmul.f32 %v652_v54, %v652_v54 }
 0x160   :  { %1730 = vst [vmem:[%s2622_s2 + $0x58] sm:$0xff] %v1618_v51   ;;  %1746 = vst [vmem:[%s2622_s2 + $0xd8] sm:$0xff] %v1698_v19   ;;  %v1157_v60 = vadd.f32 %v1156_v49, %v649_v33  ;;  %v1291_v59 = vadd.f32 %v1290_v47, %v1228_v45 }
 0x161   :  { %v657_v17 = vpop.f32.mrf.mxu0  ;;  %v2459_v21 = vpop.f32.mrf.mxu1 }
 0x162   :  { %v1230_v0 = vmul.f32 %v657_v17, %v657_v17  ;;  %v1158_v29 = vadd.f32 %v1157_v60, %v652_v54  ;;  %v1292_v9 = vadd.f32 %v1291_v59, %v1229_v56 }
 0x163   :  { %v659_v12 = vpop.f32.mrf.mxu0  ;;  %v787_v61 = vpop.f32.mrf.mxu1 }
 0x164   :  { %v1159_v10 = vadd.f32 %v1158_v29, %v657_v17  ;;  %v1293_v33 = vadd.f32 %v1292_v9, %v1230_v0 }
 0x165   :  { %v660_v24 = vpop.f32.mrf.mxu0  ;;  %v2467_v25 = vpop.f32.mrf.mxu1 }
 0x166   :  { %v1623_v7 = vpack.c.bf16 %v660_v24, %v657_v17  ;;  %v1703_v2 = vpack.c.bf16 %v2467_v25, %v2459_v21  ;;  %v1231_v27 = vmul.f32 %v660_v24, %v660_v24  ;;  %v1160_v15 = vadd.f32 %v1159_v10, %v660_v24 }
 0x167   :  { %v662_v40 = vpop.f32.mrf.mxu0  ;;  %v790_v13 = vpop.f32.mrf.mxu1 }
 0x168   :  { %1731 = vst [vmem:[%s2622_s2 + $0x60] sm:$0xff] %v1623_v7   ;;  %1747 = vst [vmem:[%s2622_s2 + $0xe0] sm:$0xff] %v1703_v2   ;;  %v1294_v3 = vadd.f32 %v1293_v33, %v1231_v27 }
 0x169   :  { %v665_v41 = vpop.f32.mrf.mxu0  ;;  %v2481_v46 = vpop.f32.mrf.mxu1 }
 0x16a   :  { %v1232_v61 = vmul.f32 %v665_v41, %v665_v41  ;;  %v1161_v26 = vadd.f32 %v1160_v15, %v665_v41 }
 0x16b   :  { %v667_v51 = vpop.f32.mrf.mxu0  ;;  %v795_v19 = vpop.f32.mrf.mxu1 }
 0x16c   :  { %v1295_v17 = vadd.f32 %v1294_v3, %v1232_v61  ;;  %v1238_v3 = vmul.f32 %v2196_v18, %v2196_v18 }
 0x16d   :  { %v668_v1 = vpop.f32.mrf.mxu0  ;;  %v2484_v57 = vpop.f32.mrf.mxu1 }
 0x16e   :  { %v1628_v35 = vpack.c.bf16 %v668_v1, %v665_v41  ;;  %v1708_v6 = vpack.c.bf16 %v2484_v57, %v2481_v46  ;;  %v1233_v37 = vmul.f32 %v668_v1, %v668_v1  ;;  %v1162_v16 = vadd.f32 %v1161_v26, %v668_v1 }
 0x16f   :  { %v670_v50 = vpop.f32.mrf.mxu0  ;;  %v798_v12 = vpop.f32.mrf.mxu1 }
 0x170   :  { %1732 = vst [vmem:[%s2622_s2 + $0x68] sm:$0xff] %v1628_v35   ;;  %1748 = vst [vmem:[%s2622_s2 + $0xe8] sm:$0xff] %v1708_v6   ;;  %v1296_v49 = vadd.f32 %v1295_v17, %v1233_v37 }
 0x171   :  { %v673_v54 = vpop.f32.mrf.mxu0  ;;  %v2494_v31 = vpop.f32.mrf.mxu1 }
 0x172   :  { %v1234_v39 = vmul.f32 %v673_v54, %v673_v54  ;;  %v1163_v24 = vadd.f32 %v1162_v16, %v673_v54 }
 0x173   :  { %v675_v7 = vpop.f32.mrf.mxu0  ;;  %v803_v2 = vpop.f32.mrf.mxu1 }
 0x174   :  { %v1297_v41 = vadd.f32 %v1296_v49, %v1234_v39  ;;  %v1239_v2 = vmul.f32 %v2200_v22, %v2200_v22  ;;  %v1240_v39 = vmul.f32 %v2214_v28, %v2214_v28  ;;  %v1242_v49 = vmul.f32 %v2232_v38, %v2232_v38 }
 0x175   :  { %v676_v40 = vpop.f32.mrf.mxu0  ;;  %v2496_v13 = vpop.f32.mrf.mxu1 }
 0x176   :  { %v1633_v43 = vpack.c.bf16 %v676_v40, %v673_v54  ;;  %v1713_v45 = vpack.c.bf16 %v2496_v13, %v2494_v31  ;;  %v1235_v47 = vmul.f32 %v676_v40, %v676_v40  ;;  %v1164_v59 = vadd.f32 %v1163_v24, %v676_v40 }
 0x177   :  { %v678_v56 = vpop.f32.mrf.mxu0  ;;  %v806_v51 = vpop.f32.mrf.mxu1 }
 0x178   :  { %1733 = vst [vmem:[%s2622_s2 + $0x70] sm:$0xff] %v1633_v43   ;;  %1749 = vst [vmem:[%s2622_s2 + $0xf0] sm:$0xff] %v1713_v45   ;;  %v1298_v1 = vadd.f32 %v1297_v41, %v1235_v47 }
 0x179   :  { %v681_v19 = vpop.f32.mrf.mxu0  ;;  %v2506_v60 = vpop.f32.mrf.mxu1 }
 0x17a   :  { %v1236_v0 = vmul.f32 %v681_v19, %v681_v19  ;;  %v1165_v6 = vadd.f32 %v1164_v59, %v681_v19 }
 0x17b   :  { %v683_v29 = vpop.f32.mrf.mxu0  ;;  %v811_v35 = vpop.f32.mrf.mxu1 }
 0x17c   :  { %v1299_v9 = vadd.f32 %v1298_v1, %v1236_v0 }
 0x17d   :  { %v684_v27 = vpop.f32.mrf.mxu0  ;;  %v2508_v50 = vpop.f32.mrf.mxu1 }
 0x17e   :  { %v1638_v12 = vpack.c.bf16 %v684_v27, %v681_v19  ;;  %v1166_v10 = vadd.f32 %v1165_v6, %v684_v27  ;;  %v1237_v33 = vmul.f32 %v684_v27, %v684_v27  ;;  %v1718_v61 = vpack.c.bf16 %v2508_v50, %v2506_v60 }
 0x17f   :  { %v686_v54 = vpop.f32.mrf.mxu0  ;;  %v814_v15 = vpop.f32.mrf.mxu1 }
 0x180   :  { %1734 = vst [vmem:[%s2622_s2 + $0x78] sm:$0xff] %v1638_v12   ;;  %v1167_v37 = vadd.f32 %v1166_v10, %v2196_v18  ;;  %v1300_v7 = vadd.f32 %v1299_v9, %v1237_v33  ;;  %1750 = vst [vmem:[%s2622_s2 + $0xf8] sm:$0xff] %v1718_v61   ;;  %v1241_v18 = vmul.f32 %v2218_v32, %v2218_v32 }
 0x182   :  { %v1168_v26 = vadd.f32 %v1167_v37, %v2200_v22  ;;  %v1301_v17 = vadd.f32 %v1300_v7, %v1238_v3  ;;  %v1243_v22 = vmul.f32 %v2236_v42, %v2236_v42 }
 0x184   :  { %v1169_v40 = vadd.f32 %v1168_v26, %v2214_v28  ;;  %v1302_v16 = vadd.f32 %v1301_v17, %v1239_v2  ;;  %v1244_v28 = vmul.f32 %v2250_v48, %v2250_v48 }
 0x186   :  { %v1170_v43 = vadd.f32 %v1169_v40, %v2218_v32  ;;  %v1303_v45 = vadd.f32 %v1302_v16, %v1240_v39  ;;  %v1245_v32 = vmul.f32 %v2254_v52, %v2254_v52  ;;  %v1255_v39 = vmul.f32 %v2357_v5, %v2357_v5 }
 0x188   :  { %v1171_v47 = vadd.f32 %v1170_v43, %v2232_v38  ;;  %v1304_v56 = vadd.f32 %v1303_v45, %v1241_v18  ;;  %v1246_v38 = vmul.f32 %v2268_v58, %v2268_v58  ;;  %v1256_v18 = vmul.f32 %v2377_v23, %v2377_v23 }
 0x189   :  { %v1257_v45 = vmul.f32 %v2387_v44, %v2387_v44 }
 0x18a   :  { %v1172_v51 = vadd.f32 %v1171_v47, %v2236_v42  ;;  %v1305_v24 = vadd.f32 %v1304_v56, %v1242_v49  ;;  %v1247_v42 = vmul.f32 %v2272_v62, %v2272_v62  ;;  %v1258_v47 = vmul.f32 %v2407_v63, %v2407_v63 }
 0x18c   :  { %v1173_v41 = vadd.f32 %v1172_v51, %v2250_v48  ;;  %v1306_v19 = vadd.f32 %v1305_v24, %v1243_v22  ;;  %v1248_v48 = vmul.f32 %v2286_v4, %v2286_v4  ;;  %v1259_v22 = vmul.f32 %v2417_v11, %v2417_v11 }
 0x18d   :  { %v1260_v24 = vmul.f32 %v2435_v34, %v2435_v34 }
 0x18e   :  { %v1174_v59 = vadd.f32 %v1173_v41, %v2254_v52  ;;  %v1307_v0 = vadd.f32 %v1306_v19, %v1244_v28  ;;  %v1249_v52 = vmul.f32 %v2290_v8, %v2290_v8  ;;  %v1261_v41 = vmul.f32 %v2443_v55, %v2443_v55 }
 0x190   :  { %v1308_v1 = vadd.f32 %v1307_v0, %v1245_v32  ;;  %v1175_v29 = vadd.f32 %v1174_v59, %v2268_v58  ;;  %v1250_v58 = vmul.f32 %v2304_v14, %v2304_v14  ;;  %v1262_v32 = vmul.f32 %v2459_v21, %v2459_v21 }
 0x191   :  { %v1263_v0 = vmul.f32 %v2467_v25, %v2467_v25 }
 0x192   :  { %v1176_v35 = vadd.f32 %v1175_v29, %v2272_v62  ;;  %v1309_v6 = vadd.f32 %v1308_v1, %v1246_v38  ;;  %v1251_v62 = vmul.f32 %v2308_v20, %v2308_v20  ;;  %v1264_v1 = vmul.f32 %v2481_v46, %v2481_v46 }
 0x194   :  { %v1177_v9 = vadd.f32 %v1176_v35, %v2286_v4  ;;  %v1310_v27 = vadd.f32 %v1309_v6, %v1247_v42  ;;  %v1252_v4 = vmul.f32 %v2322_v30, %v2322_v30  ;;  %v1265_v42 = vmul.f32 %v2484_v57, %v2484_v57 }
 0x195   :  { %v1266_v6 = vmul.f32 %v2494_v31, %v2494_v31 }
 0x196   :  { %v1178_v12 = vadd.f32 %v1177_v9, %v2290_v8  ;;  %v1311_v10 = vadd.f32 %v1310_v27, %v1248_v48  ;;  %v1253_v8 = vmul.f32 %v2326_v36, %v2326_v36  ;;  %v1267_v9 = vmul.f32 %v2496_v13, %v2496_v13 }
 0x198   :  { %v1179_v33 = vadd.f32 %v1178_v12, %v2304_v14  ;;  %v1312_v61 = vadd.f32 %v1311_v10, %v1249_v52  ;;  %v1254_v14 = vmul.f32 %v2346_v53, %v2346_v53  ;;  %v1268_v52 = vmul.f32 %v2506_v60, %v2506_v60 }
 0x199   :  { %v1269_v10 = vmul.f32 %v2508_v50, %v2508_v50 }
 0x19a   :  { %v1180_v54 = vadd.f32 %v1179_v33, %v2308_v20  ;;  %v1313_v15 = vadd.f32 %v1312_v61, %v1250_v58 }
 0x19c   :  { %v1181_v3 = vadd.f32 %v1180_v54, %v2322_v30  ;;  %v1314_v37 = vadd.f32 %v1313_v15, %v1251_v62 }
 0x19e   :  { %v1182_v7 = vadd.f32 %v1181_v3, %v2326_v36  ;;  %v1315_v2 = vadd.f32 %v1314_v37, %v1252_v4 }
 0x1a0   :  { %v1183_v26 = vadd.f32 %v1182_v7, %v2346_v53  ;;  %v1316_v17 = vadd.f32 %v1315_v2, %v1253_v8 }
 0x1a2   :  { %v1184_v20 = vadd.f32 %v1183_v26, %v2357_v5  ;;  %v1317_v40 = vadd.f32 %v1316_v17, %v1254_v14 }
 0x1a4   :  { %v1318_v30 = vadd.f32 %v1317_v40, %v1255_v39  ;;  %v1185_v16 = vadd.f32 %v1184_v20, %v2377_v23 }
 0x1a6   :  { %v1319_v36 = vadd.f32 %v1318_v30, %v1256_v18  ;;  %v1186_v43 = vadd.f32 %v1185_v16, %v2387_v44 }
 0x1a8   :  { %v1320_v53 = vadd.f32 %v1319_v36, %v1257_v45  ;;  %v1187_v49 = vadd.f32 %v1186_v43, %v2407_v63 }
 0x1aa   :  { %v1321_v5 = vadd.f32 %v1320_v53, %v1258_v47  ;;  %v1188_v56 = vadd.f32 %v1187_v49, %v2417_v11 }
 0x1ac   :  { %v1322_v51 = vadd.f32 %v1321_v5, %v1259_v22  ;;  %v1189_v23 = vadd.f32 %v1188_v56, %v2435_v34 }
 0x1ae   :  { %v1323_v28 = vadd.f32 %v1322_v51, %v1260_v24  ;;  %v1190_v44 = vadd.f32 %v1189_v23, %v2443_v55 }
 0x1b0   :  { %v1324_v19 = vadd.f32 %v1323_v28, %v1261_v41  ;;  %v1191_v63 = vadd.f32 %v1190_v44, %v2459_v21 }
 0x1b2   :  { %v1325_v59 = vadd.f32 %v1324_v19, %v1262_v32  ;;  %v1192_v11 = vadd.f32 %v1191_v63, %v2467_v25 }
 0x1b4   :  { %v1326_v38 = vadd.f32 %v1325_v59, %v1263_v0  ;;  %v1193_v34 = vadd.f32 %v1192_v11, %v2481_v46 }
 0x1b6   :  { %v1327_v29 = vadd.f32 %v1326_v38, %v1264_v1  ;;  %v1194_v55 = vadd.f32 %v1193_v34, %v2484_v57 }
 0x1b8   :  { %v1328_v35 = vadd.f32 %v1327_v29, %v1265_v42  ;;  %v1195_v21 = vadd.f32 %v1194_v55, %v2494_v31 }
 0x1ba   :  { %v1329_v48 = vadd.f32 %v1328_v35, %v1266_v6  ;;  %v1196_v25 = vadd.f32 %v1195_v21, %v2496_v13 }
 0x1bc   :  { %v1330_v27 = vadd.f32 %v1329_v48, %v1267_v9  ;;  %v1197_v46 = vadd.f32 %v1196_v25, %v2506_v60 }
 0x1be   :  { %v1331_v12 = vadd.f32 %v1330_v27, %v1268_v52  ;;  %v1198_v57 = vadd.f32 %v1197_v46, %v2508_v50 }
 0x1c0   :  { %v1199_v58 = vrot.slane %v1198_v57, 4  ;;  %v1332_v31 = vadd.f32 %v1331_v12, %v1269_v10 }
 0x1c2   :  { %v1200_v33 = vadd.f32 %v1199_v58, %v1198_v57  ;;  %v1333_v61 = vrot.slane %v1332_v31, 4 }
 0x1c4   :  { %v1201_v62 = vrot.slane %v1200_v33, 2  ;;  %v1334_v54 = vadd.f32 %v1333_v61, %v1332_v31 }
 0x1c6   :  { %v1202_v15 = vadd.f32 %v1201_v62, %v1200_v33  ;;  %v1335_v13 = vrot.slane %v1334_v54, 2 }
 0x1c8   :  { %v1203_v4 = vrot.slane %v1202_v15, 1  ;;  %v1336_v3 = vadd.f32 %v1335_v13, %v1334_v54 }
 0x1ca   :  { %v1204_v37 = vadd.f32 %v1203_v4, %v1202_v15  ;;  %v1337_v8 = vrot.slane %v1336_v3, 1 }
 0x1cc   :  { %1205 = vst [vmem:[%s2623_s3] sm:$0x1] %v1204_v37  ;;  %v1338_v60 = vadd.f32 %v1337_v8, %v1336_v3 }
 0x1ce   :  { %1339 = vst [vmem:[%s2624_s4] sm:$0x1] %v1338_v60 }

// kernel: resnet_forward.17
= control target key start
LH: loop header
LB: loop body
LE: loop exit
PB: predicated region body
PF: predicated region fallthrough
CT: control target
= control target key end

     0   :  { %s1999_s6 = smov 0   ;;  %s3720_s0 = inlined_call_operand.vmem [shape: bf16[2,326,64], index: 0, kind: input, shape index: {}]   ;;  %s3721_s1 = inlined_call_operand.vmem [shape: bf16[2,288,64], index: 1, kind: output, shape index: {}]  }
   0x1 LB: > { %s1957_s7 = sadd.s32 4294967295, %s1987_s6   ;;  %p1961_p0 = scmp.ge.s32.totalorder %s1987_s6, 1  ;;  %s1987_s6 = sphi %s1999_s6, %s11_s6  }
   0x2   : > { %p87_p1 = scmp.lt.s32.totalorder %s1987_s6, 3 }
   0x4   : > { %p88_p2 = pnand %p1961_p0, %p87_p1 }
   0x5   : > { %p107_p3 = scmp.lt.s32.totalorder (!%p88_p2), %s1957_s7, 1 }
   0x6   : > { %91 = sbr.rel (%p88_p2) target bundleno = 343 (0x157), region = 24 }
   0xb   : > { %s3735_s7 = smov (!%p107_p3, %s1957_s7), 1  ;;  %vm154_vm0 = vsmask.f32 3328  ;;  %vm155_vm1 = vsmask.f32 7440  ;;  %vm631_vm2 = vcmask 1042432  }
   0xc   : > { %s1971_s8 = smul.u32 164, %s3735_s7  ;;  %vm632_vm3 = vcmask 1046532   ;;  %vm1156_vm4 = vcmask 1041408   ;;  %vm875_vm5 = vsmask.f32 2304  ;;  %vm1157_vm7 = vcmask 1045508   ;;  %vm2051_vm13 = vmor %vm154_vm0, %vm155_vm1 }
   0xd   : > { %vm876_vm6 = vsmask.f32 6416  ;;  %vm1681_vm8 = vcmask 1040384   ;;  %vm1682_vm9 = vcmask 1044484   ;;  %vm2042_vm10 = vmor %vm631_vm2, %vm632_vm3  ;;  %vm1400_vm11 = vsmask.f32 1280 }
   0xe   : > { %s2013_s11 = scalar_lea.vmem %s3720_s0, %s1971_s8  ;;  %vm1401_vm12 = vsmask.f32 5392  ;;  %vm2076_vm14 = vmor %vm1156_vm4, %vm1157_vm7  ;;  %vm1865_vm2 = vcmask 519168   ;;  %s1972_s12 = smul.u32 144, %s3735_s7 }
   0xf   : > { %v117_v0 = vld [vmem:[%s2013_s11] sm:$0xf]  ;;  %v2017_v1 = vld [vmem:[%s2013_s11 + $0x4] sm:$0xf]  ;;  %v2020_v2 = vld [vmem:[%s2013_s11 + $0xc] sm:$0xf] }
  0x10   : > { %v2023_v3 = vld [vmem:[%s2013_s11 + $0x14] sm:$0xf]  ;;  %v158_v4 = vshrl.u32 %v117_v0, 16  ;;  %v161_v5 = vshll.u32 %v117_v0, 16  ;;  %v167_v6 = vshll.u32 %v2017_v1, 16  ;;  %v191_v7 = vshrl.u32 %v2020_v2, 16  ;;  %vm2088_vm15 = vmor %vm875_vm5, %vm876_vm6  ;;  %s2160_s15 = scalar_lea.vmem %s3721_s1, %s1972_s12 }
  0x11   : > { %v2028_v8 = vshll.u32 %v2023_v3, 16  ;;  %v593_v9 = vld [vmem:[%s2013_s11] sm:$0xe]  ;;  %v2032_v12 = vshrl.u32 %v2023_v3, 16  ;;  %v815_v14 = vld [vmem:[%s2013_s11 + $0x8] sm:$0xe]  ;;  %vm2105_vm0 = vmor %vm1681_vm8, %vm1682_vm9 }
  0x12   : > { %v160_v10 = vrot.slane %v158_v4, 4  ;;  %v163_v11 = vrot.slane %v161_v5, 5  ;;  %v1964_v13 = vrot.slane %v593_v9, 9  ;;  %v2035_v15 = vrot.slane %v167_v6, 5  ;;  %v1153_v24 = vld [vmem:[%s2013_s11 + $0x8] sm:$0xc]  ;;  %vm2119_vm1 = vmor %vm1400_vm11, %vm1401_vm12 }
  0x13   : > { %v187_v16 = vshll.u32 %v2020_v2, 16  ;;  %v2038_v17 = vrot.slane %v191_v7, 4  ;;  %v636_v19 = vrot.slane %v2017_v1, 5  ;;  %v209_v21 = vrot.slane %v2028_v8, 5  ;;  %v1340_v30 = vld [vmem:[%s2013_s11 + $0x10] sm:$0xc] }
  0x14   : > { %v164_v20 = vor.u32 %v163_v11, %v160_v10  ;;  %v1965_v22 = vrot.slane %v815_v14, 9  ;;  %v879_v23 = vshrl.u32 %v815_v14, 16  ;;  %v2056_v26 = vrot.slane %v2020_v2, 5  ;;  %v1678_v43 = vld [vmem:[%s2013_s11 + $0x10] sm:$0x8] }
  0x15   : > { %v882_v27 = vshll.u32 %v815_v14, 16  ;;  %v887_v28 = vrot.slane %v191_v7, 5  ;;  %v888_v29 = vrot.slane %v187_v16, 6  ;;  %v213_v32 = vrot.slane %v2032_v12, 4  ;;  %v2084_v49 = vld [vmem:[%s2013_s11 + $0x8] sm:$0xf] }
  0x16   : > { %v165_v31 = vrot.slane %v164_v20, 4  ;;  %v637_v33 = vsel %vm2042_vm10, %v1964_v13, %v636_v19  ;;  %v881_v34 = vrot.slane %v879_v23, 5  ;;  %v825_v35 = vsel %vm2042_vm10, %v1965_v22, %v2056_v26  ;;  %v2095_v58 = vld [vmem:[%s2013_s11 + $0x10] sm:$0xf]  ;;  %v2115_v7 = vld [vmem:[%s2013_s11 + $0x18] sm:$0xf] }
  0x17   : > { %v884_v36 = vrot.slane %v882_v27, 6  ;;  %v1966_v37 = vrot.slane %v1153_v24, 10  ;;  %v1161_v38 = vrot.slane %v2020_v2, 6  ;;  %v1967_v40 = vrot.slane %v1340_v30, 10 }
  0x18   : > { %v170_v39 = vsel %vm2051_vm13, %v165_v31, %v2035_v15  ;;  %v1404_v41 = vshrl.u32 %v1340_v30, 16  ;;  %v1407_v42 = vshll.u32 %v1340_v30, 16  ;;  %v2072_v46 = vor.u32 %v888_v29, %v887_v28 }
  0x19   : > { %v557_v44 = vmax.bf16 %v170_v39, %v117_v0  ;;  %v885_v45 = vor.u32 %v884_v36, %v881_v34  ;;  %v2081_v48 = vrot.slane %v2023_v3, 6  ;;  %v1412_v53 = vrot.slane %v2032_v12, 6 }
  0x1a   : > { %v1406_v51 = vrot.slane %v1404_v41, 6  ;;  %v1409_v52 = vrot.slane %v1407_v42, 7  ;;  %v1413_v54 = vrot.slane %v2028_v8, 7  ;;  %v1968_v57 = vrot.slane %v1678_v43, 11 }
  0x1b   : > { %v779_v55 = vmax.bf16 %v637_v33, %v557_v44  ;;  %v886_v56 = vrot.slane %v885_v45, 4  ;;  %v171_v59 = vshrl.u32 %v2017_v1, 16  ;;  %v1162_v60 = vsel %vm2076_vm14, %v1966_v37, %v1161_v38 }
  0x1c   : > { %v1350_v61 = vsel %vm2076_vm14, %v1967_v40, %v2081_v48  ;;  %v1410_v62 = vor.u32 %v1409_v52, %v1406_v51  ;;  %v177_v0 = vshll.u32 %v2084_v49, 16  ;;  %v1686_v6 = vrot.slane %v2023_v3, 7 }
  0x1d   : > { %v838_v4 = vmax.bf16 %v825_v35, %v779_v55  ;;  %v890_v5 = vsel %vm2088_vm15, %v886_v56, %v2072_v46  ;;  %v173_v9 = vrot.slane %v171_v59, 4  ;;  %v1414_v13 = vor.u32 %v1413_v54, %v1412_v53  ;;  %v2166_v59 = vld [vmem:[%s2013_s11 + $0x1c] sm:$0xf] }
  0x1e   : > { %v1411_v11 = vrot.slane %v1410_v62, 4  ;;  %v197_v14 = vshll.u32 %v2095_v58, 16  ;;  %v201_v20 = vshrl.u32 %v2095_v58, 16  ;;  %v1687_v23 = vsel %vm2105_vm0, %v1968_v57, %v1686_v6 }
  0x1f   : > { %v1117_v22 = vmax.bf16 %v890_v5, %v838_v4  ;;  %v174_v24 = vor.u32 %v173_v9, %v2035_v15  ;;  %v638_v27 = vrot.slane %v636_v19, 4  ;;  %v179_v28 = vrot.slane %v177_v0, 5 }
  0x20   : > { %v2129_v29 = vshll.u32 %v2115_v7, 16  ;;  %v2132_v30 = vshrl.u32 %v2115_v7, 16  ;;  %v639_v31 = vrot.slane %v2084_v49, 5  ;;  %v1415_v34 = vsel %vm2119_vm1, %v1411_v11, %v1414_v13 }
  0x21   : > { %v1304_v33 = vmax.bf16 %v1162_v60, %v1117_v22  ;;  %v175_v35 = vrot.slane %v174_v24, 4  ;;  %v644_v36 = vrot.slane %v2056_v26, 4  ;;  %v2139_v37 = vrot.slane %v201_v20, 4 }
  0x22   : > { %v640_v15 = vsel %vm2042_vm10, %v638_v27, %v639_v31  ;;  %v645_v19 = vrot.slane %v2095_v58, 5  ;;  %v892_v39 = vrot.slane %v201_v20, 5  ;;  %v891_v42 = vrot.slane %v2072_v46, 4 }
  0x23   : > { %v1363_v40 = vmax.bf16 %v1350_v61, %v1304_v33  ;;  %v180_v41 = vsel %vm2051_vm13, %v175_v35, %v179_v28  ;;  %v893_v43 = vrot.slane %v197_v14, 6  ;;  %v219_v44 = vrot.slane %v2129_v29, 5 }
  0x24   : > { %v223_v45 = vrot.slane %v2132_v30, 4  ;;  %v558_v51 = vmax.bf16 %v180_v41, %v2017_v1  ;;  %v1163_v52 = vrot.slane %v1161_v38, 4  ;;  %v2154_v54 = vsel %vm2042_vm10, %v644_v36, %v645_v19 }
  0x25   : > { %v1642_v53 = vmax.bf16 %v1415_v34, %v1363_v40  ;;  %v894_v55 = vor.u32 %v893_v43, %v892_v39  ;;  %v1164_v56 = vrot.slane %v2095_v58, 6  ;;  %v1169_v57 = vrot.slane %v2081_v48, 4 }
  0x26   : > { %v780_v46 = vmax.bf16 %v640_v15, %v558_v51  ;;  %v1417_v1 = vrot.slane %v2132_v30, 6  ;;  %v1418_v38 = vrot.slane %v2129_v29, 7  ;;  %v1416_v62 = vrot.slane %v1414_v13, 4 }
  0x27   : > { %v1829_v60 = vmax.bf16 %v1687_v23, %v1642_v53  ;;  %v895_v61 = vsel %vm2088_vm15, %v891_v42, %v894_v55  ;;  %v1688_v0 = vrot.slane %v1686_v6, 4  ;;  %v1165_v5 = vsel %vm2076_vm14, %v1163_v52, %v1164_v56 }
  0x28   : > { %v839_v4 = vmax.bf16 %v780_v46, %v2154_v54  ;;  %v1170_v9 = vrot.slane %v2115_v7, 6  ;;  %v181_v11 = vshrl.u32 %v2084_v49, 16  ;;  %v1419_v20 = vor.u32 %v1418_v38, %v1417_v1 }
  0x29   : > { %1866 = vst.msk [vmem:[%s2160_s15] sm:$0xf] %vm1865_vm2, %v1829_v60  ;;  %v1689_v22 = vrot.slane %v2115_v7, 7  ;;  %v2179_v23 = vshll.u32 %v2166_v59, 16  ;;  %v2182_v13 = vshrl.u32 %v2166_v59, 16  ;;  %v641_v33 = vrot.slane %v639_v31, 4 }
  0x2a   : > { %v1118_v6 = vmax.bf16 %v895_v61, %v839_v4  ;;  %v2186_v24 = vsel %vm2076_vm14, %v1169_v57, %v1170_v9  ;;  %v183_v27 = vrot.slane %v181_v11, 4  ;;  %v1420_v34 = vsel %vm2119_vm1, %v1416_v62, %v1419_v20 }
  0x2b   : > { %v1690_v35 = vsel %vm2105_vm0, %v1688_v0, %v1689_v22  ;;  %v189_v36 = vrot.slane %v187_v16, 5  ;;  %v647_v15 = vrot.slane %v645_v19, 4  ;;  %v229_v41 = vrot.slane %v2179_v23, 5  ;;  %v2213_v0 = vld [vmem:[%s2013_s11 + $0x20] sm:$0xf] }
  0x2c   : > { %v1305_v39 = vmax.bf16 %v1165_v5, %v1118_v6  ;;  %v184_v40 = vor.u32 %v183_v27, %v179_v28  ;;  %v233_v42 = vrot.slane %v2182_v13, 4  ;;  %v648_v43 = vrot.slane %v2023_v3, 5 }
  0x2d   : > { %v897_v31 = vrot.slane %v2032_v12, 5  ;;  %v898_v51 = vrot.slane %v2028_v8, 6  ;;  %v1166_v52 = vrot.slane %v1164_v56, 4  ;;  %v643_v16 = vsel %vm2042_vm10, %v641_v33, %v2056_v26 }
  0x2e   : > { %v1364_v53 = vmax.bf16 %v1305_v39, %v2186_v24  ;;  %v185_v46 = vrot.slane %v184_v40, 4  ;;  %v1172_v28 = vrot.slane %v1170_v9, 4  ;;  %v2205_v19 = vsel %vm2042_vm10, %v647_v15, %v648_v43 }
  0x2f   : > { %v896_v57 = vrot.slane %v894_v55, 4  ;;  %v1173_v1 = vrot.slane %v2166_v59, 6  ;;  %v1422_v38 = vrot.slane %v2182_v13, 6  ;;  %v899_v61 = vor.u32 %v898_v51, %v897_v31 }
  0x30   : > { %v1643_v60 = vmax.bf16 %v1420_v34, %v1364_v53  ;;  %v190_v56 = vsel %vm2051_vm13, %v185_v46, %v189_v36  ;;  %v1423_v62 = vrot.slane %v2179_v23, 7  ;;  %v1168_v55 = vsel %vm2076_vm14, %v1166_v52, %v2081_v48 }
  0x31   : > { %v559_v26 = vmax.bf16 %v190_v56, %v2084_v49  ;;  %v1421_v4 = vrot.slane %v1419_v20, 4  ;;  %v1691_v5 = vrot.slane %v1689_v22, 4  ;;  %v2221_v11 = vsel %vm2076_vm14, %v1172_v28, %v1173_v1 }
  0x32   : > { %v1830_v9 = vmax.bf16 %v1690_v35, %v1643_v60  ;;  %v1692_v6 = vrot.slane %v2166_v59, 7  ;;  %v194_v27 = vor.u32 %v2038_v17, %v189_v36  ;;  %v900_v34 = vsel %vm2088_vm15, %v896_v57, %v899_v61 }
  0x33   : > { %v781_v33 = vmax.bf16 %v643_v16, %v559_v26  ;;  %v1424_v49 = vor.u32 %v1423_v62, %v1422_v38  ;;  %v2228_v15 = vshll.u32 %v2213_v0, 16  ;;  %v199_v22 = vrot.slane %v197_v14, 5 }
  0x34   : > { %1867 = vst.msk [vmem:[%s2160_s15 + $0x4] sm:$0xf] %vm1865_vm2, %v1830_v9  ;;  %v1693_v48 = vsel %vm2105_vm0, %v1691_v5, %v1692_v6  ;;  %v195_v20 = vrot.slane %v194_v27, 4  ;;  %v2237_v35 = vshrl.u32 %v2213_v0, 16  ;;  %v650_v39 = vrot.slane %v648_v43, 4 }
  0x35   : > { %v840_v17 = vmax.bf16 %v781_v33, %v2205_v19  ;;  %v1425_v36 = vsel %vm2119_vm1, %v1421_v4, %v1424_v49  ;;  %v651_v40 = vrot.slane %v2115_v7, 5  ;;  %v901_v51 = vrot.slane %v899_v61, 4  ;;  %v2255_v4 = vld [vmem:[%s2013_s11 + $0x24] sm:$0xf] }
  0x36   : > { %v200_v31 = vsel %vm2051_vm13, %v195_v20, %v199_v22  ;;  %v902_v52 = vrot.slane %v2132_v30, 5  ;;  %v903_v14 = vrot.slane %v2129_v29, 6  ;;  %v239_v46 = vrot.slane %v2228_v15, 5 }
  0x37   : > { %v1119_v53 = vmax.bf16 %v900_v34, %v840_v17  ;;  %v560_v16 = vmax.bf16 %v200_v31, %v2020_v2  ;;  %v1175_v28 = vrot.slane %v1173_v1, 4  ;;  %v1176_v43 = vrot.slane %v2213_v0, 6 }
  0x38   : > { %v904_v57 = vor.u32 %v903_v14, %v902_v52  ;;  %v1427_v38 = vrot.slane %v2237_v35, 6  ;;  %v1428_v60 = vrot.slane %v2228_v15, 7  ;;  %v243_v61 = vrot.slane %v2237_v35, 4 }
  0x39   : > { %v1306_v56 = vmax.bf16 %v1168_v55, %v1119_v53  ;;  %v782_v62 = vmax.bf16 %v2154_v54, %v560_v16  ;;  %v1426_v26 = vrot.slane %v1424_v49, 4  ;;  %v2259_v5 = vsel %vm2042_vm10, %v650_v39, %v651_v40 }
  0x3a   : > { %v905_v2 = vsel %vm2088_vm15, %v901_v51, %v904_v57  ;;  %v2265_v1 = vsel %vm2076_vm14, %v1175_v28, %v1176_v43  ;;  %v204_v55 = vor.u32 %v2139_v37, %v199_v22  ;;  %v1429_v27 = vor.u32 %v1428_v60, %v1427_v38 }
  0x3b   : > { %v1365_v9 = vmax.bf16 %v1306_v56, %v2221_v11  ;;  %v841_v54 = vmax.bf16 %v782_v62, %v2259_v5  ;;  %v1694_v33 = vrot.slane %v1692_v6, 4  ;;  %v1695_v34 = vrot.slane %v2213_v0, 7  ;;  %v2301_v62 = vld [vmem:[%s2013_s11 + $0x28] sm:$0xf] }
  0x3c   : > { %v205_v49 = vrot.slane %v204_v55, 4  ;;  %v2272_v20 = vshll.u32 %v2255_v4, 16  ;;  %v653_v17 = vrot.slane %v651_v40, 4  ;;  %v1430_v51 = vsel %vm2119_vm1, %v1426_v26, %v1429_v27 }
  0x3d   : > { %v1644_v39 = vmax.bf16 %v1425_v36, %v1365_v9  ;;  %v1120_v31 = vmax.bf16 %v905_v2, %v841_v54  ;;  %v2277_v37 = vshrl.u32 %v2255_v4, 16  ;;  %v654_v22 = vrot.slane %v2166_v59, 5 }
  0x3e   : > { %v210_v6 = vsel %vm2051_vm13, %v205_v49, %v209_v21  ;;  %v906_v52 = vrot.slane %v904_v57, 4  ;;  %v907_v40 = vrot.slane %v2182_v13, 5  ;;  %v908_v16 = vrot.slane %v2179_v23, 6 }
  0x3f   : > { %v1831_v36 = vmax.bf16 %v1693_v48, %v1644_v39  ;;  %v1307_v14 = vmax.bf16 %v2186_v24, %v1120_v31  ;;  %v561_v53 = vmax.bf16 %v210_v6, %v2095_v58  ;;  %v1696_v28 = vsel %vm2105_vm0, %v1694_v33, %v1695_v34 }
  0x40   : > { %v249_v38 = vrot.slane %v2272_v20, 5  ;;  %v2293_v60 = vsel %vm2042_vm10, %v653_v17, %v654_v22  ;;  %v1178_v56 = vrot.slane %v1176_v43, 4  ;;  %v909_v57 = vor.u32 %v908_v16, %v907_v40 }
  0x41   : > { %1868 = vst.msk [vmem:[%s2160_s15 + $0x8] sm:$0xf] %vm1865_vm2, %v1831_v36  ;;  %v1366_v48 = vmax.bf16 %v1307_v14, %v2265_v1  ;;  %v783_v24 = vmax.bf16 %v2205_v19, %v561_v53  ;;  %v1432_v58 = vrot.slane %v2277_v37, 6  ;;  %v1179_v26 = vrot.slane %v2255_v4, 6 }
  0x42   : > { %v1431_v2 = vrot.slane %v1429_v27, 4  ;;  %v1433_v55 = vrot.slane %v2272_v20, 7  ;;  %v1697_v9 = vrot.slane %v1695_v34, 4  ;;  %v910_v33 = vsel %vm2088_vm15, %v906_v52, %v909_v57 }
  0x43   : > { %v1645_v54 = vmax.bf16 %v1430_v51, %v1366_v48  ;;  %v842_v43 = vmax.bf16 %v783_v24, %v2293_v60  ;;  %v214_v19 = vor.u32 %v213_v32, %v209_v21  ;;  %v1698_v17 = vrot.slane %v2255_v4, 7 }
  0x44   : > { %v1434_v49 = vor.u32 %v1433_v55, %v1432_v58  ;;  %v2314_v27 = vshll.u32 %v2301_v62, 16  ;;  %v2317_v34 = vshrl.u32 %v2301_v62, 16  ;;  %v253_v31 = vrot.slane %v2277_v37, 4 }
  0x45   : > { %v1832_v39 = vmax.bf16 %v1696_v28, %v1645_v54  ;;  %v1121_v51 = vmax.bf16 %v910_v33, %v842_v43  ;;  %v215_v6 = vrot.slane %v214_v19, 4  ;;  %v2322_v8 = vsel %vm2076_vm14, %v1178_v56, %v1179_v26  ;;  %v2346_v54 = vld [vmem:[%s2013_s11 + $0x2c] sm:$0xf] }
  0x46   : > { %v1435_v12 = vsel %vm2119_vm1, %v1431_v2, %v1434_v49  ;;  %v1699_v21 = vsel %vm2105_vm0, %v1697_v9, %v1698_v17  ;;  %v656_v32 = vrot.slane %v654_v22, 4  ;;  %v259_v36 = vrot.slane %v2314_v27, 5 }
  0x47   : > { %1869 = vst.msk [vmem:[%s2160_s15 + $0xc] sm:$0xf] %vm1865_vm2, %v1832_v39  ;;  %v1308_v52 = vmax.bf16 %v2221_v11, %v1121_v51  ;;  %v220_v40 = vsel %vm2051_vm13, %v215_v6, %v219_v44  ;;  %v912_v14 = vrot.slane %v2237_v35, 5  ;;  %v263_v53 = vrot.slane %v2317_v34, 4 }
  0x48   : > { %v562_v16 = vmax.bf16 %v220_v40, %v2023_v3  ;;  %v911_v28 = vrot.slane %v909_v57, 4  ;;  %v913_v22 = vrot.slane %v2228_v15, 6  ;;  %v657_v11 = vrot.slane %v2213_v0, 5 }
  0x49   : > { %v1367_v56 = vmax.bf16 %v1308_v52, %v2322_v8  ;;  %v1181_v48 = vrot.slane %v1179_v26, 4  ;;  %v1437_v24 = vrot.slane %v2317_v34, 6  ;;  %v1438_v55 = vrot.slane %v2314_v27, 7 }
  0x4a   : > { %v784_v58 = vmax.bf16 %v2259_v5, %v562_v16  ;;  %v914_v2 = vor.u32 %v913_v22, %v912_v14  ;;  %v1700_v9 = vrot.slane %v1698_v17, 4  ;;  %v2350_v3 = vsel %vm2042_vm10, %v656_v32, %v657_v11 }
  0x4b   : > { %v1646_v43 = vmax.bf16 %v1435_v12, %v1367_v56  ;;  %v1182_v57 = vrot.slane %v2301_v62, 6  ;;  %v224_v26 = vor.u32 %v223_v45, %v219_v44  ;;  %v1436_v19 = vrot.slane %v1434_v49, 4 }
  0x4c   : > { %v843_v5 = vmax.bf16 %v784_v58, %v2350_v3  ;;  %v915_v33 = vsel %vm2088_vm15, %v911_v28, %v914_v2  ;;  %v1701_v17 = vrot.slane %v2301_v62, 7  ;;  %v2366_v12 = vshll.u32 %v2346_v54, 16 }
  0x4d   : > { %v1833_v39 = vmax.bf16 %v1699_v21, %v1646_v43  ;;  %v2363_v51 = vsel %vm2076_vm14, %v1181_v48, %v1182_v57  ;;  %v225_v6 = vrot.slane %v224_v26, 4  ;;  %v1439_v30 = vor.u32 %v1438_v55, %v1437_v24 }
  0x4e   : > { %v1122_v29 = vmax.bf16 %v915_v33, %v843_v5  ;;  %v1702_v44 = vsel %vm2105_vm0, %v1700_v9, %v1701_v17  ;;  %v659_v45 = vrot.slane %v657_v11, 4  ;;  %v2377_v21 = vshrl.u32 %v2346_v54, 16 }
  0x4f   : > { %1870 = vst.msk [vmem:[%s2160_s15 + $0x10] sm:$0xf] %vm1865_vm2, %v1833_v39  ;;  %v230_v49 = vsel %vm2051_vm13, %v225_v6, %v229_v41  ;;  %v660_v32 = vrot.slane %v2255_v4, 5  ;;  %v916_v52 = vrot.slane %v914_v2, 4  ;;  %v917_v16 = vrot.slane %v2277_v37, 5 }
  0x50   : > { %v1309_v40 = vmax.bf16 %v2265_v1, %v1122_v29  ;;  %v563_v14 = vmax.bf16 %v230_v49, %v2115_v7  ;;  %v918_v28 = vrot.slane %v2272_v20, 6  ;;  %v1440_v22 = vsel %vm2119_vm1, %v1436_v19, %v1439_v30  ;;  %v2395_v2 = vld [vmem:[%s2013_s11 + $0x30] sm:$0xf] }
  0x51   : > { %v269_v56 = vrot.slane %v2366_v12, 5  ;;  %v2389_v11 = vsel %vm2042_vm10, %v659_v45, %v660_v32  ;;  %v1184_v48 = vrot.slane %v1182_v57, 4  ;;  %v1442_v7 = vrot.slane %v2377_v21, 6 }
  0x52   : > { %v1368_v24 = vmax.bf16 %v1309_v40, %v2363_v51  ;;  %v785_v1 = vmax.bf16 %v2293_v60, %v563_v14  ;;  %v919_v58 = vor.u32 %v918_v28, %v917_v16  ;;  %v1185_v55 = vrot.slane %v2346_v54, 6 }
  0x53   : > { %v1441_v9 = vrot.slane %v1439_v30, 4  ;;  %v1443_v43 = vrot.slane %v2366_v12, 7  ;;  %v1703_v26 = vrot.slane %v1701_v17, 4  ;;  %v234_v60 = vor.u32 %v233_v42, %v229_v41 }
  0x54   : > { %v1647_v5 = vmax.bf16 %v1440_v22, %v1368_v24  ;;  %v844_v33 = vmax.bf16 %v785_v1, %v2389_v11  ;;  %v920_v57 = vsel %vm2088_vm15, %v916_v52, %v919_v58  ;;  %v1704_v39 = vrot.slane %v2346_v54, 7 }
  0x55   : > { %v1444_v19 = vor.u32 %v1443_v43, %v1442_v7  ;;  %v2408_v6 = vshll.u32 %v2395_v2, 16  ;;  %v2411_v17 = vshrl.u32 %v2395_v2, 16  ;;  %v273_v30 = vrot.slane %v2377_v21, 4 }
  0x56   : > { %v1834_v29 = vmax.bf16 %v1702_v44, %v1647_v5  ;;  %v1123_v45 = vmax.bf16 %v920_v57, %v844_v33  ;;  %v235_v49 = vrot.slane %v234_v60, 4  ;;  %v2416_v23 = vsel %vm2076_vm14, %v1184_v48, %v1185_v55  ;;  %v2440_v5 = vld [vmem:[%s2013_s11 + $0x34] sm:$0xf] }
  0x57   : > { %v1445_v13 = vsel %vm2119_vm1, %v1441_v9, %v1444_v19  ;;  %v1705_v41 = vsel %vm2105_vm0, %v1703_v26, %v1704_v39  ;;  %v662_v42 = vrot.slane %v660_v32, 4  ;;  %v279_v40 = vrot.slane %v2408_v6, 5 }
  0x58   : > { %1871 = vst.msk [vmem:[%s2160_s15 + $0x14] sm:$0xf] %vm1865_vm2, %v1834_v29  ;;  %v1310_v52 = vmax.bf16 %v2322_v8, %v1123_v45  ;;  %v240_v44 = vsel %vm2051_vm13, %v235_v49, %v239_v46  ;;  %v922_v14 = vrot.slane %v2317_v34, 5  ;;  %v283_v16 = vrot.slane %v2411_v17, 4 }
  0x59   : > { %v564_v28 = vmax.bf16 %v240_v44, %v2166_v59  ;;  %v921_v22 = vrot.slane %v919_v58, 4  ;;  %v923_v32 = vrot.slane %v2314_v27, 6  ;;  %v663_v8 = vrot.slane %v2301_v62, 5 }
  0x5a   : > { %v1369_v48 = vmax.bf16 %v1310_v52, %v2416_v23  ;;  %v1187_v24 = vrot.slane %v1185_v55, 4  ;;  %v1447_v1 = vrot.slane %v2411_v17, 6  ;;  %v1448_v43 = vrot.slane %v2408_v6, 7 }
  0x5b   : > { %v786_v7 = vmax.bf16 %v2350_v3, %v564_v28  ;;  %v924_v9 = vor.u32 %v923_v32, %v922_v14  ;;  %v1706_v26 = vrot.slane %v1704_v39, 4  ;;  %v2444_v59 = vsel %vm2042_vm10, %v662_v42, %v663_v8 }
  0x5c   : > { %v1648_v33 = vmax.bf16 %v1445_v13, %v1369_v48  ;;  %v1188_v58 = vrot.slane %v2395_v2, 6  ;;  %v244_v55 = vor.u32 %v243_v61, %v239_v46  ;;  %v1446_v60 = vrot.slane %v1444_v19, 4 }
  0x5d   : > { %v845_v3 = vmax.bf16 %v786_v7, %v2444_v59  ;;  %v925_v57 = vsel %vm2088_vm15, %v921_v22, %v924_v9  ;;  %v1707_v39 = vrot.slane %v2395_v2, 7  ;;  %v2460_v13 = vshll.u32 %v2440_v5, 16 }
  0x5e   : > { %v1835_v29 = vmax.bf16 %v1705_v41, %v1648_v33  ;;  %v2457_v45 = vsel %vm2076_vm14, %v1187_v24, %v1188_v58  ;;  %v245_v49 = vrot.slane %v244_v55, 4  ;;  %v1449_v35 = vor.u32 %v1448_v43, %v1447_v1 }
  0x5f   : > { %v1124_v15 = vmax.bf16 %v925_v57, %v845_v3  ;;  %v1708_v46 = vsel %vm2105_vm0, %v1706_v26, %v1707_v39  ;;  %v665_v61 = vrot.slane %v663_v8, 4  ;;  %v2471_v41 = vshrl.u32 %v2440_v5, 16 }
  0x60   : > { %1872 = vst.msk [vmem:[%s2160_s15 + $0x18] sm:$0xf] %vm1865_vm2, %v1835_v29  ;;  %v250_v19 = vsel %vm2051_vm13, %v245_v49, %v249_v38  ;;  %v666_v42 = vrot.slane %v2346_v54, 5  ;;  %v926_v52 = vrot.slane %v924_v9, 4  ;;  %v927_v28 = vrot.slane %v2377_v21, 5 }
  0x61   : > { %v1311_v44 = vmax.bf16 %v2363_v51, %v1124_v15  ;;  %v565_v14 = vmax.bf16 %v250_v19, %v2213_v0  ;;  %v928_v22 = vrot.slane %v2366_v12, 6  ;;  %v1450_v32 = vsel %vm2119_vm1, %v1446_v60, %v1449_v35  ;;  %v2489_v9 = vld [vmem:[%s2013_s11 + $0x38] sm:$0xf] }
  0x62   : > { %v289_v48 = vrot.slane %v2460_v13, 5  ;;  %v2483_v8 = vsel %vm2042_vm10, %v665_v61, %v666_v42  ;;  %v1190_v24 = vrot.slane %v1188_v58, 4  ;;  %v1452_v0 = vrot.slane %v2471_v41, 6 }
  0x63   : > { %v1370_v1 = vmax.bf16 %v1311_v44, %v2457_v45  ;;  %v787_v51 = vmax.bf16 %v2389_v11, %v565_v14  ;;  %v929_v7 = vor.u32 %v928_v22, %v927_v28  ;;  %v1191_v43 = vrot.slane %v2440_v5, 6 }
  0x64   : > { %v1451_v26 = vrot.slane %v1449_v35, 4  ;;  %v1453_v33 = vrot.slane %v2460_v13, 7  ;;  %v1709_v55 = vrot.slane %v1707_v39, 4  ;;  %v254_v11 = vor.u32 %v253_v31, %v249_v38 }
  0x65   : > { %v1649_v3 = vmax.bf16 %v1450_v32, %v1370_v1  ;;  %v846_v57 = vmax.bf16 %v787_v51, %v2483_v8  ;;  %v930_v58 = vsel %vm2088_vm15, %v926_v52, %v929_v7  ;;  %v1710_v29 = vrot.slane %v2440_v5, 7 }
  0x66   : > { %v1454_v60 = vor.u32 %v1453_v33, %v1452_v0  ;;  %v2502_v49 = vshll.u32 %v2489_v9, 16  ;;  %v2505_v39 = vshrl.u32 %v2489_v9, 16  ;;  %v293_v35 = vrot.slane %v2471_v41, 4 }
  0x67   : > { %v1836_v15 = vmax.bf16 %v1708_v46, %v1649_v3  ;;  %v1125_v61 = vmax.bf16 %v930_v58, %v846_v57  ;;  %v255_v19 = vrot.slane %v254_v11, 4  ;;  %v2510_v20 = vsel %vm2076_vm14, %v1190_v24, %v1191_v43  ;;  %v2534_v3 = vld [vmem:[%s2013_s11 + $0x3c] sm:$0xf] }
  0x68   : > { %v1455_v37 = vsel %vm2119_vm1, %v1451_v26, %v1454_v60  ;;  %v1711_v38 = vsel %vm2105_vm0, %v1709_v55, %v1710_v29  ;;  %v668_v31 = vrot.slane %v666_v42, 4  ;;  %v299_v44 = vrot.slane %v2502_v49, 5 }
  0x69   : > { %1873 = vst.msk [vmem:[%s2160_s15 + $0x1c] sm:$0xf] %vm1865_vm2, %v1836_v15  ;;  %v1312_v52 = vmax.bf16 %v2416_v23, %v1125_v61  ;;  %v260_v46 = vsel %vm2051_vm13, %v255_v19, %v259_v36  ;;  %v932_v14 = vrot.slane %v2411_v17, 5  ;;  %v303_v28 = vrot.slane %v2505_v39, 4 }
  0x6a   : > { %v566_v22 = vmax.bf16 %v260_v46, %v2255_v4  ;;  %v931_v32 = vrot.slane %v929_v7, 4  ;;  %v933_v42 = vrot.slane %v2408_v6, 6  ;;  %v669_v23 = vrot.slane %v2395_v2, 5 }
  0x6b   : > { %v1371_v24 = vmax.bf16 %v1312_v52, %v2510_v20  ;;  %v1193_v1 = vrot.slane %v1191_v43, 4  ;;  %v1457_v51 = vrot.slane %v2505_v39, 6  ;;  %v1458_v33 = vrot.slane %v2502_v49, 7 }
  0x6c   : > { %v788_v0 = vmax.bf16 %v2444_v59, %v566_v22  ;;  %v934_v26 = vor.u32 %v933_v42, %v932_v14  ;;  %v1712_v55 = vrot.slane %v1710_v29, 4  ;;  %v2538_v4 = vsel %vm2042_vm10, %v668_v31, %v669_v23 }
  0x6d   : > { %v1650_v57 = vmax.bf16 %v1455_v37, %v1371_v24  ;;  %v1194_v7 = vrot.slane %v2489_v9, 6  ;;  %v264_v43 = vor.u32 %v263_v53, %v259_v36  ;;  %v1456_v11 = vrot.slane %v1454_v60, 4 }
  0x6e   : > { %v847_v59 = vmax.bf16 %v788_v0, %v2538_v4  ;;  %v935_v58 = vsel %vm2088_vm15, %v931_v32, %v934_v26  ;;  %v1713_v29 = vrot.slane %v2489_v9, 7  ;;  %v2554_v37 = vshll.u32 %v2534_v3, 16 }
  0x6f   : > { %v1837_v15 = vmax.bf16 %v1711_v38, %v1650_v57  ;;  %v2551_v61 = vsel %vm2076_vm14, %v1193_v1, %v1194_v7  ;;  %v265_v19 = vrot.slane %v264_v43, 4  ;;  %v1459_v34 = vor.u32 %v1458_v33, %v1457_v51 }
  0x70   : > { %v1126_v27 = vmax.bf16 %v935_v58, %v847_v59  ;;  %v1714_v36 = vsel %vm2105_vm0, %v1712_v55, %v1713_v29  ;;  %v671_v53 = vrot.slane %v669_v23, 4  ;;  %v2565_v38 = vshrl.u32 %v2534_v3, 16 }
  0x71   : > { %1874 = vst.msk [vmem:[%s2160_s15 + $0x20] sm:$0xf] %vm1865_vm2, %v1837_v15  ;;  %v270_v60 = vsel %vm2051_vm13, %v265_v19, %v269_v56  ;;  %v672_v31 = vrot.slane %v2440_v5, 5  ;;  %v936_v52 = vrot.slane %v934_v26, 4  ;;  %v937_v22 = vrot.slane %v2471_v41, 5 }
  0x72   : > { %v1313_v46 = vmax.bf16 %v2457_v45, %v1126_v27  ;;  %v567_v14 = vmax.bf16 %v270_v60, %v2301_v62  ;;  %v938_v32 = vrot.slane %v2460_v13, 6  ;;  %v1460_v42 = vsel %vm2119_vm1, %v1456_v11, %v1459_v34  ;;  %v2583_v26 = vld [vmem:[%s2013_s11 + $0x40] sm:$0xf] }
  0x73   : > { %v309_v24 = vrot.slane %v2554_v37, 5  ;;  %v2577_v23 = vsel %vm2042_vm10, %v671_v53, %v672_v31  ;;  %v1196_v1 = vrot.slane %v1194_v7, 4  ;;  %v1462_v62 = vrot.slane %v2565_v38, 6 }
  0x74   : > { %v1372_v51 = vmax.bf16 %v1313_v46, %v2551_v61  ;;  %v789_v45 = vmax.bf16 %v2483_v8, %v567_v14  ;;  %v939_v0 = vor.u32 %v938_v32, %v937_v22  ;;  %v1197_v33 = vrot.slane %v2534_v3, 6 }
  0x75   : > { %v1461_v55 = vrot.slane %v1459_v34, 4  ;;  %v1463_v57 = vrot.slane %v2554_v37, 7  ;;  %v1715_v43 = vrot.slane %v1713_v29, 4  ;;  %v274_v8 = vor.u32 %v273_v30, %v269_v56 }
  0x76   : > { %v1651_v59 = vmax.bf16 %v1460_v42, %v1372_v51  ;;  %v848_v58 = vmax.bf16 %v789_v45, %v2577_v23  ;;  %v940_v7 = vsel %vm2088_vm15, %v936_v52, %v939_v0  ;;  %v1716_v15 = vrot.slane %v2534_v3, 7 }
  0x77   : > { %v1464_v11 = vor.u32 %v1463_v57, %v1462_v62  ;;  %v2596_v19 = vshll.u32 %v2583_v26, 16  ;;  %v2599_v29 = vshrl.u32 %v2583_v26, 16  ;;  %v313_v34 = vrot.slane %v2565_v38, 4 }
  0x78   : > { %v1838_v27 = vmax.bf16 %v1714_v36, %v1651_v59  ;;  %v1127_v53 = vmax.bf16 %v940_v7, %v848_v58  ;;  %v275_v60 = vrot.slane %v274_v8, 4  ;;  %v2604_v12 = vsel %vm2076_vm14, %v1196_v1, %v1197_v33  ;;  %v2628_v59 = vld [vmem:[%s2013_s11 + $0x44] sm:$0xf] }
  0x79   : > { %v1465_v21 = vsel %vm2119_vm1, %v1461_v55, %v1464_v11  ;;  %v1717_v56 = vsel %vm2105_vm0, %v1715_v43, %v1716_v15  ;;  %v674_v30 = vrot.slane %v672_v31, 4  ;;  %v319_v46 = vrot.slane %v2596_v19, 5 }
  0x7a   : > { %1875 = vst.msk [vmem:[%s2160_s15 + $0x24] sm:$0xf] %vm1865_vm2, %v1838_v27  ;;  %v1314_v52 = vmax.bf16 %v2510_v20, %v1127_v53  ;;  %v280_v36 = vsel %vm2051_vm13, %v275_v60, %v279_v40  ;;  %v942_v14 = vrot.slane %v2505_v39, 5  ;;  %v323_v22 = vrot.slane %v2599_v29, 4 }
  0x7b   : > { %v568_v32 = vmax.bf16 %v280_v36, %v2346_v54  ;;  %v941_v42 = vrot.slane %v939_v0, 4  ;;  %v943_v31 = vrot.slane %v2502_v49, 6  ;;  %v675_v20 = vrot.slane %v2489_v9, 5 }
  0x7c   : > { %v1373_v1 = vmax.bf16 %v1314_v52, %v2604_v12  ;;  %v1199_v51 = vrot.slane %v1197_v33, 4  ;;  %v1467_v45 = vrot.slane %v2599_v29, 6  ;;  %v1468_v57 = vrot.slane %v2596_v19, 7 }
  0x7d   : > { %v790_v62 = vmax.bf16 %v2538_v4, %v568_v32  ;;  %v944_v55 = vor.u32 %v943_v31, %v942_v14  ;;  %v1718_v43 = vrot.slane %v1716_v15, 4  ;;  %v2632_v54 = vsel %vm2042_vm10, %v674_v30, %v675_v20 }
  0x7e   : > { %v1652_v58 = vmax.bf16 %v1465_v21, %v1373_v1  ;;  %v1200_v0 = vrot.slane %v2583_v26, 6  ;;  %v284_v33 = vor.u32 %v283_v16, %v279_v40  ;;  %v1466_v8 = vrot.slane %v1464_v11, 4 }
  0x7f   : > { %v849_v4 = vmax.bf16 %v790_v62, %v2632_v54  ;;  %v945_v7 = vsel %vm2088_vm15, %v941_v42, %v944_v55  ;;  %v1719_v15 = vrot.slane %v2583_v26, 7  ;;  %v2648_v21 = vshll.u32 %v2628_v59, 16 }
  0x80   : > { %v1839_v27 = vmax.bf16 %v1717_v56, %v1652_v58  ;;  %v2645_v53 = vsel %vm2076_vm14, %v1199_v51, %v1200_v0  ;;  %v285_v60 = vrot.slane %v284_v33, 4  ;;  %v1469_v17 = vor.u32 %v1468_v57, %v1467_v45 }
  0x81   : > { %v1128_v6 = vmax.bf16 %v945_v7, %v849_v4  ;;  %v1720_v40 = vsel %vm2105_vm0, %v1718_v43, %v1719_v15  ;;  %v677_v16 = vrot.slane %v675_v20, 4  ;;  %v2659_v56 = vshrl.u32 %v2628_v59, 16 }
  0x82   : > { %1876 = vst.msk [vmem:[%s2160_s15 + $0x28] sm:$0xf] %vm1865_vm2, %v1839_v27  ;;  %v290_v11 = vsel %vm2051_vm13, %v285_v60, %v289_v48  ;;  %v678_v30 = vrot.slane %v2534_v3, 5  ;;  %v946_v52 = vrot.slane %v944_v55, 4  ;;  %v947_v32 = vrot.slane %v2565_v38, 5 }
  0x83   : > { %v1315_v36 = vmax.bf16 %v2551_v61, %v1128_v6  ;;  %v569_v14 = vmax.bf16 %v290_v11, %v2395_v2  ;;  %v948_v42 = vrot.slane %v2554_v37, 6  ;;  %v1470_v31 = vsel %vm2119_vm1, %v1466_v8, %v1469_v17  ;;  %v2677_v55 = vld [vmem:[%s2013_s11 + $0x48] sm:$0xf] }
  0x84   : > { %v329_v1 = vrot.slane %v2648_v21, 5  ;;  %v2671_v20 = vsel %vm2042_vm10, %v677_v16, %v678_v30  ;;  %v1202_v51 = vrot.slane %v1200_v0, 4  ;;  %v1472_v2 = vrot.slane %v2659_v56, 6 }
  0x85   : > { %v1374_v45 = vmax.bf16 %v1315_v36, %v2645_v53  ;;  %v791_v61 = vmax.bf16 %v2577_v23, %v569_v14  ;;  %v949_v62 = vor.u32 %v948_v42, %v947_v32  ;;  %v1203_v57 = vrot.slane %v2628_v59, 6 }
  0x86   : > { %v1471_v43 = vrot.slane %v1469_v17, 4  ;;  %v1473_v58 = vrot.slane %v2648_v21, 7  ;;  %v1721_v33 = vrot.slane %v1719_v15, 4  ;;  %v294_v23 = vor.u32 %v293_v35, %v289_v48 }
  0x87   : > { %v1653_v4 = vmax.bf16 %v1470_v31, %v1374_v45  ;;  %v850_v7 = vmax.bf16 %v791_v61, %v2671_v20  ;;  %v950_v0 = vsel %vm2088_vm15, %v946_v52, %v949_v62  ;;  %v1722_v27 = vrot.slane %v2628_v59, 7 }
  0x88   : > { %v1474_v8 = vor.u32 %v1473_v58, %v1472_v2  ;;  %v2690_v60 = vshll.u32 %v2677_v55, 16  ;;  %v2693_v15 = vshrl.u32 %v2677_v55, 16  ;;  %v333_v17 = vrot.slane %v2659_v56, 4 }
  0x89   : > { %v1840_v6 = vmax.bf16 %v1720_v40, %v1653_v4  ;;  %v1129_v16 = vmax.bf16 %v950_v0, %v850_v7  ;;  %v295_v11 = vrot.slane %v294_v23, 4  ;;  %v2698_v13 = vsel %vm2076_vm14, %v1202_v51, %v1203_v57  ;;  %v2722_v4 = vld [vmem:[%s2013_s11 + $0x4c] sm:$0xf] }
  0x8a   : > { %v1475_v41 = vsel %vm2119_vm1, %v1471_v43, %v1474_v8  ;;  %v1723_v48 = vsel %vm2105_vm0, %v1721_v33, %v1722_v27  ;;  %v680_v35 = vrot.slane %v678_v30, 4  ;;  %v339_v36 = vrot.slane %v2690_v60, 5 }
  0x8b   : > { %1877 = vst.msk [vmem:[%s2160_s15 + $0x2c] sm:$0xf] %vm1865_vm2, %v1840_v6  ;;  %v1316_v52 = vmax.bf16 %v2604_v12, %v1129_v16  ;;  %v300_v40 = vsel %vm2051_vm13, %v295_v11, %v299_v44  ;;  %v952_v14 = vrot.slane %v2599_v29, 5  ;;  %v343_v32 = vrot.slane %v2693_v15, 4 }
  0x8c   : > { %v570_v42 = vmax.bf16 %v300_v40, %v2440_v5  ;;  %v951_v31 = vrot.slane %v949_v62, 4  ;;  %v953_v30 = vrot.slane %v2596_v19, 6  ;;  %v681_v12 = vrot.slane %v2583_v26, 5 }
  0x8d   : > { %v1375_v51 = vmax.bf16 %v1316_v52, %v2698_v13  ;;  %v1205_v45 = vrot.slane %v1203_v57, 4  ;;  %v1477_v61 = vrot.slane %v2693_v15, 6  ;;  %v1478_v58 = vrot.slane %v2690_v60, 7 }
  0x8e   : > { %v792_v2 = vmax.bf16 %v2632_v54, %v570_v42  ;;  %v954_v43 = vor.u32 %v953_v30, %v952_v14  ;;  %v1724_v33 = vrot.slane %v1722_v27, 4  ;;  %v2726_v5 = vsel %vm2042_vm10, %v680_v35, %v681_v12 }
  0x8f   : > { %v1654_v7 = vmax.bf16 %v1475_v41, %v1375_v51  ;;  %v1206_v62 = vrot.slane %v2677_v55, 6  ;;  %v304_v57 = vor.u32 %v303_v28, %v299_v44  ;;  %v1476_v23 = vrot.slane %v1474_v8, 4 }
  0x90   : > { %v851_v54 = vmax.bf16 %v792_v2, %v2726_v5  ;;  %v955_v0 = vsel %vm2088_vm15, %v951_v31, %v954_v43  ;;  %v1725_v27 = vrot.slane %v2677_v55, 7  ;;  %v2742_v41 = vshll.u32 %v2722_v4, 16 }
  0x91   : > { %v1841_v6 = vmax.bf16 %v1723_v48, %v1654_v7  ;;  %v2739_v16 = vsel %vm2076_vm14, %v1205_v45, %v1206_v62  ;;  %v305_v11 = vrot.slane %v304_v57, 4  ;;  %v1479_v39 = vor.u32 %v1478_v58, %v1477_v61 }
  0x92   : > { %v1130_v49 = vmax.bf16 %v955_v0, %v851_v54  ;;  %v1726_v44 = vsel %vm2105_vm0, %v1724_v33, %v1725_v27  ;;  %v683_v28 = vrot.slane %v681_v12, 4  ;;  %v2753_v48 = vshrl.u32 %v2722_v4, 16 }
  0x93   : > { %1878 = vst.msk [vmem:[%s2160_s15 + $0x30] sm:$0xf] %vm1865_vm2, %v1841_v6  ;;  %v310_v8 = vsel %vm2051_vm13, %v305_v11, %v309_v24  ;;  %v684_v35 = vrot.slane %v2628_v59, 5  ;;  %v956_v52 = vrot.slane %v954_v43, 4  ;;  %v957_v42 = vrot.slane %v2659_v56, 5 }
  0x94   : > { %v1317_v40 = vmax.bf16 %v2645_v53, %v1130_v49  ;;  %v571_v14 = vmax.bf16 %v310_v8, %v2489_v9  ;;  %v958_v31 = vrot.slane %v2648_v21, 6  ;;  %v1480_v30 = vsel %vm2119_vm1, %v1476_v23, %v1479_v39  ;;  %v2771_v43 = vld [vmem:[%s2013_s11 + $0x50] sm:$0xf] }
  0x95   : > { %v349_v51 = vrot.slane %v2742_v41, 5  ;;  %v2765_v12 = vsel %vm2042_vm10, %v683_v28, %v684_v35  ;;  %v1208_v45 = vrot.slane %v1206_v62, 4  ;;  %v1482_v9 = vrot.slane %v2753_v48, 6 }
  0x96   : > { %v1376_v61 = vmax.bf16 %v1317_v40, %v2739_v16  ;;  %v793_v53 = vmax.bf16 %v2671_v20, %v571_v14  ;;  %v959_v2 = vor.u32 %v958_v31, %v957_v42  ;;  %v1209_v58 = vrot.slane %v2722_v4, 6 }
  0x97   : > { %v1481_v33 = vrot.slane %v1479_v39, 4  ;;  %v1483_v7 = vrot.slane %v2742_v41, 7  ;;  %v1727_v57 = vrot.slane %v1725_v27, 4  ;;  %v314_v20 = vor.u32 %v313_v34, %v309_v24 }
  0x98   : > { %v1655_v54 = vmax.bf16 %v1480_v30, %v1376_v61  ;;  %v852_v0 = vmax.bf16 %v793_v53, %v2765_v12  ;;  %v960_v62 = vsel %vm2088_vm15, %v956_v52, %v959_v2  ;;  %v1728_v6 = vrot.slane %v2722_v4, 7 }
  0x99   : > { %v1484_v23 = vor.u32 %v1483_v7, %v1482_v9  ;;  %v2784_v11 = vshll.u32 %v2771_v43, 16  ;;  %v2787_v27 = vshrl.u32 %v2771_v43, 16  ;;  %v353_v39 = vrot.slane %v2753_v48, 4 }
  0x9a   : > { %v1842_v49 = vmax.bf16 %v1726_v44, %v1655_v54  ;;  %v1131_v28 = vmax.bf16 %v960_v62, %v852_v0  ;;  %v315_v8 = vrot.slane %v314_v20, 4  ;;  %v2792_v37 = vsel %vm2076_vm14, %v1208_v45, %v1209_v58  ;;  %v2816_v54 = vld [vmem:[%s2013_s11 + $0x54] sm:$0xf] }
  0x9b   : > { %v1485_v38 = vsel %vm2119_vm1, %v1481_v33, %v1484_v23  ;;  %v1729_v24 = vsel %vm2105_vm0, %v1727_v57, %v1728_v6  ;;  %v686_v34 = vrot.slane %v684_v35, 4  ;;  %v359_v40 = vrot.slane %v2784_v11, 5 }
  0x9c   : > { %1879 = vst.msk [vmem:[%s2160_s15 + $0x34] sm:$0xf] %vm1865_vm2, %v1842_v49  ;;  %v1318_v52 = vmax.bf16 %v2698_v13, %v1131_v28  ;;  %v320_v44 = vsel %vm2051_vm13, %v315_v8, %v319_v46  ;;  %v962_v14 = vrot.slane %v2693_v15, 5  ;;  %v363_v42 = vrot.slane %v2787_v27, 4 }
  0x9d   : > { %v572_v31 = vmax.bf16 %v320_v44, %v2534_v3  ;;  %v961_v30 = vrot.slane %v959_v2, 4  ;;  %v963_v35 = vrot.slane %v2690_v60, 6  ;;  %v687_v13 = vrot.slane %v2677_v55, 5 }
  0x9e   : > { %v1377_v45 = vmax.bf16 %v1318_v52, %v2792_v37  ;;  %v1211_v61 = vrot.slane %v1209_v58, 4  ;;  %v1487_v53 = vrot.slane %v2787_v27, 6  ;;  %v1488_v7 = vrot.slane %v2784_v11, 7 }
  0x9f   : > { %v794_v9 = vmax.bf16 %v2726_v5, %v572_v31  ;;  %v964_v33 = vor.u32 %v963_v35, %v962_v14  ;;  %v1730_v57 = vrot.slane %v1728_v6, 4  ;;  %v2820_v3 = vsel %vm2042_vm10, %v686_v34, %v687_v13 }
  0xa0   : > { %v1656_v0 = vmax.bf16 %v1485_v38, %v1377_v45  ;;  %v1212_v2 = vrot.slane %v2771_v43, 6  ;;  %v324_v58 = vor.u32 %v323_v22, %v319_v46  ;;  %v1486_v20 = vrot.slane %v1484_v23, 4 }
  0xa1   : > { %v853_v5 = vmax.bf16 %v794_v9, %v2820_v3  ;;  %v965_v62 = vsel %vm2088_vm15, %v961_v30, %v964_v33  ;;  %v1731_v6 = vrot.slane %v2771_v43, 7  ;;  %v2836_v38 = vshll.u32 %v2816_v54, 16 }
  0xa2   : > { %v1843_v49 = vmax.bf16 %v1729_v24, %v1656_v0  ;;  %v2833_v28 = vsel %vm2076_vm14, %v1211_v61, %v1212_v2  ;;  %v325_v8 = vrot.slane %v324_v58, 4  ;;  %v1489_v29 = vor.u32 %v1488_v7, %v1487_v53 }
  0xa3   : > { %v1132_v19 = vmax.bf16 %v965_v62, %v853_v5  ;;  %v1732_v46 = vsel %vm2105_vm0, %v1730_v57, %v1731_v6  ;;  %v689_v22 = vrot.slane %v687_v13, 4  ;;  %v2847_v24 = vshrl.u32 %v2816_v54, 16 }
  0xa4   : > { %1880 = vst.msk [vmem:[%s2160_s15 + $0x38] sm:$0xf] %vm1865_vm2, %v1843_v49  ;;  %v330_v23 = vsel %vm2051_vm13, %v325_v8, %v329_v1  ;;  %v690_v34 = vrot.slane %v2722_v4, 5  ;;  %v966_v52 = vrot.slane %v964_v33, 4  ;;  %v967_v31 = vrot.slane %v2753_v48, 5 }
  0xa5   : > { %v1319_v44 = vmax.bf16 %v2739_v16, %v1132_v19  ;;  %v573_v14 = vmax.bf16 %v330_v23, %v2583_v26  ;;  %v968_v30 = vrot.slane %v2742_v41, 6  ;;  %v1490_v35 = vsel %vm2119_vm1, %v1486_v20, %v1489_v29  ;;  %v2865_v33 = vld [vmem:[%s2013_s11 + $0x58] sm:$0xf] }
  0xa6   : > { %v369_v45 = vrot.slane %v2836_v38, 5  ;;  %v2859_v13 = vsel %vm2042_vm10, %v689_v22, %v690_v34  ;;  %v1214_v61 = vrot.slane %v1212_v2, 4  ;;  %v1492_v26 = vrot.slane %v2847_v24, 6 }
  0xa7   : > { %v1378_v53 = vmax.bf16 %v1319_v44, %v2833_v28  ;;  %v795_v16 = vmax.bf16 %v2765_v12, %v573_v14  ;;  %v969_v9 = vor.u32 %v968_v30, %v967_v31  ;;  %v1215_v7 = vrot.slane %v2816_v54, 6 }
  0xa8   : > { %v1491_v57 = vrot.slane %v1489_v29, 4  ;;  %v1493_v0 = vrot.slane %v2836_v38, 7  ;;  %v1733_v58 = vrot.slane %v1731_v6, 4  ;;  %v334_v12 = vor.u32 %v333_v17, %v329_v1 }
  0xa9   : > { %v1657_v5 = vmax.bf16 %v1490_v35, %v1378_v53  ;;  %v854_v62 = vmax.bf16 %v795_v16, %v2859_v13  ;;  %v970_v2 = vsel %vm2088_vm15, %v966_v52, %v969_v9  ;;  %v1734_v49 = vrot.slane %v2816_v54, 7 }
  0xaa   : > { %v1494_v20 = vor.u32 %v1493_v0, %v1492_v26  ;;  %v2878_v8 = vshll.u32 %v2865_v33, 16  ;;  %v2881_v6 = vshrl.u32 %v2865_v33, 16  ;;  %v373_v29 = vrot.slane %v2847_v24, 4 }
  0xab   : > { %v1844_v19 = vmax.bf16 %v1732_v46, %v1657_v5  ;;  %v1133_v22 = vmax.bf16 %v970_v2, %v854_v62  ;;  %v335_v23 = vrot.slane %v334_v12, 4  ;;  %v2886_v21 = vsel %vm2076_vm14, %v1214_v61, %v1215_v7  ;;  %v2910_v5 = vld [vmem:[%s2013_s11 + $0x5c] sm:$0xf] }
  0xac   : > { %v1495_v56 = vsel %vm2119_vm1, %v1491_v57, %v1494_v20  ;;  %v1735_v1 = vsel %vm2105_vm0, %v1733_v58, %v1734_v49  ;;  %v692_v17 = vrot.slane %v690_v34, 4  ;;  %v379_v44 = vrot.slane %v2878_v8, 5 }
  0xad   : > { %1881 = vst.msk [vmem:[%s2160_s15 + $0x3c] sm:$0xf] %vm1865_vm2, %v1844_v19  ;;  %v1320_v52 = vmax.bf16 %v2792_v37, %v1133_v22  ;;  %v340_v46 = vsel %vm2051_vm13, %v335_v23, %v339_v36  ;;  %v972_v14 = vrot.slane %v2787_v27, 5  ;;  %v383_v31 = vrot.slane %v2881_v6, 4 }
  0xae   : > { %v574_v30 = vmax.bf16 %v340_v46, %v2628_v59  ;;  %v971_v35 = vrot.slane %v969_v9, 4  ;;  %v973_v34 = vrot.slane %v2784_v11, 6  ;;  %v693_v37 = vrot.slane %v2771_v43, 5 }
  0xaf   : > { %v1379_v61 = vmax.bf16 %v1320_v52, %v2886_v21  ;;  %v1217_v53 = vrot.slane %v1215_v7, 4  ;;  %v1497_v16 = vrot.slane %v2881_v6, 6  ;;  %v1498_v0 = vrot.slane %v2878_v8, 7 }
  0xb0   : > { %v796_v26 = vmax.bf16 %v2820_v3, %v574_v30  ;;  %v974_v57 = vor.u32 %v973_v34, %v972_v14  ;;  %v1736_v58 = vrot.slane %v1734_v49, 4  ;;  %v2914_v59 = vsel %vm2042_vm10, %v692_v17, %v693_v37 }
  0xb1   : > { %v1658_v62 = vmax.bf16 %v1495_v56, %v1379_v61  ;;  %v1218_v9 = vrot.slane %v2865_v33, 6  ;;  %v344_v7 = vor.u32 %v343_v32, %v339_v36  ;;  %v1496_v12 = vrot.slane %v1494_v20, 4 }
  0xb2   : > { %v855_v3 = vmax.bf16 %v796_v26, %v2914_v59  ;;  %v975_v2 = vsel %vm2088_vm15, %v971_v35, %v974_v57  ;;  %v1737_v49 = vrot.slane %v2865_v33, 7  ;;  %v2930_v56 = vshll.u32 %v2910_v5, 16 }
  0xb3   : > { %v1845_v19 = vmax.bf16 %v1735_v1, %v1658_v62  ;;  %v2927_v22 = vsel %vm2076_vm14, %v1217_v53, %v1218_v9  ;;  %v345_v23 = vrot.slane %v344_v7, 4  ;;  %v1499_v15 = vor.u32 %v1498_v0, %v1497_v16 }
  0xb4   : > { %v1134_v60 = vmax.bf16 %v975_v2, %v855_v3  ;;  %v1738_v36 = vsel %vm2105_vm0, %v1736_v58, %v1737_v49  ;;  %v695_v32 = vrot.slane %v693_v37, 4  ;;  %v2941_v1 = vshrl.u32 %v2910_v5, 16 }
  0xb5   : > { %1882 = vst.msk [vmem:[%s2160_s15 + $0x40] sm:$0xf] %vm1865_vm2, %v1845_v19  ;;  %v350_v20 = vsel %vm2051_vm13, %v345_v23, %v349_v51  ;;  %v696_v17 = vrot.slane %v2816_v54, 5  ;;  %v976_v52 = vrot.slane %v974_v57, 4  ;;  %v977_v30 = vrot.slane %v2847_v24, 5 }
  0xb6   : > { %v1321_v46 = vmax.bf16 %v2833_v28, %v1134_v60  ;;  %v575_v14 = vmax.bf16 %v350_v20, %v2677_v55  ;;  %v978_v35 = vrot.slane %v2836_v38, 6  ;;  %v1500_v34 = vsel %vm2119_vm1, %v1496_v12, %v1499_v15  ;;  %v2959_v57 = vld [vmem:[%s2013_s11 + $0x60] sm:$0xf] }
  0xb7   : > { %v389_v61 = vrot.slane %v2930_v56, 5  ;;  %v2953_v37 = vsel %vm2042_vm10, %v695_v32, %v696_v17  ;;  %v1220_v53 = vrot.slane %v1218_v9, 4  ;;  %v1502_v55 = vrot.slane %v2941_v1, 6 }
  0xb8   : > { %v1380_v16 = vmax.bf16 %v1321_v46, %v2927_v22  ;;  %v797_v28 = vmax.bf16 %v2859_v13, %v575_v14  ;;  %v979_v26 = vor.u32 %v978_v35, %v977_v30  ;;  %v1221_v0 = vrot.slane %v2910_v5, 6 }
  0xb9   : > { %v1501_v58 = vrot.slane %v1499_v15, 4  ;;  %v1503_v62 = vrot.slane %v2930_v56, 7  ;;  %v1739_v7 = vrot.slane %v1737_v49, 4  ;;  %v354_v13 = vor.u32 %v353_v39, %v349_v51 }
  0xba   : > { %v1659_v3 = vmax.bf16 %v1500_v34, %v1380_v16  ;;  %v856_v2 = vmax.bf16 %v797_v28, %v2953_v37  ;;  %v980_v9 = vsel %vm2088_vm15, %v976_v52, %v979_v26  ;;  %v1740_v19 = vrot.slane %v2910_v5, 7 }
  0xbb   : > { %v1504_v12 = vor.u32 %v1503_v62, %v1502_v55  ;;  %v2972_v23 = vshll.u32 %v2959_v57, 16  ;;  %v2975_v49 = vshrl.u32 %v2959_v57, 16  ;;  %v393_v15 = vrot.slane %v2941_v1, 4 }
  0xbc   : > { %v1846_v60 = vmax.bf16 %v1738_v36, %v1659_v3  ;;  %v1135_v32 = vmax.bf16 %v980_v9, %v856_v2  ;;  %v355_v20 = vrot.slane %v354_v13, 4  ;;  %v2980_v41 = vsel %vm2076_vm14, %v1220_v53, %v1221_v0  ;;  %v3004_v3 = vld [vmem:[%s2013_s11 + $0x64] sm:$0xf] }
  0xbd   : > { %v1505_v48 = vsel %vm2119_vm1, %v1501_v58, %v1504_v12  ;;  %v1741_v51 = vsel %vm2105_vm0, %v1739_v7, %v1740_v19  ;;  %v698_v39 = vrot.slane %v696_v17, 4  ;;  %v399_v46 = vrot.slane %v2972_v23, 5 }
  0xbe   : > { %1883 = vst.msk [vmem:[%s2160_s15 + $0x44] sm:$0xf] %vm1865_vm2, %v1846_v60  ;;  %v1322_v52 = vmax.bf16 %v2886_v21, %v1135_v32  ;;  %v360_v36 = vsel %vm2051_vm13, %v355_v20, %v359_v40  ;;  %v982_v14 = vrot.slane %v2881_v6, 5  ;;  %v403_v30 = vrot.slane %v2975_v49, 4 }
  0xbf   : > { %v576_v35 = vmax.bf16 %v360_v36, %v2722_v4  ;;  %v981_v34 = vrot.slane %v979_v26, 4  ;;  %v983_v17 = vrot.slane %v2878_v8, 6  ;;  %v699_v21 = vrot.slane %v2865_v33, 5 }
  0xc0   : > { %v1381_v53 = vmax.bf16 %v1322_v52, %v2980_v41  ;;  %v1223_v16 = vrot.slane %v1221_v0, 4  ;;  %v1507_v28 = vrot.slane %v2975_v49, 6  ;;  %v1508_v62 = vrot.slane %v2972_v23, 7 }
  0xc1   : > { %v798_v55 = vmax.bf16 %v2914_v59, %v576_v35  ;;  %v984_v58 = vor.u32 %v983_v17, %v982_v14  ;;  %v1742_v7 = vrot.slane %v1740_v19, 4  ;;  %v3008_v4 = vsel %vm2042_vm10, %v698_v39, %v699_v21 }
  0xc2   : > { %v1660_v2 = vmax.bf16 %v1505_v48, %v1381_v53  ;;  %v1224_v26 = vrot.slane %v2959_v57, 6  ;;  %v364_v0 = vor.u32 %v363_v42, %v359_v40  ;;  %v1506_v13 = vrot.slane %v1504_v12, 4 }
  0xc3   : > { %v857_v59 = vmax.bf16 %v798_v55, %v3008_v4  ;;  %v985_v9 = vsel %vm2088_vm15, %v981_v34, %v984_v58  ;;  %v1743_v19 = vrot.slane %v2959_v57, 7  ;;  %v3024_v48 = vshll.u32 %v3004_v3, 16 }
  0xc4   : > { %v1847_v60 = vmax.bf16 %v1741_v51, %v1660_v2  ;;  %v3021_v32 = vsel %vm2076_vm14, %v1223_v16, %v1224_v26  ;;  %v365_v20 = vrot.slane %v364_v0, 4  ;;  %v1509_v27 = vor.u32 %v1508_v62, %v1507_v28 }
  0xc5   : > { %v1136_v11 = vmax.bf16 %v985_v9, %v857_v59  ;;  %v1744_v40 = vsel %vm2105_vm0, %v1742_v7, %v1743_v19  ;;  %v701_v42 = vrot.slane %v699_v21, 4  ;;  %v3035_v51 = vshrl.u32 %v3004_v3, 16 }
  0xc6   : > { %1884 = vst.msk [vmem:[%s2160_s15 + $0x48] sm:$0xf] %vm1865_vm2, %v1847_v60  ;;  %v370_v12 = vsel %vm2051_vm13, %v365_v20, %v369_v45  ;;  %v702_v39 = vrot.slane %v2910_v5, 5  ;;  %v986_v52 = vrot.slane %v984_v58, 4  ;;  %v987_v35 = vrot.slane %v2941_v1, 5 }
  0xc7   : > { %v1323_v36 = vmax.bf16 %v2927_v22, %v1136_v11  ;;  %v577_v14 = vmax.bf16 %v370_v12, %v2771_v43  ;;  %v988_v34 = vrot.slane %v2930_v56, 6  ;;  %v1510_v17 = vsel %vm2119_vm1, %v1506_v13, %v1509_v27  ;;  %v3053_v58 = vld [vmem:[%s2013_s11 + $0x68] sm:$0xf] }
  0xc8   : > { %v409_v53 = vrot.slane %v3024_v48, 5  ;;  %v3047_v21 = vsel %vm2042_vm10, %v701_v42, %v702_v39  ;;  %v1226_v16 = vrot.slane %v1224_v26, 4  ;;  %v1512_v43 = vrot.slane %v3035_v51, 6 }
  0xc9   : > { %v1382_v28 = vmax.bf16 %v1323_v36, %v3021_v32  ;;  %v799_v22 = vmax.bf16 %v2953_v37, %v577_v14  ;;  %v989_v55 = vor.u32 %v988_v34, %v987_v35  ;;  %v1227_v62 = vrot.slane %v3004_v3, 6 }
  0xca   : > { %v1511_v7 = vrot.slane %v1509_v27, 4  ;;  %v1513_v2 = vrot.slane %v3024_v48, 7  ;;  %v1745_v0 = vrot.slane %v1743_v19, 4  ;;  %v374_v37 = vor.u32 %v373_v29, %v369_v45 }
  0xcb   : > { %v1661_v59 = vmax.bf16 %v1510_v17, %v1382_v28  ;;  %v858_v9 = vmax.bf16 %v799_v22, %v3047_v21  ;;  %v990_v26 = vsel %vm2088_vm15, %v986_v52, %v989_v55  ;;  %v1746_v60 = vrot.slane %v3004_v3, 7 }
  0xcc   : > { %v1514_v13 = vor.u32 %v1513_v2, %v1512_v43  ;;  %v3066_v20 = vshll.u32 %v3053_v58, 16  ;;  %v3069_v19 = vshrl.u32 %v3053_v58, 16  ;;  %v413_v27 = vrot.slane %v3035_v51, 4 }
  0xcd   : > { %v1848_v11 = vmax.bf16 %v1744_v40, %v1661_v59  ;;  %v1137_v42 = vmax.bf16 %v990_v26, %v858_v9  ;;  %v375_v12 = vrot.slane %v374_v37, 4  ;;  %v3074_v38 = vsel %vm2076_vm14, %v1226_v16, %v1227_v62  ;;  %v3098_v59 = vld [vmem:[%s2013_s11 + $0x6c] sm:$0xf] }
  0xce   : > { %v1515_v24 = vsel %vm2119_vm1, %v1511_v7, %v1514_v13  ;;  %v1747_v45 = vsel %vm2105_vm0, %v1745_v0, %v1746_v60  ;;  %v704_v29 = vrot.slane %v702_v39, 4  ;;  %v419_v36 = vrot.slane %v3066_v20, 5 }
  0xcf   : > { %1885 = vst.msk [vmem:[%s2160_s15 + $0x4c] sm:$0xf] %vm1865_vm2, %v1848_v11  ;;  %v1324_v52 = vmax.bf16 %v2980_v41, %v1137_v42  ;;  %v380_v40 = vsel %vm2051_vm13, %v375_v12, %v379_v44  ;;  %v992_v14 = vrot.slane %v2975_v49, 5  ;;  %v423_v35 = vrot.slane %v3069_v19, 4 }
  0xd0   : > { %v578_v34 = vmax.bf16 %v380_v40, %v2816_v54  ;;  %v991_v17 = vrot.slane %v989_v55, 4  ;;  %v993_v39 = vrot.slane %v2972_v23, 6  ;;  %v705_v41 = vrot.slane %v2959_v57, 5 }
  0xd1   : > { %v1383_v16 = vmax.bf16 %v1324_v52, %v3074_v38  ;;  %v1229_v28 = vrot.slane %v1227_v62, 4  ;;  %v1517_v22 = vrot.slane %v3069_v19, 6  ;;  %v1518_v2 = vrot.slane %v3066_v20, 7 }
  0xd2   : > { %v800_v43 = vmax.bf16 %v3008_v4, %v578_v34  ;;  %v994_v7 = vor.u32 %v993_v39, %v992_v14  ;;  %v1748_v0 = vrot.slane %v1746_v60, 4  ;;  %v3102_v54 = vsel %vm2042_vm10, %v704_v29, %v705_v41 }
  0xd3   : > { %v1662_v9 = vmax.bf16 %v1515_v24, %v1383_v16  ;;  %v1230_v55 = vrot.slane %v3053_v58, 6  ;;  %v384_v62 = vor.u32 %v383_v31, %v379_v44  ;;  %v1516_v37 = vrot.slane %v1514_v13, 4 }
  0xd4   : > { %v859_v4 = vmax.bf16 %v800_v43, %v3102_v54  ;;  %v995_v26 = vsel %vm2088_vm15, %v991_v17, %v994_v7  ;;  %v1749_v60 = vrot.slane %v3053_v58, 7  ;;  %v3118_v24 = vshll.u32 %v3098_v59, 16 }
  0xd5   : > { %v1849_v11 = vmax.bf16 %v1747_v45, %v1662_v9  ;;  %v3115_v42 = vsel %vm2076_vm14, %v1229_v28, %v1230_v55  ;;  %v385_v12 = vrot.slane %v384_v62, 4  ;;  %v1519_v6 = vor.u32 %v1518_v2, %v1517_v22 }
  0xd6   : > { %v1138_v8 = vmax.bf16 %v995_v26, %v859_v4  ;;  %v1750_v44 = vsel %vm2105_vm0, %v1748_v0, %v1749_v60  ;;  %v707_v31 = vrot.slane %v705_v41, 4  ;;  %v3129_v45 = vshrl.u32 %v3098_v59, 16 }
  0xd7   : > { %1886 = vst.msk [vmem:[%s2160_s15 + $0x50] sm:$0xf] %vm1865_vm2, %v1849_v11  ;;  %v390_v13 = vsel %vm2051_vm13, %v385_v12, %v389_v61  ;;  %v708_v29 = vrot.slane %v3004_v3, 5  ;;  %v996_v52 = vrot.slane %v994_v7, 4  ;;  %v997_v34 = vrot.slane %v3035_v51, 5 }
  0xd8   : > { %v1325_v40 = vmax.bf16 %v3021_v32, %v1138_v8  ;;  %v579_v14 = vmax.bf16 %v390_v13, %v2865_v33  ;;  %v998_v17 = vrot.slane %v3024_v48, 6  ;;  %v1520_v39 = vsel %vm2119_vm1, %v1516_v37, %v1519_v6  ;;  %v3147_v7 = vld [vmem:[%s2013_s11 + $0x70] sm:$0xf] }
  0xd9   : > { %v429_v16 = vrot.slane %v3118_v24, 5  ;;  %v3141_v41 = vsel %vm2042_vm10, %v707_v31, %v708_v29  ;;  %v1232_v28 = vrot.slane %v1230_v55, 4  ;;  %v1522_v33 = vrot.slane %v3129_v45, 6 }
  0xda   : > { %v1384_v22 = vmax.bf16 %v1325_v40, %v3115_v42  ;;  %v801_v32 = vmax.bf16 %v3047_v21, %v579_v14  ;;  %v999_v43 = vor.u32 %v998_v17, %v997_v34  ;;  %v1233_v2 = vrot.slane %v3098_v59, 6 }
  0xdb   : > { %v1521_v0 = vrot.slane %v1519_v6, 4  ;;  %v1523_v9 = vrot.slane %v3118_v24, 7  ;;  %v1751_v62 = vrot.slane %v1749_v60, 4  ;;  %v394_v21 = vor.u32 %v393_v15, %v389_v61 }
  0xdc   : > { %v1663_v4 = vmax.bf16 %v1520_v39, %v1384_v22  ;;  %v860_v26 = vmax.bf16 %v801_v32, %v3141_v41  ;;  %v1000_v55 = vsel %vm2088_vm15, %v996_v52, %v999_v43  ;;  %v1752_v11 = vrot.slane %v3098_v59, 7 }
  0xdd   : > { %v1524_v37 = vor.u32 %v1523_v9, %v1522_v33  ;;  %v3160_v12 = vshll.u32 %v3147_v7, 16  ;;  %v3163_v60 = vshrl.u32 %v3147_v7, 16  ;;  %v433_v6 = vrot.slane %v3129_v45, 4 }
  0xde   : > { %v1850_v8 = vmax.bf16 %v1750_v44, %v1663_v4  ;;  %v1139_v31 = vmax.bf16 %v1000_v55, %v860_v26  ;;  %v395_v13 = vrot.slane %v394_v21, 4  ;;  %v3168_v56 = vsel %vm2076_vm14, %v1232_v28, %v1233_v2  ;;  %v3192_v4 = vld [vmem:[%s2013_s11 + $0x74] sm:$0xf] }
  0xdf   : > { %v1525_v1 = vsel %vm2119_vm1, %v1521_v0, %v1524_v37  ;;  %v1753_v61 = vsel %vm2105_vm0, %v1751_v62, %v1752_v11  ;;  %v710_v15 = vrot.slane %v708_v29, 4  ;;  %v439_v40 = vrot.slane %v3160_v12, 5 }
  0xe0   : > { %1887 = vst.msk [vmem:[%s2160_s15 + $0x54] sm:$0xf] %vm1865_vm2, %v1850_v8  ;;  %v1326_v52 = vmax.bf16 %v3074_v38, %v1139_v31  ;;  %v400_v44 = vsel %vm2051_vm13, %v395_v13, %v399_v46  ;;  %v1002_v14 = vrot.slane %v3069_v19, 5  ;;  %v443_v34 = vrot.slane %v3163_v60, 4 }
  0xe1   : > { %v580_v17 = vmax.bf16 %v400_v44, %v2910_v5  ;;  %v1001_v39 = vrot.slane %v999_v43, 4  ;;  %v1003_v29 = vrot.slane %v3066_v20, 6  ;;  %v711_v38 = vrot.slane %v3053_v58, 5 }
  0xe2   : > { %v1385_v28 = vmax.bf16 %v1326_v52, %v3168_v56  ;;  %v1235_v22 = vrot.slane %v1233_v2, 4  ;;  %v1527_v32 = vrot.slane %v3163_v60, 6  ;;  %v1528_v9 = vrot.slane %v3160_v12, 7 }
  0xe3   : > { %v802_v33 = vmax.bf16 %v3102_v54, %v580_v17  ;;  %v1004_v0 = vor.u32 %v1003_v29, %v1002_v14  ;;  %v1754_v62 = vrot.slane %v1752_v11, 4  ;;  %v3196_v5 = vsel %vm2042_vm10, %v710_v15, %v711_v38 }
  0xe4   : > { %v1664_v26 = vmax.bf16 %v1525_v1, %v1385_v28  ;;  %v1236_v43 = vrot.slane %v3147_v7, 6  ;;  %v404_v2 = vor.u32 %v403_v30, %v399_v46  ;;  %v1526_v21 = vrot.slane %v1524_v37, 4 }
  0xe5   : > { %v861_v54 = vmax.bf16 %v802_v33, %v3196_v5  ;;  %v1005_v55 = vsel %vm2088_vm15, %v1001_v39, %v1004_v0  ;;  %v1755_v11 = vrot.slane %v3147_v7, 7  ;;  %v3212_v1 = vshll.u32 %v3192_v4, 16 }
  0xe6   : > { %v1851_v8 = vmax.bf16 %v1753_v61, %v1664_v26  ;;  %v3209_v31 = vsel %vm2076_vm14, %v1235_v22, %v1236_v43  ;;  %v405_v13 = vrot.slane %v404_v2, 4  ;;  %v1529_v49 = vor.u32 %v1528_v9, %v1527_v32 }
  0xe7   : > { %v1140_v23 = vmax.bf16 %v1005_v55, %v861_v54  ;;  %v1756_v46 = vsel %vm2105_vm0, %v1754_v62, %v1755_v11  ;;  %v713_v30 = vrot.slane %v711_v38, 4  ;;  %v3223_v61 = vshrl.u32 %v3192_v4, 16 }
  0xe8   : > { %1888 = vst.msk [vmem:[%s2160_s15 + $0x58] sm:$0xf] %vm1865_vm2, %v1851_v8  ;;  %v410_v37 = vsel %vm2051_vm13, %v405_v13, %v409_v53  ;;  %v714_v15 = vrot.slane %v3098_v59, 5  ;;  %v1006_v52 = vrot.slane %v1004_v0, 4  ;;  %v1007_v17 = vrot.slane %v3129_v45, 5 }
  0xe9   : > { %v1327_v44 = vmax.bf16 %v3115_v42, %v1140_v23  ;;  %v581_v14 = vmax.bf16 %v410_v37, %v2959_v57  ;;  %v1008_v39 = vrot.slane %v3118_v24, 6  ;;  %v1530_v29 = vsel %vm2119_vm1, %v1526_v21, %v1529_v49  ;;  %v3241_v0 = vld [vmem:[%s2013_s11 + $0x78] sm:$0xf] }
  0xea   : > { %v449_v28 = vrot.slane %v3212_v1, 5  ;;  %v3235_v38 = vsel %vm2042_vm10, %v713_v30, %v714_v15  ;;  %v1238_v22 = vrot.slane %v1236_v43, 4  ;;  %v1532_v57 = vrot.slane %v3223_v61, 6 }
  0xeb   : > { %v1386_v32 = vmax.bf16 %v1327_v44, %v3209_v31  ;;  %v803_v42 = vmax.bf16 %v3141_v41, %v581_v14  ;;  %v1009_v33 = vor.u32 %v1008_v39, %v1007_v17  ;;  %v1239_v9 = vrot.slane %v3192_v4, 6 }
  0xec   : > { %v1531_v62 = vrot.slane %v1529_v49, 4  ;;  %v1533_v26 = vrot.slane %v3212_v1, 7  ;;  %v1757_v2 = vrot.slane %v1755_v11, 4  ;;  %v414_v41 = vor.u32 %v413_v27, %v409_v53 }
  0xed   : > { %v1665_v54 = vmax.bf16 %v1530_v29, %v1386_v32  ;;  %v862_v55 = vmax.bf16 %v803_v42, %v3235_v38  ;;  %v1010_v43 = vsel %vm2088_vm15, %v1006_v52, %v1009_v33  ;;  %v1758_v8 = vrot.slane %v3192_v4, 7 }
  0xee   : > { %v1534_v21 = vor.u32 %v1533_v26, %v1532_v57  ;;  %v3254_v13 = vshll.u32 %v3241_v0, 16  ;;  %v3257_v11 = vshrl.u32 %v3241_v0, 16  ;;  %v453_v49 = vrot.slane %v3223_v61, 4 }
  0xef   : > { %v1852_v23 = vmax.bf16 %v1756_v46, %v1665_v54  ;;  %v1141_v30 = vmax.bf16 %v1010_v43, %v862_v55  ;;  %v415_v37 = vrot.slane %v414_v41, 4  ;;  %v3262_v48 = vsel %vm2076_vm14, %v1238_v22, %v1239_v9  ;;  %v3286_v54 = vld [vmem:[%s2013_s11 + $0x7c] sm:$0xf] }
  0xf0   : > { %v1535_v51 = vsel %vm2119_vm1, %v1531_v62, %v1534_v21  ;;  %v1759_v53 = vsel %vm2105_vm0, %v1757_v2, %v1758_v8  ;;  %v716_v27 = vrot.slane %v714_v15, 4  ;;  %v459_v44 = vrot.slane %v3254_v13, 5 }
  0xf1   : > { %1889 = vst.msk [vmem:[%s2160_s15 + $0x5c] sm:$0xf] %vm1865_vm2, %v1852_v23  ;;  %v1328_v52 = vmax.bf16 %v3168_v56, %v1141_v30  ;;  %v420_v46 = vsel %vm2051_vm13, %v415_v37, %v419_v36  ;;  %v1012_v14 = vrot.slane %v3163_v60, 5  ;;  %v463_v17 = vrot.slane %v3257_v11, 4 }
  0xf2   : > { %v582_v39 = vmax.bf16 %v420_v46, %v3004_v3  ;;  %v1011_v29 = vrot.slane %v1009_v33, 4  ;;  %v1013_v15 = vrot.slane %v3160_v12, 6  ;;  %v717_v56 = vrot.slane %v3147_v7, 5 }
  0xf3   : > { %v1387_v22 = vmax.bf16 %v1328_v52, %v3262_v48  ;;  %v1241_v32 = vrot.slane %v1239_v9, 4  ;;  %v1537_v42 = vrot.slane %v3257_v11, 6  ;;  %v1538_v26 = vrot.slane %v3254_v13, 7 }
  0xf4   : > { %v804_v57 = vmax.bf16 %v3196_v5, %v582_v39  ;;  %v1014_v62 = vor.u32 %v1013_v15, %v1012_v14  ;;  %v1760_v2 = vrot.slane %v1758_v8, 4  ;;  %v3290_v3 = vsel %vm2042_vm10, %v716_v27, %v717_v56 }
  0xf5   : > { %v1666_v55 = vmax.bf16 %v1535_v51, %v1387_v22  ;;  %v1242_v33 = vrot.slane %v3241_v0, 6  ;;  %v424_v9 = vor.u32 %v423_v35, %v419_v36  ;;  %v1536_v41 = vrot.slane %v1534_v21, 4 }
  0xf6   : > { %v863_v5 = vmax.bf16 %v804_v57, %v3290_v3  ;;  %v1015_v43 = vsel %vm2088_vm15, %v1011_v29, %v1014_v62  ;;  %v1761_v8 = vrot.slane %v3241_v0, 7  ;;  %v3306_v51 = vshll.u32 %v3286_v54, 16 }
  0xf7   : > { %v1853_v23 = vmax.bf16 %v1759_v53, %v1666_v55  ;;  %v3303_v30 = vsel %vm2076_vm14, %v1241_v32, %v1242_v33  ;;  %v425_v37 = vrot.slane %v424_v9, 4  ;;  %v1539_v19 = vor.u32 %v1538_v26, %v1537_v42 }
  0xf8   : > { %v1142_v20 = vmax.bf16 %v1015_v43, %v863_v5  ;;  %v1762_v36 = vsel %vm2105_vm0, %v1760_v2, %v1761_v8  ;;  %v719_v35 = vrot.slane %v717_v56, 4  ;;  %v3317_v53 = vshrl.u32 %v3286_v54, 16 }
  0xf9   : > { %1890 = vst.msk [vmem:[%s2160_s15 + $0x60] sm:$0xf] %vm1865_vm2, %v1853_v23  ;;  %v430_v21 = vsel %vm2051_vm13, %v425_v37, %v429_v16  ;;  %v720_v27 = vrot.slane %v3192_v4, 5  ;;  %v1016_v52 = vrot.slane %v1014_v62, 4  ;;  %v1017_v39 = vrot.slane %v3223_v61, 5 }
  0xfa   : > { %v1329_v46 = vmax.bf16 %v3209_v31, %v1142_v20  ;;  %v583_v14 = vmax.bf16 %v430_v21, %v3053_v58  ;;  %v1018_v29 = vrot.slane %v3212_v1, 6  ;;  %v1540_v15 = vsel %vm2119_vm1, %v1536_v41, %v1539_v19  ;;  %v3335_v62 = vld [vmem:[%s2013_s11 + $0x80] sm:$0xf] }
  0xfb   : > { %v469_v22 = vrot.slane %v3306_v51, 5  ;;  %v3329_v56 = vsel %vm2042_vm10, %v719_v35, %v720_v27  ;;  %v1244_v32 = vrot.slane %v1242_v33, 4  ;;  %v1542_v58 = vrot.slane %v3317_v53, 6 }
  0xfc   : > { %v1388_v42 = vmax.bf16 %v1329_v46, %v3303_v30  ;;  %v805_v31 = vmax.bf16 %v3235_v38, %v583_v14  ;;  %v1019_v57 = vor.u32 %v1018_v29, %v1017_v39  ;;  %v1245_v26 = vrot.slane %v3286_v54, 6 }
  0xfd   : > { %v1541_v2 = vrot.slane %v1539_v19, 4  ;;  %v1543_v55 = vrot.slane %v3306_v51, 7  ;;  %v1763_v9 = vrot.slane %v1761_v8, 4  ;;  %v434_v38 = vor.u32 %v433_v6, %v429_v16 }
  0xfe   : > { %v1667_v5 = vmax.bf16 %v1540_v15, %v1388_v42  ;;  %v864_v43 = vmax.bf16 %v805_v31, %v3329_v56  ;;  %v1020_v33 = vsel %vm2088_vm15, %v1016_v52, %v1019_v57  ;;  %v1764_v23 = vrot.slane %v3286_v54, 7 }
  0xff   : > { %v1544_v41 = vor.u32 %v1543_v55, %v1542_v58  ;;  %v3348_v37 = vshll.u32 %v3335_v62, 16  ;;  %v3351_v8 = vshrl.u32 %v3335_v62, 16  ;;  %v435_v35 = vrot.slane %v434_v38, 4 }
 0x100   : > { %v1854_v20 = vmax.bf16 %v1762_v36, %v1667_v5  ;;  %v1143_v19 = vmax.bf16 %v1020_v33, %v864_v43  ;;  %v722_v21 = vrot.slane %v720_v27, 4  ;;  %v473_v52 = vrot.slane %v3317_v53, 4 }
 0x101   : > { %v3356_v24 = vsel %vm2076_vm14, %v1244_v32, %v1245_v26  ;;  %v1545_v45 = vsel %vm2119_vm1, %v1541_v2, %v1544_v41  ;;  %v1765_v16 = vsel %vm2105_vm0, %v1763_v9, %v1764_v23  ;;  %v440_v36 = vsel %vm2051_vm13, %v435_v35, %v439_v40 }
 0x102   : > { %1891 = vst.msk [vmem:[%s2160_s15 + $0x64] sm:$0xf] %vm1865_vm2, %v1854_v20  ;;  %v1330_v6 = vmax.bf16 %v3262_v48, %v1143_v19  ;;  %v723_v27 = vrot.slane %v3241_v0, 5  ;;  %v1022_v46 = vrot.slane %v3257_v11, 5  ;;  %v479_v14 = vrot.slane %v3348_v37, 5 }
 0x103   : > { %v584_v39 = vmax.bf16 %v440_v36, %v3098_v59  ;;  %v1021_v29 = vrot.slane %v1019_v57, 4  ;;  %v1023_v15 = vrot.slane %v3254_v13, 6  ;;  %v483_v48 = vrot.slane %v3351_v8, 4  ;;  %v3384_v59 = vld [vmem:[%s2013_s11 + $0x84] sm:$0xf] }
 0x104   : > { %v1389_v32 = vmax.bf16 %v1330_v6, %v3356_v24  ;;  %v3378_v42 = vsel %vm2042_vm10, %v722_v21, %v723_v27  ;;  %v1247_v31 = vrot.slane %v1245_v26, 4  ;;  %v1547_v55 = vrot.slane %v3351_v8, 6 }
 0x105   : > { %v806_v58 = vmax.bf16 %v3290_v3, %v584_v39  ;;  %v1024_v2 = vor.u32 %v1023_v15, %v1022_v46  ;;  %v1548_v9 = vrot.slane %v3348_v37, 7  ;;  %v1248_v5 = vrot.slane %v3335_v62, 6 }
 0x106   : > { %v1668_v57 = vmax.bf16 %v1545_v45, %v1389_v32  ;;  %v1766_v43 = vrot.slane %v1764_v23, 4  ;;  %v444_v33 = vor.u32 %v443_v34, %v439_v40  ;;  %v1546_v38 = vrot.slane %v1544_v41, 4 }
 0x107   : > { %v865_v26 = vmax.bf16 %v806_v58, %v3378_v42  ;;  %v1025_v3 = vsel %vm2088_vm15, %v1021_v29, %v1024_v2  ;;  %v1767_v20 = vrot.slane %v3335_v62, 7  ;;  %v3396_v21 = vshll.u32 %v3384_v59, 16 }
 0x108   : > { %v1855_v19 = vmax.bf16 %v1765_v16, %v1668_v57  ;;  %v445_v35 = vrot.slane %v444_v33, 4  ;;  %v3399_v23 = vshrl.u32 %v3384_v59, 16  ;;  %v3403_v60 = vsel %vm2076_vm14, %v1247_v31, %v1248_v5 }
 0x109   : > { %v1144_v12 = vmax.bf16 %v1025_v3, %v865_v26  ;;  %v1549_v40 = vor.u32 %v1548_v9, %v1547_v55  ;;  %v725_v34 = vrot.slane %v723_v27, 4  ;;  %v1768_v41 = vsel %vm2105_vm0, %v1766_v43, %v1767_v20  ;;  %v3430_v55 = vld [vmem:[%s2013_s11 + $0x88] sm:$0xf] }
 0x10a   : > { %1892 = vst.msk [vmem:[%s2160_s15 + $0x68] sm:$0xf] %vm1865_vm2, %v1855_v19  ;;  %v450_v45 = vsel %vm2051_vm13, %v445_v35, %v449_v28  ;;  %v726_v16 = vrot.slane %v3286_v54, 5  ;;  %v1026_v6 = vrot.slane %v1024_v2, 4  ;;  %v1027_v27 = vrot.slane %v3317_v53, 5 }
 0x10b   : > { %v1331_v36 = vmax.bf16 %v3303_v30, %v1144_v12  ;;  %v585_v46 = vmax.bf16 %v450_v45, %v3147_v7  ;;  %v1028_v39 = vrot.slane %v3306_v51, 6  ;;  %v1550_v29 = vsel %vm2119_vm1, %v1546_v38, %v1549_v40 }
 0x10c   : > { %v489_v15 = vrot.slane %v3396_v21, 5  ;;  %v493_v32 = vrot.slane %v3399_v23, 4  ;;  %v3424_v31 = vsel %vm2042_vm10, %v725_v34, %v726_v16  ;;  %v1552_v2 = vrot.slane %v3399_v23, 6 }
 0x10d   : > { %v1390_v58 = vmax.bf16 %v1331_v36, %v3403_v60  ;;  %v807_v30 = vmax.bf16 %v3329_v56, %v585_v46  ;;  %v1029_v7 = vor.u32 %v1028_v39, %v1027_v27  ;;  %v1250_v9 = vrot.slane %v1248_v5, 4 }
 0x10e   : > { %v1551_v57 = vrot.slane %v1549_v40, 4  ;;  %v1553_v43 = vrot.slane %v3396_v21, 7  ;;  %v1769_v33 = vrot.slane %v1767_v20, 4  ;;  %v454_v56 = vor.u32 %v453_v49, %v449_v28 }
 0x10f   : > { %v1669_v26 = vmax.bf16 %v1550_v29, %v1390_v58  ;;  %v866_v3 = vmax.bf16 %v807_v30, %v3424_v31  ;;  %v1030_v38 = vsel %vm2088_vm15, %v1026_v6, %v1029_v7  ;;  %v1251_v19 = vrot.slane %v3384_v59, 6 }
 0x110   : > { %v1554_v35 = vor.u32 %v1553_v43, %v1552_v2  ;;  %v1770_v5 = vrot.slane %v3384_v59, 7  ;;  %v3443_v12 = vshll.u32 %v3430_v55, 16  ;;  %v455_v34 = vrot.slane %v454_v56, 4 }
 0x111   : > { %v1856_v20 = vmax.bf16 %v1768_v41, %v1669_v26  ;;  %v1145_v40 = vmax.bf16 %v1030_v38, %v866_v3  ;;  %v728_v45 = vrot.slane %v726_v16, 4  ;;  %v3447_v6 = vsel %vm2076_vm14, %v1250_v9, %v1251_v19  ;;  %v3477_v26 = vld [vmem:[%s2013_s11 + $0x8c] sm:$0xf] }
 0x112   : > { %v1555_v1 = vsel %vm2119_vm1, %v1551_v57, %v1554_v35  ;;  %v1771_v61 = vsel %vm2105_vm0, %v1769_v33, %v1770_v5  ;;  %v3454_v28 = vshrl.u32 %v3430_v55, 16  ;;  %v460_v41 = vsel %vm2051_vm13, %v455_v34, %v459_v44 }
 0x113   : > { %1893 = vst.msk [vmem:[%s2160_s15 + $0x6c] sm:$0xf] %vm1865_vm2, %v1856_v20  ;;  %v1332_v49 = vmax.bf16 %v3356_v24, %v1145_v40  ;;  %v729_v16 = vrot.slane %v3335_v62, 5  ;;  %v1032_v36 = vrot.slane %v3351_v8, 5  ;;  %v499_v46 = vrot.slane %v3443_v12, 5 }
 0x114   : > { %v586_v27 = vmax.bf16 %v460_v41, %v3192_v4  ;;  %v1031_v39 = vrot.slane %v1029_v7, 4  ;;  %v1033_v29 = vrot.slane %v3348_v37, 6  ;;  %v1253_v30 = vrot.slane %v1251_v19, 4 }
 0x115   : > { %v1391_v58 = vmax.bf16 %v1332_v49, %v3447_v6  ;;  %v3471_v24 = vsel %vm2042_vm10, %v728_v45, %v729_v16  ;;  %v1557_v2 = vrot.slane %v3454_v28, 6  ;;  %v1558_v43 = vrot.slane %v3443_v12, 7 }
 0x116   : > { %v808_v9 = vmax.bf16 %v3378_v42, %v586_v27  ;;  %v1034_v57 = vor.u32 %v1033_v29, %v1032_v36  ;;  %v1772_v33 = vrot.slane %v1770_v5, 4  ;;  %v1254_v7 = vrot.slane %v3430_v55, 6 }
 0x117   : > { %v1670_v4 = vmax.bf16 %v1555_v1, %v1391_v58  ;;  %v1556_v3 = vrot.slane %v1554_v35, 4  ;;  %v464_v38 = vor.u32 %v463_v17, %v459_v44  ;;  %v1559_v19 = vor.u32 %v1558_v43, %v1557_v2 }
 0x118   : > { %v867_v56 = vmax.bf16 %v808_v9, %v3471_v24  ;;  %v1035_v42 = vsel %vm2088_vm15, %v1031_v39, %v1034_v57  ;;  %v1773_v5 = vrot.slane %v3430_v55, 7  ;;  %v3489_v34 = vshll.u32 %v3477_v26, 16 }
 0x119   : > { %v1857_v20 = vmax.bf16 %v1771_v61, %v1670_v4  ;;  %v465_v40 = vrot.slane %v464_v38, 4  ;;  %v3492_v35 = vshrl.u32 %v3477_v26, 16  ;;  %v503_v13 = vrot.slane %v3454_v28, 4 }
 0x11a   : > { %v1146_v11 = vmax.bf16 %v1035_v42, %v867_v56  ;;  %v3497_v44 = vsel %vm2076_vm14, %v1253_v30, %v1254_v7  ;;  %v1774_v17 = vsel %vm2105_vm0, %v1772_v33, %v1773_v5  ;;  %v1560_v45 = vsel %vm2119_vm1, %v1556_v3, %v1559_v19 }
 0x11b   : > { %1894 = vst.msk [vmem:[%s2160_s15 + $0x70] sm:$0xf] %vm1865_vm2, %v1857_v20  ;;  %v470_v1 = vsel %vm2051_vm13, %v465_v40, %v469_v22  ;;  %v731_v61 = vrot.slane %v729_v16, 4  ;;  %v1036_v49 = vrot.slane %v1034_v57, 4  ;;  %v1037_v27 = vrot.slane %v3399_v23, 5 }
 0x11c   : > { %v1333_v41 = vmax.bf16 %v3403_v60, %v1146_v11  ;;  %v587_v36 = vmax.bf16 %v470_v1, %v3241_v0  ;;  %v1038_v39 = vrot.slane %v3396_v21, 6  ;;  %v509_v29 = vrot.slane %v3489_v34, 5  ;;  %v3538_v40 = vld [vmem:[%s2013_s11 + $0x90] sm:$0xf] }
 0x11d   : > { %v513_v58 = vrot.slane %v3492_v35, 4  ;;  %v732_v30 = vrot.slane %v3384_v59, 5  ;;  %v1256_v2 = vrot.slane %v1254_v7, 4  ;;  %v1562_v60 = vrot.slane %v3492_v35, 6 }
 0x11e   : > { %v1392_v9 = vmax.bf16 %v1333_v41, %v3497_v44  ;;  %v809_v16 = vmax.bf16 %v3424_v31, %v587_v36  ;;  %v1039_v57 = vor.u32 %v1038_v39, %v1037_v27  ;;  %v1257_v43 = vrot.slane %v3477_v26, 6 }
 0x11f   : > { %v3521_v0 = vsel %vm2042_vm10, %v731_v61, %v732_v30  ;;  %v1561_v33 = vrot.slane %v1559_v19, 4  ;;  %v1563_v4 = vrot.slane %v3489_v34, 7  ;;  %v474_v31 = vor.u32 %v473_v52, %v469_v22 }
 0x120   : > { %v1671_v3 = vmax.bf16 %v1560_v45, %v1392_v9  ;;  %v868_v7 = vmax.bf16 %v809_v16, %v3521_v0  ;;  %v1040_v38 = vsel %vm2088_vm15, %v1036_v49, %v1039_v57  ;;  %v3534_v56 = vsel %vm2076_vm14, %v1256_v2, %v1257_v43 }
 0x121   : > { %v1775_v42 = vrot.slane %v1773_v5, 4  ;;  %v1776_v19 = vrot.slane %v3477_v26, 7  ;;  %v734_v20 = vrot.slane %v732_v30, 4  ;;  %v1564_v1 = vor.u32 %v1563_v4, %v1562_v60 }
 0x122   : > { %v1858_v11 = vmax.bf16 %v1774_v17, %v1671_v3  ;;  %v1147_v45 = vmax.bf16 %v1040_v38, %v868_v7  ;;  %v475_v61 = vrot.slane %v474_v31, 4  ;;  %v735_v49 = vrot.slane %v3430_v55, 5 }
 0x123   : > { %v1041_v51 = vrot.slane %v1039_v57, 4  ;;  %v1042_v53 = vrot.slane %v3454_v28, 5  ;;  %v1043_v22 = vrot.slane %v3443_v12, 6  ;;  %v1053_v17 = vshrl.u32 %v3538_v40, 16 }
 0x124   : > { %1895 = vst.msk [vmem:[%s2160_s15 + $0x74] sm:$0xf] %vm1865_vm2, %v1858_v11  ;;  %v1334_v52 = vmax.bf16 %v3447_v6, %v1147_v45  ;;  %v480_v5 = vsel %vm2051_vm13, %v475_v61, %v479_v14  ;;  %v1056_v41 = vshll.u32 %v3538_v40, 16  ;;  %v1565_v36 = vsel %vm2119_vm1, %v1561_v33, %v1564_v1 }
 0x125   : > { %v1777_v27 = vsel %vm2105_vm0, %v1775_v42, %v1776_v19  ;;  %v588_v39 = vmax.bf16 %v480_v5, %v3286_v54  ;;  %v3559_v6 = vsel %vm2042_vm10, %v734_v20, %v735_v49  ;;  %v1044_v2 = vor.u32 %v1043_v22, %v1042_v53 }
 0x126   : > { %v1393_v30 = vmax.bf16 %v1334_v52, %v3534_v56  ;;  %v1259_v9 = vrot.slane %v1257_v43, 4  ;;  %v1260_v16 = vrot.slane %v3538_v40, 6  ;;  %v1055_v60 = vrot.slane %v1053_v17, 5 }
 0x127   : > { %v810_v57 = vmax.bf16 %v3471_v24, %v588_v39  ;;  %v1058_v33 = vrot.slane %v1056_v41, 6  ;;  %v1567_v4 = vrot.slane %v1053_v17, 6  ;;  %v1045_v54 = vsel %vm2088_vm15, %v1041_v51, %v1044_v2  ;;  %v3572_v24 = vld [vmem:[%s2013_s11 + $0x94] sm:$0xf] }
 0x128   : > { %v1672_v3 = vmax.bf16 %v1565_v36, %v1393_v30  ;;  %v1568_v7 = vrot.slane %v1056_v41, 7  ;;  %v1778_v38 = vrot.slane %v1776_v19, 4  ;;  %v1566_v42 = vrot.slane %v1564_v1, 4 }
 0x129   : > { %v869_v31 = vmax.bf16 %v810_v57, %v3559_v6  ;;  %v484_v43 = vor.u32 %v483_v48, %v479_v14  ;;  %v737_v20 = vrot.slane %v735_v49, 4  ;;  %v3576_v45 = vsel %vm2076_vm14, %v1259_v9, %v1260_v16 }
 0x12a   : > { %v1859_v11 = vmax.bf16 %v1777_v27, %v1672_v3  ;;  %v1779_v61 = vrot.slane %v3538_v40, 7  ;;  %v738_v19 = vrot.slane %v3477_v26, 5  ;;  %v1569_v53 = vor.u32 %v1568_v7, %v1567_v4 }
 0x12b   : > { %v1148_v51 = vmax.bf16 %v1045_v54, %v869_v31  ;;  %v485_v1 = vrot.slane %v484_v43, 4  ;;  %v1047_v37 = vrot.slane %v3492_v35, 5  ;;  %v1048_v14 = vrot.slane %v3489_v34, 6 }
 0x12c   : > { %1896 = vst.msk [vmem:[%s2160_s15 + $0x78] sm:$0xf] %vm1865_vm2, %v1859_v11  ;;  %v1780_v8 = vsel %vm2105_vm0, %v1778_v38, %v1779_v61  ;;  %v1063_v48 = vshrl.u32 %v3572_v24, 16  ;;  %v1066_v49 = vshll.u32 %v3572_v24, 16  ;;  %v3595_v5 = vsel %vm2042_vm10, %v737_v20, %v738_v19 }
 0x12d   : > { %v1335_v22 = vmax.bf16 %v3497_v44, %v1148_v51  ;;  %v490_v52 = vsel %vm2051_vm13, %v485_v1, %v489_v15  ;;  %v1046_v17 = vrot.slane %v1044_v2, 4  ;;  %v1570_v41 = vsel %vm2119_vm1, %v1566_v42, %v1569_v53  ;;  %v1341_v1 = vld [vmem:[%s2013_s11 + $0x98] sm:$0xf] }
 0x12e   : > { %v589_v36 = vmax.bf16 %v490_v52, %v3335_v62  ;;  %v1262_v27 = vrot.slane %v1260_v16, 4  ;;  %v1263_v39 = vrot.slane %v3572_v24, 6  ;;  %v1049_v30 = vor.u32 %v1048_v14, %v1047_v37 }
 0x12f   : > { %v1394_v44 = vmax.bf16 %v1335_v22, %v3576_v45  ;;  %v1065_v9 = vrot.slane %v1063_v48, 5  ;;  %v1572_v57 = vrot.slane %v1063_v48, 6  ;;  %v1068_v3 = vrot.slane %v1066_v49, 6 }
 0x130   : > { %v811_v4 = vmax.bf16 %v3521_v0, %v589_v36  ;;  %v1573_v54 = vrot.slane %v1066_v49, 7  ;;  %v1781_v7 = vrot.slane %v1779_v61, 4  ;;  %v1050_v38 = vsel %vm2088_vm15, %v1046_v17, %v1049_v30 }
 0x131   : > { %v1673_v2 = vmax.bf16 %v1570_v41, %v1394_v44  ;;  %v1571_v62 = vrot.slane %v1569_v53, 4  ;;  %v494_v16 = vor.u32 %v493_v32, %v489_v15  ;;  %v1782_v0 = vrot.slane %v3572_v24, 7 }
 0x132   : > { %v870_v31 = vmax.bf16 %v811_v4, %v3595_v5  ;;  %v1574_v42 = vor.u32 %v1573_v54, %v1572_v57  ;;  %v3611_v43 = vrot.slane %v738_v19, 4  ;;  %v826_v61 = vrot.slane %v3538_v40, 5 }
 0x133   : > { %v1860_v20 = vmax.bf16 %v1780_v8, %v1673_v2  ;;  %v495_v11 = vrot.slane %v494_v16, 4  ;;  %v1051_v51 = vrot.slane %v1049_v30, 4  ;;  %v3617_v21 = vsel %vm2076_vm14, %v1262_v27, %v1263_v39 }
 0x134   : > { %v1149_v37 = vmax.bf16 %v1050_v38, %v870_v31  ;;  %v1783_v23 = vsel %vm2105_vm0, %v1781_v7, %v1782_v0  ;;  %v1059_v15 = vor.u32 %v1058_v33, %v1055_v60  ;;  %v1575_v32 = vsel %vm2119_vm1, %v1571_v62, %v1574_v42 }
 0x135   : > { %1897 = vst.msk [vmem:[%s2160_s15 + $0x7c] sm:$0xf] %vm1865_vm2, %v1860_v20  ;;  %v500_v40 = vsel %vm2051_vm13, %v495_v11, %v499_v46  ;;  %v827_v19 = vsel %vm2042_vm10, %v3611_v43, %v826_v61  ;;  %v3632_v53 = vrot.slane %v1263_v39, 4  ;;  %v1578_v33 = vshrl.u32 %v1341_v1, 16  ;;  %v153_v20 = vld [vmem:[%s2013_s11 + $0x90] sm:$0x1] }
 0x136   : > { %v1336_v8 = vmax.bf16 %v3534_v56, %v1149_v37  ;;  %v590_v60 = vmax.bf16 %v500_v40, %v3384_v59  ;;  %v1581_v14 = vshll.u32 %v1341_v1, 16  ;;  %v1060_v48 = vsel %vm2088_vm15, %v1051_v51, %v1059_v15 }
 0x137   : > { %v1351_v49 = vrot.slane %v1341_v1, 6  ;;  %v1784_v22 = vrot.slane %v1782_v0, 4  ;;  %v504_v52 = vor.u32 %v503_v13, %v499_v46  ;;  %v1580_v56 = vrot.slane %v1578_v33, 6  ;;  %v3648_v46 = vld [vmem:[%s2013_s11 + $0x9c] sm:$0xf] }
 0x138   : > { %v1395_v17 = vmax.bf16 %v1336_v8, %v3617_v21  ;;  %v812_v41 = vmax.bf16 %v3559_v6, %v590_v60  ;;  %v1583_v36 = vrot.slane %v1581_v14, 7  ;;  %v1576_v59 = vrot.slane %v1574_v42, 4 }
 0x139   : > { %v1785_v27 = vrot.slane %v1341_v1, 7  ;;  %v505_v39 = vrot.slane %v504_v52, 4  ;;  %v828_v44 = vrot.slane %v826_v61, 4  ;;  %v1352_v12 = vsel %vm2076_vm14, %v3632_v53, %v1351_v49 }
 0x13a   : > { %v1674_v30 = vmax.bf16 %v1575_v32, %v1395_v17  ;;  %v871_v57 = vmax.bf16 %v827_v19, %v812_v41  ;;  %v1061_v28 = vrot.slane %v1059_v15, 4  ;;  %v1584_v13 = vor.u32 %v1583_v36, %v1580_v56  ;;  %v874_v32 = vld [vmem:[%s2013_s11 + $0x98] sm:$0x3]  ;;  %v1399_v56 = vld [vmem:[%s2013_s11 + $0xa0] sm:$0x7] }
 0x13b   : > { %v1786_v6 = vsel %vm2105_vm0, %v1784_v22, %v1785_v27  ;;  %v510_v4 = vsel %vm2051_vm13, %v505_v39, %v509_v29  ;;  %v829_v54 = vrot.slane %v3572_v24, 5  ;;  %v3658_v62 = vor.u32 %v1068_v3, %v1065_v9 }
 0x13c   : > { %v1861_v7 = vmax.bf16 %v1783_v23, %v1674_v30  ;;  %v1150_v2 = vmax.bf16 %v1060_v48, %v871_v57  ;;  %v591_v38 = vmax.bf16 %v510_v4, %v3430_v55  ;;  %v1585_v16 = vsel %vm2119_vm1, %v1576_v59, %v1584_v13 }
 0x13d   : > { %v830_v31 = vsel %vm2042_vm10, %v828_v44, %v829_v54  ;;  %v1353_v42 = vrot.slane %v1351_v49, 4  ;;  %v1588_v0 = vshrl.u32 %v3648_v46, 16  ;;  %v1070_v9 = vsel %vm2088_vm15, %v1061_v28, %v3658_v62 }
 0x13e   : > { %1898 = vst.msk [vmem:[%s2160_s15 + $0x80] sm:$0xf] %vm1865_vm2, %v1861_v7  ;;  %v1337_v24 = vmax.bf16 %v3576_v45, %v1150_v2  ;;  %v813_v55 = vmax.bf16 %v3595_v5, %v591_v38  ;;  %v1591_v3 = vshll.u32 %v3648_v46, 16  ;;  %v1354_v11 = vrot.slane %v3648_v46, 6  ;;  %v818_v5 = vld [vmem:[%s2013_s11 + $0x98] sm:$0x1] }
 0x13f   : > { %v1586_v61 = vrot.slane %v1584_v13, 4  ;;  %v1590_v51 = vrot.slane %v1588_v0, 6  ;;  %v514_v1 = vor.u32 %v513_v58, %v509_v29  ;;  %v517_v15 = vshll.u32 %v153_v20, 16 }
 0x140   : > { %v1396_v37 = vmax.bf16 %v1352_v12, %v1337_v24  ;;  %v872_v23 = vmax.bf16 %v830_v31, %v813_v55  ;;  %v1593_v45 = vrot.slane %v1591_v3, 7  ;;  %v1355_v40 = vsel %vm2076_vm14, %v1353_v42, %v1354_v11 }
 0x141   : > { %v1787_v19 = vrot.slane %v1785_v27, 4  ;;  %v515_v8 = vrot.slane %v514_v1, 4  ;;  %v741_v60 = vrot.slane %v153_v20, 5  ;;  %v519_v34 = vrot.slane %v517_v15, 5 }
 0x142   : > { %v1675_v33 = vmax.bf16 %v1585_v16, %v1396_v37  ;;  %v1151_v14 = vmax.bf16 %v1070_v9, %v872_v23  ;;  %v831_v48 = vrot.slane %v829_v54, 4  ;;  %v1594_v35 = vor.u32 %v1593_v45, %v1590_v51 }
 0x143   : > { %v1788_v29 = vrot.slane %v3648_v46, 7  ;;  %v832_v58 = vrot.slane %v818_v5, 5  ;;  %v1073_v49 = vshrl.u32 %v874_v32, 16  ;;  %v520_v17 = vsel %vm2051_vm13, %v515_v8, %v519_v34 }
 0x144   : > { %v1862_v22 = vmax.bf16 %v1786_v6, %v1675_v33  ;;  %v1338_v52 = vmax.bf16 %v3617_v21, %v1151_v14  ;;  %v742_v41 = vsel %vm2042_vm10, %v3611_v43, %v741_v60  ;;  %v1595_v36 = vsel %vm2119_vm1, %v1586_v61, %v1594_v35  ;;  %v1343_v43 = vld [vmem:[%s2013_s11 + $0xa0] sm:$0x3] }
 0x145   : > { %v592_v59 = vmax.bf16 %v520_v17, %v3477_v26  ;;  %v1075_v27 = vrot.slane %v1073_v49, 5  ;;  %v1076_v39 = vshll.u32 %v874_v32, 16  ;;  %v1789_v21 = vsel %vm2105_vm0, %v1787_v19, %v1788_v29 }
 0x146   : > { %1899 = vst.msk [vmem:[%s2160_s15 + $0x84] sm:$0xf] %vm1865_vm2, %v1862_v22  ;;  %v1397_v44 = vmax.bf16 %v1355_v40, %v1338_v52  ;;  %v833_v25 = vsel %vm2042_vm10, %v831_v48, %v832_v58  ;;  %v1071_v30 = vrot.slane %v3658_v62, 4  ;;  %v1266_v28 = vrot.slane %v874_v32, 6 }
 0x147   : > { %v814_v57 = vmax.bf16 %v742_v41, %v592_v59  ;;  %v1078_v12 = vrot.slane %v1076_v39, 6  ;;  %v1598_v46 = vshrl.u32 %v1399_v56, 16  ;;  %v1356_v13 = vrot.slane %v1354_v11, 4 }
 0x148   : > { %v1676_v26 = vmax.bf16 %v1595_v36, %v1397_v44  ;;  %v1601_v6 = vshll.u32 %v1399_v56, 16  ;;  %v1357_v7 = vrot.slane %v1343_v43, 6  ;;  %v1267_v62 = vsel %vm2076_vm14, %v3632_v53, %v1266_v28 }
 0x149   : > { %v873_v4 = vmax.bf16 %v833_v25, %v814_v57  ;;  %v1079_v54 = vor.u32 %v1078_v12, %v1075_v27  ;;  %v1600_v2 = vrot.slane %v1598_v46, 6  ;;  %v1596_v31 = vrot.slane %v1594_v35, 4 }
 0x14a   : > { %v1863_v38 = vmax.bf16 %v1789_v21, %v1676_v26  ;;  %v1603_v16 = vrot.slane %v1601_v6, 7  ;;  %v1358_v20 = vsel %vm2076_vm14, %v1356_v13, %v1357_v7  ;;  %v1790_v24 = vrot.slane %v1788_v29, 4 }
 0x14b   : > { %v1080_v18 = vsel %vm2088_vm15, %v1071_v30, %v1079_v54  ;;  %v1791_v55 = vrot.slane %v1399_v56, 7 }
 0x14c   : > { %1900 = vst.msk [vmem:[%s2160_s15 + $0x88] sm:$0xf] %vm1865_vm2, %v1863_v38  ;;  %v1152_v42 = vmax.bf16 %v1080_v18, %v873_v4  ;;  %v1604_v0 = vor.u32 %v1603_v16, %v1600_v2 }
 0x14d   : > { %v1792_v11 = vsel %vm2105_vm0, %v1790_v24, %v1791_v55 }
 0x14e   : > { %v1339_v9 = vmax.bf16 %v1267_v62, %v1152_v42  ;;  %v1605_v50 = vsel %vm2119_vm1, %v1596_v31, %v1604_v0 }
 0x150   : > { %v1398_v3 = vmax.bf16 %v1358_v20, %v1339_v9 }
 0x152   : > { %v1677_v61 = vmax.bf16 %v1605_v50, %v1398_v3 }
 0x154   : > { %v1864_v53 = vmax.bf16 %v1792_v11, %v1677_v61 }
 0x156   : > { %1901 = vst.msk [vmem:[%s2160_s15 + $0x8c] sm:$0xf] %vm1865_vm2, %v1864_v53 }
 0x157 PF: > { %s11_s6 = sadd.s32 1, %s1987_s6  }
 0x158   : > { %p8_p4 = scmp.ge.s32.totalorder %s11_s6, 4  }
 0x15a   :  { %10 = sbr.rel (!%p8_p4) target bundleno = 1 (0x1), region = 54 }

// kernel: resnet_forward.19
= control target key start
LH: loop header
LB: loop body
LE: loop exit
PB: predicated region body
PF: predicated region fallthrough
CT: control target
= control target key end

     0   :  { %s472_s12 = smov 0   ;;  %s508_s0 = inlined_call_operand.vmem [shape: bf16[2,80,128], index: 0, kind: input, shape index: {}]   ;;  %s509_s1 = inlined_call_operand.vmem [shape: f32[2,1,128], index: 1, kind: input, shape index: {}]   ;;  %s510_s2 = inlined_call_operand.vmem [shape: f32[2,1,128], index: 2, kind: input, shape index: {}]   ;;  %s511_s3 = inlined_call_operand.vmem [shape: bf16[2,80,128], index: 3, kind: output, shape index: {}]  }
   0x1 LB: > { %s351_s13 = sadd.s32 4294967295, %s450_s12   ;;  %p355_p0 = scmp.ge.s32.totalorder %s450_s12, 1  ;;  %s450_s12 = sphi %s472_s12, %s13_s12  }
   0x2   : > { %p137_p1 = scmp.lt.s32.totalorder %s450_s12, 3 }
   0x4   : > { %p138_p2 = pnand %p355_p0, %p137_p1 }
   0x5   : > { %p161_p3 = scmp.lt.s32.totalorder (!%p138_p2), %s351_s13, 1 }
   0x6   : > { %141 = sbr.rel (%p138_p2) target bundleno = 50 (0x32), region = 32 }
   0xb   : > { %v171_v0 = vld [vmem:[%s509_s1] sm:$0x1]  ;;  %v172_v1 = vld [vmem:[%s509_s1 + $0x1] sm:$0x1]  ;;  %vm173_vm0 = vcmask 1040384   ;;  %s513_s13 = smov (!%p161_p3, %s351_s13), 1  ;;  %v208_v13 = vlaneseq }
   0xc   : > { %v174_v2 = vsel %vm173_vm0, %v171_v0, 0.0  ;;  %v175_v3 = vsel %vm173_vm0, %v172_v1, 0.0  ;;  %v178_v4 = vld [vmem:[%s510_s2] sm:$0x1]  ;;  %v179_v5 = vld [vmem:[%s510_s2 + $0x1] sm:$0x1] }
   0xd   : > { %v176_v6 = vadd.f32 %v175_v3, %v174_v2  ;;  %v180_v7 = vsel %vm173_vm0, %v178_v4, 0.0  ;;  %v181_v8 = vsel %vm173_vm0, %v179_v5, 0.0  ;;  %s433_s22 = smul.u32 40, %s513_s13  ;;  %v209_v16 = vshrl.u32 %v208_v13, 7 }
   0xe   : > { %v182_v9 = vadd.f32 %v181_v8, %v180_v7 }
   0xf   : > { %v177_v10 = vmul.f32 0.0078125, %v176_v6  ;;  %s165_s25 = scalar_lea.vmem %s508_s0, %s433_s22  ;;  %v210_v17 = vsub.s32 0, %v209_v16  ;;  %s170_s28 = scalar_lea.vmem %s511_s3, %s433_s22 }
  0x10   : > { %v183_v11 = vmul.f32 0.0078125, %v182_v9  ;;  %v381_v18 = vld [vmem:[%s165_s25] sm:$0xff]   ;;  %v425_v19 = vld [vmem:[%s165_s25 + $0x8] sm:$0xff]   ;;  %v426_v20 = vld [vmem:[%s165_s25 + $0x10] sm:$0xff]  }
  0x11   : > { %v184_v12 = vmul.f32 %v177_v10, %v177_v10  ;;  %v427_v21 = vld [vmem:[%s165_s25 + $0x18] sm:$0xff]   ;;  %v211_v22 = vrot.slane %v177_v10, %v210_v17  ;;  %v382_v23 = vunpack.c.l.bf16 %v381_v18  ;;  %v383_v24 = vunpack.c.h.bf16 %v381_v18  ;;  %v428_v27 = vld [vmem:[%s165_s25 + $0x20] sm:$0xff]  }
  0x12   : > { %v386_v25 = vunpack.c.l.bf16 %v425_v19  ;;  %v387_v26 = vunpack.c.h.bf16 %v425_v19  ;;  %v390_v28 = vunpack.c.l.bf16 %v426_v20  ;;  %v391_v29 = vunpack.c.h.bf16 %v426_v20 }
  0x13   : > { %v185_v14 = vsub.f32 %v183_v11, %v184_v12  ;;  %v394_v30 = vunpack.c.l.bf16 %v427_v21  ;;  %v395_v31 = vunpack.c.h.bf16 %v427_v21  ;;  %v398_v32 = vunpack.c.l.bf16 %v428_v27 }
  0x14   : > { %v399_v33 = vunpack.c.h.bf16 %v428_v27  ;;  %v212_v34 = vsub.f32 %v382_v23, %v211_v22  ;;  %v213_v35 = vsub.f32 %v383_v24, %v211_v22  ;;  %v214_v36 = vsub.f32 %v386_v25, %v211_v22 }
  0x15   : > { %v186_v15 = vadd.f32 1e-05, %v185_v14  ;;  %v215_v37 = vsub.f32 %v387_v26, %v211_v22  ;;  %v216_v39 = vsub.f32 %v390_v28, %v211_v22  ;;  %v217_v40 = vsub.f32 %v391_v29, %v211_v22 }
  0x16   : > { %v218_v41 = vsub.f32 %v394_v30, %v211_v22  ;;  %v219_v42 = vsub.f32 %v395_v31, %v211_v22  ;;  %v220_v44 = vsub.f32 %v398_v32, %v211_v22  ;;  %v221_v45 = vsub.f32 %v399_v33, %v211_v22 }
  0x17   : > { %442 = vrsqrt.f32 %v186_v15 }
  0x24   : > { %v443_v38 = vpop.eup %442 }
  0x25   : > { %v225_v43 = vrot.slane %v443_v38, %v210_v17 }
  0x27   : > { %v226_v46 = vmul.f32 %v225_v43, %v212_v34  ;;  %v227_v47 = vmul.f32 %v225_v43, %v213_v35  ;;  %v228_v48 = vmul.f32 %v225_v43, %v214_v36  ;;  %v229_v49 = vmul.f32 %v225_v43, %v215_v37 }
  0x28   : > { %v230_v50 = vmul.f32 %v225_v43, %v216_v39  ;;  %v231_v51 = vmul.f32 %v225_v43, %v217_v40  ;;  %v232_v52 = vmul.f32 %v225_v43, %v218_v41  ;;  %v233_v53 = vmul.f32 %v225_v43, %v219_v42 }
  0x29   : > { %v236_v54 = vmax.f32 %v226_v46, 0.0  ;;  %v237_v55 = vmax.f32 %v227_v47, 0.0  ;;  %v238_v56 = vmax.f32 %v228_v48, 0.0  ;;  %v239_v57 = vmax.f32 %v229_v49, 0.0 }
  0x2a   : > { %v240_v58 = vmax.f32 %v230_v50, 0.0  ;;  %v241_v59 = vmax.f32 %v231_v51, 0.0  ;;  %v242_v60 = vmax.f32 %v232_v52, 0.0  ;;  %v243_v61 = vmax.f32 %v233_v53, 0.0 }
  0x2b   : > { %v403_v62 = vpack.c.bf16 %v237_v55, %v236_v54  ;;  %v408_v63 = vpack.c.bf16 %v239_v57, %v238_v56  ;;  %v234_v0 = vmul.f32 %v225_v43, %v220_v44  ;;  %v235_v1 = vmul.f32 %v225_v43, %v221_v45 }
  0x2c   : > { %v413_v2 = vpack.c.bf16 %v241_v59, %v240_v58  ;;  %v418_v3 = vpack.c.bf16 %v243_v61, %v242_v60 }
  0x2d   : > { %404 = vst [vmem:[%s170_s28] sm:$0xff] %v403_v62   ;;  %429 = vst [vmem:[%s170_s28 + $0x8] sm:$0xff] %v408_v63   ;;  %v244_v4 = vmax.f32 %v234_v0, 0.0  ;;  %v245_v5 = vmax.f32 %v235_v1, 0.0 }
  0x2e   : > { %430 = vst [vmem:[%s170_s28 + $0x10] sm:$0xff] %v413_v2   ;;  %431 = vst [vmem:[%s170_s28 + $0x18] sm:$0xff] %v418_v3  }
  0x2f   : > { %v423_v6 = vpack.c.bf16 %v245_v5, %v244_v4 }
  0x31   : > { %432 = vst [vmem:[%s170_s28 + $0x20] sm:$0xff] %v423_v6  }
  0x32 PF: > { %s13_s12 = sadd.s32 1, %s450_s12  }
  0x33   : > { %p10_p4 = scmp.ge.s32.totalorder %s13_s12, 4  }
  0x35   :  { %12 = sbr.rel (!%p10_p4) target bundleno = 1 (0x1), region = 62 }

// kernel: resnet_forward.18
= control target key start
LH: loop header
LB: loop body
LE: loop exit
PB: predicated region body
PF: predicated region fallthrough
CT: control target
= control target key end

     0   :  { %s2694_s18 = smov 0   ;;  %s3290_s0 = inlined_call_operand.vmem [shape: bf16[2,102,64], index: 0, kind: input, shape index: {}]   ;;  %s3291_s1 = inlined_call_operand.vmem [shape: bf16[9,64,128], index: 1, kind: input, shape index: {}]   ;;  %s3292_s2 = inlined_call_operand.vmem [shape: f32[80,1], index: 2, kind: input, shape index: {}]   ;;  %s3293_s3 = inlined_call_operand.vmem [shape: bf16[2,80,128], index: 3, kind: output, shape index: {0}]   ;;  %s3294_s4 = inlined_call_operand.vmem [shape: f32[2,1,128], index: 4, kind: output, shape index: {1}]   ;;  %s3295_s5 = inlined_call_operand.vmem [shape: f32[2,1,128], index: 5, kind: output, shape index: {2}]  }
   0x1 LB: > { %s2012_s19 = sadd.s32 4294967295, %s2659_s18   ;;  %p2016_p0 = scmp.ge.s32.totalorder %s2659_s18, 1  ;;  %s2659_s18 = sphi %s2694_s18, %s16_s18  }
   0x2   : > { %p192_p1 = scmp.lt.s32.totalorder %s2659_s18, 3 }
   0x4   : > { %p193_p2 = pnand %p2016_p0, %p192_p1 }
   0x5   : > { %p226_p3 = scmp.lt.s32.totalorder (!%p193_p2), %s2012_s19, 1 }
   0x6   : > { %196 = sbr.rel (%p193_p2) target bundleno = 424 (0x1a8), region = 32 }
   0xb   : > { %v2594_v0 = vld [vmem:[%s3291_s1 + $0x38] sm:$0xff]   ;;  %v2661_v1 = vmov 0.0   ;;  %v2595_v2 = vld [vmem:[%s3291_s1 + $0x30] sm:$0xff]   ;;  %vm2662_vm0 = vmmov 0   ;;  %s3297_s19 = smov (!%p226_p3, %s2012_s19), 1  ;;  %v2596_v3 = vld [vmem:[%s3291_s1 + $0x28] sm:$0xff]  }
   0xc   : > { %2571 = vmatprep.subr.bf16.mxu1 %v2661_v1  ;;  %2319 = vmatprep.subr.bf16.mxu0 %v2661_v1  ;;  %s2579_s26 = smul.u32 52, %s3297_s19  ;;  %v2597_v4 = vld [vmem:[%s3291_s1 + $0x20] sm:$0xff]   ;;  %vm299_vm1 = vsmask.f32 7424  ;;  %vm368_vm2 = vcmask 523264   ;;  %v2600_v19 = vld [vmem:[%s3291_s1 + $0x18] sm:$0xff]   ;;  %s238_s8 = scalar_lea.vmem %s3294_s4, %s3297_s19 }
   0xd   : > { %2575 = vmatpush3.bf16.msra.mxu1 %v2594_v0  ;;  %2320 = vmatpush3.bf16.msra.mxu0 %v2594_v0  ;;  %v2603_v26 = vld [vmem:[%s3291_s1 + $0x58] sm:$0xff]   ;;  %v2604_v32 = vld [vmem:[%s3291_s1 + $0x10] sm:$0xff]   ;;  %v2607_v37 = vld [vmem:[%s3291_s1 + $0x8] sm:$0xff]   ;;  %vm577_vm3 = vcmask 1046528   ;;  %vm905_vm4 = vsmask.f32 6400  ;;  %s241_s11 = scalar_lea.vmem %s3295_s5, %s3297_s19 }
   0xe   : > { %2572 = vmatprep.subr.bf16.mxu1 %v2661_v1  ;;  %2321 = vmatprep.subr.bf16.mxu0 %v2661_v1  ;;  %s2730_s6 = scalar_lea.vmem %s3290_s0, %s2579_s26  ;;  %v2606_v35 = vld [vmem:[%s3291_s1 + $0x50] sm:$0xff]   ;;  %v2608_v43 = vld [vmem:[%s3291_s1 + $0x48] sm:$0xff]   ;;  %v2611_v47 = vld [vmem:[%s3291_s1] sm:$0xff]   ;;  %vm1094_vm5 = vcmask 1045504   ;;  %vm1611_vm6 = vcmask 1044480  }
   0xf   : > { %2335 = vmatprep.mubr.msk.bf16.mxu1 %vm2662_vm0, %v2661_v1  ;;  %2327 = vmatprep.mubr.msk.bf16.mxu0 %vm2662_vm0, %v2661_v1  ;;  %v2733_v5 = vld [vmem:[%s2730_s6 + $0x10] sm:$0xff]   ;;  %v2736_v6 = vld [vmem:[%s2730_s6 + $0x18] sm:$0xff]   ;;  %v243_v7 = vld [vmem:[%s2730_s6] sm:$0xf]  ;;  %vm1422_vm7 = vsmask.f32 5376 }
  0x10   : > { %v2742_v8 = vld [vmem:[%s2730_s6 + $0x4] sm:$0xf]  ;;  %v316_v9 = vshll.u32 %v2733_v5, 16  ;;  %v320_v10 = vshrl.u32 %v2733_v5, 16  ;;  %v324_v11 = vshll.u32 %v2736_v6, 16  ;;  %v2751_v13 = vld [vmem:[%s2730_s6 + $0x8] sm:$0xff]  }
  0x11   : > { %2576 = vmatpush3.bf16.msra.mxu1 %v2595_v2  ;;  %2322 = vmatpush3.bf16.msra.mxu0 %v2595_v2  ;;  %v2748_v12 = vcombine.low %v243_v7, %v2742_v8  ;;  %v2754_v14 = vld [vmem:[%s2730_s6 + $0x20] sm:$0xff]   ;;  %v308_v20 = vshll.u32 %v2751_v13, 16  ;;  %v328_v21 = vshrl.u32 %v2736_v6, 16  ;;  %v312_v27 = vshrl.u32 %v2751_v13, 16  ;;  %v2614_v53 = vld [vmem:[%s3291_s1 + $0x98] sm:$0xff]   ;;  %v2616_v55 = vld [vmem:[%s3291_s1 + $0x90] sm:$0xff]  }
  0x12   : > { %2573 = vmatprep.subr.bf16.mxu1 %v2661_v1  ;;  %2323 = vmatprep.subr.bf16.mxu0 %v2661_v1  ;;  %v318_v15 = vrot.slane %v316_v9, 1  ;;  %v326_v16 = vrot.slane %v324_v11, 1  ;;  %v332_v24 = vshll.u32 %v2754_v14, 16  ;;  %v2773_v30 = vld [vmem:[%s2730_s6 + $0x28] ss:$0 sps:$4 sm:$0x11]  }
  0x13   : > { %v301_v17 = vshrl.u32 %v2748_v12, 16  ;;  %v303_v18 = vshll.u32 %v2748_v12, 16  ;;  %v310_v25 = vrot.slane %v308_v20, 1  ;;  %v564_v38 = vld [vmem:[%s2730_s6] sm:$0xe]  ;;  %v336_v40 = vshrl.u32 %v2754_v14, 16 }
  0x14   : > { %v322_v22 = vor.u32 %v320_v10, %v318_v15  ;;  %v330_v33 = vor.u32 %v328_v21, %v326_v16  ;;  %v334_v34 = vrot.slane %v332_v24, 1  ;;  %v340_v41 = vshll.u32 %v2773_v30, 16  ;;  %v2610_v48 = vld [vmem:[%s3291_s1 + $0x40] sm:$0xff]   ;;  %v2613_v58 = vld [vmem:[%s3291_s1 + $0x78] sm:$0xff]   ;;  %v2618_v62 = vld [vmem:[%s3291_s1 + $0x88] sm:$0xff]  }
  0x15   : > { %2577 = vmatpush3.bf16.msra.mxu1 %v2596_v3  ;;  %2324 = vmatpush3.bf16.msra.mxu0 %v2596_v3  ;;  %v305_v23 = vrot.slane %v303_v18, 1  ;;  %v314_v36 = vor.u32 %v312_v27, %v310_v25  ;;  %v2059_v44 = vcombine.low %v564_v38, %v2742_v8  ;;  %v579_v50 = vrot.slane %v2751_v13, 1  ;;  %v2836_v56 = vld [vmem:[%s2730_s6 + $0x1c] sm:$0xff]   ;;  %v2840_v57 = vld [vmem:[%s2730_s6 + $0x24] sm:$0xff]   ;;  %v2615_v0 = vld [vmem:[%s3291_s1 + $0x70] sm:$0xff]  }
  0x16   : > { %2574 = vmatprep.subr.bf16.mxu1 %v2661_v1  ;;  %2325 = vmatprep.subr.bf16.mxu0 %v2661_v1  ;;  %v327_v28 = vsel %vm299_vm1, %v322_v22, %v326_v16  ;;  %v335_v39 = vsel %vm299_vm1, %v330_v33, %v334_v34  ;;  %v338_v45 = vor.u32 %v336_v40, %v334_v34  ;;  %v342_v46 = vrot.slane %v340_v41, 1  ;;  %v2634_v2 = vld [vmem:[%s2730_s6 + $0x2c] ss:$0 sps:$4 sm:$0x11]   ;;  %v2619_v11 = vld [vmem:[%s3291_s1 + $0x60] sm:$0xff]  }
  0x17   : > { %v306_v29 = vor.u32 %v305_v23, %v301_v17  ;;  %v319_v42 = vsel %vm299_vm1, %v314_v36, %v318_v15  ;;  %v578_v49 = vrot.slane %v2059_v44, 1  ;;  %v581_v54 = vrot.slane %v2733_v5, 1  ;;  %v2617_v8 = vld [vmem:[%s3291_s1 + $0x68] sm:$0xff]  }
  0x18   : > { %v343_v51 = vsel %vm299_vm1, %v338_v45, %v342_v46  ;;  %v764_v59 = vrot.slane %v2836_v56, 1  ;;  %v766_v60 = vrot.slane %v2840_v57, 1  ;;  %v583_v3 = vrot.slane %v2736_v6, 1  ;;  %v2897_v15 = vld [vmem:[%s2730_s6 + $0x8] sm:$0xf]  ;;  %v2903_v18 = vld [vmem:[%s2730_s6 + $0xc] sm:$0xff]  }
  0x19   : > { %2578 = vmatpush3.bf16.msra.mxu1 %v2597_v4  ;;  %2326 = vmatpush3.bf16.msra.mxu0 %v2597_v4  ;;  %v311_v31 = vsel %vm299_vm1, %v306_v29, %v310_v25  ;;  %v580_v52 = vsel %vm577_vm3, %v578_v49, %v579_v50  ;;  %v582_v61 = vsel %vm577_vm3, %v579_v50, %v581_v54  ;;  %v2620_v4 = vld [vmem:[%s3291_s1 + $0x80] sm:$0xff]   ;;  %v768_v7 = vrot.slane %v2634_v2, 1  ;;  %v2631_v46 = vld [vmem:[%s3291_s1 + $0xc8] sm:$0xff]  }
  0x1a   : > { %2347 = vmatprep.subr.bf16.mxu1 %v2661_v1  ;;  %2375 = vmatprep.subr.bf16.mxu0 %v2661_v1  ;;  %v2857_v63 = vsel %vm577_vm3, %v764_v59, %v766_v60  ;;  %v584_v10 = vsel %vm577_vm3, %v581_v54, %v583_v3  ;;  %v915_v22 = vshrl.u32 %v2903_v18, 16  ;;  %v918_v23 = vshll.u32 %v2903_v18, 16  ;;  %v2630_v54 = vld [vmem:[%s3291_s1 + $0xa8] sm:$0xff]  }
  0x1b   : > { %v2878_v9 = vsel %vm577_vm3, %v766_v60, %v768_v7  ;;  %v936_v40 = vshll.u32 %v2836_v56, 16  ;;  %v942_v50 = vshrl.u32 %v2840_v57, 16 }
  0x1c   : > { %2336 = vmatmul.mubr.msk.bf16.vlgmr.msra.gmra.mxu1 %vm368_vm2, %v327_v28  ;;  %2328 = vmatmul.mubr.msk.bf16.vlgmr.msra.gmra.mxu0 %vm368_vm2, %v311_v31  ;;  %v920_v27 = vrot.slane %v918_v23, 2  ;;  %v2917_v28 = vld [vmem:[%s2730_s6 + $0x14] sm:$0xff]  }
  0x1d   : > { %2348 = vmatpush3.bf16.msra.mxu1 %v2600_v19  ;;  %2339 = vmatprep.mubr.msk.bf16.mxu1 %vm2662_vm0, %v2661_v1  ;;  %v587_v19 = vrot.slane %v2773_v30, 1  ;;  %v924_v31 = vshrl.u32 %v2917_v28, 16  ;;  %v938_v45 = vrot.slane %v936_v40, 2  ;;  %v1752_v40 = vld [vmem:[%s3292_s2 + $0x38] sm:$0xff] }
  0x1e   : > { %2349 = vmatprep.subr.bf16.mxu1 %v2661_v1  ;;  %2376 = vmatpush3.bf16.msra.mxu0 %v2603_v26  ;;  %v917_v26 = vrot.slane %v915_v22, 1 }
  0x1f   : > { %2331 = vmatprep.mubr.msk.bf16.mxu0 %vm2662_vm0, %v2661_v1  ;;  %2377 = vmatprep.subr.bf16.mxu0 %v2661_v1  ;;  %v926_v34 = vrot.slane %v924_v31, 1  ;;  %v1096_v31 = vrot.slane %v2903_v18, 2 }
  0x20   : > { %v921_v30 = vor.u32 %v920_v27, %v917_v26  ;;  %v2640_v26 = vld [vmem:[%s3291_s1 + $0x118] sm:$0xff]  }
  0x21   : > { %2350 = vmatpush3.bf16.msra.mxu1 %v2604_v32  ;;  %v927_v32 = vshll.u32 %v2917_v28, 16  ;;  %v3041_v27 = vld [vmem:[%s2730_s6 + $0x18] sm:$0xff]  }
  0x22   : > { %2351 = vmatprep.subr.bf16.mxu1 %v2661_v1  ;;  %2378 = vmatpush3.bf16.msra.mxu0 %v2606_v35 }
  0x23   : > { %2379 = vmatprep.subr.bf16.mxu0 %v2661_v1  ;;  %v929_v35 = vrot.slane %v927_v32, 2  ;;  %v2644_v32 = vld [vmem:[%s3291_s1 + $0x110] sm:$0xff]  }
  0x24   : > { %2340 = vmatmul.mubr.msk.bf16.gmra.mxu1 %vm368_vm2, %v335_v39  ;;  %2332 = vmatmul.mubr.msk.bf16.gmra.mxu0 %vm368_vm2, %v319_v42  ;;  %v933_v39 = vshrl.u32 %v2836_v56, 16  ;;  %v2623_v42 = vld [vmem:[%s3291_s1 + $0xb8] sm:$0xff]  }
  0x25   : > { %2352 = vmatpush3.bf16.msra.mxu1 %v2607_v37  ;;  %2343 = vmatprep.mubr.msk.bf16.mxu1 %vm2662_vm0, %v2661_v1  ;;  %v760_v37 = vrot.slane %v2903_v18, 1  ;;  %v930_v38 = vor.u32 %v929_v35, %v926_v34  ;;  %v1750_v18 = vld [vmem:[%s3292_s2 + $0x28] sm:$0xff]  ;;  %v2639_v34 = vld [vmem:[%s3291_s1 + $0xf8] sm:$0xff]  }
  0x26   : > { %2353 = vmatprep.subr.bf16.mxu1 %v2661_v1  ;;  %2380 = vmatpush3.bf16.msra.mxu0 %v2608_v43  ;;  %v935_v44 = vrot.slane %v933_v39, 1  ;;  %v2642_v39 = vld [vmem:[%s3291_s1 + $0xf0] sm:$0xff]  }
  0x27   : > { %2383 = vmatprep.mubr.msk.bf16.mxu0 %vm2662_vm0, %v2661_v1  ;;  %2381 = vmatprep.subr.bf16.mxu0 %v2661_v1  ;;  %v931_v43 = vsel %vm905_vm4, %v921_v30, %v930_v38 }
  0x28   : > { %v939_v49 = vor.u32 %v938_v45, %v935_v44  ;;  %v1754_v44 = vld [vmem:[%s3292_s2 + $0x48] sm:$0xff] }
  0x29   : > { %2354 = vmatpush3.bf16.msra.mxu1 %v2611_v47  ;;  %v762_v47 = vrot.slane %v2917_v28, 1 }
  0x2a   : > { %2403 = vmatprep.subr.bf16.mxu1 %v2661_v1  ;;  %2382 = vmatpush3.bf16.msra.mxu0 %v2610_v48  ;;  %v2626_v48 = vld [vmem:[%s3291_s1 + $0xb0] sm:$0xff]  }
  0x2b   : > { %2431 = vmatprep.subr.bf16.mxu0 %v2661_v1 }
  0x2c   : > { %2344 = vmatmul.mubr.msk.bf16.gmra.mxu1 %vm368_vm2, %v343_v51  ;;  %v945_v51 = vshll.u32 %v2840_v57, 16 }
  0x2d   : > { %2355 = vmatprep.mubr.msk.bf16.mxu1 %vm2662_vm0, %v2661_v1  ;;  %2384 = vmatmul.mubr.msk.bf16.vlgmr.msra.gmra.mxu0 %vm368_vm2, %v580_v52  ;;  %v2635_v52 = vld [vmem:[%s3291_s1 + $0xc0] sm:$0xff]  }
  0x2e   : > { %2432 = vmatpush3.bf16.msra.mxu0 %v2614_v53  ;;  %2387 = vmatprep.mubr.msk.bf16.mxu0 %vm2662_vm0, %v2661_v1  ;;  %v763_v53 = vsel %vm577_vm3, %v760_v37, %v762_v47  ;;  %v947_v60 = vrot.slane %v945_v51, 2  ;;  %v2648_v51 = vld [vmem:[%s2730_s6 + $0x30] ss:$0 sps:$4 sm:$0x33]  }
  0x2f   : > { %2433 = vmatprep.subr.bf16.mxu0 %v2661_v1 }
  0x32   : > { %2434 = vmatpush3.bf16.msra.mxu0 %v2616_v55  ;;  %v940_v55 = vsel %vm905_vm4, %v930_v38, %v939_v49  ;;  %v1098_v38 = vrot.slane %v2917_v28, 2 }
  0x33   : > { %2435 = vmatprep.subr.bf16.mxu0 %v2661_v1 }
  0x34   : > { %2356 = vmatmul.mubr.msk.bf16.vlgmr.msra.gmra.mxu1 %vm368_vm2, %v2748_v12  ;;  %v585_v12 = vrot.slane %v2754_v14, 1 }
  0x35   : > { %2404 = vmatpush3.bf16.msra.mxu1 %v2613_v58  ;;  %2359 = vmatprep.mubr.msk.bf16.mxu1 %vm2662_vm0, %v2661_v1  ;;  %v944_v58 = vrot.slane %v942_v50, 1 }
  0x36   : > { %2388 = vmatmul.mubr.msk.bf16.gmra.mxu0 %vm368_vm2, %v582_v61  ;;  %2405 = vmatprep.subr.bf16.mxu1 %v2661_v1  ;;  %v586_v16 = vsel %vm577_vm3, %v583_v3, %v585_v12  ;;  %v588_v24 = vsel %vm577_vm3, %v585_v12, %v587_v19  ;;  %v2979_v61 = vld [vmem:[%s2730_s6 + $0x2c] ss:$0 sps:$4 sm:$0x33]   ;;  %v2663_v19 = vmov 0  }
  0x37   : > { %2391 = vmatprep.mubr.msk.bf16.mxu0 %vm2662_vm0, %v2661_v1  ;;  %2436 = vmatpush3.bf16.msra.mxu0 %v2618_v62  ;;  %v2633_v62 = vld [vmem:[%s3291_s1 + $0xa0] sm:$0xff]   ;;  %v951_v2 = vshrl.u32 %v2979_v61, 16  ;;  %v954_v3 = vshll.u32 %v2979_v61, 16  ;;  %v3007_v12 = vld [vmem:[%s2730_s6 + $0xc] sm:$0xf] }
  0x38   : > { %2437 = vmatprep.subr.bf16.mxu0 %v2661_v1  ;;  %2592 = vset.pattern.permute.xlu0 %v2663_v19 }
  0x39   : > { %2406 = vmatpush3.bf16.msra.mxu1 %v2615_v0  ;;  %v948_v0 = vor.u32 %v947_v60, %v944_v58  ;;  %2593 = vset.pattern.permute.xlu1 %v2663_v19  ;;  %v1441_v19 = vshrl.u32 %v3041_v27, 16 }
  0x3a   : > { %2407 = vmatprep.subr.bf16.mxu1 %v2661_v1 }
  0x3b   : > { %2438 = vmatpush3.bf16.msra.mxu0 %v2620_v4  ;;  %v765_v4 = vsel %vm577_vm3, %v762_v47, %v764_v59  ;;  %v949_v7 = vsel %vm905_vm4, %v939_v49, %v948_v0  ;;  %v1228_v59 = vld [vmem:[%s2730_s6 + $0x8] sm:$0xc]  ;;  %v1100_v47 = vrot.slane %v2836_v56, 2 }
  0x3c   : > { %2360 = vmatmul.mubr.msk.bf16.gmra.mxu1 %vm368_vm2, %v2751_v13  ;;  %2487 = vmatprep.subr.bf16.mxu0 %v2661_v1  ;;  %v711_v13 = vld [vmem:[%s2730_s6 + $0x4] sm:$0xe] }
  0x3d   : > { %2363 = vmatprep.mubr.msk.bf16.mxu1 %vm2662_vm0, %v2661_v1  ;;  %2408 = vmatpush3.bf16.msra.mxu1 %v2617_v8  ;;  %v2077_v17 = vcombine.low %v711_v13, %v2897_v15  ;;  %v953_v8 = vrot.slane %v951_v2, 1  ;;  %v1101_v50 = vsel %vm1094_vm5, %v1098_v38, %v1100_v47 }
  0x3e   : > { %2392 = vmatmul.mubr.msk.bf16.gmra.mxu0 %vm368_vm2, %v584_v10  ;;  %2409 = vmatprep.subr.bf16.mxu1 %v2661_v1  ;;  %v956_v10 = vrot.slane %v954_v3, 2 }
  0x3f   : > { %2395 = vmatprep.mubr.msk.bf16.mxu0 %vm2662_vm0, %v2661_v1  ;;  %v907_v20 = vshrl.u32 %v2077_v17, 16  ;;  %v910_v21 = vshll.u32 %v2077_v17, 16  ;;  %v759_v36 = vrot.slane %v2077_v17, 1  ;;  %v3014_v17 = vld [vmem:[%s2730_s6 + $0x10] sm:$0xff]  }
  0x40   : > { %v1277_v23 = vrot.slane %v3014_v17, 2  ;;  %v1432_v2 = vshrl.u32 %v3014_v17, 16  ;;  %v1435_v3 = vshll.u32 %v3014_v17, 16 }
  0x41   : > { %2410 = vmatpush3.bf16.msra.mxu1 %v2619_v11  ;;  %v909_v25 = vrot.slane %v907_v20, 1  ;;  %v761_v41 = vsel %vm577_vm3, %v759_v36, %v760_v37  ;;  %v957_v11 = vor.u32 %v956_v10, %v953_v8  ;;  %v1745_v20 = vld [vmem:[%s3292_s2] sm:$0xff]  ;;  %v2647_v37 = vld [vmem:[%s3291_s1 + $0x108] sm:$0xff]  }
  0x42   : > { %2459 = vmatprep.subr.bf16.mxu1 %v2661_v1  ;;  %1757 = vperm.xlu0 %2592, %v1745_v20   ;;  %v3074_v36 = vld [vmem:[%s2730_s6 + $0x20] sm:$0xff]   ;;  %v1615_v20 = vrot.slane %v3041_v27, 3 }
  0x43   : > { %v958_v13 = vsel %vm905_vm4, %v948_v0, %v957_v11  ;;  %v1281_v28 = vrot.slane %v3074_v36, 2  ;;  %v1434_v11 = vrot.slane %v1432_v2, 2 }
  0x44   : > { %2364 = vmatmul.mubr.msk.bf16.gmra.mxu1 %vm368_vm2, %v2733_v5  ;;  %v912_v5 = vrot.slane %v910_v21, 2  ;;  %v1081_v21 = vld [vmem:[%s2730_s6 + $0x4] sm:$0xc] }
  0x45   : > { %2367 = vmatprep.mubr.msk.bf16.mxu1 %vm2662_vm0, %v2661_v1 }
  0x46   : > { %2396 = vmatmul.mubr.msk.bf16.gmra.mxu0 %vm368_vm2, %v586_v16  ;;  %v913_v29 = vor.u32 %v912_v5, %v909_v25  ;;  %v3011_v16 = vcombine.low %v1228_v59, %v3007_v12  ;;  %v2118_v25 = vcombine.low %v1081_v21, %v2897_v15  ;;  %v1749_v15 = vld [vmem:[%s3292_s2 + $0x20] sm:$0xff]  ;;  %v1437_v59 = vrot.slane %v1435_v3, 3 }
  0x47   : > { %2399 = vmatprep.mubr.msk.bf16.mxu0 %vm2662_vm0, %v2661_v1 }
  0x48   : > { %v922_v33 = vsel %vm905_vm4, %v913_v29, %v921_v30  ;;  %v1276_v22 = vrot.slane %v3011_v16, 2  ;;  %v1748_v29 = vld [vmem:[%s3292_s2 + $0x18] sm:$0xff]  ;;  %v1095_v30 = vrot.slane %v2118_v25, 2  ;;  %v1427_v0 = vshll.u32 %v3011_v16, 16 }
  0x49   : > { %v1450_v25 = vshrl.u32 %v3074_v36, 16 }
  0x4a   : > { %v1278_v5 = vsel %vm1094_vm5, %v1276_v22, %v1277_v23  ;;  %v1429_v10 = vrot.slane %v1427_v0, 3  ;;  %v1443_v22 = vrot.slane %v1441_v19, 2 }
  0x4c   : > { %2368 = vmatmul.mubr.msk.bf16.gmra.mxu1 %vm368_vm2, %v2736_v6  ;;  %v2624_v6 = vld [vmem:[%s3291_s1 + $0xd8] sm:$0xff]  }
  0x4d   : > { %2371 = vmatprep.mubr.msk.bf16.mxu1 %vm2662_vm0, %v2661_v1 }
  0x4e   : > { %2400 = vmatmul.mubr.msk.bf16.gmra.mxu0 %vm368_vm2, %v588_v24  ;;  %v1747_v24 = vld [vmem:[%s3292_s2 + $0x10] sm:$0xff] }
  0x4f   : > { %2439 = vmatprep.mubr.msk.bf16.mxu0 %vm2662_vm0, %v2661_v1  ;;  %1767 = vperm.xlu1 %2593, %v1747_v24  }
  0x53   : > { %1772 = vperm.xlu1 %2593, %v1748_v29   ;;  %v1452_v29 = vrot.slane %v1450_v25, 2 }
  0x54   : > { %2372 = vmatmul.mubr.msk.bf16.gmra.mxu1 %vm368_vm2, %v2754_v14  ;;  %v2628_v14 = vld [vmem:[%s3291_s1 + $0xd0] sm:$0xff]  }
  0x55   : > { %2411 = vmatprep.mubr.msk.bf16.mxu1 %vm2662_vm0, %v2661_v1 }
  0x56   : > { %2440 = vmatmul.mubr.msk.bf16.vlgmr.msra.gmra.mxu0 %vm368_vm2, %v922_v33  ;;  %v1751_v33 = vld [vmem:[%s3292_s2 + $0x30] sm:$0xff] }
  0x57   : > { %2488 = vmatpush3.bf16.msra.mxu0 %v2624_v6  ;;  %2443 = vmatprep.mubr.msk.bf16.mxu0 %vm2662_vm0, %v2661_v1  ;;  %v1097_v6 = vsel %vm1094_vm5, %v1095_v30, %v1096_v31 }
  0x58   : > { %2489 = vmatprep.subr.bf16.mxu0 %v2661_v1  ;;  %1782 = vperm.xlu1 %2593, %v1750_v18  }
  0x5b   : > { %2490 = vmatpush3.bf16.msra.mxu0 %v2628_v14  ;;  %v1753_v14 = vld [vmem:[%s3292_s2 + $0x40] sm:$0xff] }
  0x5c   : > { %2412 = vmatmul.mubr.msk.bf16.vlgmr.msra.gmra.mxu1 %vm368_vm2, %v761_v41  ;;  %2491 = vmatprep.subr.bf16.mxu0 %v2661_v1  ;;  %v2650_v41 = vld [vmem:[%s3291_s1 + $0x100] sm:$0xff]  }
  0x5d   : > { %2460 = vmatpush3.bf16.msra.mxu1 %v2623_v42  ;;  %2415 = vmatprep.mubr.msk.bf16.mxu1 %vm2662_vm0, %v2661_v1  ;;  %v1099_v42 = vsel %vm1094_vm5, %v1096_v31, %v1098_v38 }
  0x5e   : > { %2444 = vmatmul.mubr.msk.bf16.gmra.mxu0 %vm368_vm2, %v931_v43  ;;  %2461 = vmatprep.subr.bf16.mxu1 %v2661_v1  ;;  %v2646_v43 = vld [vmem:[%s3291_s1 + $0xe8] sm:$0xff]  }
  0x5f   : > { %2447 = vmatprep.mubr.msk.bf16.mxu0 %vm2662_vm0, %v2661_v1  ;;  %2492 = vmatpush3.bf16.msra.mxu0 %v2631_v46  ;;  %v3112_v46 = vld [vmem:[%s2730_s6 + $0x28] sm:$0xff]  }
  0x60   : > { %2493 = vmatprep.subr.bf16.mxu0 %v2661_v1  ;;  %1792 = vperm.xlu1 %2593, %v1752_v40   ;;  %v1283_v49 = vrot.slane %v3112_v46, 2  ;;  %v1619_v18 = vrot.slane %v3112_v46, 3 }
  0x61   : > { %2462 = vmatpush3.bf16.msra.mxu1 %v2626_v48  ;;  %v2649_v48 = vld [vmem:[%s3291_s1 + $0xe0] sm:$0xff]  }
  0x62   : > { %2463 = vmatprep.subr.bf16.mxu1 %v2661_v1  ;;  %v1284_v56 = vsel %vm1094_vm5, %v1281_v28, %v1283_v49 }
  0x63   : > { %2494 = vmatpush3.bf16.msra.mxu0 %v2635_v52  ;;  %v1102_v52 = vrot.slane %v2840_v57, 2  ;;  %v1424_v57 = vshrl.u32 %v3011_v16, 16  ;;  %v1438_v16 = vor.u32 %v1437_v59, %v1434_v11 }
  0x64   : > { %2416 = vmatmul.mubr.msk.bf16.gmra.mxu1 %vm368_vm2, %v763_v53  ;;  %2543 = vmatprep.subr.bf16.mxu0 %v2661_v1  ;;  %v1285_v53 = vrot.slane %v2648_v51, 2 }
  0x65   : > { %2419 = vmatprep.mubr.msk.bf16.mxu1 %vm2662_vm0, %v2661_v1  ;;  %2464 = vmatpush3.bf16.msra.mxu1 %v2630_v54  ;;  %v1598_v54 = vld [vmem:[%s2730_s6 + $0x8] sm:$0x8]  ;;  %v1426_v8 = vrot.slane %v1424_v57, 2 }
  0x66   : > { %2448 = vmatmul.mubr.msk.bf16.gmra.mxu0 %vm368_vm2, %v940_v55  ;;  %2465 = vmatprep.subr.bf16.mxu1 %v2661_v1  ;;  %v1103_v55 = vsel %vm1094_vm5, %v1100_v47, %v1102_v52  ;;  %v1286_v58 = vsel %vm1094_vm5, %v1283_v49, %v1285_v53  ;;  %v2177_v60 = vcombine.low %v1598_v54, %v3007_v12 }
  0x67   : > { %2451 = vmatprep.mubr.msk.bf16.mxu0 %vm2662_vm0, %v2661_v1  ;;  %1802 = vperm.xlu1 %2593, %v1754_v44  }
  0x69   : > { %2466 = vmatpush3.bf16.msra.mxu1 %v2633_v62  ;;  %v1104_v62 = vrot.slane %v2979_v61, 2 }
  0x6a   : > { %2515 = vmatprep.subr.bf16.mxu1 %v2661_v1 }
  0x6b   : > { %v1105_v61 = vsel %vm1094_vm5, %v1102_v52, %v1104_v62 }
  0x6c   : > { %2420 = vmatmul.mubr.msk.bf16.gmra.mxu1 %vm368_vm2, %v765_v4  ;;  %v1612_v4 = vrot.slane %v2177_v60, 3 }
  0x6d   : > { %2423 = vmatprep.mubr.msk.bf16.mxu1 %vm2662_vm0, %v2661_v1 }
  0x6e   : > { %2452 = vmatmul.mubr.msk.bf16.gmra.mxu0 %vm368_vm2, %v949_v7  ;;  %v1613_v7 = vrot.slane %v3014_v17, 3  ;;  %v1444_v17 = vshll.u32 %v3041_v27, 16 }
  0x6f   : > { %2455 = vmatprep.mubr.msk.bf16.mxu0 %vm2662_vm0, %v2661_v1 }
  0x70   : > { %v1614_v12 = vsel %vm1611_vm6, %v1612_v4, %v1613_v7 }
  0x74   : > { %2424 = vmatmul.mubr.msk.bf16.gmra.mxu1 %vm368_vm2, %v2857_v63  ;;  %v1746_v63 = vld [vmem:[%s3292_s2 + $0x8] sm:$0xff] }
  0x75   : > { %2427 = vmatprep.mubr.msk.bf16.mxu1 %vm2662_vm0, %v2661_v1  ;;  %1762 = vperm.xlu0 %2592, %v1746_v63   ;;  %v1616_v63 = vsel %vm1611_vm6, %v1613_v7, %v1615_v20 }
  0x76   : > { %2456 = vmatmul.mubr.msk.bf16.gmra.mxu0 %vm368_vm2, %v958_v13  ;;  %v1430_v13 = vor.u32 %v1429_v10, %v1426_v8 }
  0x77   : > { %2495 = vmatprep.mubr.msk.bf16.mxu0 %vm2662_vm0, %v2661_v1 }
  0x78   : > { %v1439_v21 = vsel %vm1422_vm7, %v1430_v13, %v1438_v16 }
  0x79   : > { %1777 = vperm.xlu0 %2592, %v1749_v15  }
  0x7c   : > { %2428 = vmatmul.mubr.msk.bf16.gmra.mxu1 %vm368_vm2, %v2878_v9  ;;  %v1279_v9 = vrot.slane %v3041_v27, 2 }
  0x7d   : > { %2467 = vmatprep.mubr.msk.bf16.mxu1 %vm2662_vm0, %v2661_v1  ;;  %1787 = vperm.xlu0 %2592, %v1751_v33  }
  0x7e   : > { %2496 = vmatmul.mubr.msk.bf16.vlgmr.msra.gmra.mxu0 %vm368_vm2, %v1278_v5  ;;  %v1280_v35 = vsel %vm1094_vm5, %v1277_v23, %v1279_v9  ;;  %v1282_v45 = vsel %vm1094_vm5, %v1279_v9, %v1281_v28  ;;  %v1446_v23 = vrot.slane %v1444_v17, 3  ;;  %v1453_v5 = vshll.u32 %v3074_v36, 16 }
  0x7f   : > { %2544 = vmatpush3.bf16.msra.mxu0 %v2640_v26  ;;  %2499 = vmatprep.mubr.msk.bf16.mxu0 %vm2662_vm0, %v2661_v1  ;;  %v1617_v26 = vrot.slane %v3074_v36, 3  ;;  %v1459_v9 = vshrl.u32 %v3112_v46, 16 }
  0x80   : > { %2545 = vmatprep.subr.bf16.mxu0 %v2661_v1  ;;  %v1447_v24 = vor.u32 %v1446_v23, %v1443_v22  ;;  %v1455_v15 = vrot.slane %v1453_v5, 3 }
  0x81   : > { %1797 = vperm.xlu0 %2592, %v1753_v14   ;;  %v1618_v30 = vsel %vm1611_vm6, %v1615_v20, %v1617_v26  ;;  %v1620_v36 = vsel %vm1611_vm6, %v1617_v26, %v1619_v18 }
  0x82   : > { %v1448_v27 = vsel %vm1422_vm7, %v1438_v16, %v1447_v24  ;;  %v1456_v31 = vor.u32 %v1455_v15, %v1452_v29 }
  0x83   : > { %2546 = vmatpush3.bf16.msra.mxu0 %v2644_v32  ;;  %v1462_v32 = vshll.u32 %v3112_v46, 16 }
  0x84   : > { %2468 = vmatmul.mubr.msk.bf16.vlgmr.msra.gmra.mxu1 %vm368_vm2, %v1097_v6  ;;  %2547 = vmatprep.subr.bf16.mxu0 %v2661_v1  ;;  %v1457_v33 = vsel %vm1422_vm7, %v1447_v24, %v1456_v31  ;;  %v1461_v6 = vrot.slane %v1459_v9, 2 }
  0x85   : > { %2516 = vmatpush3.bf16.msra.mxu1 %v2639_v34  ;;  %2471 = vmatprep.mubr.msk.bf16.mxu1 %vm2662_vm0, %v2661_v1  ;;  %v1464_v34 = vrot.slane %v1462_v32, 3 }
  0x86   : > { %2500 = vmatmul.mubr.msk.bf16.gmra.mxu0 %vm368_vm2, %v1280_v35  ;;  %2517 = vmatprep.subr.bf16.mxu1 %v2661_v1  ;;  %v2652_v35 = vld [vmem:[%s2730_s6 + $0x30] ss:$0 sps:$4 sm:$0x77]   ;;  %s2580_s6 = smul.u32 40, %s3297_s19 }
  0x87   : > { %2503 = vmatprep.mubr.msk.bf16.mxu0 %vm2662_vm0, %v2661_v1  ;;  %2548 = vmatpush3.bf16.msra.mxu0 %v2647_v37  ;;  %v1465_v37 = vor.u32 %v1464_v34, %v1461_v6  ;;  %v1468_v38 = vshrl.u32 %v2652_v35, 16  ;;  %v1621_v40 = vrot.slane %v2652_v35, 3 }
  0x88   : > { %2549 = vmatprep.subr.bf16.mxu0 %v2661_v1  ;;  %s3254_s29 = scalar_lea.vmem %s3293_s3, %s2580_s6 }
  0x89   : > { %2518 = vmatpush3.bf16.msra.mxu1 %v2642_v39  ;;  %v1471_v39 = vshll.u32 %v2652_v35, 16  ;;  %v1466_v14 = vsel %vm1422_vm7, %v1456_v31, %v1465_v37  ;;  %v1470_v28 = vrot.slane %v1468_v38, 2 }
  0x8a   : > { %2519 = vmatprep.subr.bf16.mxu1 %v2661_v1 }
  0x8b   : > { %2550 = vmatpush3.bf16.msra.mxu0 %v2650_v41  ;;  %v1473_v41 = vrot.slane %v1471_v39, 3 }
  0x8c   : > { %2472 = vmatmul.mubr.msk.bf16.gmra.mxu1 %vm368_vm2, %v1099_v42  ;;  %v1622_v42 = vsel %vm1611_vm6, %v1619_v18, %v1621_v40 }
  0x8d   : > { %2475 = vmatprep.mubr.msk.bf16.mxu1 %vm2662_vm0, %v2661_v1  ;;  %2520 = vmatpush3.bf16.msra.mxu1 %v2646_v43  ;;  %v1474_v43 = vor.u32 %v1473_v41, %v1470_v28 }
  0x8e   : > { %2504 = vmatmul.mubr.msk.bf16.gmra.mxu0 %vm368_vm2, %v1282_v45  ;;  %2521 = vmatprep.subr.bf16.mxu1 %v2661_v1 }
  0x8f   : > { %2507 = vmatprep.mubr.msk.bf16.mxu0 %vm2662_vm0, %v2661_v1  ;;  %v1475_v44 = vsel %vm1422_vm7, %v1465_v37, %v1474_v43 }
  0x91   : > { %2522 = vmatpush3.bf16.msra.mxu1 %v2649_v48 }
  0x94   : > { %2476 = vmatmul.mubr.msk.bf16.gmra.mxu1 %vm368_vm2, %v1101_v50 }
  0x95   : > { %2479 = vmatprep.mubr.msk.bf16.mxu1 %vm2662_vm0, %v2661_v1 }
  0x96   : > { %2508 = vmatmul.mubr.msk.bf16.gmra.mxu0 %vm368_vm2, %v1284_v56 }
  0x97   : > { %2511 = vmatprep.mubr.msk.bf16.mxu0 %vm2662_vm0, %v2661_v1 }
  0x9c   : > { %2480 = vmatmul.mubr.msk.bf16.gmra.mxu1 %vm368_vm2, %v1103_v55 }
  0x9d   : > { %2483 = vmatprep.mubr.msk.bf16.mxu1 %vm2662_vm0, %v2661_v1 }
  0x9e   : > { %2512 = vmatmul.mubr.msk.bf16.gmra.mxu0 %vm368_vm2, %v1286_v58 }
  0x9f   : > { %2551 = vmatprep.mubr.msk.bf16.mxu0 %vm2662_vm0, %v2661_v1 }
  0xa4   : > { %2484 = vmatmul.mubr.msk.bf16.gmra.mxu1 %vm368_vm2, %v1105_v61 }
  0xa5   : > { %2523 = vmatprep.mubr.msk.bf16.mxu1 %vm2662_vm0, %v2661_v1 }
  0xa6   : > { %2552 = vmatmul.mubr.msk.bf16.vlgmr.msra.gmra.mxu0 %vm368_vm2, %v1614_v12 }
  0xa7   : > { %2555 = vmatprep.mubr.msk.bf16.mxu0 %vm2662_vm0, %v2661_v1 }
  0xac   : > { %2524 = vmatmul.mubr.msk.bf16.vlgmr.msra.gmra.mxu1 %vm368_vm2, %v1439_v21 }
  0xad   : > { %2527 = vmatprep.mubr.msk.bf16.mxu1 %vm2662_vm0, %v2661_v1 }
  0xae   : > { %2556 = vmatmul.mubr.msk.bf16.gmra.mxu0 %vm368_vm2, %v1616_v63 }
  0xaf   : > { %2559 = vmatprep.mubr.msk.bf16.mxu0 %vm2662_vm0, %v2661_v1 }
  0xb4   : > { %2528 = vmatmul.mubr.msk.bf16.gmra.mxu1 %vm368_vm2, %v1448_v27 }
  0xb5   : > { %2531 = vmatprep.mubr.msk.bf16.mxu1 %vm2662_vm0, %v2661_v1 }
  0xb6   : > { %2560 = vmatmul.mubr.msk.bf16.gmra.mxu0 %vm368_vm2, %v1618_v30 }
  0xb7   : > { %2563 = vmatprep.mubr.msk.bf16.mxu0 %vm2662_vm0, %v2661_v1 }
  0xbc   : > { %2532 = vmatmul.mubr.msk.bf16.gmra.mxu1 %vm368_vm2, %v1457_v33 }
  0xbd   : > { %2535 = vmatprep.mubr.msk.bf16.mxu1 %vm2662_vm0, %v2661_v1 }
  0xbe   : > { %2564 = vmatmul.mubr.msk.bf16.gmra.mxu0 %vm368_vm2, %v1620_v36 }
  0xbf   : > { %2567 = vmatprep.mubr.msk.bf16.mxu0 %vm2662_vm0, %v2661_v1 }
  0xc4   : > { %2536 = vmatmul.mubr.msk.bf16.gmra.mxu1 %vm368_vm2, %v1466_v14 }
  0xc5   : > { %2539 = vmatprep.mubr.msk.bf16.mxu1 %vm2662_vm0, %v2661_v1 }
  0xc6   : > { %2568 = vmatmul.mubr.msk.bf16.gmra.mxu0 %vm368_vm2, %v1622_v42 }
  0xcc   : > { %2540 = vmatmul.mubr.msk.bf16.gmra.mxu1 %vm368_vm2, %v1475_v44 }
  0xdc   : > { %v434_v45 = vpop.f32.mrf.mxu1  ;;  %v418_v47 = vpop.f32.mrf.mxu0 }
  0xde   : > { %v2337_v46 = vpop.f32.mrf.mxu1  ;;  %v2329_v49 = vpop.f32.mrf.mxu0 }
  0xe0   : > { %v437_v48 = vpop.f32.mrf.mxu1  ;;  %v421_v56 = vpop.f32.mrf.mxu0 }
  0xe2   : > { %v2338_v50 = vpop.f32.mrf.mxu1  ;;  %v2330_v52 = vpop.f32.mrf.mxu0 }
  0xe4   : > { %v442_v51 = vpop.f32.mrf.mxu1  ;;  %v426_v54 = vpop.f32.mrf.mxu0 }
  0xe6   : > { %v2341_v53 = vpop.f32.mrf.mxu1  ;;  %v2333_v1 = vpop.f32.mrf.mxu0 }
  0xe8   : > { %v445_v55 = vpop.f32.mrf.mxu1  ;;  %v429_v60 = vpop.f32.mrf.mxu0 }
  0xea   : > { %v2342_v58 = vpop.f32.mrf.mxu1  ;;  %v2334_v57 = vpop.f32.mrf.mxu0 }
  0xec   : > { %v450_v62 = vpop.f32.mrf.mxu1 }
  0xed   : > { %v662_v2 = vpop.f32.mrf.mxu0 }
  0xee   : > { %v2345_v0 = vpop.f32.mrf.mxu1 }
  0xef   : > { %v2385_v4 = vpop.f32.mrf.mxu0 }
  0xf0   : > { %v453_v3 = vpop.f32.mrf.mxu1 }
  0xf1   : > { %v665_v61 = vpop.f32.mrf.mxu0 }
  0xf2   : > { %v2346_v7 = vpop.f32.mrf.mxu1 }
  0xf3   : > { %v2386_v10 = vpop.f32.mrf.mxu0 }
  0xf4   : > { %v525_v8 = vpop.f32.mrf.mxu1 }
  0xf5   : > { %v526_v11 = vadd.f32 %v525_v8, %v418_v47 }
  0xf6   : > { %v2357_v59 = vpop.f32.mrf.mxu1  ;;  %v670_v12 = vpop.f32.mrf.mxu0 }
  0xf7   : > { %v701_v13 = vadd.f32 %v662_v2, %v526_v11 }
  0xf8   : > { %v528_v16 = vpop.f32.mrf.mxu1  ;;  %v2389_v19 = vpop.f32.mrf.mxu0 }
  0xf9   : > { %v529_v17 = vadd.f32 %v528_v16, %v421_v56 }
  0xfa   : > { %v2358_v20 = vpop.f32.mrf.mxu1  ;;  %v673_v21 = vpop.f32.mrf.mxu0 }
  0xfb   : > { %v702_v22 = vadd.f32 %v665_v61, %v529_v17 }
  0xfc   : > { %v533_v23 = vpop.f32.mrf.mxu1  ;;  %v2390_v63 = vpop.f32.mrf.mxu0 }
  0xfd   : > { %v534_v24 = vadd.f32 %v533_v23, %v426_v54 }
  0xfe   : > { %v2361_v25 = vpop.f32.mrf.mxu1  ;;  %v678_v5 = vpop.f32.mrf.mxu0 }
  0xff   : > { %v703_v26 = vadd.f32 %v670_v12, %v534_v24 }
 0x100   : > { %v536_v27 = vpop.f32.mrf.mxu1  ;;  %v2393_v29 = vpop.f32.mrf.mxu0 }
 0x101   : > { %v537_v15 = vadd.f32 %v536_v27, %v429_v60 }
 0x102   : > { %v2362_v30 = vpop.f32.mrf.mxu1  ;;  %v681_v31 = vpop.f32.mrf.mxu0 }
 0x103   : > { %v704_v9 = vadd.f32 %v673_v21, %v537_v15 }
 0x104   : > { %v541_v32 = vpop.f32.mrf.mxu1  ;;  %v2394_v18 = vpop.f32.mrf.mxu0 }
 0x105   : > { %v542_v33 = vadd.f32 %v541_v32, %v434_v45 }
 0x106   : > { %v2365_v6 = vpop.f32.mrf.mxu1  ;;  %v686_v34 = vpop.f32.mrf.mxu0 }
 0x107   : > { %v705_v35 = vadd.f32 %v678_v5, %v542_v33 }
 0x108   : > { %v544_v36 = vpop.f32.mrf.mxu1  ;;  %v2397_v37 = vpop.f32.mrf.mxu0 }
 0x109   : > { %v545_v38 = vadd.f32 %v544_v36, %v437_v48 }
 0x10a   : > { %v2366_v39 = vpop.f32.mrf.mxu1  ;;  %v689_v40 = vpop.f32.mrf.mxu0 }
 0x10b   : > { %v706_v14 = vadd.f32 %v681_v31, %v545_v38 }
 0x10c   : > { %v549_v28 = vpop.f32.mrf.mxu1  ;;  %v2398_v41 = vpop.f32.mrf.mxu0 }
 0x10d   : > { %v550_v42 = vadd.f32 %v549_v28, %v442_v51 }
 0x10e   : > { %v2369_v43 = vpop.f32.mrf.mxu1  ;;  %v694_v44 = vpop.f32.mrf.mxu0 }
 0x10f   : > { %v707_v46 = vadd.f32 %v686_v34, %v550_v42 }
 0x110   : > { %v552_v47 = vpop.f32.mrf.mxu1  ;;  %v2401_v49 = vpop.f32.mrf.mxu0 }
 0x111   : > { %v553_v50 = vadd.f32 %v552_v47, %v445_v55 }
 0x112   : > { %v2370_v56 = vpop.f32.mrf.mxu1  ;;  %v697_v45 = vpop.f32.mrf.mxu0 }
 0x113   : > { %v708_v52 = vadd.f32 %v689_v40, %v553_v50 }
 0x114   : > { %v557_v53 = vpop.f32.mrf.mxu1  ;;  %v2402_v54 = vpop.f32.mrf.mxu0 }
 0x115   : > { %v558_v1 = vadd.f32 %v557_v53, %v450_v62 }
 0x116   : > { %v2373_v58 = vpop.f32.mrf.mxu1  ;;  %v1032_v48 = vpop.f32.mrf.mxu0 }
 0x117   : > { %v709_v60 = vadd.f32 %v694_v44, %v558_v1 }
 0x118   : > { %v560_v57 = vpop.f32.mrf.mxu1  ;;  %v2441_v0 = vpop.f32.mrf.mxu0 }
 0x119   : > { %v561_v2 = vadd.f32 %v560_v57, %v453_v3 }
 0x11a   : > { %v2374_v4 = vpop.f32.mrf.mxu1  ;;  %v1035_v51 = vpop.f32.mrf.mxu0 }
 0x11b   : > { %v710_v7 = vadd.f32 %v697_v45, %v561_v2 }
 0x11c   : > { %v843_v61 = vpop.f32.mrf.mxu1  ;;  %v2442_v8 = vpop.f32.mrf.mxu0 }
 0x11d   : > { %v882_v10 = vadd.f32 %v843_v61, %v701_v13 }
 0x11e   : > { %v2413_v11 = vpop.f32.mrf.mxu1  ;;  %v1040_v55 = vpop.f32.mrf.mxu0 }
 0x11f   : > { %v3202_v59 = vadd.f32 %v1032_v48, %v882_v10 }
 0x120   : > { %v846_v12 = vpop.f32.mrf.mxu1  ;;  %v2445_v16 = vpop.f32.mrf.mxu0 }
 0x121   : > { %v883_v19 = vadd.f32 %v846_v12, %v702_v22 }
 0x122   : > { %v2414_v62 = vpop.f32.mrf.mxu1  ;;  %v1043_v17 = vpop.f32.mrf.mxu0 }
 0x123   : > { %v3204_v20 = vadd.f32 %v1035_v51, %v883_v19 }
 0x124   : > { %v851_v21 = vpop.f32.mrf.mxu1  ;;  %v2446_v23 = vpop.f32.mrf.mxu0 }
 0x125   : > { %v884_v3 = vadd.f32 %v851_v21, %v703_v26 }
 0x126   : > { %v2417_v63 = vpop.f32.mrf.mxu1  ;;  %v1048_v24 = vpop.f32.mrf.mxu0 }
 0x127   : > { %v3206_v25 = vadd.f32 %v1040_v55, %v884_v3 }
 0x128   : > { %v854_v5 = vpop.f32.mrf.mxu1  ;;  %v2449_v13 = vpop.f32.mrf.mxu0 }
 0x129   : > { %v885_v27 = vadd.f32 %v854_v5, %v704_v9 }
 0x12a   : > { %v2418_v29 = vpop.f32.mrf.mxu1  ;;  %v1051_v15 = vpop.f32.mrf.mxu0 }
 0x12b   : > { %v3208_v30 = vadd.f32 %v1043_v17, %v885_v27 }
 0x12c   : > { %v859_v31 = vpop.f32.mrf.mxu1  ;;  %v2450_v22 = vpop.f32.mrf.mxu0 }
 0x12d   : > { %v886_v32 = vadd.f32 %v859_v31, %v705_v35 }
 0x12e   : > { %v2421_v18 = vpop.f32.mrf.mxu1  ;;  %v1056_v33 = vpop.f32.mrf.mxu0 }
 0x12f   : > { %v3210_v6 = vadd.f32 %v1048_v24, %v886_v32 }
 0x130   : > { %v862_v34 = vpop.f32.mrf.mxu1  ;;  %v2453_v26 = vpop.f32.mrf.mxu0 }
 0x131   : > { %v887_v36 = vadd.f32 %v862_v34, %v706_v14 }
 0x132   : > { %v2422_v37 = vpop.f32.mrf.mxu1  ;;  %v1059_v38 = vpop.f32.mrf.mxu0 }
 0x133   : > { %v3212_v39 = vadd.f32 %v1051_v15, %v887_v36 }
 0x134   : > { %v867_v40 = vpop.f32.mrf.mxu1  ;;  %v2454_v9 = vpop.f32.mrf.mxu0 }
 0x135   : > { %v888_v28 = vadd.f32 %v867_v40, %v707_v46 }
 0x136   : > { %v2425_v41 = vpop.f32.mrf.mxu1  ;;  %v1064_v42 = vpop.f32.mrf.mxu0 }
 0x137   : > { %v3214_v43 = vadd.f32 %v1056_v33, %v888_v28 }
 0x138   : > { %v870_v44 = vpop.f32.mrf.mxu1  ;;  %v2457_v35 = vpop.f32.mrf.mxu0 }
 0x139   : > { %v889_v47 = vadd.f32 %v870_v44, %v708_v52 }
 0x13a   : > { %v2426_v49 = vpop.f32.mrf.mxu1  ;;  %v1067_v50 = vpop.f32.mrf.mxu0 }
 0x13b   : > { %v3216_v56 = vadd.f32 %v1059_v38, %v889_v47 }
 0x13c   : > { %v875_v45 = vpop.f32.mrf.mxu1  ;;  %v2458_v14 = vpop.f32.mrf.mxu0 }
 0x13d   : > { %v890_v53 = vadd.f32 %v875_v45, %v709_v60 }
 0x13e   : > { %v2429_v54 = vpop.f32.mrf.mxu1  ;;  %v1360_v1 = vpop.f32.mrf.mxu0 }
 0x13f   : > { %v3218_v58 = vadd.f32 %v1064_v42, %v890_v53 }
 0x140   : > { %v878_v48 = vpop.f32.mrf.mxu1  ;;  %v2497_v46 = vpop.f32.mrf.mxu0 }
 0x141   : > { %v891_v57 = vadd.f32 %v878_v48, %v710_v7 }
 0x142   : > { %v2430_v0 = vpop.f32.mrf.mxu1  ;;  %v1363_v2 = vpop.f32.mrf.mxu0 }
 0x143   : > { %v3220_v4 = vadd.f32 %v1067_v50, %v891_v57  ;;  %v1758_v50 = vpop.permute.xlu0 %1757 }
 0x144   : > { %v1179_v51 = vpop.f32.mrf.mxu1  ;;  %v2498_v52 = vpop.f32.mrf.mxu0 }
 0x145   : > { %v1218_v28 = vadd.f32 %v1179_v51, %v3202_v59 }
 0x146   : > { %v2469_v61 = vpop.f32.mrf.mxu1  ;;  %v1368_v8 = vpop.f32.mrf.mxu0 }
 0x147   : > { %v1399_v49 = vadd.f32 %v1360_v1, %v1218_v28  ;;  %v1763_v61 = vpop.permute.xlu0 %1762 }
 0x148   : > { %v1182_v10 = vpop.f32.mrf.mxu1  ;;  %v2501_v11 = vpop.f32.mrf.mxu0 }
 0x149   : > { %v1219_v47 = vadd.f32 %v1182_v10, %v3204_v20 }
 0x14a   : > { %v2470_v55 = vpop.f32.mrf.mxu1  ;;  %v3222_v12 = vpop.f32.mrf.mxu0 }
 0x14b   : > { %v1400_v0 = vadd.f32 %v1363_v2, %v1219_v47 }
 0x14c   : > { %v1187_v60 = vpop.f32.mrf.mxu1  ;;  %v2502_v16 = vpop.f32.mrf.mxu0 }
 0x14d   : > { %v1220_v46 = vadd.f32 %v1187_v60, %v3206_v25 }
 0x14e   : > { %v2473_v19 = vpop.f32.mrf.mxu1  ;;  %v3224_v62 = vpop.f32.mrf.mxu0 }
 0x14f   : > { %v1401_v16 = vadd.f32 %v1368_v8, %v1220_v46 }
 0x150   : > { %v1190_v17 = vpop.f32.mrf.mxu1  ;;  %v2505_v7 = vpop.f32.mrf.mxu0 }
 0x151   : > { %v1221_v11 = vadd.f32 %v1190_v17, %v3208_v30 }
 0x152   : > { %v2474_v21 = vpop.f32.mrf.mxu1  ;;  %v3226_v23 = vpop.f32.mrf.mxu0 }
 0x153   : > { %v1768_v21 = vpop.permute.xlu1 %1767  ;;  %v1402_v17 = vadd.f32 %v3222_v12, %v1221_v11 }
 0x154   : > { %v1195_v3 = vpop.f32.mrf.mxu1  ;;  %v2506_v63 = vpop.f32.mrf.mxu0 }
 0x155   : > { %v1222_v63 = vadd.f32 %v1195_v3, %v3210_v6 }
 0x156   : > { %v2477_v24 = vpop.f32.mrf.mxu1  ;;  %v3228_v5 = vpop.f32.mrf.mxu0 }
 0x157   : > { %v1403_v28 = vadd.f32 %v3224_v62, %v1222_v63 }
 0x158   : > { %v3230_v13 = vpop.f32.mrf.mxu1  ;;  %v2509_v27 = vpop.f32.mrf.mxu0 }
 0x159   : > { %v1223_v6 = vadd.f32 %v3230_v13, %v3212_v39 }
 0x15a   : > { %v2478_v29 = vpop.f32.mrf.mxu1  ;;  %v3232_v15 = vpop.f32.mrf.mxu0 }
 0x15b   : > { %v1404_v13 = vadd.f32 %v3226_v23, %v1223_v6 }
 0x15c   : > { %v3234_v31 = vpop.f32.mrf.mxu1  ;;  %v2510_v22 = vpop.f32.mrf.mxu0 }
 0x15e   : > { %v2481_v32 = vpop.f32.mrf.mxu1  ;;  %v3236_v18 = vpop.f32.mrf.mxu0 }
 0x160   : > { %v3238_v33 = vpop.f32.mrf.mxu1  ;;  %v2513_v34 = vpop.f32.mrf.mxu0 }
 0x162   : > { %v2482_v26 = vpop.f32.mrf.mxu1  ;;  %v3240_v36 = vpop.f32.mrf.mxu0 }
 0x164   : > { %v3242_v37 = vpop.f32.mrf.mxu1  ;;  %v2514_v38 = vpop.f32.mrf.mxu0 }
 0x165   : > { %v1226_v63 = vadd.f32 %v3242_v37, %v3218_v58 }
 0x166   : > { %v2485_v40 = vpop.f32.mrf.mxu1  ;;  %v1696_v9 = vpop.f32.mrf.mxu0 }
 0x168   : > { %v3245_v41 = vpop.f32.mrf.mxu1  ;;  %v2553_v42 = vpop.f32.mrf.mxu0 }
 0x169   : > { %v1227_v58 = vadd.f32 %v3245_v41, %v3220_v4 }
 0x16a   : > { %v2486_v44 = vpop.f32.mrf.mxu1  ;;  %v1699_v35 = vpop.f32.mrf.mxu0 }
 0x16c   : > { %v1549_v45 = vpop.f32.mrf.mxu1  ;;  %v2554_v14 = vpop.f32.mrf.mxu0 }
 0x16d   : > { %v1588_v53 = vadd.f32 %v1549_v45, %v1399_v49 }
 0x16e   : > { %v2525_v54 = vpop.f32.mrf.mxu1  ;;  %v1704_v48 = vpop.f32.mrf.mxu0 }
 0x16f   : > { %v1735_v57 = vadd.f32 %v1696_v9, %v1588_v53  ;;  %v1224_v54 = vadd.f32 %v3234_v31, %v3214_v43  ;;  %v1225_v43 = vadd.f32 %v3238_v33, %v3216_v56 }
 0x170   : > { %v1552_v59 = vpop.f32.mrf.mxu1  ;;  %v2557_v51 = vpop.f32.mrf.mxu0 }
 0x171   : > { %v1589_v52 = vadd.f32 %v1552_v59, %v1400_v0  ;;  %v1805_v1 = vmul.f32 %v1758_v50, %v1735_v57  ;;  %v1778_v0 = vpop.permute.xlu0 %1777  ;;  %v1406_v33 = vadd.f32 %v3232_v15, %v1225_v43 }
 0x172   : > { %v2526_v55 = vpop.f32.mrf.mxu1  ;;  %v1707_v20 = vpop.f32.mrf.mxu0 }
 0x173   : > { %v1736_v10 = vadd.f32 %v1699_v35, %v1589_v52  ;;  %v1881_v27 = vmul.f32 %v1805_v1, %v1735_v57  ;;  %v1773_v35 = vpop.permute.xlu1 %1772 }
 0x174   : > { %v1557_v25 = vpop.f32.mrf.mxu1  ;;  %v2558_v2 = vpop.f32.mrf.mxu0 }
 0x175   : > { %v2212_v60 = vpack.c.bf16 %v1736_v10, %v1735_v57  ;;  %v1806_v19 = vmul.f32 %v1763_v61, %v1736_v10  ;;  %v1590_v7 = vadd.f32 %v1557_v25, %v1401_v16 }
 0x176   : > { %v2529_v30 = vpop.f32.mrf.mxu1  ;;  %v1712_v24 = vpop.f32.mrf.mxu0 }
 0x177   : > { %2213 = vst [vmem:[%s3254_s29] sm:$0xff] %v2212_v60   ;;  %v1865_v8 = vadd.f32 %v1806_v19, %v1805_v1  ;;  %v1882_v29 = vmul.f32 %v1806_v19, %v1736_v10  ;;  %v1737_v22 = vadd.f32 %v1704_v48, %v1590_v7  ;;  %v1783_v16 = vpop.permute.xlu1 %1782 }
 0x178   : > { %v1560_v32 = vpop.f32.mrf.mxu1  ;;  %v2561_v34 = vpop.f32.mrf.mxu0 }
 0x179   : > { %v1891_v26 = vadd.f32 %v1882_v29, %v1881_v27  ;;  %v1807_v38 = vmul.f32 %v1768_v21, %v1737_v22  ;;  %v1591_v40 = vadd.f32 %v1560_v32, %v1402_v17  ;;  %v1788_v17 = vpop.permute.xlu0 %1787 }
 0x17a   : > { %v2530_v9 = vpop.f32.mrf.mxu1  ;;  %v1715_v42 = vpop.f32.mrf.mxu0 }
 0x17b   : > { %v1866_v12 = vadd.f32 %v1865_v8, %v1807_v38  ;;  %v1883_v3 = vmul.f32 %v1807_v38, %v1737_v22  ;;  %v1738_v44 = vadd.f32 %v1707_v20, %v1591_v40  ;;  %v1405_v20 = vadd.f32 %v3228_v5, %v1224_v54  ;;  %v1793_v37 = vpop.permute.xlu1 %1792 }
 0x17c   : > { %v1565_v47 = vpop.f32.mrf.mxu1  ;;  %v2562_v49 = vpop.f32.mrf.mxu0  ;;  %v1407_v38 = vadd.f32 %v3236_v18, %v1226_v63 }
 0x17d   : > { %v1892_v50 = vadd.f32 %v1891_v26, %v1883_v3  ;;  %v2217_v45 = vpack.c.bf16 %v1738_v44, %v1737_v22  ;;  %v1808_v14 = vmul.f32 %v1773_v35, %v1738_v44  ;;  %v1592_v53 = vadd.f32 %v1565_v47, %v1403_v28 }
 0x17e   : > { %v2533_v48 = vpop.f32.mrf.mxu1  ;;  %v1720_v62 = vpop.f32.mrf.mxu0 }
 0x17f   : > { %2234 = vst [vmem:[%s3254_s29 + $0x8] sm:$0xff] %v2217_v45   ;;  %v1867_v46 = vadd.f32 %v1866_v12, %v1808_v14  ;;  %v1884_v57 = vmul.f32 %v1808_v14, %v1738_v44  ;;  %v1739_v39 = vadd.f32 %v1712_v24, %v1592_v53  ;;  %v1408_v45 = vadd.f32 %v3240_v36, %v1227_v58  ;;  %v1798_v14 = vpop.permute.xlu0 %1797 }
 0x180   : > { %v1568_v59 = vpop.f32.mrf.mxu1  ;;  %v2565_v51 = vpop.f32.mrf.mxu0 }
 0x181   : > { %v1893_v52 = vadd.f32 %v1892_v50, %v1884_v57  ;;  %v1809_v61 = vmul.f32 %v1778_v0, %v1739_v39  ;;  %v1593_v11 = vadd.f32 %v1568_v59, %v1404_v13  ;;  %v1803_v0 = vpop.permute.xlu1 %1802 }
 0x182   : > { %v2534_v55 = vpop.f32.mrf.mxu1  ;;  %v1723_v1 = vpop.f32.mrf.mxu0 }
 0x183   : > { %v1868_v31 = vadd.f32 %v1867_v46, %v1809_v61  ;;  %v1885_v10 = vmul.f32 %v1809_v61, %v1739_v39  ;;  %v1740_v25 = vadd.f32 %v1715_v42, %v1593_v11 }
 0x184   : > { %v1573_v2 = vpop.f32.mrf.mxu1  ;;  %v2566_v60 = vpop.f32.mrf.mxu0 }
 0x185   : > { %v1894_v23 = vadd.f32 %v1893_v52, %v1885_v10  ;;  %v1810_v19 = vmul.f32 %v1783_v16, %v1740_v25  ;;  %v2222_v7 = vpack.c.bf16 %v1740_v25, %v1739_v39  ;;  %v1594_v21 = vadd.f32 %v1573_v2, %v1405_v20 }
 0x186   : > { %v2537_v30 = vpop.f32.mrf.mxu1  ;;  %v1728_v5 = vpop.f32.mrf.mxu0 }
 0x187   : > { %2235 = vst [vmem:[%s3254_s29 + $0x10] sm:$0xff] %v2222_v7   ;;  %v1869_v24 = vadd.f32 %v1868_v31, %v1810_v19  ;;  %v1886_v27 = vmul.f32 %v1810_v19, %v1740_v25  ;;  %v1741_v56 = vadd.f32 %v1720_v62, %v1594_v21 }
 0x188   : > { %v1576_v8 = vpop.f32.mrf.mxu1  ;;  %v2569_v29 = vpop.f32.mrf.mxu0 }
 0x189   : > { %v1895_v22 = vadd.f32 %v1894_v23, %v1886_v27  ;;  %v1811_v32 = vmul.f32 %v1788_v17, %v1741_v56  ;;  %v1595_v34 = vadd.f32 %v1576_v8, %v1406_v33 }
 0x18a   : > { %v2538_v26 = vpop.f32.mrf.mxu1  ;;  %v1731_v40 = vpop.f32.mrf.mxu0 }
 0x18b   : > { %v1870_v9 = vadd.f32 %v1869_v24, %v1811_v32  ;;  %v1887_v28 = vmul.f32 %v1811_v32, %v1741_v56  ;;  %v1742_v42 = vadd.f32 %v1723_v1, %v1595_v34 }
 0x18c   : > { %v1581_v6 = vpop.f32.mrf.mxu1  ;;  %v2570_v12 = vpop.f32.mrf.mxu0 }
 0x18d   : > { %v1896_v15 = vadd.f32 %v1895_v22, %v1887_v28  ;;  %v1812_v3 = vmul.f32 %v1793_v37, %v1742_v42  ;;  %v2227_v44 = vpack.c.bf16 %v1742_v42, %v1741_v56  ;;  %v1596_v35 = vadd.f32 %v1581_v6, %v1407_v38 }
 0x18e   : > { %v2541_v47 = vpop.f32.mrf.mxu1 }
 0x18f   : > { %2236 = vst [vmem:[%s3254_s29 + $0x18] sm:$0xff] %v2227_v44   ;;  %v1871_v49 = vadd.f32 %v1870_v9, %v1812_v3  ;;  %v1888_v50 = vmul.f32 %v1812_v3, %v1742_v42  ;;  %v1743_v18 = vadd.f32 %v1728_v5, %v1596_v35 }
 0x190   : > { %v1584_v4 = vpop.f32.mrf.mxu1 }
 0x191   : > { %v1897_v41 = vadd.f32 %v1896_v15, %v1888_v50  ;;  %v1813_v53 = vmul.f32 %v1798_v14, %v1743_v18  ;;  %v1597_v54 = vadd.f32 %v1584_v4, %v1408_v45 }
 0x192   : > { %v2542_v48 = vpop.f32.mrf.mxu1 }
 0x193   : > { %v1872_v62 = vadd.f32 %v1871_v49, %v1813_v53  ;;  %v1889_v46 = vmul.f32 %v1813_v53, %v1743_v18  ;;  %v1744_v57 = vadd.f32 %v1731_v40, %v1597_v54 }
 0x195   : > { %v1898_v39 = vadd.f32 %v1897_v41, %v1889_v46  ;;  %v1814_v13 = vmul.f32 %v1803_v0, %v1744_v57  ;;  %v2232_v59 = vpack.c.bf16 %v1744_v57, %v1743_v18 }
 0x197   : > { %2237 = vst [vmem:[%s3254_s29 + $0x20] sm:$0xff] %v2232_v59   ;;  %v1873_v51 = vadd.f32 %v1872_v62, %v1814_v13  ;;  %v1890_v52 = vmul.f32 %v1814_v13, %v1744_v57 }
 0x199   : > { %v1874_v61 = vrot.slane %v1873_v51, 4  ;;  %v1899_v36 = vadd.f32 %v1898_v39, %v1890_v52 }
 0x19b   : > { %v1875_v11 = vadd.f32 %v1874_v61, %v1873_v51  ;;  %v1900_v55 = vrot.slane %v1899_v36, 4 }
 0x19d   : > { %v1876_v20 = vrot.slane %v1875_v11, 2  ;;  %v1901_v1 = vadd.f32 %v1900_v55, %v1899_v36 }
 0x19f   : > { %v1877_v43 = vadd.f32 %v1876_v20, %v1875_v11  ;;  %v1902_v31 = vrot.slane %v1901_v1, 2 }
 0x1a1   : > { %v1878_v10 = vrot.slane %v1877_v43, 1  ;;  %v1903_v16 = vadd.f32 %v1902_v31, %v1901_v1 }
 0x1a3   : > { %v1879_v25 = vadd.f32 %v1878_v10, %v1877_v43  ;;  %v1904_v2 = vrot.slane %v1903_v16, 1 }
 0x1a5   : > { %1880 = vst [vmem:[%s238_s8] sm:$0x1] %v1879_v25  ;;  %v1905_v60 = vadd.f32 %v1904_v2, %v1903_v16 }
 0x1a7   : > { %1906 = vst [vmem:[%s241_s11] sm:$0x1] %v1905_v60 }
 0x1a8 PF: > { %s16_s18 = sadd.s32 1, %s2659_s18  }
 0x1a9   : > { %p13_p4 = scmp.ge.s32.totalorder %s16_s18, 4  }
 0x1ab   :  { %15 = sbr.rel (!%p13_p4) target bundleno = 1 (0x1), region = 94 }

// kernel: resnet_forward.21
= control target key start
LH: loop header
LB: loop body
LE: loop exit
PB: predicated region body
PF: predicated region fallthrough
CT: control target
= control target key end

     0   :  { %s591_s15 = smov 0   ;;  %s628_s0 = inlined_call_operand.vmem [shape: bf16[2,80,128], index: 0, kind: input, shape index: {}]   ;;  %s629_s1 = inlined_call_operand.vmem [shape: f32[2,1,128], index: 1, kind: input, shape index: {}]   ;;  %s630_s2 = inlined_call_operand.vmem [shape: f32[2,1,128], index: 2, kind: input, shape index: {}]   ;;  %s631_s3 = inlined_call_operand.vmem [shape: bf16[2,80,128], index: 3, kind: input, shape index: {}]   ;;  %s632_s4 = inlined_call_operand.vmem [shape: bf16[2,80,128], index: 4, kind: output, shape index: {}]  }
   0x1 LB: > { %s440_s16 = sadd.s32 4294967295, %s564_s15   ;;  %p444_p0 = scmp.ge.s32.totalorder %s564_s15, 1  ;;  %s564_s15 = sphi %s591_s15, %s14_s15  }
   0x2   : > { %p172_p1 = scmp.lt.s32.totalorder %s564_s15, 3 }
   0x4   : > { %p173_p2 = pnand %p444_p0, %p172_p1 }
   0x5   : > { %p203_p3 = scmp.lt.s32.totalorder (!%p173_p2), %s440_s16, 1 }
   0x6   : > { %176 = sbr.rel (%p173_p2) target bundleno = 54 (0x36), region = 36 }
   0xb   : > { %v218_v0 = vld [vmem:[%s629_s1] sm:$0x1]  ;;  %v219_v1 = vld [vmem:[%s629_s1 + $0x1] sm:$0x1]  ;;  %vm220_vm0 = vcmask 1040384   ;;  %s634_s16 = smov (!%p203_p3, %s440_s16), 1  ;;  %v255_v13 = vlaneseq }
   0xc   : > { %v221_v2 = vsel %vm220_vm0, %v218_v0, 0.0  ;;  %v222_v3 = vsel %vm220_vm0, %v219_v1, 0.0  ;;  %v225_v4 = vld [vmem:[%s630_s2] sm:$0x1]  ;;  %v226_v5 = vld [vmem:[%s630_s2 + $0x1] sm:$0x1] }
   0xd   : > { %v223_v6 = vadd.f32 %v222_v3, %v221_v2  ;;  %v227_v7 = vsel %vm220_vm0, %v225_v4, 0.0  ;;  %v228_v8 = vsel %vm220_vm0, %v226_v5, 0.0  ;;  %s611_s25 = smul.u32 40, %s634_s16  ;;  %v256_v16 = vshrl.u32 %v255_v13, 7 }
   0xe   : > { %v229_v9 = vadd.f32 %v228_v8, %v227_v7 }
   0xf   : > { %v224_v10 = vmul.f32 0.0078125, %v223_v6  ;;  %s207_s28 = scalar_lea.vmem %s628_s0, %s611_s25  ;;  %v257_v17 = vsub.s32 0, %v256_v16  ;;  %s212_s5 = scalar_lea.vmem %s631_s3, %s611_s25 }
  0x10   : > { %v230_v11 = vmul.f32 0.0078125, %v229_v9  ;;  %v471_v18 = vld [vmem:[%s207_s28] sm:$0xff]   ;;  %v535_v19 = vld [vmem:[%s207_s28 + $0x8] sm:$0xff]   ;;  %v536_v20 = vld [vmem:[%s207_s28 + $0x10] sm:$0xff]   ;;  %s217_s8 = scalar_lea.vmem %s632_s4, %s611_s25 }
  0x11   : > { %v231_v12 = vmul.f32 %v224_v10, %v224_v10  ;;  %v537_v21 = vld [vmem:[%s207_s28 + $0x18] sm:$0xff]   ;;  %v472_v22 = vunpack.c.l.bf16 %v471_v18  ;;  %v473_v23 = vunpack.c.h.bf16 %v471_v18  ;;  %v258_v24 = vrot.slane %v224_v10, %v257_v17  ;;  %v491_v25 = vld [vmem:[%s212_s5] sm:$0xff]   ;;  %v539_v26 = vld [vmem:[%s212_s5 + $0x8] sm:$0xff]  }
  0x12   : > { %v476_v27 = vunpack.c.l.bf16 %v535_v19  ;;  %v477_v28 = vunpack.c.h.bf16 %v535_v19  ;;  %v538_v29 = vld [vmem:[%s207_s28 + $0x20] sm:$0xff]   ;;  %v480_v30 = vunpack.c.l.bf16 %v536_v20  ;;  %v481_v31 = vunpack.c.h.bf16 %v536_v20  ;;  %v540_v32 = vld [vmem:[%s212_s5 + $0x10] sm:$0xff]   ;;  %v541_v40 = vld [vmem:[%s212_s5 + $0x18] sm:$0xff]  }
  0x13   : > { %v232_v14 = vsub.f32 %v230_v11, %v231_v12  ;;  %v484_v33 = vunpack.c.l.bf16 %v537_v21  ;;  %v485_v34 = vunpack.c.h.bf16 %v537_v21  ;;  %v492_v35 = vunpack.c.l.bf16 %v491_v25  ;;  %v542_v47 = vld [vmem:[%s212_s5 + $0x20] sm:$0xff]  }
  0x14   : > { %v493_v36 = vunpack.c.h.bf16 %v491_v25  ;;  %v496_v37 = vunpack.c.l.bf16 %v539_v26  ;;  %v259_v38 = vsub.f32 %v472_v22, %v258_v24  ;;  %v260_v39 = vsub.f32 %v473_v23, %v258_v24 }
  0x15   : > { %v233_v15 = vadd.f32 1e-05, %v232_v14  ;;  %v488_v41 = vunpack.c.l.bf16 %v538_v29  ;;  %v489_v42 = vunpack.c.h.bf16 %v538_v29  ;;  %v261_v43 = vsub.f32 %v476_v27, %v258_v24 }
  0x16   : > { %v262_v44 = vsub.f32 %v477_v28, %v258_v24  ;;  %v497_v45 = vunpack.c.h.bf16 %v539_v26  ;;  %v500_v46 = vunpack.c.l.bf16 %v540_v32  ;;  %v263_v49 = vsub.f32 %v480_v30, %v258_v24 }
  0x17   : > { %556 = vrsqrt.f32 %v233_v15  ;;  %v264_v50 = vsub.f32 %v481_v31, %v258_v24  ;;  %v265_v51 = vsub.f32 %v484_v33, %v258_v24  ;;  %v266_v52 = vsub.f32 %v485_v34, %v258_v24 }
  0x18   : > { %v501_v54 = vunpack.c.h.bf16 %v540_v32  ;;  %v504_v55 = vunpack.c.l.bf16 %v541_v40  ;;  %v505_v56 = vunpack.c.h.bf16 %v541_v40  ;;  %v267_v57 = vsub.f32 %v488_v41, %v258_v24 }
  0x19   : > { %v268_v58 = vsub.f32 %v489_v42, %v258_v24  ;;  %v508_v59 = vunpack.c.l.bf16 %v542_v47  ;;  %v509_v60 = vunpack.c.h.bf16 %v542_v47 }
  0x24   : > { %v557_v48 = vpop.eup %556 }
  0x25   : > { %v272_v53 = vrot.slane %v557_v48, %v257_v17 }
  0x27   : > { %v273_v61 = vmul.f32 %v272_v53, %v259_v38  ;;  %v274_v62 = vmul.f32 %v272_v53, %v260_v39  ;;  %v275_v63 = vmul.f32 %v272_v53, %v261_v43  ;;  %v276_v0 = vmul.f32 %v272_v53, %v262_v44 }
  0x28   : > { %v277_v1 = vmul.f32 %v272_v53, %v263_v49  ;;  %v278_v2 = vmul.f32 %v272_v53, %v264_v50  ;;  %v279_v3 = vmul.f32 %v272_v53, %v265_v51  ;;  %v280_v4 = vmul.f32 %v272_v53, %v266_v52 }
  0x29   : > { %v303_v5 = vadd.f32 %v492_v35, %v273_v61  ;;  %v304_v6 = vadd.f32 %v493_v36, %v274_v62  ;;  %v305_v7 = vadd.f32 %v496_v37, %v275_v63  ;;  %v306_v8 = vadd.f32 %v497_v45, %v276_v0 }
  0x2a   : > { %v307_v9 = vadd.f32 %v500_v46, %v277_v1  ;;  %v308_v10 = vadd.f32 %v501_v54, %v278_v2  ;;  %v309_v11 = vadd.f32 %v504_v55, %v279_v3  ;;  %v310_v12 = vadd.f32 %v505_v56, %v280_v4 }
  0x2b   : > { %v313_v13 = vmax.f32 %v303_v5, 0.0  ;;  %v314_v14 = vmax.f32 %v304_v6, 0.0  ;;  %v315_v15 = vmax.f32 %v305_v7, 0.0  ;;  %v316_v16 = vmax.f32 %v306_v8, 0.0 }
  0x2c   : > { %v317_v17 = vmax.f32 %v307_v9, 0.0  ;;  %v318_v18 = vmax.f32 %v308_v10, 0.0  ;;  %v319_v19 = vmax.f32 %v309_v11, 0.0  ;;  %v320_v20 = vmax.f32 %v310_v12, 0.0 }
  0x2d   : > { %v513_v21 = vpack.c.bf16 %v314_v14, %v313_v13  ;;  %v518_v22 = vpack.c.bf16 %v316_v16, %v315_v15  ;;  %v281_v23 = vmul.f32 %v272_v53, %v267_v57  ;;  %v282_v24 = vmul.f32 %v272_v53, %v268_v58 }
  0x2e   : > { %v523_v25 = vpack.c.bf16 %v318_v18, %v317_v17  ;;  %v528_v26 = vpack.c.bf16 %v320_v20, %v319_v19 }
  0x2f   : > { %514 = vst [vmem:[%s217_s8] sm:$0xff] %v513_v21   ;;  %543 = vst [vmem:[%s217_s8 + $0x8] sm:$0xff] %v518_v22   ;;  %v311_v27 = vadd.f32 %v508_v59, %v281_v23  ;;  %v312_v28 = vadd.f32 %v509_v60, %v282_v24 }
  0x30   : > { %544 = vst [vmem:[%s217_s8 + $0x10] sm:$0xff] %v523_v25   ;;  %545 = vst [vmem:[%s217_s8 + $0x18] sm:$0xff] %v528_v26  }
  0x31   : > { %v321_v29 = vmax.f32 %v311_v27, 0.0  ;;  %v322_v30 = vmax.f32 %v312_v28, 0.0 }
  0x33   : > { %v533_v31 = vpack.c.bf16 %v322_v30, %v321_v29 }
  0x35   : > { %546 = vst [vmem:[%s217_s8 + $0x20] sm:$0xff] %v533_v31  }
  0x36 PF: > { %s14_s15 = sadd.s32 1, %s564_s15  }
  0x37   : > { %p11_p4 = scmp.ge.s32.totalorder %s14_s15, 4  }
  0x39   :  { %13 = sbr.rel (!%p11_p4) target bundleno = 1 (0x1), region = 69 }

// kernel: resnet_forward.24
= control target key start
LH: loop header
LB: loop body
LE: loop exit
PB: predicated region body
PF: predicated region fallthrough
CT: control target
= control target key end

     0   :  { %s670_s1 = inlined_call_operand.vmem [shape: bf16[128,128], index: 1, kind: input, shape index: {}]   ;;  %s671_s0 = inlined_call_operand.vmem [shape: bf16[128,128], index: 0, kind: input, shape index: {}]   ;;  %s672_s2 = inlined_call_operand.vmem [shape: bf16[128,128], index: 2, kind: output, shape index: {0}]   ;;  %s673_s3 = inlined_call_operand.vmem [shape: f32[1,1,128], index: 3, kind: output, shape index: {1}]   ;;  %s674_s4 = inlined_call_operand.vmem [shape: f32[1,1,128], index: 4, kind: output, shape index: {2}]  }
   0x1   :  { %v551_v0 = vld [vmem:[%s670_s1 + $0x38] sm:$0xff]   ;;  %v552_v1 = vld [vmem:[%s670_s1 + $0x30] sm:$0xff]   ;;  %v553_v2 = vld [vmem:[%s670_s1 + $0x28] sm:$0xff]  }
   0x2   :  { %503 = vmatprep.subr.bf16.mxu0 %v551_v0  ;;  %535 = vmatprep.subr.bf16.mxu1 %v551_v0  ;;  %v554_v3 = vld [vmem:[%s670_s1 + $0x20] sm:$0xff]   ;;  %v555_v5 = vld [vmem:[%s670_s1 + $0x18] sm:$0xff]   ;;  %v556_v7 = vld [vmem:[%s670_s1 + $0x10] sm:$0xff]  }
   0x3   :  { %504 = vmatpush3.bf16.msra.mxu0 %v551_v0  ;;  %543 = vmatpush3.bf16.msra.mxu1 %v551_v0  ;;  %v559_v4 = vld [vmem:[%s671_s0] sm:$0xff]   ;;  %v557_v8 = vld [vmem:[%s670_s1 + $0x8] sm:$0xff]   ;;  %v561_v12 = vld [vmem:[%s671_s0 + $0x10] sm:$0xff]  }
   0x4   :  { %505 = vmatprep.subr.bf16.mxu0 %v552_v1  ;;  %536 = vmatprep.subr.bf16.mxu1 %v552_v1  ;;  %v563_v6 = vld [vmem:[%s671_s0 + $0x20] sm:$0xff]   ;;  %v560_v10 = vld [vmem:[%s671_s0 + $0x8] sm:$0xff]   ;;  %v565_v13 = vld [vmem:[%s671_s0 + $0x30] sm:$0xff]  }
   0x5   :  { %519 = vmatprep.mubr.bf16.mxu0 %v559_v4  ;;  %527 = vmatprep.mubr.bf16.mxu1 %v563_v6  ;;  %v558_v9 = vld [vmem:[%s670_s1] sm:$0xff]   ;;  %v564_v11 = vld [vmem:[%s671_s0 + $0x28] sm:$0xff]   ;;  %v562_v14 = vld [vmem:[%s671_s0 + $0x18] sm:$0xff]  }
   0x6   :  { %v566_v15 = vld [vmem:[%s671_s0 + $0x38] sm:$0xff]  }
   0x7   :  { %506 = vmatpush3.bf16.msra.mxu0 %v552_v1  ;;  %544 = vmatpush3.bf16.msra.mxu1 %v552_v1 }
   0x8   :  { %507 = vmatprep.subr.bf16.mxu0 %v553_v2  ;;  %537 = vmatprep.subr.bf16.mxu1 %v553_v2 }
   0xb   :  { %508 = vmatpush3.bf16.msra.mxu0 %v553_v2  ;;  %545 = vmatpush3.bf16.msra.mxu1 %v553_v2 }
   0xc   :  { %509 = vmatprep.subr.bf16.mxu0 %v554_v3  ;;  %538 = vmatprep.subr.bf16.mxu1 %v554_v3 }
   0xf   :  { %510 = vmatpush3.bf16.msra.mxu0 %v554_v3  ;;  %546 = vmatpush3.bf16.msra.mxu1 %v554_v3 }
  0x10   :  { %511 = vmatprep.subr.bf16.mxu0 %v555_v5  ;;  %539 = vmatprep.subr.bf16.mxu1 %v555_v5 }
  0x13   :  { %512 = vmatpush3.bf16.msra.mxu0 %v555_v5  ;;  %547 = vmatpush3.bf16.msra.mxu1 %v555_v5 }
  0x14   :  { %513 = vmatprep.subr.bf16.mxu0 %v556_v7  ;;  %540 = vmatprep.subr.bf16.mxu1 %v556_v7 }
  0x17   :  { %514 = vmatpush3.bf16.msra.mxu0 %v556_v7  ;;  %548 = vmatpush3.bf16.msra.mxu1 %v556_v7 }
  0x18   :  { %515 = vmatprep.subr.bf16.mxu0 %v557_v8  ;;  %541 = vmatprep.subr.bf16.mxu1 %v557_v8 }
  0x1b   :  { %516 = vmatpush3.bf16.msra.mxu0 %v557_v8  ;;  %549 = vmatpush3.bf16.msra.mxu1 %v557_v8 }
  0x1c   :  { %517 = vmatprep.subr.bf16.mxu0 %v558_v9  ;;  %542 = vmatprep.subr.bf16.mxu1 %v558_v9 }
  0x1f   :  { %518 = vmatpush3.bf16.msra.mxu0 %v558_v9  ;;  %550 = vmatpush3.bf16.msra.mxu1 %v558_v9 }
  0x22   :  { %520 = vmatmul.mubr.bf16.vlgmr.msra.gmra.mxu0 %v560_v10  ;;  %528 = vmatmul.mubr.bf16.vlgmr.msra.gmra.mxu1 %v564_v11 }
  0x23   :  { %523 = vmatprep.mubr.bf16.mxu0 %v561_v12  ;;  %531 = vmatprep.mubr.bf16.mxu1 %v565_v13 }
  0x2a   :  { %524 = vmatmul.mubr.bf16.gmra.mxu0 %v562_v14  ;;  %532 = vmatmul.mubr.bf16.gmra.mxu1 %v566_v15 }
  0xe2   :  { %v521_v16 = vpop.f32.mrf.mxu0  ;;  %v529_v17 = vpop.f32.mrf.mxu1 }
  0xe3   :  { %v344_v33 = vmul.f32 %v521_v16, %v521_v16  ;;  %v352_v3 = vmul.f32 %v529_v17, %v529_v17 }
  0xe4   :  { %v177_v18 = vpop.f32.mrf.mxu0  ;;  %v209_v19 = vpop.f32.mrf.mxu1 }
  0xe5   :  { %v342_v24 = vmul.f32 %v177_v18, %v177_v18  ;;  %v350_v61 = vmul.f32 %v209_v19, %v209_v19 }
  0xe6   :  { %v522_v20 = vpop.f32.mrf.mxu0  ;;  %v530_v21 = vpop.f32.mrf.mxu1 }
  0xe7   :  { %v448_v22 = vpack.c.bf16 %v522_v20, %v521_v16  ;;  %v468_v23 = vpack.c.bf16 %v530_v21, %v529_v17  ;;  %v345_v38 = vmul.f32 %v522_v20, %v522_v20  ;;  %v353_v6 = vmul.f32 %v530_v21, %v530_v21 }
  0xe8   :  { %v180_v25 = vpop.f32.mrf.mxu0  ;;  %v212_v26 = vpop.f32.mrf.mxu1 }
  0xe9   :  { %480 = vst [vmem:[%s672_s2 + $0x8] sm:$0xff] %v448_v22   ;;  %v443_v27 = vpack.c.bf16 %v180_v25, %v177_v18  ;;  %v320_v28 = vadd.f32 %v180_v25, %v177_v18  ;;  %v343_v29 = vmul.f32 %v180_v25, %v180_v25  ;;  %484 = vst [vmem:[%s672_s2 + $0x28] sm:$0xff] %v468_v23  }
  0xea   :  { %v463_v30 = vpack.c.bf16 %v212_v26, %v209_v19  ;;  %v525_v31 = vpop.f32.mrf.mxu0  ;;  %v533_v32 = vpop.f32.mrf.mxu1  ;;  %v351_v1 = vmul.f32 %v212_v26, %v212_v26 }
  0xeb   :  { %444 = vst [vmem:[%s672_s2] sm:$0xff] %v443_v27   ;;  %v321_v34 = vadd.f32 %v521_v16, %v320_v28  ;;  %v358_v35 = vadd.f32 %v343_v29, %v342_v24  ;;  %v348_v55 = vmul.f32 %v525_v31, %v525_v31  ;;  %v356_v15 = vmul.f32 %v533_v32, %v533_v32 }
  0xec   :  { %483 = vst [vmem:[%s672_s2 + $0x20] sm:$0xff] %v463_v30   ;;  %v193_v36 = vpop.f32.mrf.mxu0  ;;  %v225_v37 = vpop.f32.mrf.mxu1 }
  0xed   :  { %v359_v39 = vadd.f32 %v358_v35, %v344_v33  ;;  %v322_v40 = vadd.f32 %v522_v20, %v321_v34  ;;  %v346_v44 = vmul.f32 %v193_v36, %v193_v36  ;;  %v354_v10 = vmul.f32 %v225_v37, %v225_v37 }
  0xee   :  { %v526_v41 = vpop.f32.mrf.mxu0  ;;  %v534_v42 = vpop.f32.mrf.mxu1 }
  0xef   :  { %v323_v43 = vadd.f32 %v322_v40, %v193_v36  ;;  %v360_v45 = vadd.f32 %v359_v39, %v345_v38  ;;  %v458_v46 = vpack.c.bf16 %v526_v41, %v525_v31  ;;  %v478_v48 = vpack.c.bf16 %v534_v42, %v533_v32 }
  0xf0   :  { %v196_v47 = vpop.f32.mrf.mxu0  ;;  %v228_v49 = vpop.f32.mrf.mxu1  ;;  %v349_v58 = vmul.f32 %v526_v41, %v526_v41  ;;  %v357_v20 = vmul.f32 %v534_v42, %v534_v42 }
  0xf1   :  { %v361_v50 = vadd.f32 %v360_v45, %v346_v44  ;;  %482 = vst [vmem:[%s672_s2 + $0x18] sm:$0xff] %v458_v46   ;;  %v453_v51 = vpack.c.bf16 %v196_v47, %v193_v36  ;;  %v324_v52 = vadd.f32 %v323_v43, %v196_v47  ;;  %v347_v53 = vmul.f32 %v196_v47, %v196_v47 }
  0xf2   :  { %486 = vst [vmem:[%s672_s2 + $0x38] sm:$0xff] %v478_v48   ;;  %v473_v54 = vpack.c.bf16 %v228_v49, %v225_v37  ;;  %v355_v14 = vmul.f32 %v228_v49, %v228_v49 }
  0xf3   :  { %481 = vst [vmem:[%s672_s2 + $0x10] sm:$0xff] %v453_v51   ;;  %v325_v56 = vadd.f32 %v525_v31, %v324_v52  ;;  %v362_v57 = vadd.f32 %v361_v50, %v347_v53 }
  0xf4   :  { %485 = vst [vmem:[%s672_s2 + $0x30] sm:$0xff] %v473_v54  }
  0xf5   :  { %v326_v59 = vadd.f32 %v526_v41, %v325_v56  ;;  %v363_v60 = vadd.f32 %v362_v57, %v348_v55 }
  0xf7   :  { %v364_v62 = vadd.f32 %v363_v60, %v349_v58  ;;  %v327_v63 = vadd.f32 %v326_v59, %v209_v19 }
  0xf9   :  { %v328_v0 = vadd.f32 %v327_v63, %v212_v26  ;;  %v365_v2 = vadd.f32 %v364_v62, %v350_v61 }
  0xfb   :  { %v329_v4 = vadd.f32 %v529_v17, %v328_v0  ;;  %v366_v5 = vadd.f32 %v365_v2, %v351_v1 }
  0xfd   :  { %v367_v7 = vadd.f32 %v366_v5, %v352_v3  ;;  %v330_v8 = vadd.f32 %v530_v21, %v329_v4 }
  0xff   :  { %v331_v9 = vadd.f32 %v330_v8, %v225_v37  ;;  %v368_v11 = vadd.f32 %v367_v7, %v353_v6 }
 0x101   :  { %v369_v12 = vadd.f32 %v368_v11, %v354_v10  ;;  %v332_v13 = vadd.f32 %v331_v9, %v228_v49 }
 0x103   :  { %v333_v16 = vadd.f32 %v533_v32, %v332_v13  ;;  %v370_v18 = vadd.f32 %v369_v12, %v355_v14 }
 0x105   :  { %v334_v19 = vadd.f32 %v534_v42, %v333_v16  ;;  %v371_v22 = vadd.f32 %v370_v18, %v356_v15 }
 0x107   :  { %v335_v23 = vrot.slane %v334_v19, 4  ;;  %v372_v24 = vadd.f32 %v371_v22, %v357_v20 }
 0x109   :  { %v336_v25 = vadd.f32 %v335_v23, %v334_v19  ;;  %v373_v17 = vrot.slane %v372_v24, 4 }
 0x10b   :  { %v337_v26 = vrot.slane %v336_v25, 2  ;;  %v374_v27 = vadd.f32 %v373_v17, %v372_v24 }
 0x10d   :  { %v338_v28 = vadd.f32 %v337_v26, %v336_v25  ;;  %v375_v21 = vrot.slane %v374_v27, 2 }
 0x10f   :  { %v339_v29 = vrot.slane %v338_v28, 1  ;;  %v376_v30 = vadd.f32 %v375_v21, %v374_v27 }
 0x111   :  { %v340_v31 = vadd.f32 %v339_v29, %v338_v28  ;;  %v377_v33 = vrot.slane %v376_v30, 1 }
 0x113   :  { %341 = vst [vmem:[%s673_s3] sm:$0x1] %v340_v31  ;;  %v378_v32 = vadd.f32 %v377_v33, %v376_v30 }
 0x115   :  { %379 = vst [vmem:[%s674_s4] sm:$0x1] %v378_v32 }

// kernel: resnet_forward.25
= control target key start
LH: loop header
LB: loop body
LE: loop exit
PB: predicated region body
PF: predicated region fallthrough
CT: control target
= control target key end

     0   :  { %v57_v5 = vlaneseq  ;;  %s378_s1 = inlined_call_operand.vmem [shape: f32[1,1,128], index: 1, kind: input, shape index: {}]   ;;  %s379_s2 = inlined_call_operand.vmem [shape: f32[1,1,128], index: 2, kind: input, shape index: {}]   ;;  %s380_s0 = inlined_call_operand.vmem [shape: bf16[1,128,128], index: 0, kind: input, shape index: {}]   ;;  %s381_s3 = inlined_call_operand.vmem [shape: bf16[1,128,128], index: 3, kind: output, shape index: {}]  }
   0x1   :  { %v14_v0 = vld [vmem:[%s378_s1] sm:$0x1]  ;;  %v288_v11 = vld [vmem:[%s380_s0 + $0x8] sm:$0xff]   ;;  %v289_v12 = vld [vmem:[%s380_s0 + $0x10] sm:$0xff]  }
   0x2   :  { %v17_v1 = vld [vmem:[%s379_s2] sm:$0x1]  ;;  %v16_v2 = vmul.f32 0.03125, %v14_v0  ;;  %v58_v8 = vshrl.u32 %v57_v5, 7  ;;  %v290_v13 = vld [vmem:[%s380_s0 + $0x18] sm:$0xff]   ;;  %v292_v17 = vld [vmem:[%s380_s0 + $0x28] sm:$0xff]   ;;  %v222_v20 = vunpack.c.l.bf16 %v288_v11  ;;  %v223_v21 = vunpack.c.h.bf16 %v288_v11 }
   0x3   :  { %v19_v3 = vmul.f32 0.03125, %v17_v1  ;;  %v217_v10 = vld [vmem:[%s380_s0] sm:$0xff]   ;;  %v293_v18 = vld [vmem:[%s380_s0 + $0x30] sm:$0xff]   ;;  %v226_v22 = vunpack.c.l.bf16 %v289_v12  ;;  %v294_v23 = vld [vmem:[%s380_s0 + $0x38] sm:$0xff]   ;;  %v227_v24 = vunpack.c.h.bf16 %v289_v12  ;;  %v230_v25 = vunpack.c.l.bf16 %v290_v13 }
   0x4   :  { %v20_v4 = vmul.f32 %v16_v2, %v16_v2  ;;  %v59_v9 = vsub.s32 0, %v58_v8  ;;  %v291_v14 = vld [vmem:[%s380_s0 + $0x20] sm:$0xff]   ;;  %v218_v15 = vunpack.c.l.bf16 %v217_v10  ;;  %v219_v19 = vunpack.c.h.bf16 %v217_v10 }
   0x5   :  { %v231_v26 = vunpack.c.h.bf16 %v290_v13  ;;  %v234_v27 = vunpack.c.l.bf16 %v291_v14  ;;  %v235_v28 = vunpack.c.h.bf16 %v291_v14  ;;  %v238_v29 = vunpack.c.l.bf16 %v292_v17 }
   0x6   :  { %v21_v6 = vsub.f32 %v19_v3, %v20_v4  ;;  %v60_v16 = vrot.slane %v16_v2, %v59_v9  ;;  %v239_v30 = vunpack.c.h.bf16 %v292_v17  ;;  %v242_v31 = vunpack.c.l.bf16 %v293_v18 }
   0x7   :  { %v243_v33 = vunpack.c.h.bf16 %v293_v18  ;;  %v246_v34 = vunpack.c.l.bf16 %v294_v23  ;;  %v247_v35 = vunpack.c.h.bf16 %v294_v23 }
   0x8   :  { %v22_v7 = vadd.f32 1e-05, %v21_v6  ;;  %v62_v32 = vsub.f32 %v218_v15, %v60_v16  ;;  %v63_v36 = vsub.f32 %v219_v19, %v60_v16  ;;  %v64_v37 = vsub.f32 %v222_v20, %v60_v16 }
   0x9   :  { %v65_v38 = vsub.f32 %v223_v21, %v60_v16  ;;  %v66_v39 = vsub.f32 %v226_v22, %v60_v16  ;;  %v67_v41 = vsub.f32 %v227_v24, %v60_v16  ;;  %v68_v42 = vsub.f32 %v230_v25, %v60_v16 }
   0xa   :  { %302 = vrsqrt.f32 %v22_v7  ;;  %v69_v43 = vsub.f32 %v231_v26, %v60_v16  ;;  %v70_v44 = vsub.f32 %v234_v27, %v60_v16  ;;  %v71_v46 = vsub.f32 %v235_v28, %v60_v16 }
   0xb   :  { %v72_v47 = vsub.f32 %v238_v29, %v60_v16  ;;  %v73_v48 = vsub.f32 %v239_v30, %v60_v16  ;;  %v74_v49 = vsub.f32 %v242_v31, %v60_v16  ;;  %v75_v50 = vsub.f32 %v243_v33, %v60_v16 }
   0xc   :  { %v76_v51 = vsub.f32 %v246_v34, %v60_v16  ;;  %v77_v52 = vsub.f32 %v247_v35, %v60_v16 }
  0x17   :  { %v303_v40 = vpop.eup %302 }
  0x18   :  { %v82_v45 = vrot.slane %v303_v40, %v59_v9 }
  0x1a   :  { %v84_v53 = vmul.f32 %v82_v45, %v62_v32  ;;  %v85_v54 = vmul.f32 %v82_v45, %v63_v36  ;;  %v86_v55 = vmul.f32 %v82_v45, %v64_v37  ;;  %v87_v56 = vmul.f32 %v82_v45, %v65_v38 }
  0x1b   :  { %v88_v57 = vmul.f32 %v82_v45, %v66_v39  ;;  %v89_v58 = vmul.f32 %v82_v45, %v67_v41  ;;  %v90_v59 = vmul.f32 %v82_v45, %v68_v42  ;;  %v91_v60 = vmul.f32 %v82_v45, %v69_v43 }
  0x1c   :  { %v251_v61 = vpack.c.bf16 %v85_v54, %v84_v53  ;;  %v256_v62 = vpack.c.bf16 %v87_v56, %v86_v55  ;;  %v92_v63 = vmul.f32 %v82_v45, %v70_v44  ;;  %v93_v0 = vmul.f32 %v82_v45, %v71_v46 }
  0x1d   :  { %v261_v1 = vpack.c.bf16 %v89_v58, %v88_v57  ;;  %v266_v2 = vpack.c.bf16 %v91_v60, %v90_v59  ;;  %v94_v3 = vmul.f32 %v82_v45, %v72_v47  ;;  %v95_v4 = vmul.f32 %v82_v45, %v73_v48 }
  0x1e   :  { %252 = vst [vmem:[%s381_s3] sm:$0xff] %v251_v61   ;;  %295 = vst [vmem:[%s381_s3 + $0x8] sm:$0xff] %v256_v62   ;;  %v271_v5 = vpack.c.bf16 %v93_v0, %v92_v63  ;;  %v96_v6 = vmul.f32 %v82_v45, %v74_v49  ;;  %v97_v7 = vmul.f32 %v82_v45, %v75_v50 }
  0x1f   :  { %v98_v8 = vmul.f32 %v82_v45, %v76_v51  ;;  %296 = vst [vmem:[%s381_s3 + $0x10] sm:$0xff] %v261_v1   ;;  %297 = vst [vmem:[%s381_s3 + $0x18] sm:$0xff] %v266_v2   ;;  %v276_v9 = vpack.c.bf16 %v95_v4, %v94_v3  ;;  %v99_v10 = vmul.f32 %v82_v45, %v77_v52 }
  0x20   :  { %298 = vst [vmem:[%s381_s3 + $0x20] sm:$0xff] %v271_v5   ;;  %v281_v11 = vpack.c.bf16 %v97_v7, %v96_v6 }
  0x21   :  { %299 = vst [vmem:[%s381_s3 + $0x28] sm:$0xff] %v276_v9   ;;  %v286_v12 = vpack.c.bf16 %v99_v10, %v98_v8 }
  0x22   :  { %300 = vst [vmem:[%s381_s3 + $0x30] sm:$0xff] %v281_v11  }
  0x23   :  { %301 = vst [vmem:[%s381_s3 + $0x38] sm:$0xff] %v286_v12  }

// kernel: resnet_forward.23
= control target key start
LH: loop header
LB: loop body
LE: loop exit
PB: predicated region body
PF: predicated region fallthrough
CT: control target
= control target key end

     0   :  { %v57_v5 = vlaneseq  ;;  %s394_s1 = inlined_call_operand.vmem [shape: f32[1,1,128], index: 1, kind: input, shape index: {}]   ;;  %s395_s2 = inlined_call_operand.vmem [shape: f32[1,1,128], index: 2, kind: input, shape index: {}]   ;;  %s396_s0 = inlined_call_operand.vmem [shape: bf16[1,128,128], index: 0, kind: input, shape index: {}]   ;;  %s397_s3 = inlined_call_operand.vmem [shape: bf16[1,128,128], index: 3, kind: output, shape index: {}]  }
   0x1   :  { %v14_v0 = vld [vmem:[%s394_s1] sm:$0x1]  ;;  %v304_v11 = vld [vmem:[%s396_s0 + $0x8] sm:$0xff]   ;;  %v305_v12 = vld [vmem:[%s396_s0 + $0x10] sm:$0xff]  }
   0x2   :  { %v17_v1 = vld [vmem:[%s395_s2] sm:$0x1]  ;;  %v16_v2 = vmul.f32 0.03125, %v14_v0  ;;  %v58_v8 = vshrl.u32 %v57_v5, 7  ;;  %v306_v13 = vld [vmem:[%s396_s0 + $0x18] sm:$0xff]   ;;  %v308_v17 = vld [vmem:[%s396_s0 + $0x28] sm:$0xff]   ;;  %v238_v20 = vunpack.c.l.bf16 %v304_v11  ;;  %v239_v21 = vunpack.c.h.bf16 %v304_v11 }
   0x3   :  { %v19_v3 = vmul.f32 0.03125, %v17_v1  ;;  %v233_v10 = vld [vmem:[%s396_s0] sm:$0xff]   ;;  %v309_v18 = vld [vmem:[%s396_s0 + $0x30] sm:$0xff]   ;;  %v242_v22 = vunpack.c.l.bf16 %v305_v12  ;;  %v310_v23 = vld [vmem:[%s396_s0 + $0x38] sm:$0xff]   ;;  %v243_v24 = vunpack.c.h.bf16 %v305_v12  ;;  %v246_v25 = vunpack.c.l.bf16 %v306_v13 }
   0x4   :  { %v20_v4 = vmul.f32 %v16_v2, %v16_v2  ;;  %v59_v9 = vsub.s32 0, %v58_v8  ;;  %v307_v14 = vld [vmem:[%s396_s0 + $0x20] sm:$0xff]   ;;  %v234_v15 = vunpack.c.l.bf16 %v233_v10  ;;  %v235_v19 = vunpack.c.h.bf16 %v233_v10 }
   0x5   :  { %v247_v26 = vunpack.c.h.bf16 %v306_v13  ;;  %v250_v27 = vunpack.c.l.bf16 %v307_v14  ;;  %v251_v28 = vunpack.c.h.bf16 %v307_v14  ;;  %v254_v29 = vunpack.c.l.bf16 %v308_v17 }
   0x6   :  { %v21_v6 = vsub.f32 %v19_v3, %v20_v4  ;;  %v60_v16 = vrot.slane %v16_v2, %v59_v9  ;;  %v255_v30 = vunpack.c.h.bf16 %v308_v17  ;;  %v258_v31 = vunpack.c.l.bf16 %v309_v18 }
   0x7   :  { %v259_v33 = vunpack.c.h.bf16 %v309_v18  ;;  %v262_v34 = vunpack.c.l.bf16 %v310_v23  ;;  %v263_v35 = vunpack.c.h.bf16 %v310_v23 }
   0x8   :  { %v22_v7 = vadd.f32 1e-05, %v21_v6  ;;  %v62_v32 = vsub.f32 %v234_v15, %v60_v16  ;;  %v63_v36 = vsub.f32 %v235_v19, %v60_v16  ;;  %v64_v37 = vsub.f32 %v238_v20, %v60_v16 }
   0x9   :  { %v65_v38 = vsub.f32 %v239_v21, %v60_v16  ;;  %v66_v39 = vsub.f32 %v242_v22, %v60_v16  ;;  %v67_v41 = vsub.f32 %v243_v24, %v60_v16  ;;  %v68_v42 = vsub.f32 %v246_v25, %v60_v16 }
   0xa   :  { %318 = vrsqrt.f32 %v22_v7  ;;  %v69_v43 = vsub.f32 %v247_v26, %v60_v16  ;;  %v70_v44 = vsub.f32 %v250_v27, %v60_v16  ;;  %v71_v46 = vsub.f32 %v251_v28, %v60_v16 }
   0xb   :  { %v72_v47 = vsub.f32 %v254_v29, %v60_v16  ;;  %v73_v48 = vsub.f32 %v255_v30, %v60_v16  ;;  %v74_v49 = vsub.f32 %v258_v31, %v60_v16  ;;  %v75_v50 = vsub.f32 %v259_v33, %v60_v16 }
   0xc   :  { %v76_v51 = vsub.f32 %v262_v34, %v60_v16  ;;  %v77_v52 = vsub.f32 %v263_v35, %v60_v16 }
  0x17   :  { %v319_v40 = vpop.eup %318 }
  0x18   :  { %v82_v45 = vrot.slane %v319_v40, %v59_v9 }
  0x1a   :  { %v84_v53 = vmul.f32 %v82_v45, %v62_v32  ;;  %v85_v54 = vmul.f32 %v82_v45, %v63_v36  ;;  %v86_v55 = vmul.f32 %v82_v45, %v64_v37  ;;  %v87_v56 = vmul.f32 %v82_v45, %v65_v38 }
  0x1b   :  { %v88_v57 = vmul.f32 %v82_v45, %v66_v39  ;;  %v89_v58 = vmul.f32 %v82_v45, %v67_v41  ;;  %v90_v59 = vmul.f32 %v82_v45, %v68_v42  ;;  %v91_v60 = vmul.f32 %v82_v45, %v69_v43 }
  0x1c   :  { %v100_v61 = vmax.f32 %v84_v53, 0.0  ;;  %v101_v62 = vmax.f32 %v85_v54, 0.0  ;;  %v102_v63 = vmax.f32 %v86_v55, 0.0  ;;  %v103_v0 = vmax.f32 %v87_v56, 0.0 }
  0x1d   :  { %v104_v1 = vmax.f32 %v88_v57, 0.0  ;;  %v105_v2 = vmax.f32 %v89_v58, 0.0  ;;  %v106_v3 = vmax.f32 %v90_v59, 0.0  ;;  %v107_v4 = vmax.f32 %v91_v60, 0.0 }
  0x1e   :  { %v267_v5 = vpack.c.bf16 %v101_v62, %v100_v61  ;;  %v272_v6 = vpack.c.bf16 %v103_v0, %v102_v63  ;;  %v92_v7 = vmul.f32 %v82_v45, %v70_v44  ;;  %v93_v8 = vmul.f32 %v82_v45, %v71_v46 }
  0x1f   :  { %v277_v9 = vpack.c.bf16 %v105_v2, %v104_v1  ;;  %v282_v10 = vpack.c.bf16 %v107_v4, %v106_v3  ;;  %v94_v11 = vmul.f32 %v82_v45, %v72_v47  ;;  %v95_v12 = vmul.f32 %v82_v45, %v73_v48 }
  0x20   :  { %268 = vst [vmem:[%s397_s3] sm:$0xff] %v267_v5   ;;  %311 = vst [vmem:[%s397_s3 + $0x8] sm:$0xff] %v272_v6   ;;  %v108_v13 = vmax.f32 %v92_v7, 0.0  ;;  %v109_v14 = vmax.f32 %v93_v8, 0.0  ;;  %v96_v15 = vmul.f32 %v82_v45, %v74_v49  ;;  %v97_v16 = vmul.f32 %v82_v45, %v75_v50 }
  0x21   :  { %312 = vst [vmem:[%s397_s3 + $0x10] sm:$0xff] %v277_v9   ;;  %313 = vst [vmem:[%s397_s3 + $0x18] sm:$0xff] %v282_v10   ;;  %v110_v17 = vmax.f32 %v94_v11, 0.0  ;;  %v111_v18 = vmax.f32 %v95_v12, 0.0  ;;  %v98_v19 = vmul.f32 %v82_v45, %v76_v51  ;;  %v99_v20 = vmul.f32 %v82_v45, %v77_v52 }
  0x22   :  { %v287_v21 = vpack.c.bf16 %v109_v14, %v108_v13  ;;  %v112_v22 = vmax.f32 %v96_v15, 0.0  ;;  %v113_v23 = vmax.f32 %v97_v16, 0.0 }
  0x23   :  { %v292_v24 = vpack.c.bf16 %v111_v18, %v110_v17  ;;  %v114_v25 = vmax.f32 %v98_v19, 0.0  ;;  %v115_v26 = vmax.f32 %v99_v20, 0.0 }
  0x24   :  { %314 = vst [vmem:[%s397_s3 + $0x20] sm:$0xff] %v287_v21   ;;  %v297_v27 = vpack.c.bf16 %v113_v23, %v112_v22 }
  0x25   :  { %315 = vst [vmem:[%s397_s3 + $0x28] sm:$0xff] %v292_v24   ;;  %v302_v28 = vpack.c.bf16 %v115_v26, %v114_v25 }
  0x26   :  { %316 = vst [vmem:[%s397_s3 + $0x30] sm:$0xff] %v297_v27  }
  0x27   :  { %317 = vst [vmem:[%s397_s3 + $0x38] sm:$0xff] %v302_v28  }

// kernel: resnet_forward.22
= control target key start
LH: loop header
LB: loop body
LE: loop exit
PB: predicated region body
PF: predicated region fallthrough
CT: control target
= control target key end

     0   :  { %s1833_s1 = inlined_call_operand.vmem [shape: bf16[640,128], index: 1, kind: input, shape index: {}]   ;;  %s1834_s0 = inlined_call_operand.vmem [shape: bf16[128,640], index: 0, kind: input, shape index: {}]   ;;  %s1835_s2 = inlined_call_operand.vmem [shape: bf16[128,128], index: 2, kind: output, shape index: {0}]   ;;  %s1836_s3 = inlined_call_operand.vmem [shape: f32[1,1,128], index: 3, kind: output, shape index: {1}]   ;;  %s1837_s4 = inlined_call_operand.vmem [shape: f32[1,1,128], index: 4, kind: output, shape index: {2}]  }
   0x1   :  { %v1385_v0 = vld [vmem:[%s1833_s1 + $0x78] sm:$0xff]   ;;  %v1389_v4 = vld [vmem:[%s1833_s1 + $0x70] sm:$0xff]   ;;  %v1393_v8 = vld [vmem:[%s1833_s1 + $0x68] sm:$0xff]  }
   0x2   :  { %v1386_v1 = vld [vmem:[%s1833_s1 + $0xf8] sm:$0xff]   ;;  %1193 = vmatprep.subr.bf16.mxu0 %v1385_v0  ;;  %v1390_v5 = vld [vmem:[%s1833_s1 + $0xf0] sm:$0xff]   ;;  %v1394_v9 = vld [vmem:[%s1833_s1 + $0xe8] sm:$0xff]  }
   0x3   :  { %v1387_v2 = vld [vmem:[%s1833_s1 + $0x38] sm:$0xff]   ;;  %1257 = vmatprep.subr.bf16.mxu1 %v1386_v1  ;;  %v1391_v6 = vld [vmem:[%s1833_s1 + $0x30] sm:$0xff]   ;;  %v1395_v10 = vld [vmem:[%s1833_s1 + $0x28] sm:$0xff]  }
   0x4   :  { %v1388_v3 = vld [vmem:[%s1833_s1 + $0xb8] sm:$0xff]   ;;  %1194 = vmatpush3.bf16.msra.mxu0 %v1387_v2  ;;  %v1392_v7 = vld [vmem:[%s1833_s1 + $0xb0] sm:$0xff]   ;;  %v1396_v11 = vld [vmem:[%s1833_s1 + $0xa8] sm:$0xff]  }
   0x5   :  { %1258 = vmatpush3.bf16.msra.mxu1 %v1388_v3  ;;  %1195 = vmatprep.subr.bf16.mxu0 %v1389_v4  ;;  %v1397_v12 = vld [vmem:[%s1833_s1 + $0x60] sm:$0xff]   ;;  %v1401_v16 = vld [vmem:[%s1833_s1 + $0x58] sm:$0xff]   ;;  %v1405_v20 = vld [vmem:[%s1833_s1 + $0x50] sm:$0xff]  }
   0x6   :  { %1259 = vmatprep.subr.bf16.mxu1 %v1390_v5  ;;  %v1398_v13 = vld [vmem:[%s1833_s1 + $0xe0] sm:$0xff]   ;;  %v1402_v17 = vld [vmem:[%s1833_s1 + $0xd8] sm:$0xff]   ;;  %v1406_v21 = vld [vmem:[%s1833_s1 + $0xd0] sm:$0xff]  }
   0x7   :  { %v1399_v14 = vld [vmem:[%s1833_s1 + $0x20] sm:$0xff]   ;;  %v1403_v18 = vld [vmem:[%s1833_s1 + $0x18] sm:$0xff]   ;;  %v1407_v22 = vld [vmem:[%s1833_s1 + $0x10] sm:$0xff]  }
   0x8   :  { %1196 = vmatpush3.bf16.msra.mxu0 %v1391_v6  ;;  %v1400_v15 = vld [vmem:[%s1833_s1 + $0xa0] sm:$0xff]   ;;  %v1404_v19 = vld [vmem:[%s1833_s1 + $0x98] sm:$0xff]   ;;  %v1408_v23 = vld [vmem:[%s1833_s1 + $0x90] sm:$0xff]  }
   0x9   :  { %1260 = vmatpush3.bf16.msra.mxu1 %v1392_v7  ;;  %1197 = vmatprep.subr.bf16.mxu0 %v1393_v8  ;;  %v1409_v24 = vld [vmem:[%s1833_s1 + $0x48] sm:$0xff]   ;;  %v1413_v28 = vld [vmem:[%s1833_s1 + $0x40] sm:$0xff]   ;;  %v1423_v36 = vld [vmem:[%s1833_s1 + $0x138] sm:$0xff]  }
   0xa   :  { %1261 = vmatprep.subr.bf16.mxu1 %v1394_v9  ;;  %v1410_v25 = vld [vmem:[%s1833_s1 + $0xc8] sm:$0xff]   ;;  %v1414_v29 = vld [vmem:[%s1833_s1 + $0xc0] sm:$0xff]   ;;  %v1430_v39 = vld [vmem:[%s1833_s1 + $0x130] sm:$0xff]  }
   0xb   :  { %v1411_v26 = vld [vmem:[%s1833_s1 + $0x8] sm:$0xff]   ;;  %v1415_v30 = vld [vmem:[%s1833_s1] sm:$0xff]   ;;  %v1433_v43 = vld [vmem:[%s1834_s0 + $0x5c] ss:$20 sps:$4 sm:$0xff]  }
   0xc   :  { %1198 = vmatpush3.bf16.msra.mxu0 %v1395_v10  ;;  %v1412_v27 = vld [vmem:[%s1833_s1 + $0x88] sm:$0xff]   ;;  %v1416_v31 = vld [vmem:[%s1833_s1 + $0x80] sm:$0xff]   ;;  %v1438_v48 = vld [vmem:[%s1834_s0 + $0x7c] ss:$20 sps:$4 sm:$0xff]  }
   0xd   :  { %1262 = vmatpush3.bf16.msra.mxu1 %v1396_v11  ;;  %1199 = vmatprep.subr.bf16.mxu0 %v1397_v12  ;;  %v1417_v32 = vld [vmem:[%s1834_s0] ss:$20 sps:$4 sm:$0xff]   ;;  %v1419_v33 = vld [vmem:[%s1834_s0 + $0x4] ss:$20 sps:$4 sm:$0xff]   ;;  %v1420_v34 = vld [vmem:[%s1834_s0 + $0x8] ss:$20 sps:$4 sm:$0xff]  }
   0xe   :  { %1263 = vmatprep.subr.bf16.mxu1 %v1398_v13  ;;  %v1422_v35 = vld [vmem:[%s1834_s0 + $0xc] ss:$20 sps:$4 sm:$0xff]   ;;  %623 = vmatprep.mubr.bf16.mxu0 %v1419_v33  ;;  %v1426_v38 = vld [vmem:[%s1834_s0 + $0x34] ss:$20 sps:$4 sm:$0xff]   ;;  %v1429_v41 = vld [vmem:[%s1834_s0 + $0x30] ss:$20 sps:$4 sm:$0xff]  }
   0xf   :  { %720 = vmatprep.mubr.bf16.mxu1 %v1422_v35  ;;  %v1424_v37 = vld [vmem:[%s1834_s0 + $0x2c] ss:$20 sps:$4 sm:$0xff]   ;;  %v1428_v40 = vld [vmem:[%s1834_s0 + $0x28] ss:$20 sps:$4 sm:$0xff]   ;;  %v1435_v46 = vld [vmem:[%s1834_s0 + $0x50] ss:$20 sps:$4 sm:$0xff]  }
  0x10   :  { %1200 = vmatpush3.bf16.msra.mxu0 %v1399_v14  ;;  %v1431_v42 = vld [vmem:[%s1834_s0 + $0x54] ss:$20 sps:$4 sm:$0xff]   ;;  %v1444_v45 = vld [vmem:[%s1833_s1 + $0x120] sm:$0xff]   ;;  %v1436_v47 = vld [vmem:[%s1834_s0 + $0x58] ss:$20 sps:$4 sm:$0xff]  }
  0x11   :  { %1264 = vmatpush3.bf16.msra.mxu1 %v1400_v15  ;;  %1201 = vmatprep.subr.bf16.mxu0 %v1401_v16  ;;  %v1437_v44 = vld [vmem:[%s1833_s1 + $0x128] sm:$0xff]   ;;  %v1440_v49 = vld [vmem:[%s1834_s0 + $0x84] ss:$20 sps:$4 sm:$0xff]   ;;  %v1458_v51 = vld [vmem:[%s1833_s1 + $0x110] sm:$0xff]  }
  0x12   :  { %1265 = vmatprep.subr.bf16.mxu1 %v1402_v17  ;;  %v1451_v50 = vld [vmem:[%s1833_s1 + $0x118] sm:$0xff]   ;;  %v1443_v53 = vld [vmem:[%s1834_s0 + $0x80] ss:$20 sps:$4 sm:$0xff]   ;;  %v1465_v55 = vld [vmem:[%s1833_s1 + $0x108] sm:$0xff]  }
  0x13   :  { %v1442_v52 = vld [vmem:[%s1834_s0 + $0x78] ss:$20 sps:$4 sm:$0xff]   ;;  %v1472_v57 = vld [vmem:[%s1833_s1 + $0x100] sm:$0xff]   ;;  %v1450_v59 = vld [vmem:[%s1834_s0 + $0xa8] ss:$20 sps:$4 sm:$0xff]  }
  0x14   :  { %1202 = vmatpush3.bf16.msra.mxu0 %v1403_v18  ;;  %v1445_v54 = vld [vmem:[%s1834_s0 + $0xa4] ss:$20 sps:$4 sm:$0xff]   ;;  %v1447_v56 = vld [vmem:[%s1834_s0 + $0xac] ss:$20 sps:$4 sm:$0xff]   ;;  %v1454_v61 = vld [vmem:[%s1834_s0 + $0xd4] ss:$20 sps:$4 sm:$0xff]  }
  0x15   :  { %1266 = vmatpush3.bf16.msra.mxu1 %v1404_v19  ;;  %1203 = vmatprep.subr.bf16.mxu0 %v1405_v20  ;;  %v1449_v58 = vld [vmem:[%s1834_s0 + $0xa0] ss:$20 sps:$4 sm:$0xff]   ;;  %v1456_v62 = vld [vmem:[%s1834_s0 + $0xc8] ss:$20 sps:$4 sm:$0xff]   ;;  %v1457_v63 = vld [vmem:[%s1834_s0 + $0xd0] ss:$20 sps:$4 sm:$0xff]  }
  0x16   :  { %1267 = vmatprep.subr.bf16.mxu1 %v1406_v21  ;;  %v1452_v60 = vld [vmem:[%s1834_s0 + $0xcc] ss:$20 sps:$4 sm:$0xff]   ;;  %v1459_v0 = vld [vmem:[%s1834_s0 + $0xf4] ss:$20 sps:$4 sm:$0xff]   ;;  %v1461_v1 = vld [vmem:[%s1834_s0 + $0xfc] ss:$20 sps:$4 sm:$0xff]  }
  0x17   :  { %v1463_v2 = vld [vmem:[%s1834_s0 + $0xf0] ss:$20 sps:$4 sm:$0xff]   ;;  %v1464_v3 = vld [vmem:[%s1834_s0 + $0xf8] ss:$20 sps:$4 sm:$0xff]   ;;  %v1471_v7 = vld [vmem:[%s1834_s0 + $0x120] ss:$20 sps:$4 sm:$0xff]  }
  0x18   :  { %1204 = vmatpush3.bf16.msra.mxu0 %v1407_v22  ;;  %v1466_v4 = vld [vmem:[%s1834_s0 + $0x11c] ss:$20 sps:$4 sm:$0xff]   ;;  %v1468_v5 = vld [vmem:[%s1834_s0 + $0x124] ss:$20 sps:$4 sm:$0xff]   ;;  %v1477_v12 = vld [vmem:[%s1834_s0 + $0x60] ss:$20 sps:$4 sm:$0xff]  }
  0x19   :  { %1268 = vmatpush3.bf16.msra.mxu1 %v1408_v23  ;;  %1205 = vmatprep.subr.bf16.mxu0 %v1409_v24  ;;  %v1470_v6 = vld [vmem:[%s1834_s0 + $0x118] ss:$20 sps:$4 sm:$0xff]   ;;  %v1473_v8 = vld [vmem:[%s1834_s0 + $0x10] ss:$20 sps:$4 sm:$0xff]   ;;  %v1478_v13 = vld [vmem:[%s1834_s0 + $0x100] ss:$20 sps:$4 sm:$0xff]  }
  0x1a   :  { %1269 = vmatprep.subr.bf16.mxu1 %v1410_v25  ;;  %v1474_v9 = vld [vmem:[%s1834_s0 + $0xb0] ss:$20 sps:$4 sm:$0xff]   ;;  %v1475_v10 = vld [vmem:[%s1834_s0 + $0x38] ss:$20 sps:$4 sm:$0xff]   ;;  %v1479_v14 = vld [vmem:[%s1834_s0 + $0x88] ss:$20 sps:$4 sm:$0xff]  }
  0x1b   :  { %v1476_v11 = vld [vmem:[%s1834_s0 + $0xd8] ss:$20 sps:$4 sm:$0xff]   ;;  %v1480_v15 = vld [vmem:[%s1834_s0 + $0x128] ss:$20 sps:$4 sm:$0xff]  }
  0x1c   :  { %1206 = vmatpush3.bf16.msra.mxu0 %v1411_v26 }
  0x1d   :  { %1270 = vmatpush3.bf16.msra.mxu1 %v1412_v27  ;;  %1207 = vmatprep.subr.bf16.mxu0 %v1413_v28 }
  0x1e   :  { %1271 = vmatprep.subr.bf16.mxu1 %v1414_v29 }
  0x20   :  { %1208 = vmatpush3.bf16.msra.mxu0 %v1415_v30 }
  0x21   :  { %1272 = vmatpush3.bf16.msra.mxu1 %v1416_v31  ;;  %1337 = vmatprep.subr.bf16.mxu0 %v1423_v36 }
  0x22   :  { %1369 = vmatprep.subr.bf16.mxu1 %v1423_v36 }
  0x23   :  { %624 = vmatmul.mubr.bf16.vlgmr.msra.gmra.mxu0 %v1417_v32 }
  0x24   :  { %721 = vmatmul.mubr.bf16.vlgmr.msra.gmra.mxu1 %v1420_v34  ;;  %1338 = vmatpush3.bf16.msra.mxu0 %v1423_v36 }
  0x25   :  { %631 = vmatprep.mubr.bf16.mxu0 %v1424_v37  ;;  %728 = vmatprep.mubr.bf16.mxu1 %v1426_v38 }
  0x26   :  { %1377 = vmatpush3.bf16.msra.mxu1 %v1423_v36  ;;  %1339 = vmatprep.subr.bf16.mxu0 %v1430_v39 }
  0x27   :  { %1370 = vmatprep.subr.bf16.mxu1 %v1430_v39 }
  0x28   :  { %1340 = vmatpush3.bf16.msra.mxu0 %v1430_v39 }
  0x29   :  { %1341 = vmatprep.subr.bf16.mxu0 %v1437_v44 }
  0x2a   :  { %1378 = vmatpush3.bf16.msra.mxu1 %v1430_v39 }
  0x2b   :  { %632 = vmatmul.mubr.bf16.gmra.mxu0 %v1428_v40  ;;  %1371 = vmatprep.subr.bf16.mxu1 %v1437_v44 }
  0x2c   :  { %729 = vmatmul.mubr.bf16.gmra.mxu1 %v1429_v41  ;;  %639 = vmatprep.mubr.bf16.mxu0 %v1431_v42 }
  0x2d   :  { %736 = vmatprep.mubr.bf16.mxu1 %v1433_v43  ;;  %1342 = vmatpush3.bf16.msra.mxu0 %v1437_v44 }
  0x2e   :  { %1343 = vmatprep.subr.bf16.mxu0 %v1444_v45  ;;  %1379 = vmatpush3.bf16.msra.mxu1 %v1437_v44 }
  0x2f   :  { %1372 = vmatprep.subr.bf16.mxu1 %v1444_v45 }
  0x31   :  { %1344 = vmatpush3.bf16.msra.mxu0 %v1444_v45 }
  0x32   :  { %1345 = vmatprep.subr.bf16.mxu0 %v1451_v50  ;;  %1380 = vmatpush3.bf16.msra.mxu1 %v1444_v45 }
  0x33   :  { %640 = vmatmul.mubr.bf16.gmra.mxu0 %v1435_v46  ;;  %1373 = vmatprep.subr.bf16.mxu1 %v1451_v50 }
  0x34   :  { %737 = vmatmul.mubr.bf16.gmra.mxu1 %v1436_v47  ;;  %647 = vmatprep.mubr.bf16.mxu0 %v1438_v48 }
  0x35   :  { %744 = vmatprep.mubr.bf16.mxu1 %v1440_v49  ;;  %1346 = vmatpush3.bf16.msra.mxu0 %v1451_v50 }
  0x36   :  { %1347 = vmatprep.subr.bf16.mxu0 %v1458_v51  ;;  %1381 = vmatpush3.bf16.msra.mxu1 %v1451_v50 }
  0x37   :  { %1374 = vmatprep.subr.bf16.mxu1 %v1458_v51 }
  0x39   :  { %1348 = vmatpush3.bf16.msra.mxu0 %v1458_v51 }
  0x3a   :  { %1349 = vmatprep.subr.bf16.mxu0 %v1465_v55  ;;  %1382 = vmatpush3.bf16.msra.mxu1 %v1458_v51 }
  0x3b   :  { %648 = vmatmul.mubr.bf16.gmra.mxu0 %v1442_v52  ;;  %1375 = vmatprep.subr.bf16.mxu1 %v1465_v55 }
  0x3c   :  { %745 = vmatmul.mubr.bf16.gmra.mxu1 %v1443_v53  ;;  %655 = vmatprep.mubr.bf16.mxu0 %v1445_v54 }
  0x3d   :  { %752 = vmatprep.mubr.bf16.mxu1 %v1447_v56  ;;  %1350 = vmatpush3.bf16.msra.mxu0 %v1465_v55 }
  0x3e   :  { %1351 = vmatprep.subr.bf16.mxu0 %v1472_v57  ;;  %1383 = vmatpush3.bf16.msra.mxu1 %v1465_v55 }
  0x3f   :  { %1376 = vmatprep.subr.bf16.mxu1 %v1472_v57 }
  0x41   :  { %1352 = vmatpush3.bf16.msra.mxu0 %v1472_v57 }
  0x42   :  { %1384 = vmatpush3.bf16.msra.mxu1 %v1472_v57 }
  0x43   :  { %656 = vmatmul.mubr.bf16.gmra.mxu0 %v1449_v58 }
  0x44   :  { %753 = vmatmul.mubr.bf16.gmra.mxu1 %v1450_v59  ;;  %663 = vmatprep.mubr.bf16.mxu0 %v1452_v60 }
  0x45   :  { %760 = vmatprep.mubr.bf16.mxu1 %v1454_v61 }
  0x4b   :  { %664 = vmatmul.mubr.bf16.gmra.mxu0 %v1456_v62 }
  0x4c   :  { %761 = vmatmul.mubr.bf16.gmra.mxu1 %v1457_v63  ;;  %671 = vmatprep.mubr.bf16.mxu0 %v1459_v0 }
  0x4d   :  { %768 = vmatprep.mubr.bf16.mxu1 %v1461_v1 }
  0x53   :  { %672 = vmatmul.mubr.bf16.gmra.mxu0 %v1463_v2 }
  0x54   :  { %769 = vmatmul.mubr.bf16.gmra.mxu1 %v1464_v3  ;;  %679 = vmatprep.mubr.bf16.mxu0 %v1466_v4 }
  0x55   :  { %776 = vmatprep.mubr.bf16.mxu1 %v1468_v5 }
  0x5b   :  { %680 = vmatmul.mubr.bf16.gmra.mxu0 %v1470_v6 }
  0x5c   :  { %777 = vmatmul.mubr.bf16.gmra.mxu1 %v1471_v7  ;;  %1353 = vmatprep.mubr.bf16.mxu0 %v1473_v8 }
  0x5d   :  { %1361 = vmatprep.mubr.bf16.mxu1 %v1474_v9 }
  0x63   :  { %1354 = vmatmul.mubr.bf16.vlgmr.msra.gmra.mxu0 %v1475_v10 }
  0x64   :  { %1362 = vmatmul.mubr.bf16.vlgmr.msra.gmra.mxu1 %v1476_v11  ;;  %1357 = vmatprep.mubr.bf16.mxu0 %v1477_v12 }
  0x65   :  { %1365 = vmatprep.mubr.bf16.mxu1 %v1478_v13 }
  0x6b   :  { %1358 = vmatmul.mubr.bf16.gmra.mxu0 %v1479_v14 }
  0x6c   :  { %1366 = vmatmul.mubr.bf16.gmra.mxu1 %v1480_v15 }
  0xe3   :  { %v1209_v16 = vpop.f32.mrf.mxu0 }
  0xe4   :  { %v1273_v17 = vpop.f32.mrf.mxu1 }
  0xe5   :  { %v1210_v18 = vpop.f32.mrf.mxu0 }
  0xe6   :  { %v1211_v19 = vadd.f32 %v1210_v18, %v1209_v16  ;;  %v1274_v20 = vpop.f32.mrf.mxu1 }
  0xe7   :  { %v1275_v21 = vadd.f32 %v1274_v20, %v1273_v17  ;;  %v1212_v22 = vpop.f32.mrf.mxu0 }
  0xe8   :  { %v1276_v23 = vpop.f32.mrf.mxu1 }
  0xe9   :  { %v1213_v24 = vpop.f32.mrf.mxu0  ;;  %v1746_v25 = vadd.f32 %v1275_v21, %v1211_v19 }
  0xea   :  { %v1277_v26 = vpop.f32.mrf.mxu1  ;;  %v1214_v15 = vadd.f32 %v1213_v24, %v1212_v22 }
  0xeb   :  { %1838 = vst [vmem:[#allocation2_spill] sm:$0xff] %v1746_v25  ;;  %v1215_v27 = vpop.f32.mrf.mxu0  ;;  %v1278_v16 = vadd.f32 %v1277_v26, %v1276_v23 }
  0xec   :  { %v1279_v28 = vpop.f32.mrf.mxu1 }
  0xed   :  { %v1216_v29 = vpop.f32.mrf.mxu0 }
  0xee   :  { %v1280_v30 = vpop.f32.mrf.mxu1  ;;  %v1217_v18 = vadd.f32 %v1216_v29, %v1215_v27 }
  0xef   :  { %v1218_v31 = vpop.f32.mrf.mxu0  ;;  %v1281_v19 = vadd.f32 %v1280_v30, %v1279_v28 }
  0xf0   :  { %v1282_v32 = vpop.f32.mrf.mxu1 }
  0xf1   :  { %v1219_v33 = vpop.f32.mrf.mxu0 }
  0xf2   :  { %v1283_v34 = vpop.f32.mrf.mxu1  ;;  %v1220_v20 = vadd.f32 %v1219_v33, %v1218_v31  ;;  %v731_v31 = vadd.f32 %v1281_v19, %v1217_v18 }
  0xf3   :  { %v1221_v35 = vpop.f32.mrf.mxu0  ;;  %v1284_v21 = vadd.f32 %v1283_v34, %v1282_v32  ;;  %v726_v34 = vadd.f32 %v1278_v16, %v1214_v15 }
  0xf4   :  { %v1285_v36 = vpop.f32.mrf.mxu1 }
  0xf5   :  { %v1222_v37 = vpop.f32.mrf.mxu0  ;;  %v734_v33 = vadd.f32 %v1284_v21, %v1220_v20 }
  0xf6   :  { %v1286_v38 = vpop.f32.mrf.mxu1 }
  0xf7   :  { %v1748_v39 = vpop.f32.mrf.mxu0 }
  0xf8   :  { %1839 = vst [vmem:[#allocation3_spill] sm:$0xff] %v1748_v39  ;;  %v1750_v40 = vpop.f32.mrf.mxu1 }
  0xf9   :  { %1840 = vst [vmem:[#allocation4_spill] sm:$0xff] %v1750_v40  ;;  %v1752_v41 = vpop.f32.mrf.mxu0 }
  0xfa   :  { %1841 = vst [vmem:[#allocation5_spill] sm:$0xff] %v1752_v41  ;;  %v1754_v42 = vpop.f32.mrf.mxu1 }
  0xfb   :  { %1842 = vst [vmem:[#allocation6_spill] sm:$0xff] %v1754_v42  ;;  %v1227_v43 = vpop.f32.mrf.mxu0 }
  0xfc   :  { %v1291_v44 = vpop.f32.mrf.mxu1 }
  0xfd   :  { %v1228_v45 = vpop.f32.mrf.mxu0 }
  0xfe   :  { %v1292_v46 = vpop.f32.mrf.mxu1  ;;  %v1229_v25 = vadd.f32 %v1228_v45, %v1227_v43 }
  0xff   :  { %v1230_v47 = vpop.f32.mrf.mxu0 }
 0x100   :  { %v1294_v48 = vpop.f32.mrf.mxu1 }
 0x101   :  { %v1231_v49 = vpop.f32.mrf.mxu0 }
 0x102   :  { %v1295_v50 = vpop.f32.mrf.mxu1  ;;  %v1852_v43 = vld [vmem:[#allocation6_spill] sm:$0xff] }
 0x103   :  { %v1233_v51 = vpop.f32.mrf.mxu0  ;;  %v1296_v40 = vadd.f32 %v1295_v50, %v1294_v48 }
 0x104   :  { %v1297_v52 = vpop.f32.mrf.mxu1 }
 0x105   :  { %v1234_v53 = vpop.f32.mrf.mxu0 }
 0x106   :  { %v1298_v54 = vpop.f32.mrf.mxu1 }
 0x107   :  { %v1236_v55 = vpop.f32.mrf.mxu0  ;;  %v1299_v41 = vadd.f32 %v1298_v54, %v1297_v52  ;;  %v1853_v54 = vld [vmem:[#allocation2_spill] sm:$0xff] }
 0x108   :  { %v1300_v56 = vpop.f32.mrf.mxu1 }
 0x109   :  { %v1237_v57 = vpop.f32.mrf.mxu0 }
 0x10a   :  { %v1301_v58 = vpop.f32.mrf.mxu1  ;;  %v1238_v29 = vadd.f32 %v1237_v57, %v1236_v55 }
 0x10b   :  { %v1239_v59 = vpop.f32.mrf.mxu0  ;;  %v1302_v28 = vadd.f32 %v1301_v58, %v1300_v56 }
 0x10c   :  { %v1303_v60 = vpop.f32.mrf.mxu1 }
 0x10d   :  { %v1240_v61 = vpop.f32.mrf.mxu0  ;;  %v758_v58 = vadd.f32 %v1302_v28, %v1238_v29 }
 0x10e   :  { %v1304_v62 = vpop.f32.mrf.mxu1  ;;  %v1241_v22 = vadd.f32 %v1240_v61, %v1239_v59 }
 0x10f   :  { %v1242_v63 = vpop.f32.mrf.mxu0  ;;  %v1305_v24 = vadd.f32 %v1304_v62, %v1303_v60 }
 0x110   :  { %v1306_v0 = vpop.f32.mrf.mxu1 }
 0x111   :  { %v1243_v1 = vpop.f32.mrf.mxu0  ;;  %v763_v48 = vadd.f32 %v1305_v24, %v1241_v22 }
 0x112   :  { %v1307_v2 = vpop.f32.mrf.mxu1  ;;  %v1244_v23 = vadd.f32 %v1243_v1, %v1242_v63 }
 0x113   :  { %v1245_v3 = vpop.f32.mrf.mxu0  ;;  %v1308_v26 = vadd.f32 %v1307_v2, %v1306_v0 }
 0x114   :  { %v1756_v4 = vpop.f32.mrf.mxu1 }
 0x115   :  { %1843 = vst [vmem:[#allocation7_spill] sm:$0xff] %v1756_v4  ;;  %v1246_v5 = vpop.f32.mrf.mxu0  ;;  %v1223_v4 = vadd.f32 %v1222_v37, %v1221_v35  ;;  %v1849_v35 = vld [vmem:[#allocation3_spill] sm:$0xff] }
 0x116   :  { %v1758_v6 = vpop.f32.mrf.mxu1  ;;  %v1247_v59 = vadd.f32 %v1246_v5, %v1245_v3 }
 0x117   :  { %1844 = vst [vmem:[#allocation8_spill] sm:$0xff] %v1758_v6  ;;  %v1760_v7 = vpop.f32.mrf.mxu0 }
 0x118   :  { %1845 = vst [vmem:[#allocation9_spill] sm:$0xff] %v1760_v7  ;;  %v1762_v8 = vpop.f32.mrf.mxu1  ;;  %v1287_v7 = vadd.f32 %v1286_v38, %v1285_v36  ;;  %v1850_v36 = vld [vmem:[#allocation5_spill] sm:$0xff]  ;;  %v1851_v38 = vld [vmem:[#allocation4_spill] sm:$0xff] }
 0x119   :  { %1846 = vst [vmem:[#allocation10_spill] sm:$0xff] %v1762_v8  ;;  %v1764_v9 = vpop.f32.mrf.mxu0  ;;  %v1293_v8 = vadd.f32 %v1292_v46, %v1291_v44  ;;  %v1226_v37 = vadd.f32 %v1850_v36, %v1849_v35  ;;  %v1290_v44 = vadd.f32 %v1852_v43, %v1851_v38 }
 0x11a   :  { %1847 = vst [vmem:[#allocation11_spill] sm:$0xff] %v1764_v9  ;;  %v1766_v10 = vpop.f32.mrf.mxu1  ;;  %v1232_v9 = vadd.f32 %v1231_v49, %v1230_v47  ;;  %v739_v47 = vadd.f32 %v1287_v7, %v1223_v4 }
 0x11b   :  { %1848 = vst [vmem:[#allocation12_spill] sm:$0xff] %v1766_v10  ;;  %v1251_v11 = vpop.f32.mrf.mxu0  ;;  %v1235_v10 = vadd.f32 %v1234_v53, %v1233_v51  ;;  %v747_v46 = vadd.f32 %v1293_v8, %v1229_v25  ;;  %v766_v51 = vadd.f32 %v1308_v26, %v1244_v23 }
 0x11c   :  { %v1315_v12 = vpop.f32.mrf.mxu1  ;;  %v750_v52 = vadd.f32 %v1296_v40, %v1232_v9 }
 0x11d   :  { %v1252_v13 = vpop.f32.mrf.mxu0  ;;  %v755_v49 = vadd.f32 %v1299_v41, %v1235_v10 }
 0x11e   :  { %v1316_v14 = vpop.f32.mrf.mxu1  ;;  %v1253_v60 = vadd.f32 %v1252_v13, %v1251_v11  ;;  %v1855_v13 = vld [vmem:[#allocation8_spill] sm:$0xff] }
 0x11f   :  { %v1254_v17 = vpop.f32.mrf.mxu0  ;;  %v1317_v25 = vadd.f32 %v1316_v14, %v1315_v12  ;;  %v1854_v12 = vld [vmem:[#allocation7_spill] sm:$0xff] }
 0x120   :  { %v1318_v6 = vpop.f32.mrf.mxu1  ;;  %v1858_v16 = vld [vmem:[#allocation10_spill] sm:$0xff] }
 0x121   :  { %v1255_v42 = vpop.f32.mrf.mxu0  ;;  %v1857_v14 = vld [vmem:[#allocation11_spill] sm:$0xff]  ;;  %v779_v29 = vadd.f32 %v1317_v25, %v1253_v60 }
 0x122   :  { %v1319_v39 = vpop.f32.mrf.mxu1  ;;  %v1256_v0 = vadd.f32 %v1255_v42, %v1254_v17  ;;  %v1859_v17 = vld [vmem:[#allocation12_spill] sm:$0xff] }
 0x123   :  { %v1355_v27 = vpop.f32.mrf.mxu0  ;;  %v1320_v4 = vadd.f32 %v1319_v39, %v1318_v6  ;;  %v1311_v39 = vadd.f32 %v1855_v13, %v1854_v12  ;;  %v1856_v6 = vld [vmem:[#allocation9_spill] sm:$0xff]  ;;  %v1314_v18 = vadd.f32 %v1859_v17, %v1858_v16 }
 0x124   :  { %v1363_v30 = vpop.f32.mrf.mxu1  ;;  %v828_v53 = vadd.f32 %v1355_v27, %v731_v31  ;;  %v1250_v15 = vadd.f32 %v1857_v14, %v1856_v6  ;;  %v742_v31 = vadd.f32 %v1290_v44, %v1226_v37 }
 0x125   :  { %v819_v32 = vpop.f32.mrf.mxu0  ;;  %v1773_v61 = vadd.f32 %v1363_v30, %v763_v48  ;;  %v782_v30 = vadd.f32 %v1320_v4, %v1256_v0  ;;  %v771_v43 = vadd.f32 %v1311_v39, %v1247_v59 }
 0x126   :  { %v851_v45 = vpop.f32.mrf.mxu1  ;;  %v820_v55 = vadd.f32 %v819_v32, %v1853_v54  ;;  %v986_v21 = vmul.f32 %v828_v53, %v828_v53 }
 0x127   :  { %v1356_v50 = vpop.f32.mrf.mxu0  ;;  %v1777_v40 = vadd.f32 %v851_v45, %v755_v49 }
 0x128   :  { %v831_v56 = vadd.f32 %v1356_v50, %v734_v33  ;;  %v1364_v57 = vpop.f32.mrf.mxu1  ;;  %v984_v5 = vmul.f32 %v820_v55, %v820_v55 }
 0x129   :  { %v1775_v62 = vadd.f32 %v1364_v57, %v766_v51  ;;  %v822_v63 = vpop.f32.mrf.mxu0 }
 0x12a   :  { %v1154_v1 = vpack.c.bf16 %v831_v56, %v828_v53  ;;  %v823_v41 = vadd.f32 %v822_v63, %v726_v34  ;;  %v854_v2 = vpop.f32.mrf.mxu1  ;;  %v987_v27 = vmul.f32 %v831_v56, %v831_v56 }
 0x12b   :  { %v1174_v7 = vpack.c.bf16 %v1775_v62, %v1773_v61  ;;  %v1781_v8 = vadd.f32 %v854_v2, %v758_v58  ;;  %v1359_v3 = vpop.f32.mrf.mxu0  ;;  %v992_v2 = vmul.f32 %v1777_v40, %v1777_v40  ;;  %v995_v12 = vmul.f32 %v1775_v62, %v1775_v62 }
 0x12c   :  { %1186 = vst [vmem:[%s1835_s2 + $0x8] sm:$0xff] %v1154_v1   ;;  %v1149_v9 = vpack.c.bf16 %v823_v41, %v820_v55  ;;  %v962_v10 = vadd.f32 %v823_v41, %v820_v55  ;;  %v985_v42 = vmul.f32 %v823_v41, %v823_v41  ;;  %v1367_v11 = vpop.f32.mrf.mxu1  ;;  %v844_v33 = vadd.f32 %v1359_v3, %v747_v46 }
 0x12d   :  { %1190 = vst [vmem:[%s1835_s2 + $0x28] sm:$0xff] %v1174_v7   ;;  %v1169_v19 = vpack.c.bf16 %v1781_v8, %v1777_v40  ;;  %v835_v20 = vpop.f32.mrf.mxu0  ;;  %v876_v38 = vadd.f32 %v1367_v11, %v779_v29  ;;  %v993_v3 = vmul.f32 %v1781_v8, %v1781_v8 }
 0x12e   :  { %1150 = vst [vmem:[%s1835_s2] sm:$0xff] %v1149_v9   ;;  %v963_v22 = vadd.f32 %v962_v10, %v828_v53  ;;  %v1000_v24 = vadd.f32 %v985_v42, %v984_v5  ;;  %v836_v23 = vadd.f32 %v835_v20, %v739_v47  ;;  %v867_v26 = vpop.f32.mrf.mxu1  ;;  %v774_v47 = vadd.f32 %v1314_v18, %v1250_v15 }
 0x12f   :  { %1189 = vst [vmem:[%s1835_s2 + $0x20] sm:$0xff] %v1169_v19   ;;  %v1360_v28 = vpop.f32.mrf.mxu0  ;;  %v868_v55 = vadd.f32 %v867_v26, %v771_v43  ;;  %v990_v59 = vmul.f32 %v844_v33, %v844_v33  ;;  %v994_v10 = vmul.f32 %v1773_v61, %v1773_v61  ;;  %v998_v18 = vmul.f32 %v876_v38, %v876_v38 }
 0x130   :  { %v1001_v32 = vadd.f32 %v1000_v24, %v986_v21  ;;  %v964_v34 = vadd.f32 %v963_v22, %v831_v56  ;;  %v847_v35 = vadd.f32 %v1360_v28, %v750_v52  ;;  %v1368_v36 = vpop.f32.mrf.mxu1  ;;  %v988_v50 = vmul.f32 %v836_v23, %v836_v23 }
 0x131   :  { %v879_v45 = vadd.f32 %v1368_v36, %v782_v30  ;;  %v838_v48 = vpop.f32.mrf.mxu0 }
 0x132   :  { %v965_v49 = vadd.f32 %v964_v34, %v836_v23  ;;  %v1002_v51 = vadd.f32 %v1001_v32, %v987_v27  ;;  %v1164_v53 = vpack.c.bf16 %v847_v35, %v844_v33  ;;  %v870_v54 = vpop.f32.mrf.mxu1  ;;  %v839_v58 = vadd.f32 %v838_v48, %v742_v31 }
 0x133   :  { %v1184_v57 = vpack.c.bf16 %v879_v45, %v876_v38  ;;  %v871_v60 = vadd.f32 %v870_v54, %v774_v47  ;;  %v991_v0 = vmul.f32 %v847_v35, %v847_v35  ;;  %v999_v20 = vmul.f32 %v879_v45, %v879_v45 }
 0x134   :  { %v1003_v37 = vadd.f32 %v1002_v51, %v988_v50  ;;  %1188 = vst [vmem:[%s1835_s2 + $0x18] sm:$0xff] %v1164_v53   ;;  %v1159_v44 = vpack.c.bf16 %v839_v58, %v836_v23  ;;  %v966_v46 = vadd.f32 %v965_v49, %v839_v58  ;;  %v989_v52 = vmul.f32 %v839_v58, %v839_v58 }
 0x135   :  { %1192 = vst [vmem:[%s1835_s2 + $0x38] sm:$0xff] %v1184_v57   ;;  %v1179_v56 = vpack.c.bf16 %v871_v60, %v868_v55  ;;  %v997_v16 = vmul.f32 %v871_v60, %v871_v60 }
 0x136   :  { %1187 = vst [vmem:[%s1835_s2 + $0x10] sm:$0xff] %v1159_v44   ;;  %v967_v63 = vadd.f32 %v966_v46, %v844_v33  ;;  %v1004_v25 = vadd.f32 %v1003_v37, %v989_v52 }
 0x137   :  { %1191 = vst [vmem:[%s1835_s2 + $0x30] sm:$0xff] %v1179_v56  }
 0x138   :  { %v968_v1 = vadd.f32 %v967_v63, %v847_v35  ;;  %v1005_v41 = vadd.f32 %v1004_v25, %v990_v59 }
 0x13a   :  { %v969_v4 = vadd.f32 %v968_v1, %v1777_v40  ;;  %v1006_v7 = vadd.f32 %v1005_v41, %v991_v0  ;;  %v996_v40 = vmul.f32 %v868_v55, %v868_v55 }
 0x13c   :  { %v1007_v5 = vadd.f32 %v1006_v7, %v992_v2  ;;  %v970_v9 = vadd.f32 %v969_v4, %v1781_v8 }
 0x13e   :  { %v971_v42 = vadd.f32 %v970_v9, %v1773_v61  ;;  %v1008_v11 = vadd.f32 %v1007_v5, %v993_v3 }
 0x140   :  { %v972_v13 = vadd.f32 %v971_v42, %v1775_v62  ;;  %v1009_v39 = vadd.f32 %v1008_v11, %v994_v10 }
 0x142   :  { %v973_v6 = vadd.f32 %v972_v13, %v868_v55  ;;  %v1010_v14 = vadd.f32 %v1009_v39, %v995_v12 }
 0x144   :  { %v974_v15 = vadd.f32 %v973_v6, %v871_v60  ;;  %v1011_v17 = vadd.f32 %v1010_v14, %v996_v40 }
 0x146   :  { %v975_v8 = vadd.f32 %v974_v15, %v876_v38  ;;  %v1012_v19 = vadd.f32 %v1011_v17, %v997_v16 }
 0x148   :  { %v976_v21 = vadd.f32 %v975_v8, %v879_v45  ;;  %v1013_v22 = vadd.f32 %v1012_v19, %v998_v18 }
 0x14a   :  { %v977_v61 = vrot.slane %v976_v21, 4  ;;  %v1014_v24 = vadd.f32 %v1013_v22, %v999_v20 }
 0x14c   :  { %v978_v23 = vadd.f32 %v977_v61, %v976_v21  ;;  %v1015_v26 = vrot.slane %v1014_v24, 4 }
 0x14e   :  { %v979_v27 = vrot.slane %v978_v23, 2  ;;  %v1016_v29 = vadd.f32 %v1015_v26, %v1014_v24 }
 0x150   :  { %v980_v62 = vadd.f32 %v979_v27, %v978_v23  ;;  %v1017_v28 = vrot.slane %v1016_v29, 2 }
 0x152   :  { %v981_v30 = vrot.slane %v980_v62, 1  ;;  %v1018_v31 = vadd.f32 %v1017_v28, %v1016_v29 }
 0x154   :  { %v982_v32 = vadd.f32 %v981_v30, %v980_v62  ;;  %v1019_v33 = vrot.slane %v1018_v31, 1 }
 0x156   :  { %983 = vst [vmem:[%s1836_s3] sm:$0x1] %v982_v32  ;;  %v1020_v34 = vadd.f32 %v1019_v33, %v1018_v31 }
 0x158   :  { %1021 = vst [vmem:[%s1837_s4] sm:$0x1] %v1020_v34 }

// kernel: resnet_forward.26
= control target key start
LH: loop header
LB: loop body
LE: loop exit
PB: predicated region body
PF: predicated region fallthrough
CT: control target
= control target key end

     0   :  { %s1745_s18 = smov 0   ;;  %s1962_s0 = inlined_call_operand.vmem [shape: bf16[2,38,64], index: 0, kind: input, shape index: {}]   ;;  %s1963_s1 = inlined_call_operand.vmem [shape: bf16[9,64,128], index: 1, kind: input, shape index: {}]   ;;  %s1964_s2 = inlined_call_operand.vmem [shape: f32[24,1], index: 2, kind: input, shape index: {}]   ;;  %s1965_s3 = inlined_call_operand.vmem [shape: bf16[2,24,128], index: 3, kind: output, shape index: {0}]   ;;  %s1966_s4 = inlined_call_operand.vmem [shape: f32[2,1,128], index: 4, kind: output, shape index: {1}]   ;;  %s1967_s5 = inlined_call_operand.vmem [shape: f32[2,1,128], index: 5, kind: output, shape index: {2}]  }
   0x1 LB: > { %s1331_s19 = sadd.s32 4294967295, %s1712_s18   ;;  %p1335_p0 = scmp.ge.s32.totalorder %s1712_s18, 1  ;;  %s1712_s18 = sphi %s1745_s18, %s16_s18  }
   0x2   : > { %p192_p1 = scmp.lt.s32.totalorder %s1712_s18, 3 }
   0x4   : > { %p193_p2 = pnand %p1335_p0, %p192_p1 }
   0x5   : > { %p226_p3 = scmp.lt.s32.totalorder (!%p193_p2), %s1331_s19, 1 }
   0x6   : > { %196 = sbr.rel (%p193_p2) target bundleno = 314 (0x13a), region = 32 }
   0xb   : > { %v1657_v0 = vld [vmem:[%s1963_s1 + $0x38] sm:$0xff]   ;;  %v1659_v2 = vld [vmem:[%s1963_s1 + $0x30] sm:$0xff]   ;;  %s1969_s19 = smov (!%p226_p3, %s1331_s19), 1  ;;  %v1661_v4 = vld [vmem:[%s1963_s1 + $0x28] sm:$0xff]   ;;  %vm314_vm0 = vcmask 523264   ;;  %v1714_v13 = vmov 0  }
   0xc   : > { %v1658_v1 = vld [vmem:[%s1963_s1 + $0x18] sm:$0xff]   ;;  %1536 = vmatprep.subr.bf16.mxu0 %v1657_v0  ;;  %v1660_v3 = vld [vmem:[%s1963_s1 + $0x10] sm:$0xff]   ;;  %s1644_s30 = smul.u32 20, %s1969_s19  ;;  %v1662_v5 = vld [vmem:[%s1963_s1 + $0x8] sm:$0xff]   ;;  %1655 = vset.pattern.permute.xlu0 %v1714_v13  ;;  %vm274_vm1 = vsmask.f32 7424  ;;  %s238_s16 = scalar_lea.vmem %s1966_s4, %s1969_s19 }
   0xd   : > { %1548 = vmatprep.subr.bf16.mxu1 %v1658_v1  ;;  %1537 = vmatpush3.bf16.msra.mxu0 %v1657_v0  ;;  %v1663_v6 = vld [vmem:[%s1963_s1 + $0x20] sm:$0xff]   ;;  %v1668_v17 = vld [vmem:[%s1963_s1 + $0x58] sm:$0xff]   ;;  %v1670_v26 = vld [vmem:[%s1963_s1 + $0x50] sm:$0xff]   ;;  %vm460_vm2 = vcmask 1046528   ;;  %vm562_vm3 = vcmask 1044480   ;;  %vm874_vm5 = vcmask 1045504   ;;  %s241_s21 = scalar_lea.vmem %s1967_s5, %s1969_s19 }
   0xe   : > { %1549 = vmatpush3.bf16.msra.mxu1 %v1658_v1  ;;  %1538 = vmatprep.subr.bf16.mxu0 %v1659_v2  ;;  %s1777_s10 = scalar_lea.vmem %s1962_s0, %s1644_s30  ;;  %v1664_v10 = vld [vmem:[%s1963_s1] sm:$0xff]   ;;  %v1669_v21 = vld [vmem:[%s1963_s1 + $0x78] sm:$0xff]   ;;  %v1671_v28 = vld [vmem:[%s1963_s1 + $0x70] sm:$0xff]   ;;  %vm660_vm4 = vsmask.f32 4352  ;;  %s1645_s9 = smul.u32 12, %s1969_s19 }
   0xf   : > { %1550 = vmatprep.subr.bf16.mxu1 %v1660_v3  ;;  %v243_v7 = vld [vmem:[%s1777_s10] sm:$0xf]  ;;  %v1784_v8 = vld [vmem:[%s1777_s10 + $0x4] sm:$0xf]  ;;  %v1787_v9 = vld [vmem:[%s1777_s10 + $0x8] sm:$0xf]  ;;  %1656 = vset.pattern.permute.xlu1 %v1714_v13 }
  0x10   : > { %v254_v11 = vld [vmem:[%s1777_s10 + $0xc] sm:$0x1]  ;;  %v1346_v12 = vcombine.low %v243_v7, %v1784_v8  ;;  %v1354_v24 = vcombine.low %v1787_v9, %v1787_v9  ;;  %v447_v29 = vld [vmem:[%s1777_s10] sm:$0xe]  ;;  %v1677_v47 = vld [vmem:[%s1963_s1 + $0x98] sm:$0xff]   ;;  %v1415_v61 = vcombine.low %v1784_v8, %v1787_v9  ;;  %s235_s13 = scalar_lea.vmem %s1965_s3, %s1645_s9 }
  0x11   : > { %1539 = vmatpush3.bf16.msra.mxu0 %v1659_v2  ;;  %v1795_v14 = vcombine.low %v1787_v9, %v254_v11  ;;  %v1369_v30 = vcombine.low %v447_v29, %v1784_v8  ;;  %v545_v32 = vld [vmem:[%s1777_s10] sm:$0x8]  ;;  %v546_v33 = vld [vmem:[%s1777_s10 + $0xc] sm:$0x7]  ;;  %v1680_v52 = vld [vmem:[%s1963_s1 + $0xb8] sm:$0xff]  }
  0x12   : > { %1551 = vmatpush3.bf16.msra.mxu1 %v1660_v3  ;;  %1540 = vmatprep.subr.bf16.mxu0 %v1661_v4  ;;  %v276_v15 = vshrl.u32 %v1346_v12, 16  ;;  %v278_v16 = vshll.u32 %v1346_v12, 16  ;;  %v1672_v34 = vld [vmem:[%s1963_s1 + $0x48] sm:$0xff]   ;;  %v1384_v35 = vcombine.low %v545_v32, %v1784_v8  ;;  %v1385_v36 = vcombine.low %v1787_v9, %v546_v33  ;;  %v1674_v43 = vld [vmem:[%s1963_s1 + $0x40] sm:$0xff]   ;;  %v1681_v55 = vld [vmem:[%s1963_s1 + $0x90] sm:$0xff]  }
  0x13   : > { %1552 = vmatprep.subr.bf16.mxu1 %v1662_v5  ;;  %1556 = vmatprep.mubr.msk.bf16.mxu1 %vm314_vm0, %v1346_v12  ;;  %v283_v18 = vshll.u32 %v1795_v14, 16  ;;  %v287_v19 = vshrl.u32 %v1795_v14, 16  ;;  %v462_v31 = vrot.slane %v1795_v14, 1  ;;  %v1673_v37 = vld [vmem:[%s1963_s1 + $0x68] sm:$0xff]   ;;  %v461_v38 = vrot.slane %v1369_v30, 1  ;;  %v1675_v46 = vld [vmem:[%s1963_s1 + $0x60] sm:$0xff]  }
  0x14   : > { %v280_v20 = vrot.slane %v278_v16, 1  ;;  %v563_v39 = vrot.slane %v1384_v35, 3  ;;  %v564_v40 = vrot.slane %v1385_v36, 3  ;;  %v662_v42 = vshrl.u32 %v1384_v35, 16  ;;  %v1845_v48 = vld [vmem:[%s1777_s10 + $0xc] sm:$0xf] }
  0x15   : > { %1541 = vmatpush3.bf16.msra.mxu0 %v1661_v4  ;;  %v285_v22 = vrot.slane %v283_v18, 1  ;;  %v463_v41 = vsel %vm460_vm2, %v461_v38, %v462_v31  ;;  %v665_v45 = vshll.u32 %v1384_v35, 16  ;;  %v1400_v51 = vcombine.low %v1787_v9, %v1845_v48  ;;  %v1682_v56 = vld [vmem:[%s1963_s1 + $0xb0] sm:$0xff]   ;;  %v1683_v62 = vld [vmem:[%s1963_s1 + $0x88] sm:$0xff]   ;;  %v851_v63 = vld [vmem:[%s1777_s10 + $0x4] sm:$0xc] }
  0x16   : > { %1553 = vmatpush3.bf16.msra.mxu1 %v1662_v5  ;;  %1542 = vmatprep.subr.bf16.mxu0 %v1663_v6  ;;  %v281_v23 = vor.u32 %v280_v20, %v276_v15  ;;  %v565_v44 = vsel %vm562_vm3, %v563_v39, %v564_v40  ;;  %v664_v49 = vrot.slane %v662_v42, 3  ;;  %v1684_v0 = vld [vmem:[%s1963_s1 + $0xa8] sm:$0xff]   ;;  %v959_v5 = vld [vmem:[%s1777_s10 + $0x10] sm:$0x7]  ;;  %v1685_v12 = vld [vmem:[%s1963_s1 + $0x80] sm:$0xff]  }
  0x17   : > { %1554 = vmatprep.subr.bf16.mxu1 %v1664_v10  ;;  %v289_v25 = vor.u32 %v287_v19, %v285_v22  ;;  %v667_v50 = vrot.slane %v665_v45, 4  ;;  %v670_v53 = vshrl.u32 %v1400_v51, 16  ;;  %v673_v54 = vshll.u32 %v1400_v51, 16  ;;  %v1870_v2 = vld [vmem:[%s1777_s10 + $0x8] sm:$0xf]  ;;  %v1686_v13 = vld [vmem:[%s1963_s1 + $0xa0] sm:$0xff]  }
  0x18   : > { %v286_v27 = vsel %vm274_vm1, %v281_v23, %v285_v22  ;;  %v853_v3 = vld [vmem:[%s1777_s10 + $0xc] sm:$0xf]  ;;  %v1431_v4 = vcombine.low %v851_v63, %v1870_v2  ;;  %v854_v7 = vld [vmem:[%s1777_s10 + $0x10] sm:$0x3]  ;;  %v1168_v19 = vld [vmem:[%s1964_s2] sm:$0xff]  ;;  %v1416_v23 = vcombine.low %v1845_v48, %v1845_v48 }
  0x19   : > { %1543 = vmatpush3.bf16.msra.mxu0 %v1663_v6  ;;  %1544 = vmatprep.mubr.msk.bf16.mxu0 %vm314_vm0, %v286_v27  ;;  %v668_v57 = vor.u32 %v667_v50, %v664_v49  ;;  %v672_v58 = vrot.slane %v670_v53, 3  ;;  %v675_v59 = vrot.slane %v673_v54, 4  ;;  %v1877_v6 = vcombine.low %v853_v3, %v959_v5  ;;  %v1170_v20 = vld [vmem:[%s1964_s2 + $0x10] sm:$0xff]  ;;  %v1691_v22 = vld [vmem:[%s1963_s1 + $0xf8] sm:$0xff]   ;;  %v1694_v33 = vld [vmem:[%s1963_s1 + $0xc8] sm:$0xff]  }
  0x1a   : > { %1555 = vmatpush3.bf16.msra.mxu1 %v1664_v10  ;;  %1560 = vmatprep.subr.bf16.mxu0 %v1668_v17  ;;  %v974_v8 = vshrl.u32 %v1431_v4, 16  ;;  %v977_v9 = vshll.u32 %v1431_v4, 16  ;;  %v1432_v14 = vcombine.low %v853_v3, %v854_v7  ;;  %vm972_vm6 = vsmask.f32 5376  ;;  %v1692_v29 = vld [vmem:[%s1963_s1 + $0xd0] sm:$0xff]   ;;  %v1696_v36 = vld [vmem:[%s1963_s1 + $0xc0] sm:$0xff]  }
  0x1b   : > { %1572 = vmatprep.subr.bf16.mxu1 %v1669_v21  ;;  %v676_v60 = vor.u32 %v675_v59, %v672_v58  ;;  %v982_v10 = vshrl.u32 %v1877_v6, 16  ;;  %v985_v11 = vshll.u32 %v1877_v6, 16  ;;  %1173 = vperm.xlu0 %1655, %v1168_v19   ;;  %v1693_v30 = vld [vmem:[%s1963_s1 + $0xf0] sm:$0xff]   ;;  %v1071_v35 = vld [vmem:[%s1777_s10 + $0x4] sm:$0x8]  ;;  %v1701_v39 = vld [vmem:[%s1963_s1 + $0x118] sm:$0xff]  }
  0x1c   : > { %1545 = vmatmul.mubr.msk.bf16.vlgmr.msra.gmra.mxu0 %vm314_vm0, %v289_v25  ;;  %v976_v15 = vrot.slane %v974_v8, 2  ;;  %v979_v16 = vrot.slane %v977_v9, 3  ;;  %1183 = vperm.xlu1 %1656, %v1170_v20   ;;  %v876_v25 = vrot.slane %v1432_v14, 2  ;;  %v1462_v38 = vcombine.low %v1071_v35, %v1870_v2  ;;  %v1702_v42 = vld [vmem:[%s1963_s1 + $0x110] sm:$0xff]   ;;  %v1704_v45 = vld [vmem:[%s1963_s1 + $0x100] sm:$0xff]  }
  0x1d   : > { %1557 = vmatmul.mubr.msk.bf16.vlgmr.msra.gmra.mxu1 %vm314_vm0, %v1354_v24  ;;  %1561 = vmatpush3.bf16.msra.mxu0 %v1668_v17  ;;  %v677_v1 = vsel %vm660_vm4, %v668_v57, %v676_v60  ;;  %v984_v17 = vrot.slane %v982_v10, 2  ;;  %v987_v18 = vrot.slane %v985_v11, 3  ;;  %v875_v24 = vrot.slane %v1431_v4, 2 }
  0x1e   : > { %1573 = vmatpush3.bf16.msra.mxu1 %v1669_v21  ;;  %1562 = vmatprep.subr.bf16.mxu0 %v1670_v26  ;;  %v1688_v21 = vld [vmem:[%s1963_s1 + $0xd8] sm:$0xff]  }
  0x1f   : > { %1574 = vmatprep.subr.bf16.mxu1 %v1671_v28  ;;  %1568 = vmatprep.mubr.msk.bf16.mxu0 %vm314_vm0, %v463_v41  ;;  %v988_v27 = vor.u32 %v987_v18, %v984_v17  ;;  %v1085_v41 = vrot.slane %v1877_v6, 3 }
  0x20   : > { %1580 = vmatprep.mubr.msk.bf16.mxu1 %vm314_vm0, %v565_v44  ;;  %v1703_v44 = vld [vmem:[%s1963_s1 + $0x108] sm:$0xff]  }
  0x21   : > { %1563 = vmatpush3.bf16.msra.mxu0 %v1670_v26  ;;  %v980_v26 = vor.u32 %v979_v16, %v976_v15 }
  0x22   : > { %1575 = vmatpush3.bf16.msra.mxu1 %v1671_v28  ;;  %1564 = vmatprep.subr.bf16.mxu0 %v1672_v34  ;;  %v1169_v28 = vld [vmem:[%s1964_s2 + $0x8] sm:$0xff] }
  0x23   : > { %1576 = vmatprep.subr.bf16.mxu1 %v1673_v37  ;;  %1178 = vperm.xlu0 %1655, %v1169_v28   ;;  %v989_v32 = vsel %vm972_vm6, %v980_v26, %v988_v27 }
  0x25   : > { %1565 = vmatpush3.bf16.msra.mxu0 %v1672_v34  ;;  %v1695_v34 = vld [vmem:[%s1963_s1 + $0xe8] sm:$0xff]  }
  0x26   : > { %1577 = vmatpush3.bf16.msra.mxu1 %v1673_v37  ;;  %1566 = vmatprep.subr.bf16.mxu0 %v1674_v43  ;;  %v1697_v37 = vld [vmem:[%s1963_s1 + $0xe0] sm:$0xff]  }
  0x27   : > { %1578 = vmatprep.subr.bf16.mxu1 %v1675_v46 }
  0x29   : > { %1567 = vmatpush3.bf16.msra.mxu0 %v1674_v43 }
  0x2a   : > { %1579 = vmatpush3.bf16.msra.mxu1 %v1675_v46  ;;  %1584 = vmatprep.subr.bf16.mxu0 %v1677_v47 }
  0x2b   : > { %1596 = vmatprep.subr.bf16.mxu1 %v1680_v52 }
  0x2c   : > { %1569 = vmatmul.mubr.msk.bf16.vlgmr.msra.gmra.mxu0 %vm314_vm0, %v462_v31  ;;  %v877_v31 = vsel %vm874_vm5, %v875_v24, %v876_v25 }
  0x2d   : > { %1581 = vmatmul.mubr.msk.bf16.vlgmr.msra.gmra.mxu1 %vm314_vm0, %v564_v40  ;;  %1585 = vmatpush3.bf16.msra.mxu0 %v1677_v47  ;;  %v1084_v40 = vrot.slane %v1462_v38, 3 }
  0x2e   : > { %1597 = vmatpush3.bf16.msra.mxu1 %v1680_v52  ;;  %1586 = vmatprep.subr.bf16.mxu0 %v1681_v55 }
  0x2f   : > { %1598 = vmatprep.subr.bf16.mxu1 %v1682_v56  ;;  %1592 = vmatprep.mubr.msk.bf16.mxu0 %vm314_vm0, %v677_v1  ;;  %v1086_v43 = vsel %vm562_vm3, %v1084_v40, %v1085_v41 }
  0x30   : > { %1604 = vmatprep.mubr.msk.bf16.mxu1 %vm314_vm0, %v1415_v61 }
  0x31   : > { %1587 = vmatpush3.bf16.msra.mxu0 %v1681_v55 }
  0x32   : > { %1599 = vmatpush3.bf16.msra.mxu1 %v1682_v56  ;;  %1588 = vmatprep.subr.bf16.mxu0 %v1683_v62 }
  0x33   : > { %1600 = vmatprep.subr.bf16.mxu1 %v1684_v0 }
  0x35   : > { %1589 = vmatpush3.bf16.msra.mxu0 %v1683_v62 }
  0x36   : > { %1601 = vmatpush3.bf16.msra.mxu1 %v1684_v0  ;;  %1590 = vmatprep.subr.bf16.mxu0 %v1685_v12 }
  0x37   : > { %1602 = vmatprep.subr.bf16.mxu1 %v1686_v13 }
  0x39   : > { %1591 = vmatpush3.bf16.msra.mxu0 %v1685_v12 }
  0x3a   : > { %1603 = vmatpush3.bf16.msra.mxu1 %v1686_v13  ;;  %1608 = vmatprep.subr.bf16.mxu0 %v1688_v21 }
  0x3b   : > { %1620 = vmatprep.subr.bf16.mxu1 %v1691_v22 }
  0x3c   : > { %1593 = vmatmul.mubr.msk.bf16.vlgmr.msra.gmra.mxu0 %vm314_vm0, %v676_v60 }
  0x3d   : > { %1605 = vmatmul.mubr.msk.bf16.vlgmr.msra.gmra.mxu1 %vm314_vm0, %v1416_v23  ;;  %1609 = vmatpush3.bf16.msra.mxu0 %v1688_v21 }
  0x3e   : > { %1621 = vmatpush3.bf16.msra.mxu1 %v1691_v22  ;;  %1610 = vmatprep.subr.bf16.mxu0 %v1692_v29 }
  0x3f   : > { %1622 = vmatprep.subr.bf16.mxu1 %v1693_v30  ;;  %1616 = vmatprep.mubr.msk.bf16.mxu0 %vm314_vm0, %v877_v31 }
  0x40   : > { %1628 = vmatprep.mubr.msk.bf16.mxu1 %vm314_vm0, %v989_v32 }
  0x41   : > { %1611 = vmatpush3.bf16.msra.mxu0 %v1692_v29 }
  0x42   : > { %1623 = vmatpush3.bf16.msra.mxu1 %v1693_v30  ;;  %1612 = vmatprep.subr.bf16.mxu0 %v1694_v33 }
  0x43   : > { %1624 = vmatprep.subr.bf16.mxu1 %v1695_v34 }
  0x45   : > { %1613 = vmatpush3.bf16.msra.mxu0 %v1694_v33 }
  0x46   : > { %1625 = vmatpush3.bf16.msra.mxu1 %v1695_v34  ;;  %1614 = vmatprep.subr.bf16.mxu0 %v1696_v36 }
  0x47   : > { %1626 = vmatprep.subr.bf16.mxu1 %v1697_v37 }
  0x49   : > { %1615 = vmatpush3.bf16.msra.mxu0 %v1696_v36 }
  0x4a   : > { %1627 = vmatpush3.bf16.msra.mxu1 %v1697_v37  ;;  %1632 = vmatprep.subr.bf16.mxu0 %v1701_v39 }
  0x4c   : > { %1617 = vmatmul.mubr.msk.bf16.vlgmr.msra.gmra.mxu0 %vm314_vm0, %v876_v25 }
  0x4d   : > { %1629 = vmatmul.mubr.msk.bf16.vlgmr.msra.gmra.mxu1 %vm314_vm0, %v988_v27  ;;  %1633 = vmatpush3.bf16.msra.mxu0 %v1701_v39 }
  0x4e   : > { %1640 = vmatprep.mubr.msk.bf16.mxu0 %vm314_vm0, %v1086_v43  ;;  %1634 = vmatprep.subr.bf16.mxu0 %v1702_v42 }
  0x51   : > { %1635 = vmatpush3.bf16.msra.mxu0 %v1702_v42 }
  0x52   : > { %1636 = vmatprep.subr.bf16.mxu0 %v1703_v44 }
  0x55   : > { %1637 = vmatpush3.bf16.msra.mxu0 %v1703_v44 }
  0x56   : > { %1638 = vmatprep.subr.bf16.mxu0 %v1704_v45 }
  0x59   : > { %1639 = vmatpush3.bf16.msra.mxu0 %v1704_v45 }
  0x5c   : > { %1641 = vmatmul.mubr.msk.bf16.vlgmr.msra.gmra.mxu0 %vm314_vm0, %v1085_v41 }
  0x96   : > { %v1174_v34 = vpop.permute.xlu0 %1173 }
  0x97   : > { %v1184_v42 = vpop.permute.xlu1 %1183 }
  0xdc   : > { %v1546_v46 = vpop.f32.mrf.mxu0 }
  0xdd   : > { %v1558_v47 = vpop.f32.mrf.mxu1 }
  0xde   : > { %v355_v48 = vpop.f32.mrf.mxu0  ;;  %v442_v4 = vadd.f32 %v1558_v47, %v1546_v46  ;;  %v1179_v46 = vpop.permute.xlu0 %1178 }
  0xdf   : > { %v433_v49 = vpop.f32.mrf.mxu1 }
  0xe0   : > { %v1547_v50 = vpop.f32.mrf.mxu0  ;;  %v434_v7 = vadd.f32 %v433_v49, %v355_v48 }
  0xe1   : > { %v1559_v51 = vpop.f32.mrf.mxu1 }
  0xe2   : > { %v358_v52 = vpop.f32.mrf.mxu0 }
  0xe3   : > { %v436_v53 = vpop.f32.mrf.mxu1 }
  0xe4   : > { %v437_v14 = vadd.f32 %v436_v53, %v358_v52 }
  0xec   : > { %v1570_v54 = vpop.f32.mrf.mxu0 }
  0xed   : > { %v1582_v55 = vpop.f32.mrf.mxu1  ;;  %v544_v8 = vadd.f32 %v1570_v54, %v442_v4 }
  0xee   : > { %v528_v56 = vpop.f32.mrf.mxu0 }
  0xef   : > { %v630_v57 = vpop.f32.mrf.mxu1  ;;  %v542_v11 = vadd.f32 %v528_v56, %v434_v7  ;;  %v646_v15 = vadd.f32 %v1582_v55, %v544_v8 }
  0xf0   : > { %v1571_v58 = vpop.f32.mrf.mxu0 }
  0xf1   : > { %v1583_v59 = vpop.f32.mrf.mxu1  ;;  %v644_v18 = vadd.f32 %v630_v57, %v542_v11 }
  0xf2   : > { %v531_v60 = vpop.f32.mrf.mxu0 }
  0xf3   : > { %v633_v61 = vpop.f32.mrf.mxu1  ;;  %v543_v19 = vadd.f32 %v531_v60, %v437_v14 }
  0xf5   : > { %v645_v22 = vadd.f32 %v633_v61, %v543_v19 }
  0xfc   : > { %v1594_v62 = vpop.f32.mrf.mxu0 }
  0xfd   : > { %v1606_v63 = vpop.f32.mrf.mxu1  ;;  %v758_v20 = vadd.f32 %v1594_v62, %v646_v15 }
  0xfe   : > { %v742_v0 = vpop.f32.mrf.mxu0 }
  0xff   : > { %v834_v1 = vpop.f32.mrf.mxu1  ;;  %v756_v21 = vadd.f32 %v742_v0, %v644_v18  ;;  %v850_v23 = vadd.f32 %v1606_v63, %v758_v20 }
 0x100   : > { %v1595_v2 = vpop.f32.mrf.mxu0 }
 0x101   : > { %v1607_v3 = vpop.f32.mrf.mxu1  ;;  %v848_v24 = vadd.f32 %v834_v1, %v756_v21 }
 0x102   : > { %v745_v5 = vpop.f32.mrf.mxu0 }
 0x103   : > { %v837_v6 = vpop.f32.mrf.mxu1  ;;  %v757_v25 = vadd.f32 %v745_v5, %v645_v22 }
 0x105   : > { %v849_v29 = vadd.f32 %v837_v6, %v757_v25 }
 0x10c   : > { %v1618_v9 = vpop.f32.mrf.mxu0 }
 0x10d   : > { %v1630_v10 = vpop.f32.mrf.mxu1  ;;  %v958_v26 = vadd.f32 %v1618_v9, %v850_v23 }
 0x10e   : > { %v942_v12 = vpop.f32.mrf.mxu0 }
 0x10f   : > { %v1054_v13 = vpop.f32.mrf.mxu1  ;;  %v956_v27 = vadd.f32 %v942_v12, %v848_v24  ;;  %v1070_v30 = vadd.f32 %v1630_v10, %v958_v26 }
 0x110   : > { %v1619_v16 = vpop.f32.mrf.mxu0 }
 0x111   : > { %v1631_v17 = vpop.f32.mrf.mxu1  ;;  %v1068_v32 = vadd.f32 %v1054_v13, %v956_v27 }
 0x112   : > { %v945_v28 = vpop.f32.mrf.mxu0 }
 0x113   : > { %v957_v33 = vadd.f32 %v945_v28, %v849_v29  ;;  %v1057_v36 = vpop.f32.mrf.mxu1 }
 0x115   : > { %v1069_v41 = vadd.f32 %v1057_v36, %v957_v33 }
 0x11c   : > { %v1642_v31 = vpop.f32.mrf.mxu0 }
 0x11d   : > { %v1167_v35 = vadd.f32 %v1642_v31, %v1070_v30 }
 0x11e   : > { %v1151_v37 = vpop.f32.mrf.mxu0 }
 0x11f   : > { %v1476_v38 = vpack.c.bf16 %v1167_v35, %v1167_v35  ;;  %v1165_v39 = vadd.f32 %v1151_v37, %v1068_v32  ;;  %v1188_v47 = vmul.f32 %v1184_v42, %v1167_v35 }
 0x120   : > { %v1643_v40 = vpop.f32.mrf.mxu0 }
 0x121   : > { %1204 = vst [vmem:[%s235_s13 + $0x8] sm:$0xf] %v1476_v38  ;;  %v1186_v44 = vmul.f32 %v1174_v34, %v1165_v39  ;;  %v1216_v53 = vmul.f32 %v1188_v47, %v1167_v35 }
 0x122   : > { %v1154_v43 = vpop.f32.mrf.mxu0 }
 0x123   : > { %v1166_v45 = vadd.f32 %v1154_v43, %v1069_v41  ;;  %v1214_v50 = vmul.f32 %v1186_v44, %v1165_v39 }
 0x125   : > { %v1187_v48 = vmul.f32 %v1179_v46, %v1166_v45  ;;  %v1480_v49 = vpack.c.bf16 %v1166_v45, %v1165_v39 }
 0x127   : > { %1481 = vst [vmem:[%s235_s13] sm:$0xff] %v1480_v49   ;;  %v1205_v51 = vadd.f32 %v1187_v48, %v1186_v44  ;;  %v1215_v52 = vmul.f32 %v1187_v48, %v1166_v45 }
 0x129   : > { %v1206_v54 = vadd.f32 %v1205_v51, %v1188_v47  ;;  %v1217_v55 = vadd.f32 %v1215_v52, %v1214_v50 }
 0x12b   : > { %v1207_v56 = vrot.slane %v1206_v54, 4  ;;  %v1218_v57 = vadd.f32 %v1217_v55, %v1216_v53 }
 0x12d   : > { %v1208_v58 = vadd.f32 %v1207_v56, %v1206_v54  ;;  %v1219_v59 = vrot.slane %v1218_v57, 4 }
 0x12f   : > { %v1209_v60 = vrot.slane %v1208_v58, 2  ;;  %v1220_v61 = vadd.f32 %v1219_v59, %v1218_v57 }
 0x131   : > { %v1210_v62 = vadd.f32 %v1209_v60, %v1208_v58  ;;  %v1221_v63 = vrot.slane %v1220_v61, 2 }
 0x133   : > { %v1211_v0 = vrot.slane %v1210_v62, 1  ;;  %v1222_v1 = vadd.f32 %v1221_v63, %v1220_v61 }
 0x135   : > { %v1212_v2 = vadd.f32 %v1211_v0, %v1210_v62  ;;  %v1223_v3 = vrot.slane %v1222_v1, 1 }
 0x137   : > { %1213 = vst [vmem:[%s238_s16] sm:$0x1] %v1212_v2  ;;  %v1224_v4 = vadd.f32 %v1223_v3, %v1222_v1 }
 0x139   : > { %1225 = vst [vmem:[%s241_s21] sm:$0x1] %v1224_v4 }
 0x13a PF: > { %s16_s18 = sadd.s32 1, %s1712_s18  }
 0x13b   : > { %p13_p4 = scmp.ge.s32.totalorder %s16_s18, 4  }
 0x13d   :  { %15 = sbr.rel (!%p13_p4) target bundleno = 1 (0x1), region = 94 }

// kernel: resnet_forward.27
= control target key start
LH: loop header
LB: loop body
LE: loop exit
PB: predicated region body
PF: predicated region fallthrough
CT: control target
= control target key end

     0   :  { %s423_s15 = smov 0   ;;  %s460_s0 = inlined_call_operand.vmem [shape: bf16[2,24,128], index: 0, kind: input, shape index: {}]   ;;  %s461_s1 = inlined_call_operand.vmem [shape: f32[2,1,128], index: 1, kind: input, shape index: {}]   ;;  %s462_s2 = inlined_call_operand.vmem [shape: f32[2,1,128], index: 2, kind: input, shape index: {}]   ;;  %s463_s3 = inlined_call_operand.vmem [shape: bf16[2,24,128], index: 3, kind: input, shape index: {}]   ;;  %s464_s4 = inlined_call_operand.vmem [shape: bf16[2,24,128], index: 4, kind: output, shape index: {}]  }
   0x1 LB: > { %s350_s16 = sadd.s32 4294967295, %s396_s15   ;;  %p354_p0 = scmp.ge.s32.totalorder %s396_s15, 1  ;;  %s396_s15 = sphi %s423_s15, %s14_s15  }
   0x2   : > { %p172_p1 = scmp.lt.s32.totalorder %s396_s15, 3 }
   0x4   : > { %p173_p2 = pnand %p354_p0, %p172_p1 }
   0x5   : > { %p203_p3 = scmp.lt.s32.totalorder (!%p173_p2), %s350_s16, 1 }
   0x6   : > { %176 = sbr.rel (%p173_p2) target bundleno = 48 (0x30), region = 36 }
   0xb   : > { %v218_v0 = vld [vmem:[%s461_s1] sm:$0x1]  ;;  %v219_v1 = vld [vmem:[%s461_s1 + $0x1] sm:$0x1]  ;;  %vm220_vm0 = vcmask 1040384   ;;  %s466_s16 = smov (!%p203_p3, %s350_s16), 1  ;;  %v241_v14 = vlaneseq }
   0xc   : > { %v221_v2 = vsel %vm220_vm0, %v218_v0, 0.0  ;;  %v222_v3 = vsel %vm220_vm0, %v219_v1, 0.0  ;;  %v225_v4 = vld [vmem:[%s462_s2] sm:$0x1]  ;;  %v226_v5 = vld [vmem:[%s462_s2 + $0x1] sm:$0x1] }
   0xd   : > { %v223_v6 = vadd.f32 %v222_v3, %v221_v2  ;;  %v227_v7 = vsel %vm220_vm0, %v225_v4, 0.0  ;;  %v228_v8 = vsel %vm220_vm0, %v226_v5, 0.0  ;;  %s443_s25 = smul.u32 12, %s466_s16  ;;  %v242_v16 = vshrl.u32 %v241_v14, 7 }
   0xe   : > { %v229_v9 = vadd.f32 %v228_v8, %v227_v7 }
   0xf   : > { %v224_v10 = vmul.f32 0.03125, %v223_v6  ;;  %s207_s28 = scalar_lea.vmem %s460_s0, %s443_s25  ;;  %v243_v17 = vsub.s32 0, %v242_v16  ;;  %s212_s5 = scalar_lea.vmem %s463_s3, %s443_s25 }
  0x10   : > { %v230_v11 = vmul.f32 0.03125, %v229_v9  ;;  %v367_v18 = vld [vmem:[%s207_s28] sm:$0xff]   ;;  %v237_v19 = vld [vmem:[%s207_s28 + $0x8] sm:$0xf]  ;;  %s217_s8 = scalar_lea.vmem %s464_s4, %s443_s25 }
  0x11   : > { %v231_v12 = vmul.f32 %v224_v10, %v224_v10  ;;  %v368_v20 = vunpack.c.l.bf16 %v367_v18  ;;  %v369_v21 = vunpack.c.h.bf16 %v367_v18  ;;  %v244_v22 = vrot.slane %v224_v10, %v243_v17  ;;  %v371_v24 = vld [vmem:[%s212_s5] sm:$0xff]   ;;  %v257_v25 = vld [vmem:[%s212_s5 + $0x8] sm:$0xf] }
  0x12   : > { %v240_v23 = vunpack.c.l.bf16 %v237_v19  ;;  %v372_v31 = vunpack.c.l.bf16 %v371_v24  ;;  %v373_v32 = vunpack.c.h.bf16 %v371_v24  ;;  %v260_v33 = vunpack.c.l.bf16 %v257_v25 }
  0x13   : > { %v232_v13 = vsub.f32 %v230_v11, %v231_v12  ;;  %v245_v26 = vsub.f32 %v368_v20, %v244_v22  ;;  %v246_v27 = vsub.f32 %v369_v21, %v244_v22 }
  0x14   : > { %v247_v28 = vsub.f32 %v240_v23, %v244_v22 }
  0x15   : > { %v233_v15 = vadd.f32 1e-05, %v232_v13 }
  0x17   : > { %388 = vrsqrt.f32 %v233_v15 }
  0x24   : > { %v389_v29 = vpop.eup %388 }
  0x25   : > { %v251_v30 = vrot.slane %v389_v29, %v243_v17 }
  0x27   : > { %v252_v34 = vmul.f32 %v251_v30, %v245_v26  ;;  %v253_v35 = vmul.f32 %v251_v30, %v246_v27  ;;  %v254_v36 = vmul.f32 %v251_v30, %v247_v28 }
  0x29   : > { %v261_v37 = vadd.f32 %v372_v31, %v252_v34  ;;  %v262_v38 = vadd.f32 %v373_v32, %v253_v35  ;;  %v263_v39 = vadd.f32 %v260_v33, %v254_v36 }
  0x2b   : > { %v264_v40 = vmax.f32 %v261_v37, 0.0  ;;  %v265_v41 = vmax.f32 %v262_v38, 0.0  ;;  %v266_v42 = vmax.f32 %v263_v39, 0.0 }
  0x2d   : > { %v377_v43 = vpack.c.bf16 %v265_v41, %v264_v40  ;;  %v365_v44 = vpack.c.bf16 %v266_v42, %v266_v42 }
  0x2f   : > { %378 = vst [vmem:[%s217_s8] sm:$0xff] %v377_v43   ;;  %282 = vst [vmem:[%s217_s8 + $0x8] sm:$0xf] %v365_v44 }
  0x30 PF: > { %s14_s15 = sadd.s32 1, %s396_s15  }
  0x31   : > { %p11_p4 = scmp.ge.s32.totalorder %s14_s15, 4  }
  0x33   :  { %13 = sbr.rel (!%p11_p4) target bundleno = 1 (0x1), region = 69 }

// kernel: resnet_forward.28
= control target key start
LH: loop header
LB: loop body
LE: loop exit
PB: predicated region body
PF: predicated region fallthrough
CT: control target
= control target key end

     0   :  { %vm16_vm0 = vcmask 523264   ;;  %vm40_vm1 = vcmask 1041409   ;;  %vm43_vm2 = vcmask 517120   ;;  %s77_s0 = inlined_call_operand.vmem [shape: bf16[2,16,64], index: 0, kind: input, shape index: {}]   ;;  %s78_s1 = inlined_call_operand.vmem [shape: f32[2,64], index: 1, kind: output, shape index: {}]  }
   0x1   :  { %v50_v0 = vld [vmem:[%s77_s0] sm:$0xff]   ;;  %v57_v1 = vld [vmem:[%s77_s0 + $0x8] sm:$0xff]  }
   0x2   :  { %v51_v2 = vunpack.c.l.bf16 %v50_v0  ;;  %v52_v3 = vunpack.c.h.bf16 %v50_v0  ;;  %v55_v4 = vunpack.c.l.bf16 %v57_v1  ;;  %v56_v5 = vunpack.c.h.bf16 %v57_v1 }
   0x4   :  { %v17_v6 = vsel %vm16_vm0, %v51_v2, 0.0  ;;  %v18_v7 = vsel %vm16_vm0, %v52_v3, 0.0  ;;  %v26_v8 = vsel %vm16_vm0, %v55_v4, 0.0  ;;  %v27_v9 = vsel %vm16_vm0, %v56_v5, 0.0 }
   0x5   :  { %v19_v10 = vadd.f32 %v18_v7, %v17_v6  ;;  %v28_v11 = vadd.f32 %v27_v9, %v26_v8 }
   0x7   :  { %v20_v12 = vrot.slane %v19_v10, 4  ;;  %v29_v13 = vrot.slane %v28_v11, 4 }
   0x9   :  { %v21_v14 = vadd.f32 %v20_v12, %v19_v10  ;;  %v30_v15 = vadd.f32 %v29_v13, %v28_v11 }
   0xb   :  { %v22_v16 = vrot.slane %v21_v14, 2  ;;  %v31_v17 = vrot.slane %v30_v15, 2 }
   0xd   :  { %v23_v18 = vadd.f32 %v22_v16, %v21_v14  ;;  %v32_v19 = vadd.f32 %v31_v17, %v30_v15 }
   0xf   :  { %v24_v20 = vrot.slane %v23_v18, 1  ;;  %v33_v21 = vrot.slane %v32_v19, 1 }
  0x11   :  { %v25_v22 = vadd.f32 %v24_v20, %v23_v18  ;;  %v34_v23 = vadd.f32 %v33_v21, %v32_v19 }
  0x13   :  { %v36_v24 = vmul.f32 0.0625, %v25_v22  ;;  %v37_v25 = vmul.f32 0.0625, %v34_v23 }
  0x15   :  { %v41_v26 = vsel %vm40_vm1, %v37_v25, %v36_v24 }
  0x16   :  { %44 = vst.msk [vmem:[%s78_s1] sm:$0x3] %vm43_vm2, %v41_v26 }

// kernel: resnet_forward.29
= control target key start
LH: loop header
LB: loop body
LE: loop exit
PB: predicated region body
PF: predicated region fallthrough
CT: control target
= control target key end

     0   :  { %v176_v1 = vmov 0.0   ;;  %vm177_vm0 = vmmov 0   ;;  %s232_s0 = inlined_call_operand.vmem [shape: f32[2,64], index: 0, kind: input, shape index: {}]   ;;  %s233_s1 = inlined_call_operand.vmem [shape: f32[64,10], index: 1, kind: input, shape index: {}]   ;;  %s234_s2 = inlined_call_operand.vmem [shape: f32[1,10], index: 2, kind: input, shape index: {}]   ;;  %s235_s3 = inlined_call_operand.hbm [shape: f32[2,10], index: 3, kind: output, shape index: {}]  }
   0x1   :  { %v23_v0 = vld [vmem:[%s233_s1 + $0x38] sm:$0xff]  ;;  %132 = vmatprep.subr.mxu0 %v176_v1  ;;  %v22_v2 = vld [vmem:[%s233_s1 + $0x30] sm:$0xff]  ;;  %148 = vmatprep.mubr.msk.f32.mxu0 %vm177_vm0, %v176_v1  ;;  %v21_v3 = vld [vmem:[%s233_s1 + $0x28] sm:$0xff] }
   0x2   :  { %133 = vmatpush3.msra.mxu0 %v23_v0 }
   0x3   :  { %134 = vmatprep.subr.mxu0 %v176_v1 }
   0x4   :  { %8 = vsyncpa [#allocation3], 0  ;;  %135 = vmatpush3.msra.mxu0 %v22_v2  ;;  %v20_v4 = vld [vmem:[%s233_s1 + $0x20] sm:$0xff]  ;;  %v19_v5 = vld [vmem:[%s233_s1 + $0x18] sm:$0xff]  ;;  %vm31_vm1 = vcmask 523264   ;;  %s178_s5 = smov [#allocation2]  }
   0x5   :  { %136 = vmatprep.subr.mxu0 %v176_v1  ;;  %v18_v6 = vld [vmem:[%s233_s1 + $0x10] sm:$0xff]  ;;  %v17_v7 = vld [vmem:[%s233_s1 + $0x8] sm:$0xff]  ;;  %v16_v8 = vld [vmem:[%s233_s1] sm:$0xff]  ;;  %s113_s6 = sshll.u32 %s178_s5, 4  ;;  %vm105_vm2 = vcmask 74752   ;;  %s114_s6 = int_to_ptr.vmem [resolvable:$true] %s113_s6 }
   0x6   :  { %137 = vmatpush3.msra.mxu0 %v21_v3  ;;  %v15_v9 = vld [vmem:[%s232_s0] sm:$0x3]  ;;  %s154_s1 = scalar_lea.vmem %s114_s6, 32  ;;  %p159_p1 = scmp.lt.s32.totalorder %s114_s6, %s114_s6 }
   0x7   :  { %138 = vmatprep.subr.mxu0 %v176_v1  ;;  %v121_v10 = vld [vmem:[%s234_s2] ss:$0 sm:$0xff]  ;;  %p155_p0 = scmp.ne.s32.totalorder %s114_s6, %s154_s1  ;;  %p160_p2 = scmp.lt.s32.totalorder %s154_s1, %s154_s1 }
   0x8   :  { %139 = vmatpush3.msra.mxu0 %v20_v4 }
   0x9   :  { %140 = vmatprep.subr.mxu0 %v176_v1  ;;  %p161_p3 = por %p160_p2, %p159_p1 }
   0xa   :  { %141 = vmatpush3.msra.mxu0 %v19_v5 }
   0xb   :  { %142 = vmatprep.subr.mxu0 %v176_v1  ;;  %p162_p4 = pnand %p161_p3, %p155_p0 }
   0xc   :  { %143 = vmatpush3.msra.mxu0 %v18_v6 }
   0xd   :  { %144 = vmatprep.subr.mxu0 %v176_v1 }
   0xe   :  { %145 = vmatpush3.msra.mxu0 %v17_v7 }
   0xf   :  { %146 = vmatprep.subr.mxu0 %v176_v1 }
  0x10   :  { %147 = vmatpush3.msra.mxu0 %v16_v8 }
  0x11   :  { %149 = vmatmul.mubr.msk.f32.vlgmr.msra.gmra.mxu0 %vm31_vm1, %v15_v9 }
  0xd1   :  { %v101_v11 = vpop.f32.mrf.mxu0 }
  0xd2   :  { %v102_v12 = vadd.f32 %v121_v10, %v101_v11 }
  0xd3   :  { %v150_v13 = vpop.f32.mrf.mxu0 }
  0xd4   :  { %106 = vst.msk [vmem:[#allocation2] sm:$0x3] %vm105_vm2, %v102_v12 }
  0xd5   :  { %165 = shalt.err (!%p162_p4)
}
  0xd6   :  { %116 = dma.vmem_to_hbm [thread:$0]  %s114_s6, 32, %s235_s3, [#allocation3]  }
  0xd7   :  { %174 = dma.done.wait [#allocation3], 32  }
  0xd8   :  { %175 = vsyncadd [#allocation3], 4294967264 }
  0xd9   :  { %120 = vsyncpa [#allocation3], 1 }

</bundles_post_ra>
